<compile_context>
chip_gen: v7x
topology: tpu7x:2x2x1
jax: 0.10.0
libtpu: 0.0.40
codegen_flags: <defaults>
</compile_context>

<pallas_src>
import functools

import jax
import jax.numpy as jnp
from jax.experimental import pallas as pl
from jax.experimental.pallas import tpu as pltpu

BLOCK_B = 16  # batch elements per grid step; keep a multiple of 16


# ----------------------------------------------------------------------------
# Fused encoder kernel: one block of `bb` samples per grid step.
#
# Row layouts (position-major, batch-minor; `n` = sample within block):
#   cols1: row = (p*8+q)*bb + n,   col = (r*2+t)*K1 + (c*64 + ki*8 + kj)
#   act1 : row = (p*8+q)*bb + n,   lane = (r*2+t)*32 + c      (bf16, 128 lanes)
#          conv1 pixel (i1, j1) = (2p+r, 2q+t)
#   act2 : row = (i2*8+j2)*bb + n, lane = c2 (64)   (j2 >= 6 rows are garbage,
#          row-groups >= 48 are zeroed padding; neither feeds valid outputs)
#   act3 : row = (i3*8+j3)*bb + n, lane = c3 (32)   (j3 >= 4 rows are garbage)
# ----------------------------------------------------------------------------
def _encoder_kernel(cols1_ref, w1_ref, b1_ref, w2_ref, b2_ref, w3_ref, b3_ref,
                    w4_ref, b4_ref, w5_ref, b5_ref, out_ref,
                    act1_ref, act2_ref, *, bb):
    f32 = jnp.float32
    bf16 = jnp.bfloat16

    # ---- conv1: single matmul with block-diagonal weight -> lane-packed act1.
    y1 = jnp.dot(cols1_ref[0], w1_ref[...], preferred_element_type=f32)
    act1_ref[...] = jnp.maximum(y1 + b1_ref[...], 0.0).astype(bf16)  # (64*bb,128)

    # ---- conv2 (4x4, stride 2): 4 shifted matmuls with K=128, f32 accum.
    acc2 = None
    for a in range(2):
        for b in range(2):
            off = (a * 8 + b) * bb
            part = jnp.dot(act1_ref[off:off + 48 * bb, :], w2_ref[a * 2 + b],
                           preferred_element_type=f32)
            acc2 = part if acc2 is None else acc2 + part
    act2_ref[0:48 * bb, :] = jnp.maximum(acc2 + b2_ref[...], 0.0).astype(bf16)
    # Zero the padding row-groups (48..63): conv3 windows read up to group 49;
    # keeps garbage reads finite and deterministic every grid step.
    act2_ref[48 * bb:64 * bb, :] = jnp.zeros((16 * bb, 64), bf16)

    # ---- conv3 (3x3, stride 1): 9 shifted matmuls, f32 accum.
    acc3 = None
    for ki in range(3):
        for kj in range(3):
            off = (ki * 8 + kj) * bb
            part = jnp.dot(act2_ref[off:off + 32 * bb, :], w3_ref[ki * 3 + kj],
                           preferred_element_type=f32)
            acc3 = part if acc3 is None else acc3 + part
    act3 = jnp.maximum(acc3 + b3_ref[...], 0.0).astype(bf16)          # (32*bb, 32)

    # ---- fc1: 16 per-pixel matmuls, each (bb, 32) x (32, latent).
    # PyTorch's (C, H, W) flatten order is folded into w4 at prep time.
    acc4 = None
    for h in range(4):
        for w in range(4):
            u = h * 8 + w
            part = jnp.dot(act3[u * bb:(u + 1) * bb, :], w4_ref[h * 4 + w],
                           preferred_element_type=f32)
            acc4 = part if acc4 is None else acc4 + part
    y4 = jnp.maximum(acc4 + b4_ref[...], 0.0)                         # (bb, latent)

    # ---- fc2 (+ final ReLU, as in AtariNatureEncoder.forward) + single store.
    y5 = jnp.dot(y4, w5_ref[...], preferred_element_type=f32) + b5_ref[...]
    y5 = jnp.maximum(y5, 0.0)                                         # (bb, 1)
    out_ref[...] = jnp.broadcast_to(y5, (bb, 128))


def encoder_forward(prep, cols1, bb):
    """cols1: (nb, 64*bb, 4*C*64) bf16 patches -> (nb*bb, 128) f32 (lane 0 = V)."""
    nb, _, k4 = cols1.shape
    latent = prep["b4"].shape[1]

    return pl.pallas_call(
        functools.partial(_encoder_kernel, bb=bb),
        out_shape=jax.ShapeDtypeStruct((nb * bb, 128), jnp.float32),
        grid=(nb,),
        in_specs=[
            pl.BlockSpec((1, 64 * bb, k4), lambda g: (g, 0, 0)),      # cols1
            pl.BlockSpec((k4, 128), lambda g: (0, 0)),                # w1 (blockdiag)
            pl.BlockSpec((1, 128), lambda g: (0, 0)),                 # b1 (tiled x4)
            pl.BlockSpec((4, 128, 64), lambda g: (0, 0, 0)),          # w2 slabs
            pl.BlockSpec((1, 64), lambda g: (0, 0)),                  # b2
            pl.BlockSpec((9, 64, 32), lambda g: (0, 0, 0)),           # w3 slabs
            pl.BlockSpec((1, 32), lambda g: (0, 0)),                  # b3
            pl.BlockSpec((16, 32, latent), lambda g: (0, 0, 0)),      # w4 slabs
            pl.BlockSpec((1, latent), lambda g: (0, 0)),              # b4
            pl.BlockSpec((latent, 1), lambda g: (0, 0)),              # w5
            pl.BlockSpec((1, 1), lambda g: (0, 0)),                   # b5
        ],
        out_specs=pl.BlockSpec((bb, 128), lambda g: (g, 0)),
        scratch_shapes=[
            pltpu.VMEM((64 * bb, 128), jnp.bfloat16),   # act1 (lane-packed)
            pltpu.VMEM((64 * bb, 64), jnp.bfloat16),    # act2 (groups>=48 zeroed)
        ],
        compiler_params=pltpu.CompilerParams(
            dimension_semantics=("parallel",),
            vmem_limit_bytes=32 * 1024 * 1024),
    )(cols1, prep["w1"], prep["b1"], prep["w2"], prep["b2"],
      prep["w3"], prep["b3"], prep["w4"], prep["b4"],
      prep["w5"], prep["b5"])


# ----------------------------------------------------------------------------
# conv1 im2col (XLA, on the raw input), block-interleaved + residue-packed cols.
# ----------------------------------------------------------------------------
def _build_cols1(x, bb):
    """x: (N, C, 64, 64) f32 -> (nb, 64*bb, 4*C*64) bf16.

    Row  = (p*8 + q)*bb + n_local.
    Col  = (r*2 + t)*(C*64) + (c*64 + ki*8 + kj); the residue block (r, t)
           holds the 8x8 patch of conv1 output pixel (2p+r, 2q+t); pixels with
           i1 == 15 or j1 == 15 are zero padding (never read for valid outputs).
    """
    n, c, h, w = x.shape
    assert h == 64 and w == 64, "VMlpModel conv stack assumes 64x64 frames"
    nb = -(-n // bb)
    npad = nb * bb
    if npad != n:
        x = jnp.pad(x, ((0, npad - n), (0, 0), (0, 0), (0, 0)))
    k1 = c * 64
    pats = [x[:, :, ki:ki + 57:4, kj:kj + 57:4]
            for ki in range(8) for kj in range(8)]                 # (npad,C,15,15)
    cols = jnp.stack(pats, axis=2).reshape(npad, k1, 15, 15)
    cols = jnp.pad(cols, ((0, 0), (0, 0), (0, 1), (0, 1)))         # (npad,f,16,16)
    cols = cols.reshape(npad, k1, 8, 2, 8, 2)                      # (N,f,p,r,q,t)
    cols = cols.transpose(0, 2, 4, 3, 5, 1)                        # (N,p,q,r,t,f)
    cols = cols.reshape(nb, bb, 64, 4 * k1)                        # (nb,n,pq,col)
    cols = cols.transpose(0, 2, 1, 3)                              # (nb,pq,n,col)
    return cols.reshape(nb, 64 * bb, 4 * k1).astype(jnp.bfloat16)


# ----------------------------------------------------------------------------
# Parameter init (orthogonal, gain=sqrt(2), zero bias) + one-time prep.
# ----------------------------------------------------------------------------
def init_params(key, img_channels, latent_size):
    gain = float(jnp.sqrt(2.0))  # nn.init.calculate_gain('relu')
    ks = jax.random.split(key, 5)
    orth = jax.nn.initializers.orthogonal
    p = {}
    p["w1"] = orth(scale=gain)(ks[0], (32, img_channels * 64),
                               jnp.float32).reshape(32, img_channels, 8, 8)
    p["b1"] = jnp.zeros((32,), jnp.float32)
    p["w2"] = orth(scale=gain)(ks[1], (64, 32 * 16),
                               jnp.float32).reshape(64, 32, 4, 4)
    p["b2"] = jnp.zeros((64,), jnp.float32)
    p["w3"] = orth(scale=gain)(ks[2], (32, 64 * 9),
                               jnp.float32).reshape(32, 64, 3, 3)
    p["b3"] = jnp.zeros((32,), jnp.float32)
    p["w4"] = orth(scale=gain)(ks[3], (latent_size, 512), jnp.float32)
    p["b4"] = jnp.zeros((latent_size,), jnp.float32)
    p["w5"] = orth(scale=gain)(ks[4], (1, latent_size), jnp.float32)
    p["b5"] = jnp.zeros((1,), jnp.float32)
    return p


def prepare_params(p):
    """One-time (off the hot path) weight layout prep + bf16 cast."""
    c_in = p["w1"].shape[1]
    latent = p["w4"].shape[0]
    k1 = c_in * 64
    bf16, f32 = jnp.bfloat16, jnp.float32

    # conv1 as a block-diagonal (4*K1, 128) matrix: residue class (r,t) maps
    # its patch columns to lanes [(r*2+t)*32, +32) -> act1 comes out lane-packed.
    w1t = p["w1"].reshape(32, k1).T.astype(f32)                    # (K1, 32)
    w1bd = jnp.zeros((4 * k1, 128), f32)
    for rt in range(4):
        w1bd = w1bd.at[rt * k1:(rt + 1) * k1, rt * 32:(rt + 1) * 32].set(w1t)

    return {
        "w1": w1bd.astype(bf16),
        "b1": jnp.tile(p["b1"], 4).reshape(1, 128).astype(f32),
        # conv2: slab[a*2+b][(r*2+t)*32 + c, o] = w2[o, c, 2a+r, 2b+t]
        "w2": jnp.transpose(p["w2"].reshape(64, 32, 2, 2, 2, 2),
                            (2, 4, 3, 5, 1, 0)).reshape(4, 128, 64).astype(bf16),
        "b2": p["b2"].reshape(1, 64).astype(f32),
        # conv3: slab[ki*3+kj][c, o] = w3[o, c, ki, kj]
        "w3": jnp.transpose(p["w3"], (2, 3, 1, 0)).reshape(9, 64, 32).astype(bf16),
        "b3": p["b3"].reshape(1, 32).astype(f32),
        # fc1 regrouped per conv3 output pixel (folds PyTorch (C,H,W) flatten).
        "w4": jnp.transpose(p["w4"].reshape(latent, 32, 4, 4),
                            (2, 3, 1, 0)).reshape(16, 32, latent).astype(bf16),
        "b4": p["b4"].reshape(1, latent).astype(f32),
        "w5": p["w5"].T.astype(f32),                                # (latent, 1)
        "b5": p["b5"].reshape(1, 1).astype(f32),
    }


# ----------------------------------------------------------------------------
# VMlpModel.forward: infer/restore leading dims around the fused encoder.
# ----------------------------------------------------------------------------
def vmlp_forward(prep, observation, prev_action=None, prev_reward=None,
                 obs_ndim=3, block_b=BLOCK_B):
    lead_dims = observation.shape[:observation.ndim - obs_ndim]
    img_shape = observation.shape[observation.ndim - obs_ndim:]
    tb = 1
    for d in lead_dims:
        tb *= d
    obs = observation.reshape((tb,) + img_shape)
    cols1 = _build_cols1(obs, block_b)
    out = encoder_forward(prep, cols1, block_b)       # (nb*block_b, 128)
    v = out[:tb, 0:1]                                 # (T*B, 1)
    return v.reshape(lead_dims + (1,))


# ----------------------------------------------------------------------------
# Pure-JAX f32 reference (loose bf16-level cross-check).
# ----------------------------------------------------------------------------
def _reference_forward(params, obs):
    dn = ("NCHW", "OIHW", "NCHW")
    x = jax.lax.conv_general_dilated(obs, params["w1"], (4, 4), "VALID",
                                     dimension_numbers=dn)
    x = jax.nn.relu(x + params["b1"].reshape(1, -1, 1, 1))
    x = jax.lax.conv_general_dilated(x, params["w2"], (2, 2), "VALID",
                                     dimension_numbers=dn)
    x = jax.nn.relu(x + params["b2"].reshape(1, -1, 1, 1))
    x = jax.lax.conv_general_dilated(x, params["w3"], (1, 1), "VALID",
                                     dimension_numbers=dn)
    x = jax.nn.relu(x + params["b3"].reshape(1, -1, 1, 1))
    x = x.reshape(x.shape[0], -1)
    x = jax.nn.relu(x @ params["w4"].T + params["b4"])
    x = jax.nn.relu(x @ params["w5"].T + params["b5"])
    return x


if __name__ == "__main__":
    key = jax.random.PRNGKey(0)
    k_obs, k_param = jax.random.split(key)

    B, C, H, W = 2, 4, 64, 64        # 64x64 frames so fc1 sees 32*4*4 = 512
    latent_size = 32

    observation = jax.random.normal(k_obs, (B, C, H, W), dtype=jnp.float32)
    prev_action = jnp.zeros((B,), jnp.float32)   # unused by forward (as in module)
    prev_reward = jnp.zeros((B,), jnp.float32)   # unused by forward (as in module)

    params = init_params(k_param, C, latent_size)
    prep = prepare_params(params)                # hoisted weight prep

    fwd = jax.jit(vmlp_forward)
    v = fwd(prep, observation, prev_action, prev_reward)
    jax.block_until_ready(v)

    assert v.shape == (B, 1), v.shape
    assert bool(jnp.all(jnp.isfinite(v)))

    # bf16 MXU operands + f32 accumulation => loose tolerance vs f32 reference.
    v_ref = _reference_forward(params, observation)
    assert jnp.allclose(v, v_ref, rtol=0.1, atol=0.1), (v, v_ref)

    print("KERNEL_OK")
</pallas_src>

<mosaic_0001>
module attributes {stable_mosaic.version = 11 : i64} {
  func.func @_encoder_kernel(%arg0: i32, %arg1: memref<1x1024x1024xbf16, #tpu.memory_space<vmem>>, %arg2: memref<1024x128xbf16, #tpu.memory_space<vmem>>, %arg3: memref<1x128xf32, #tpu.memory_space<vmem>>, %arg4: memref<4x128x64xbf16, #tpu.memory_space<vmem>>, %arg5: memref<1x64xf32, #tpu.memory_space<vmem>>, %arg6: memref<9x64x32xbf16, #tpu.memory_space<vmem>>, %arg7: memref<1x32xf32, #tpu.memory_space<vmem>>, %arg8: memref<16x32x32xbf16, #tpu.memory_space<vmem>>, %arg9: memref<1x32xf32, #tpu.memory_space<vmem>>, %arg10: memref<32x1xf32, #tpu.memory_space<vmem>>, %arg11: memref<1x1xf32, #tpu.memory_space<vmem>>, %arg12: memref<16x128xf32, #tpu.memory_space<vmem>>, %arg13: memref<1024x128xbf16, #tpu.memory_space<vmem>>, %arg14: memref<1024x64xbf16, #tpu.memory_space<vmem>>) attributes {dimension_semantics = [#tpu.dimension_semantics<parallel>], iteration_bounds = array<i64: 1>, scalar_prefetch = 0 : i64, scratch_operands = 2 : i64, tpu.core_type = #tpu.core_type<tc>, window_params = [{transform_indices = @transform_0, window_bounds = array<i64: 1, 1024, 1024>}, {pipeline_mode = #tpu.pipeline_mode<synchronous>, transform_indices = @transform_1, window_bounds = array<i64: 1024, 128>}, {pipeline_mode = #tpu.pipeline_mode<synchronous>, transform_indices = @transform_2, window_bounds = array<i64: 1, 128>}, {pipeline_mode = #tpu.pipeline_mode<synchronous>, transform_indices = @transform_3, window_bounds = array<i64: 4, 128, 64>}, {pipeline_mode = #tpu.pipeline_mode<synchronous>, transform_indices = @transform_4, window_bounds = array<i64: 1, 64>}, {pipeline_mode = #tpu.pipeline_mode<synchronous>, transform_indices = @transform_5, window_bounds = array<i64: 9, 64, 32>}, {pipeline_mode = #tpu.pipeline_mode<synchronous>, transform_indices = @transform_6, window_bounds = array<i64: 1, 32>}, {pipeline_mode = #tpu.pipeline_mode<synchronous>, transform_indices = @transform_7, window_bounds = array<i64: 16, 32, 32>}, {pipeline_mode = #tpu.pipeline_mode<synchronous>, transform_indices = @transform_8, window_bounds = array<i64: 1, 32>}, {pipeline_mode = #tpu.pipeline_mode<synchronous>, transform_indices = @transform_9, window_bounds = array<i64: 32, 1>}, {pipeline_mode = #tpu.pipeline_mode<synchronous>, transform_indices = @transform_10, window_bounds = array<i64: 1, 1>}, {transform_indices = @transform_11, window_bounds = array<i64: 16, 128>}]} {
    %c0 = arith.constant 0 : index
    %c0_0 = arith.constant 0 : index
    %c0_1 = arith.constant 0 : index
    %0 = vector.load %arg1[%c0, %c0_0, %c0_1] : memref<1x1024x1024xbf16, #tpu.memory_space<vmem>>, vector<1x1024x1024xbf16>
    %1 = vector.shape_cast %0 : vector<1x1024x1024xbf16> to vector<1024x1024xbf16>
    %c0_2 = arith.constant 0 : index
    %c0_3 = arith.constant 0 : index
    %2 = vector.load %arg2[%c0_2, %c0_3] : memref<1024x128xbf16, #tpu.memory_space<vmem>>, vector<1024x128xbf16>
    %cst = arith.constant dense<0.000000e+00> : vector<1024x128xf32>
    %3 = tpu.matmul %1, %2, %cst {dimension_numbers = #tpu.dot_dimension_numbers<[1], [0], [0], [1], [0, 0, 1, 1], [], []>} : vector<1024x1024xbf16>, vector<1024x128xbf16>, vector<1024x128xf32> -> vector<1024x128xf32>
    %c0_4 = arith.constant 0 : index
    %c0_5 = arith.constant 0 : index
    %4 = vector.load %arg3[%c0_4, %c0_5] : memref<1x128xf32, #tpu.memory_space<vmem>>, vector<1x128xf32>
    %5 = vector.broadcast %4 : vector<1x128xf32> to vector<1024x128xf32>
    %6 = arith.addf %3, %5 : vector<1024x128xf32>
    %cst_6 = arith.constant 0.000000e+00 : f32
    %7 = vector.broadcast %cst_6 : f32 to vector<1024x128xf32>
    %8 = arith.maximumf %6, %7 : vector<1024x128xf32>
    %9 = arith.truncf %8 : vector<1024x128xf32> to vector<1024x128xbf16>
    %c0_7 = arith.constant 0 : index
    %c0_8 = arith.constant 0 : index
    %10 = vector.load %arg13[%c0_7, %c0_8] : memref<1024x128xbf16, #tpu.memory_space<vmem>>, vector<1024x128xbf16>
    tpu.vector_store %arg13[%c0_7, %c0_8], %9 {strides = array<i32>} : memref<1024x128xbf16, #tpu.memory_space<vmem>>, vector<1024x128xbf16>,
    %c0_9 = arith.constant 0 : index
    %c0_10 = arith.constant 0 : index
    %11 = vector.load %arg13[%c0_9, %c0_10] : memref<1024x128xbf16, #tpu.memory_space<vmem>>, vector<768x128xbf16>
    %c0_11 = arith.constant 0 : index
    %c0_12 = arith.constant 0 : index
    %c0_13 = arith.constant 0 : index
    %12 = vector.load %arg4[%c0_11, %c0_12, %c0_13] : memref<4x128x64xbf16, #tpu.memory_space<vmem>>, vector<1x128x64xbf16>
    %13 = vector.shape_cast %12 : vector<1x128x64xbf16> to vector<128x64xbf16>
    %cst_14 = arith.constant dense<0.000000e+00> : vector<768x64xf32>
    %14 = tpu.matmul %11, %13, %cst_14 {dimension_numbers = #tpu.dot_dimension_numbers<[1], [0], [0], [1], [0, 0, 1, 1], [], []>} : vector<768x128xbf16>, vector<128x64xbf16>, vector<768x64xf32> -> vector<768x64xf32>
    %c16 = arith.constant 16 : index
    %c0_15 = arith.constant 0 : index
    %15 = vector.load %arg13[%c16, %c0_15] : memref<1024x128xbf16, #tpu.memory_space<vmem>>, vector<768x128xbf16>
    %c1 = arith.constant 1 : index
    %c0_16 = arith.constant 0 : index
    %c0_17 = arith.constant 0 : index
    %16 = vector.load %arg4[%c1, %c0_16, %c0_17] : memref<4x128x64xbf16, #tpu.memory_space<vmem>>, vector<1x128x64xbf16>
    %17 = vector.shape_cast %16 : vector<1x128x64xbf16> to vector<128x64xbf16>
    %cst_18 = arith.constant dense<0.000000e+00> : vector<768x64xf32>
    %18 = tpu.matmul %15, %17, %cst_18 {dimension_numbers = #tpu.dot_dimension_numbers<[1], [0], [0], [1], [0, 0, 1, 1], [], []>} : vector<768x128xbf16>, vector<128x64xbf16>, vector<768x64xf32> -> vector<768x64xf32>
    %19 = arith.addf %14, %18 : vector<768x64xf32>
    %c128 = arith.constant 128 : index
    %c0_19 = arith.constant 0 : index
    %20 = vector.load %arg13[%c128, %c0_19] : memref<1024x128xbf16, #tpu.memory_space<vmem>>, vector<768x128xbf16>
    %c2 = arith.constant 2 : index
    %c0_20 = arith.constant 0 : index
    %c0_21 = arith.constant 0 : index
    %21 = vector.load %arg4[%c2, %c0_20, %c0_21] : memref<4x128x64xbf16, #tpu.memory_space<vmem>>, vector<1x128x64xbf16>
    %22 = vector.shape_cast %21 : vector<1x128x64xbf16> to vector<128x64xbf16>
    %cst_22 = arith.constant dense<0.000000e+00> : vector<768x64xf32>
    %23 = tpu.matmul %20, %22, %cst_22 {dimension_numbers = #tpu.dot_dimension_numbers<[1], [0], [0], [1], [0, 0, 1, 1], [], []>} : vector<768x128xbf16>, vector<128x64xbf16>, vector<768x64xf32> -> vector<768x64xf32>
    %24 = arith.addf %19, %23 : vector<768x64xf32>
    %c144 = arith.constant 144 : index
    %c0_23 = arith.constant 0 : index
    %25 = vector.load %arg13[%c144, %c0_23] : memref<1024x128xbf16, #tpu.memory_space<vmem>>, vector<768x128xbf16>
    %c3 = arith.constant 3 : index
    %c0_24 = arith.constant 0 : index
    %c0_25 = arith.constant 0 : index
    %26 = vector.load %arg4[%c3, %c0_24, %c0_25] : memref<4x128x64xbf16, #tpu.memory_space<vmem>>, vector<1x128x64xbf16>
    %27 = vector.shape_cast %26 : vector<1x128x64xbf16> to vector<128x64xbf16>
    %cst_26 = arith.constant dense<0.000000e+00> : vector<768x64xf32>
    %28 = tpu.matmul %25, %27, %cst_26 {dimension_numbers = #tpu.dot_dimension_numbers<[1], [0], [0], [1], [0, 0, 1, 1], [], []>} : vector<768x128xbf16>, vector<128x64xbf16>, vector<768x64xf32> -> vector<768x64xf32>
    %29 = arith.addf %24, %28 : vector<768x64xf32>
    %c0_27 = arith.constant 0 : index
    %c0_28 = arith.constant 0 : index
    %30 = vector.load %arg5[%c0_27, %c0_28] : memref<1x64xf32, #tpu.memory_space<vmem>>, vector<1x64xf32>
    %31 = vector.broadcast %30 : vector<1x64xf32> to vector<768x64xf32>
    %32 = arith.addf %29, %31 : vector<768x64xf32>
    %cst_29 = arith.constant 0.000000e+00 : f32
    %33 = vector.broadcast %cst_29 : f32 to vector<768x64xf32>
    %34 = arith.maximumf %32, %33 : vector<768x64xf32>
    %35 = arith.truncf %34 : vector<768x64xf32> to vector<768x64xbf16>
    %c0_30 = arith.constant 0 : index
    %c0_31 = arith.constant 0 : index
    %36 = vector.load %arg14[%c0_30, %c0_31] : memref<1024x64xbf16, #tpu.memory_space<vmem>>, vector<768x64xbf16>
    tpu.vector_store %arg14[%c0_30, %c0_31], %35 {strides = array<i32>} : memref<1024x64xbf16, #tpu.memory_space<vmem>>, vector<768x64xbf16>,
    %cst_32 = arith.constant 0.000000e+00 : bf16
    %37 = vector.broadcast %cst_32 : bf16 to vector<256x64xbf16>
    %c768 = arith.constant 768 : index
    %c0_33 = arith.constant 0 : index
    %38 = vector.load %arg14[%c768, %c0_33] : memref<1024x64xbf16, #tpu.memory_space<vmem>>, vector<256x64xbf16>
    tpu.vector_store %arg14[%c768, %c0_33], %37 {strides = array<i32>} : memref<1024x64xbf16, #tpu.memory_space<vmem>>, vector<256x64xbf16>,
    %c0_34 = arith.constant 0 : index
    %c0_35 = arith.constant 0 : index
    %39 = vector.load %arg14[%c0_34, %c0_35] : memref<1024x64xbf16, #tpu.memory_space<vmem>>, vector<512x64xbf16>
    %c0_36 = arith.constant 0 : index
    %c0_37 = arith.constant 0 : index
    %c0_38 = arith.constant 0 : index
    %40 = vector.load %arg6[%c0_36, %c0_37, %c0_38] : memref<9x64x32xbf16, #tpu.memory_space<vmem>>, vector<1x64x32xbf16>
    %41 = vector.shape_cast %40 : vector<1x64x32xbf16> to vector<64x32xbf16>
    %cst_39 = arith.constant dense<0.000000e+00> : vector<512x32xf32>
    %42 = tpu.matmul %39, %41, %cst_39 {dimension_numbers = #tpu.dot_dimension_numbers<[1], [0], [0], [1], [0, 0, 1, 1], [], []>} : vector<512x64xbf16>, vector<64x32xbf16>, vector<512x32xf32> -> vector<512x32xf32>
    %c16_40 = arith.constant 16 : index
    %c0_41 = arith.constant 0 : index
    %43 = vector.load %arg14[%c16_40, %c0_41] : memref<1024x64xbf16, #tpu.memory_space<vmem>>, vector<512x64xbf16>
    %c1_42 = arith.constant 1 : index
    %c0_43 = arith.constant 0 : index
    %c0_44 = arith.constant 0 : index
    %44 = vector.load %arg6[%c1_42, %c0_43, %c0_44] : memref<9x64x32xbf16, #tpu.memory_space<vmem>>, vector<1x64x32xbf16>
    %45 = vector.shape_cast %44 : vector<1x64x32xbf16> to vector<64x32xbf16>
    %cst_45 = arith.constant dense<0.000000e+00> : vector<512x32xf32>
    %46 = tpu.matmul %43, %45, %cst_45 {dimension_numbers = #tpu.dot_dimension_numbers<[1], [0], [0], [1], [0, 0, 1, 1], [], []>} : vector<512x64xbf16>, vector<64x32xbf16>, vector<512x32xf32> -> vector<512x32xf32>
    %47 = arith.addf %42, %46 : vector<512x32xf32>
    %c32 = arith.constant 32 : index
    %c0_46 = arith.constant 0 : index
    %48 = vector.load %arg14[%c32, %c0_46] : memref<1024x64xbf16, #tpu.memory_space<vmem>>, vector<512x64xbf16>
    %c2_47 = arith.constant 2 : index
    %c0_48 = arith.constant 0 : index
    %c0_49 = arith.constant 0 : index
    %49 = vector.load %arg6[%c2_47, %c0_48, %c0_49] : memref<9x64x32xbf16, #tpu.memory_space<vmem>>, vector<1x64x32xbf16>
    %50 = vector.shape_cast %49 : vector<1x64x32xbf16> to vector<64x32xbf16>
    %cst_50 = arith.constant dense<0.000000e+00> : vector<512x32xf32>
    %51 = tpu.matmul %48, %50, %cst_50 {dimension_numbers = #tpu.dot_dimension_numbers<[1], [0], [0], [1], [0, 0, 1, 1], [], []>} : vector<512x64xbf16>, vector<64x32xbf16>, vector<512x32xf32> -> vector<512x32xf32>
    %52 = arith.addf %47, %51 : vector<512x32xf32>
    %c128_51 = arith.constant 128 : index
    %c0_52 = arith.constant 0 : index
    %53 = vector.load %arg14[%c128_51, %c0_52] : memref<1024x64xbf16, #tpu.memory_space<vmem>>, vector<512x64xbf16>
    %c3_53 = arith.constant 3 : index
    %c0_54 = arith.constant 0 : index
    %c0_55 = arith.constant 0 : index
    %54 = vector.load %arg6[%c3_53, %c0_54, %c0_55] : memref<9x64x32xbf16, #tpu.memory_space<vmem>>, vector<1x64x32xbf16>
    %55 = vector.shape_cast %54 : vector<1x64x32xbf16> to vector<64x32xbf16>
    %cst_56 = arith.constant dense<0.000000e+00> : vector<512x32xf32>
    %56 = tpu.matmul %53, %55, %cst_56 {dimension_numbers = #tpu.dot_dimension_numbers<[1], [0], [0], [1], [0, 0, 1, 1], [], []>} : vector<512x64xbf16>, vector<64x32xbf16>, vector<512x32xf32> -> vector<512x32xf32>
    %57 = arith.addf %52, %56 : vector<512x32xf32>
    %c144_57 = arith.constant 144 : index
    %c0_58 = arith.constant 0 : index
    %58 = vector.load %arg14[%c144_57, %c0_58] : memref<1024x64xbf16, #tpu.memory_space<vmem>>, vector<512x64xbf16>
    %c4 = arith.constant 4 : index
    %c0_59 = arith.constant 0 : index
    %c0_60 = arith.constant 0 : index
    %59 = vector.load %arg6[%c4, %c0_59, %c0_60] : memref<9x64x32xbf16, #tpu.memory_space<vmem>>, vector<1x64x32xbf16>
    %60 = vector.shape_cast %59 : vector<1x64x32xbf16> to vector<64x32xbf16>
    %cst_61 = arith.constant dense<0.000000e+00> : vector<512x32xf32>
    %61 = tpu.matmul %58, %60, %cst_61 {dimension_numbers = #tpu.dot_dimension_numbers<[1], [0], [0], [1], [0, 0, 1, 1], [], []>} : vector<512x64xbf16>, vector<64x32xbf16>, vector<512x32xf32> -> vector<512x32xf32>
    %62 = arith.addf %57, %61 : vector<512x32xf32>
    %c160 = arith.constant 160 : index
    %c0_62 = arith.constant 0 : index
    %63 = vector.load %arg14[%c160, %c0_62] : memref<1024x64xbf16, #tpu.memory_space<vmem>>, vector<512x64xbf16>
    %c5 = arith.constant 5 : index
    %c0_63 = arith.constant 0 : index
    %c0_64 = arith.constant 0 : index
    %64 = vector.load %arg6[%c5, %c0_63, %c0_64] : memref<9x64x32xbf16, #tpu.memory_space<vmem>>, vector<1x64x32xbf16>
    %65 = vector.shape_cast %64 : vector<1x64x32xbf16> to vector<64x32xbf16>
    %cst_65 = arith.constant dense<0.000000e+00> : vector<512x32xf32>
    %66 = tpu.matmul %63, %65, %cst_65 {dimension_numbers = #tpu.dot_dimension_numbers<[1], [0], [0], [1], [0, 0, 1, 1], [], []>} : vector<512x64xbf16>, vector<64x32xbf16>, vector<512x32xf32> -> vector<512x32xf32>
    %67 = arith.addf %62, %66 : vector<512x32xf32>
    %c256 = arith.constant 256 : index
    %c0_66 = arith.constant 0 : index
    %68 = vector.load %arg14[%c256, %c0_66] : memref<1024x64xbf16, #tpu.memory_space<vmem>>, vector<512x64xbf16>
    %c6 = arith.constant 6 : index
    %c0_67 = arith.constant 0 : index
    %c0_68 = arith.constant 0 : index
    %69 = vector.load %arg6[%c6, %c0_67, %c0_68] : memref<9x64x32xbf16, #tpu.memory_space<vmem>>, vector<1x64x32xbf16>
    %70 = vector.shape_cast %69 : vector<1x64x32xbf16> to vector<64x32xbf16>
    %cst_69 = arith.constant dense<0.000000e+00> : vector<512x32xf32>
    %71 = tpu.matmul %68, %70, %cst_69 {dimension_numbers = #tpu.dot_dimension_numbers<[1], [0], [0], [1], [0, 0, 1, 1], [], []>} : vector<512x64xbf16>, vector<64x32xbf16>, vector<512x32xf32> -> vector<512x32xf32>
    %72 = arith.addf %67, %71 : vector<512x32xf32>
    %c272 = arith.constant 272 : index
    %c0_70 = arith.constant 0 : index
    %73 = vector.load %arg14[%c272, %c0_70] : memref<1024x64xbf16, #tpu.memory_space<vmem>>, vector<512x64xbf16>
    %c7 = arith.constant 7 : index
    %c0_71 = arith.constant 0 : index
    %c0_72 = arith.constant 0 : index
    %74 = vector.load %arg6[%c7, %c0_71, %c0_72] : memref<9x64x32xbf16, #tpu.memory_space<vmem>>, vector<1x64x32xbf16>
    %75 = vector.shape_cast %74 : vector<1x64x32xbf16> to vector<64x32xbf16>
    %cst_73 = arith.constant dense<0.000000e+00> : vector<512x32xf32>
    %76 = tpu.matmul %73, %75, %cst_73 {dimension_numbers = #tpu.dot_dimension_numbers<[1], [0], [0], [1], [0, 0, 1, 1], [], []>} : vector<512x64xbf16>, vector<64x32xbf16>, vector<512x32xf32> -> vector<512x32xf32>
    %77 = arith.addf %72, %76 : vector<512x32xf32>
    %c288 = arith.constant 288 : index
    %c0_74 = arith.constant 0 : index
    %78 = vector.load %arg14[%c288, %c0_74] : memref<1024x64xbf16, #tpu.memory_space<vmem>>, vector<512x64xbf16>
    %c8 = arith.constant 8 : index
    %c0_75 = arith.constant 0 : index
    %c0_76 = arith.constant 0 : index
    %79 = vector.load %arg6[%c8, %c0_75, %c0_76] : memref<9x64x32xbf16, #tpu.memory_space<vmem>>, vector<1x64x32xbf16>
    %80 = vector.shape_cast %79 : vector<1x64x32xbf16> to vector<64x32xbf16>
    %cst_77 = arith.constant dense<0.000000e+00> : vector<512x32xf32>
    %81 = tpu.matmul %78, %80, %cst_77 {dimension_numbers = #tpu.dot_dimension_numbers<[1], [0], [0], [1], [0, 0, 1, 1], [], []>} : vector<512x64xbf16>, vector<64x32xbf16>, vector<512x32xf32> -> vector<512x32xf32>
    %82 = arith.addf %77, %81 : vector<512x32xf32>
    %c0_78 = arith.constant 0 : index
    %c0_79 = arith.constant 0 : index
    %83 = vector.load %arg7[%c0_78, %c0_79] : memref<1x32xf32, #tpu.memory_space<vmem>>, vector<1x32xf32>
    %84 = vector.broadcast %83 : vector<1x32xf32> to vector<512x32xf32>
    %85 = arith.addf %82, %84 : vector<512x32xf32>
    %cst_80 = arith.constant 0.000000e+00 : f32
    %86 = vector.broadcast %cst_80 : f32 to vector<512x32xf32>
    %87 = arith.maximumf %85, %86 : vector<512x32xf32>
    %88 = arith.truncf %87 : vector<512x32xf32> to vector<512x32xbf16>
    %89 = vector.extract_strided_slice %88 {offsets = [0, 0], sizes = [16, 32], strides = [1, 1]} : vector<512x32xbf16> to vector<16x32xbf16>
    %c0_81 = arith.constant 0 : index
    %c0_82 = arith.constant 0 : index
    %c0_83 = arith.constant 0 : index
    %90 = vector.load %arg8[%c0_81, %c0_82, %c0_83] : memref<16x32x32xbf16, #tpu.memory_space<vmem>>, vector<1x32x32xbf16>
    %91 = vector.shape_cast %90 : vector<1x32x32xbf16> to vector<32x32xbf16>
    %cst_84 = arith.constant dense<0.000000e+00> : vector<16x32xf32>
    %92 = tpu.matmul %89, %91, %cst_84 {dimension_numbers = #tpu.dot_dimension_numbers<[1], [0], [0], [1], [0, 0, 1, 1], [], []>} : vector<16x32xbf16>, vector<32x32xbf16>, vector<16x32xf32> -> vector<16x32xf32>
    %93 = vector.extract_strided_slice %88 {offsets = [16, 0], sizes = [16, 32], strides = [1, 1]} : vector<512x32xbf16> to vector<16x32xbf16>
    %c1_85 = arith.constant 1 : index
    %c0_86 = arith.constant 0 : index
    %c0_87 = arith.constant 0 : index
    %94 = vector.load %arg8[%c1_85, %c0_86, %c0_87] : memref<16x32x32xbf16, #tpu.memory_space<vmem>>, vector<1x32x32xbf16>
    %95 = vector.shape_cast %94 : vector<1x32x32xbf16> to vector<32x32xbf16>
    %cst_88 = arith.constant dense<0.000000e+00> : vector<16x32xf32>
    %96 = tpu.matmul %93, %95, %cst_88 {dimension_numbers = #tpu.dot_dimension_numbers<[1], [0], [0], [1], [0, 0, 1, 1], [], []>} : vector<16x32xbf16>, vector<32x32xbf16>, vector<16x32xf32> -> vector<16x32xf32>
    %97 = arith.addf %92, %96 : vector<16x32xf32>
    %98 = vector.extract_strided_slice %88 {offsets = [32, 0], sizes = [16, 32], strides = [1, 1]} : vector<512x32xbf16> to vector<16x32xbf16>
    %c2_89 = arith.constant 2 : index
    %c0_90 = arith.constant 0 : index
    %c0_91 = arith.constant 0 : index
    %99 = vector.load %arg8[%c2_89, %c0_90, %c0_91] : memref<16x32x32xbf16, #tpu.memory_space<vmem>>, vector<1x32x32xbf16>
    %100 = vector.shape_cast %99 : vector<1x32x32xbf16> to vector<32x32xbf16>
    %cst_92 = arith.constant dense<0.000000e+00> : vector<16x32xf32>
    %101 = tpu.matmul %98, %100, %cst_92 {dimension_numbers = #tpu.dot_dimension_numbers<[1], [0], [0], [1], [0, 0, 1, 1], [], []>} : vector<16x32xbf16>, vector<32x32xbf16>, vector<16x32xf32> -> vector<16x32xf32>
    %102 = arith.addf %97, %101 : vector<16x32xf32>
    %103 = vector.extract_strided_slice %88 {offsets = [48, 0], sizes = [16, 32], strides = [1, 1]} : vector<512x32xbf16> to vector<16x32xbf16>
    %c3_93 = arith.constant 3 : index
    %c0_94 = arith.constant 0 : index
    %c0_95 = arith.constant 0 : index
    %104 = vector.load %arg8[%c3_93, %c0_94, %c0_95] : memref<16x32x32xbf16, #tpu.memory_space<vmem>>, vector<1x32x32xbf16>
    %105 = vector.shape_cast %104 : vector<1x32x32xbf16> to vector<32x32xbf16>
    %cst_96 = arith.constant dense<0.000000e+00> : vector<16x32xf32>
    %106 = tpu.matmul %103, %105, %cst_96 {dimension_numbers = #tpu.dot_dimension_numbers<[1], [0], [0], [1], [0, 0, 1, 1], [], []>} : vector<16x32xbf16>, vector<32x32xbf16>, vector<16x32xf32> -> vector<16x32xf32>
    %107 = arith.addf %102, %106 : vector<16x32xf32>
    %108 = vector.extract_strided_slice %88 {offsets = [128, 0], sizes = [16, 32], strides = [1, 1]} : vector<512x32xbf16> to vector<16x32xbf16>
    %c4_97 = arith.constant 4 : index
    %c0_98 = arith.constant 0 : index
    %c0_99 = arith.constant 0 : index
    %109 = vector.load %arg8[%c4_97, %c0_98, %c0_99] : memref<16x32x32xbf16, #tpu.memory_space<vmem>>, vector<1x32x32xbf16>
    %110 = vector.shape_cast %109 : vector<1x32x32xbf16> to vector<32x32xbf16>
    %cst_100 = arith.constant dense<0.000000e+00> : vector<16x32xf32>
    %111 = tpu.matmul %108, %110, %cst_100 {dimension_numbers = #tpu.dot_dimension_numbers<[1], [0], [0], [1], [0, 0, 1, 1], [], []>} : vector<16x32xbf16>, vector<32x32xbf16>, vector<16x32xf32> -> vector<16x32xf32>
    %112 = arith.addf %107, %111 : vector<16x32xf32>
    %113 = vector.extract_strided_slice %88 {offsets = [144, 0], sizes = [16, 32], strides = [1, 1]} : vector<512x32xbf16> to vector<16x32xbf16>
    %c5_101 = arith.constant 5 : index
    %c0_102 = arith.constant 0 : index
    %c0_103 = arith.constant 0 : index
    %114 = vector.load %arg8[%c5_101, %c0_102, %c0_103] : memref<16x32x32xbf16, #tpu.memory_space<vmem>>, vector<1x32x32xbf16>
    %115 = vector.shape_cast %114 : vector<1x32x32xbf16> to vector<32x32xbf16>
    %cst_104 = arith.constant dense<0.000000e+00> : vector<16x32xf32>
    %116 = tpu.matmul %113, %115, %cst_104 {dimension_numbers = #tpu.dot_dimension_numbers<[1], [0], [0], [1], [0, 0, 1, 1], [], []>} : vector<16x32xbf16>, vector<32x32xbf16>, vector<16x32xf32> -> vector<16x32xf32>
    %117 = arith.addf %112, %116 : vector<16x32xf32>
    %118 = vector.extract_strided_slice %88 {offsets = [160, 0], sizes = [16, 32], strides = [1, 1]} : vector<512x32xbf16> to vector<16x32xbf16>
    %c6_105 = arith.constant 6 : index
    %c0_106 = arith.constant 0 : index
    %c0_107 = arith.constant 0 : index
    %119 = vector.load %arg8[%c6_105, %c0_106, %c0_107] : memref<16x32x32xbf16, #tpu.memory_space<vmem>>, vector<1x32x32xbf16>
    %120 = vector.shape_cast %119 : vector<1x32x32xbf16> to vector<32x32xbf16>
    %cst_108 = arith.constant dense<0.000000e+00> : vector<16x32xf32>
    %121 = tpu.matmul %118, %120, %cst_108 {dimension_numbers = #tpu.dot_dimension_numbers<[1], [0], [0], [1], [0, 0, 1, 1], [], []>} : vector<16x32xbf16>, vector<32x32xbf16>, vector<16x32xf32> -> vector<16x32xf32>
    %122 = arith.addf %117, %121 : vector<16x32xf32>
    %123 = vector.extract_strided_slice %88 {offsets = [176, 0], sizes = [16, 32], strides = [1, 1]} : vector<512x32xbf16> to vector<16x32xbf16>
    %c7_109 = arith.constant 7 : index
    %c0_110 = arith.constant 0 : index
    %c0_111 = arith.constant 0 : index
    %124 = vector.load %arg8[%c7_109, %c0_110, %c0_111] : memref<16x32x32xbf16, #tpu.memory_space<vmem>>, vector<1x32x32xbf16>
    %125 = vector.shape_cast %124 : vector<1x32x32xbf16> to vector<32x32xbf16>
    %cst_112 = arith.constant dense<0.000000e+00> : vector<16x32xf32>
    %126 = tpu.matmul %123, %125, %cst_112 {dimension_numbers = #tpu.dot_dimension_numbers<[1], [0], [0], [1], [0, 0, 1, 1], [], []>} : vector<16x32xbf16>, vector<32x32xbf16>, vector<16x32xf32> -> vector<16x32xf32>
    %127 = arith.addf %122, %126 : vector<16x32xf32>
    %128 = vector.extract_strided_slice %88 {offsets = [256, 0], sizes = [16, 32], strides = [1, 1]} : vector<512x32xbf16> to vector<16x32xbf16>
    %c8_113 = arith.constant 8 : index
    %c0_114 = arith.constant 0 : index
    %c0_115 = arith.constant 0 : index
    %129 = vector.load %arg8[%c8_113, %c0_114, %c0_115] : memref<16x32x32xbf16, #tpu.memory_space<vmem>>, vector<1x32x32xbf16>
    %130 = vector.shape_cast %129 : vector<1x32x32xbf16> to vector<32x32xbf16>
    %cst_116 = arith.constant dense<0.000000e+00> : vector<16x32xf32>
    %131 = tpu.matmul %128, %130, %cst_116 {dimension_numbers = #tpu.dot_dimension_numbers<[1], [0], [0], [1], [0, 0, 1, 1], [], []>} : vector<16x32xbf16>, vector<32x32xbf16>, vector<16x32xf32> -> vector<16x32xf32>
    %132 = arith.addf %127, %131 : vector<16x32xf32>
    %133 = vector.extract_strided_slice %88 {offsets = [272, 0], sizes = [16, 32], strides = [1, 1]} : vector<512x32xbf16> to vector<16x32xbf16>
    %c9 = arith.constant 9 : index
    %c0_117 = arith.constant 0 : index
    %c0_118 = arith.constant 0 : index
    %134 = vector.load %arg8[%c9, %c0_117, %c0_118] : memref<16x32x32xbf16, #tpu.memory_space<vmem>>, vector<1x32x32xbf16>
    %135 = vector.shape_cast %134 : vector<1x32x32xbf16> to vector<32x32xbf16>
    %cst_119 = arith.constant dense<0.000000e+00> : vector<16x32xf32>
    %136 = tpu.matmul %133, %135, %cst_119 {dimension_numbers = #tpu.dot_dimension_numbers<[1], [0], [0], [1], [0, 0, 1, 1], [], []>} : vector<16x32xbf16>, vector<32x32xbf16>, vector<16x32xf32> -> vector<16x32xf32>
    %137 = arith.addf %132, %136 : vector<16x32xf32>
    %138 = vector.extract_strided_slice %88 {offsets = [288, 0], sizes = [16, 32], strides = [1, 1]} : vector<512x32xbf16> to vector<16x32xbf16>
    %c10 = arith.constant 10 : index
    %c0_120 = arith.constant 0 : index
    %c0_121 = arith.constant 0 : index
    %139 = vector.load %arg8[%c10, %c0_120, %c0_121] : memref<16x32x32xbf16, #tpu.memory_space<vmem>>, vector<1x32x32xbf16>
    %140 = vector.shape_cast %139 : vector<1x32x32xbf16> to vector<32x32xbf16>
    %cst_122 = arith.constant dense<0.000000e+00> : vector<16x32xf32>
    %141 = tpu.matmul %138, %140, %cst_122 {dimension_numbers = #tpu.dot_dimension_numbers<[1], [0], [0], [1], [0, 0, 1, 1], [], []>} : vector<16x32xbf16>, vector<32x32xbf16>, vector<16x32xf32> -> vector<16x32xf32>
    %142 = arith.addf %137, %141 : vector<16x32xf32>
    %143 = vector.extract_strided_slice %88 {offsets = [304, 0], sizes = [16, 32], strides = [1, 1]} : vector<512x32xbf16> to vector<16x32xbf16>
    %c11 = arith.constant 11 : index
    %c0_123 = arith.constant 0 : index
    %c0_124 = arith.constant 0 : index
    %144 = vector.load %arg8[%c11, %c0_123, %c0_124] : memref<16x32x32xbf16, #tpu.memory_space<vmem>>, vector<1x32x32xbf16>
    %145 = vector.shape_cast %144 : vector<1x32x32xbf16> to vector<32x32xbf16>
    %cst_125 = arith.constant dense<0.000000e+00> : vector<16x32xf32>
    %146 = tpu.matmul %143, %145, %cst_125 {dimension_numbers = #tpu.dot_dimension_numbers<[1], [0], [0], [1], [0, 0, 1, 1], [], []>} : vector<16x32xbf16>, vector<32x32xbf16>, vector<16x32xf32> -> vector<16x32xf32>
    %147 = arith.addf %142, %146 : vector<16x32xf32>
    %148 = vector.extract_strided_slice %88 {offsets = [384, 0], sizes = [16, 32], strides = [1, 1]} : vector<512x32xbf16> to vector<16x32xbf16>
    %c12 = arith.constant 12 : index
    %c0_126 = arith.constant 0 : index
    %c0_127 = arith.constant 0 : index
    %149 = vector.load %arg8[%c12, %c0_126, %c0_127] : memref<16x32x32xbf16, #tpu.memory_space<vmem>>, vector<1x32x32xbf16>
    %150 = vector.shape_cast %149 : vector<1x32x32xbf16> to vector<32x32xbf16>
    %cst_128 = arith.constant dense<0.000000e+00> : vector<16x32xf32>
    %151 = tpu.matmul %148, %150, %cst_128 {dimension_numbers = #tpu.dot_dimension_numbers<[1], [0], [0], [1], [0, 0, 1, 1], [], []>} : vector<16x32xbf16>, vector<32x32xbf16>, vector<16x32xf32> -> vector<16x32xf32>
    %152 = arith.addf %147, %151 : vector<16x32xf32>
    %153 = vector.extract_strided_slice %88 {offsets = [400, 0], sizes = [16, 32], strides = [1, 1]} : vector<512x32xbf16> to vector<16x32xbf16>
    %c13 = arith.constant 13 : index
    %c0_129 = arith.constant 0 : index
    %c0_130 = arith.constant 0 : index
    %154 = vector.load %arg8[%c13, %c0_129, %c0_130] : memref<16x32x32xbf16, #tpu.memory_space<vmem>>, vector<1x32x32xbf16>
    %155 = vector.shape_cast %154 : vector<1x32x32xbf16> to vector<32x32xbf16>
    %cst_131 = arith.constant dense<0.000000e+00> : vector<16x32xf32>
    %156 = tpu.matmul %153, %155, %cst_131 {dimension_numbers = #tpu.dot_dimension_numbers<[1], [0], [0], [1], [0, 0, 1, 1], [], []>} : vector<16x32xbf16>, vector<32x32xbf16>, vector<16x32xf32> -> vector<16x32xf32>
    %157 = arith.addf %152, %156 : vector<16x32xf32>
    %158 = vector.extract_strided_slice %88 {offsets = [416, 0], sizes = [16, 32], strides = [1, 1]} : vector<512x32xbf16> to vector<16x32xbf16>
    %c14 = arith.constant 14 : index
    %c0_132 = arith.constant 0 : index
    %c0_133 = arith.constant 0 : index
    %159 = vector.load %arg8[%c14, %c0_132, %c0_133] : memref<16x32x32xbf16, #tpu.memory_space<vmem>>, vector<1x32x32xbf16>
    %160 = vector.shape_cast %159 : vector<1x32x32xbf16> to vector<32x32xbf16>
    %cst_134 = arith.constant dense<0.000000e+00> : vector<16x32xf32>
    %161 = tpu.matmul %158, %160, %cst_134 {dimension_numbers = #tpu.dot_dimension_numbers<[1], [0], [0], [1], [0, 0, 1, 1], [], []>} : vector<16x32xbf16>, vector<32x32xbf16>, vector<16x32xf32> -> vector<16x32xf32>
    %162 = arith.addf %157, %161 : vector<16x32xf32>
    %163 = vector.extract_strided_slice %88 {offsets = [432, 0], sizes = [16, 32], strides = [1, 1]} : vector<512x32xbf16> to vector<16x32xbf16>
    %c15 = arith.constant 15 : index
    %c0_135 = arith.constant 0 : index
    %c0_136 = arith.constant 0 : index
    %164 = vector.load %arg8[%c15, %c0_135, %c0_136] : memref<16x32x32xbf16, #tpu.memory_space<vmem>>, vector<1x32x32xbf16>
    %165 = vector.shape_cast %164 : vector<1x32x32xbf16> to vector<32x32xbf16>
    %cst_137 = arith.constant dense<0.000000e+00> : vector<16x32xf32>
    %166 = tpu.matmul %163, %165, %cst_137 {dimension_numbers = #tpu.dot_dimension_numbers<[1], [0], [0], [1], [0, 0, 1, 1], [], []>} : vector<16x32xbf16>, vector<32x32xbf16>, vector<16x32xf32> -> vector<16x32xf32>
    %167 = arith.addf %162, %166 : vector<16x32xf32>
    %c0_138 = arith.constant 0 : index
    %c0_139 = arith.constant 0 : index
    %168 = vector.load %arg9[%c0_138, %c0_139] : memref<1x32xf32, #tpu.memory_space<vmem>>, vector<1x32xf32>
    %169 = vector.broadcast %168 : vector<1x32xf32> to vector<16x32xf32>
    %170 = arith.addf %167, %169 : vector<16x32xf32>
    %cst_140 = arith.constant 0.000000e+00 : f32
    %171 = vector.broadcast %cst_140 : f32 to vector<16x32xf32>
    %172 = arith.maximumf %170, %171 : vector<16x32xf32>
    %c0_141 = arith.constant 0 : index
    %c0_142 = arith.constant 0 : index
    %173 = vector.load %arg10[%c0_141, %c0_142] : memref<32x1xf32, #tpu.memory_space<vmem>>, vector<32x1xf32>
    %cst_143 = arith.constant dense<0.000000e+00> : vector<16x1xf32>
    %174 = tpu.matmul %172, %173, %cst_143 {dimension_numbers = #tpu.dot_dimension_numbers<[1], [0], [0], [1], [0, 0, 1, 1], [], []>} : vector<16x32xf32>, vector<32x1xf32>, vector<16x1xf32> -> vector<16x1xf32>
    %c0_144 = arith.constant 0 : index
    %c0_145 = arith.constant 0 : index
    %175 = vector.load %arg11[%c0_144, %c0_145] : memref<1x1xf32, #tpu.memory_space<vmem>>, vector<1x1xf32>
    %176 = vector.broadcast %175 : vector<1x1xf32> to vector<16x1xf32>
    %177 = arith.addf %174, %176 : vector<16x1xf32>
    %cst_146 = arith.constant 0.000000e+00 : f32
    %178 = vector.broadcast %cst_146 : f32 to vector<16x1xf32>
    %179 = arith.maximumf %177, %178 : vector<16x1xf32>
    %180 = vector.shape_cast %179 : vector<16x1xf32> to vector<16x1xf32>
    %181 = vector.broadcast %180 : vector<16x1xf32> to vector<16x128xf32>
    %c0_147 = arith.constant 0 : index
    %c0_148 = arith.constant 0 : index
    %182 = vector.load %arg12[%c0_147, %c0_148] : memref<16x128xf32, #tpu.memory_space<vmem>>, vector<16x128xf32>
    tpu.vector_store %arg12[%c0_147, %c0_148], %181 {strides = array<i32>} : memref<16x128xf32, #tpu.memory_space<vmem>>, vector<16x128xf32>,
    return
  }
  func.func @transform_0(%arg0: i32) -> (i32, i32, i32) {
    %c0_i32 = arith.constant 0 : i32
    %c0_i32_0 = arith.constant 0 : i32
    %c0_i32_1 = arith.constant 0 : i32
    return %arg0, %c0_i32, %c0_i32_0 : i32, i32, i32
  }
  func.func @transform_1(%arg0: i32) -> (i32, i32) {
    %c0_i32 = arith.constant 0 : i32
    %c0_i32_0 = arith.constant 0 : i32
    %c0_i32_1 = arith.constant 0 : i32
    return %c0_i32, %c0_i32_0 : i32, i32
  }
  func.func @transform_2(%arg0: i32) -> (i32, i32) {
    %c0_i32 = arith.constant 0 : i32
    %c0_i32_0 = arith.constant 0 : i32
    %c0_i32_1 = arith.constant 0 : i32
    return %c0_i32, %c0_i32_0 : i32, i32
  }
  func.func @transform_3(%arg0: i32) -> (i32, i32, i32) {
    %c0_i32 = arith.constant 0 : i32
    %c0_i32_0 = arith.constant 0 : i32
    %c0_i32_1 = arith.constant 0 : i32
    %c0_i32_2 = arith.constant 0 : i32
    return %c0_i32, %c0_i32_0, %c0_i32_1 : i32, i32, i32
  }
  func.func @transform_4(%arg0: i32) -> (i32, i32) {
    %c0_i32 = arith.constant 0 : i32
    %c0_i32_0 = arith.constant 0 : i32
    %c0_i32_1 = arith.constant 0 : i32
    return %c0_i32, %c0_i32_0 : i32, i32
  }
  func.func @transform_5(%arg0: i32) -> (i32, i32, i32) {
    %c0_i32 = arith.constant 0 : i32
    %c0_i32_0 = arith.constant 0 : i32
    %c0_i32_1 = arith.constant 0 : i32
    %c0_i32_2 = arith.constant 0 : i32
    return %c0_i32, %c0_i32_0, %c0_i32_1 : i32, i32, i32
  }
  func.func @transform_6(%arg0: i32) -> (i32, i32) {
    %c0_i32 = arith.constant 0 : i32
    %c0_i32_0 = arith.constant 0 : i32
    %c0_i32_1 = arith.constant 0 : i32
    return %c0_i32, %c0_i32_0 : i32, i32
  }
  func.func @transform_7(%arg0: i32) -> (i32, i32, i32) {
    %c0_i32 = arith.constant 0 : i32
    %c0_i32_0 = arith.constant 0 : i32
    %c0_i32_1 = arith.constant 0 : i32
    %c0_i32_2 = arith.constant 0 : i32
    return %c0_i32, %c0_i32_0, %c0_i32_1 : i32, i32, i32
  }
  func.func @transform_8(%arg0: i32) -> (i32, i32) {
    %c0_i32 = arith.constant 0 : i32
    %c0_i32_0 = arith.constant 0 : i32
    %c0_i32_1 = arith.constant 0 : i32
    return %c0_i32, %c0_i32_0 : i32, i32
  }
  func.func @transform_9(%arg0: i32) -> (i32, i32) {
    %c0_i32 = arith.constant 0 : i32
    %c0_i32_0 = arith.constant 0 : i32
    %c0_i32_1 = arith.constant 0 : i32
    return %c0_i32, %c0_i32_0 : i32, i32
  }
  func.func @transform_10(%arg0: i32) -> (i32, i32) {
    %c0_i32 = arith.constant 0 : i32
    %c0_i32_0 = arith.constant 0 : i32
    %c0_i32_1 = arith.constant 0 : i32
    return %c0_i32, %c0_i32_0 : i32, i32
  }
  func.func @transform_11(%arg0: i32) -> (i32, i32) {
    %c0_i32 = arith.constant 0 : i32
    %c0_i32_0 = arith.constant 0 : i32
    return %arg0, %c0_i32 : i32, i32
  }
}

</mosaic_0001>

<bundles_post_ra>
// kernel: vmlp_forward.1
= control target key start
LH: loop header
LB: loop body
LE: loop exit
PB: predicated region body
PF: predicated region fallthrough
CT: control target
= control target key end

     0   :  { %v21875_v0 = vmov 0   ;;  %vm8579_vm0 = vcmask 523264   ;;  %vm18234_vm1 = vmmov 0   ;;  %vm12613_vm2 = vcmask 261120   ;;  %s21863_s1 = inlined_call_operand.vmem [shape: bf16[1024,128], index: 1, kind: input, shape index: {}]   ;;  %s21864_s0 = inlined_call_operand.vmem [shape: bf16[1,1024,1024], index: 0, kind: input, shape index: {}]   ;;  %s21865_s3 = inlined_call_operand.vmem [shape: bf16[4,128,64], index: 3, kind: input, shape index: {}]   ;;  %s21866_s2 = inlined_call_operand.vmem [shape: f32[1,128], index: 2, kind: input, shape index: {}]   ;;  %s21867_s5 = inlined_call_operand.vmem [shape: bf16[9,64,32], index: 5, kind: input, shape index: {}]   ;;  %s21868_s4 = inlined_call_operand.vmem [shape: f32[1,64], index: 4, kind: input, shape index: {}]   ;;  %s21869_s7 = inlined_call_operand.vmem [shape: bf16[16,32,32], index: 7, kind: input, shape index: {}]   ;;  %s21870_s6 = inlined_call_operand.vmem [shape: f32[1,32], index: 6, kind: input, shape index: {}]   ;;  %s21871_s9 = inlined_call_operand.vmem [shape: f32[32,1], index: 9, kind: input, shape index: {}]   ;;  %s21872_s10 = inlined_call_operand.<no memory space> [shape: f32[1,1], index: 10, kind: input, shape index: {}]   ;;  %s21873_s8 = inlined_call_operand.vmem [shape: f32[1,32], index: 8, kind: input, shape index: {}]   ;;  %s21874_s11 = inlined_call_operand.vmem [shape: f32[16,128], index: 11, kind: output, shape index: {}]  }
   0x1   :  { %3632 = vmatprep.subr.bf16.mxu0 %v21875_v0  ;;  %v18067_v1 = vld [vmem:[%s21863_s1] sm:$0xff]   ;;  %18066 = vset.pattern.permute.xlu0 %v21875_v0  ;;  %v18068_v2 = vld [vmem:[%s21863_s1 + $0x8] sm:$0xff]   ;;  %v18069_v3 = vld [vmem:[%s21863_s1 + $0x10] sm:$0xff]  }
   0x2   :  { %3633 = vmatpush1.bf16.msra.mxu0 %v18067_v1  ;;  %v18070_v4 = vld [vmem:[%s21863_s1 + $0x18] sm:$0xff]   ;;  %v18071_v5 = vld [vmem:[%s21863_s1 + $0x20] sm:$0xff]   ;;  %v18072_v9 = vld [vmem:[%s21863_s1 + $0x28] sm:$0xff]  }
   0x3   :  { %3634 = vmatprep.subr.bf16.mxu0 %v21875_v0  ;;  %v41_v6 = vld [vmem:[%s21864_s0] sm:$0xff]  ;;  %v18073_v10 = vld [vmem:[%s21863_s1 + $0x30] sm:$0xff]   ;;  %v18074_v11 = vld [vmem:[%s21863_s1 + $0x38] sm:$0xff]  }
   0x4   :  { %v45_v7 = vld [vmem:[%s21864_s0 + $0x20] sm:$0xff]  ;;  %v18076_v13 = vld [vmem:[%s21863_s1 + $0x48] sm:$0xff]   ;;  %v18077_v14 = vld [vmem:[%s21863_s1 + $0x50] sm:$0xff]  }
   0x5   :  { %v13719_v8 = vcombine.high %v41_v6, %v45_v7  ;;  %v18075_v12 = vld [vmem:[%s21863_s1 + $0x40] sm:$0xff]   ;;  %v18078_v15 = vld [vmem:[%s21863_s1 + $0x58] sm:$0xff]   ;;  %v18080_v17 = vld [vmem:[%s21863_s1 + $0x68] sm:$0xff]   ;;  %v13718_v22 = vcombine.low %v41_v6, %v45_v7 }
   0x6   :  { %3635 = vmatpush1.bf16.msra.mxu0 %v18068_v2  ;;  %v18079_v16 = vld [vmem:[%s21863_s1 + $0x60] sm:$0xff]   ;;  %v18081_v18 = vld [vmem:[%s21863_s1 + $0x70] sm:$0xff]   ;;  %v18082_v19 = vld [vmem:[%s21863_s1 + $0x78] sm:$0xff]  }
   0x7   :  { %3636 = vmatprep.subr.bf16.mxu0 %v21875_v0  ;;  %3664 = vmatprep.mubr.bf16.mxu0 %v13719_v8  ;;  %v49_v20 = vld [vmem:[%s21864_s0 + $0x40] sm:$0xff]  ;;  %v18084_v25 = vld [vmem:[%s21863_s1 + $0x88] sm:$0xff]   ;;  %v18085_v30 = vld [vmem:[%s21863_s1 + $0x90] sm:$0xff]  }
   0x8   :  { %v53_v21 = vld [vmem:[%s21864_s0 + $0x60] sm:$0xff]  ;;  %v18086_v31 = vld [vmem:[%s21863_s1 + $0x98] sm:$0xff]   ;;  %v18088_v45 = vld [vmem:[%s21863_s1 + $0xa8] sm:$0xff]  }
   0x9   :  { %v18083_v23 = vld [vmem:[%s21863_s1 + $0x80] sm:$0xff]   ;;  %v13727_v24 = vcombine.high %v49_v20, %v53_v21  ;;  %v13726_v28 = vcombine.low %v49_v20, %v53_v21  ;;  %v18089_v62 = vld [vmem:[%s21863_s1 + $0xb0] sm:$0xff]  }
   0xa   :  { %3637 = vmatpush1.bf16.msra.mxu0 %v18069_v3  ;;  %v57_v26 = vld [vmem:[%s21864_s0 + $0x80] sm:$0xff] }
   0xb   :  { %3638 = vmatprep.subr.bf16.mxu0 %v21875_v0  ;;  %v61_v27 = vld [vmem:[%s21864_s0 + $0xa0] sm:$0xff] }
   0xc   :  { %v13735_v29 = vcombine.high %v57_v26, %v61_v27  ;;  %v65_v32 = vld [vmem:[%s21864_s0 + $0xc0] sm:$0xff]  ;;  %v13734_v34 = vcombine.low %v57_v26, %v61_v27 }
   0xd   :  { %v69_v33 = vld [vmem:[%s21864_s0 + $0xe0] sm:$0xff] }
   0xe   :  { %3639 = vmatpush1.bf16.msra.mxu0 %v18070_v4  ;;  %v13743_v35 = vcombine.high %v65_v32, %v69_v33  ;;  %v18087_v36 = vld [vmem:[%s21863_s1 + $0xa0] sm:$0xff]   ;;  %v13742_v39 = vcombine.low %v65_v32, %v69_v33 }
   0xf   :  { %3640 = vmatprep.subr.bf16.mxu0 %v21875_v0  ;;  %v73_v37 = vld [vmem:[%s21864_s0 + $0x100] sm:$0xff] }
  0x10   :  { %v77_v38 = vld [vmem:[%s21864_s0 + $0x120] sm:$0xff] }
  0x11   :  { %v13751_v40 = vcombine.high %v73_v37, %v77_v38  ;;  %v81_v41 = vld [vmem:[%s21864_s0 + $0x140] sm:$0xff]  ;;  %v13750_v43 = vcombine.low %v73_v37, %v77_v38 }
  0x12   :  { %3641 = vmatpush1.bf16.msra.mxu0 %v18071_v5  ;;  %v85_v42 = vld [vmem:[%s21864_s0 + $0x160] sm:$0xff] }
  0x13   :  { %3642 = vmatprep.subr.bf16.mxu0 %v21875_v0  ;;  %v13759_v44 = vcombine.high %v81_v41, %v85_v42  ;;  %v89_v46 = vld [vmem:[%s21864_s0 + $0x180] sm:$0xff]  ;;  %v13758_v48 = vcombine.low %v81_v41, %v85_v42 }
  0x14   :  { %v93_v47 = vld [vmem:[%s21864_s0 + $0x1a0] sm:$0xff] }
  0x15   :  { %v13767_v49 = vcombine.high %v89_v46, %v93_v47  ;;  %v97_v50 = vld [vmem:[%s21864_s0 + $0x1c0] sm:$0xff]  ;;  %v13766_v52 = vcombine.low %v89_v46, %v93_v47 }
  0x16   :  { %3643 = vmatpush1.bf16.msra.mxu0 %v18072_v9  ;;  %v101_v51 = vld [vmem:[%s21864_s0 + $0x1e0] sm:$0xff] }
  0x17   :  { %3644 = vmatprep.subr.bf16.mxu0 %v21875_v0  ;;  %v13775_v53 = vcombine.high %v97_v50, %v101_v51  ;;  %v105_v54 = vld [vmem:[%s21864_s0 + $0x200] sm:$0xff]  ;;  %v13774_v56 = vcombine.low %v97_v50, %v101_v51  ;;  %v18092_v50 = vld [vmem:[%s21863_s1 + $0xc8] sm:$0xff]  }
  0x18   :  { %v109_v55 = vld [vmem:[%s21864_s0 + $0x220] sm:$0xff] }
  0x19   :  { %v13783_v57 = vcombine.high %v105_v54, %v109_v55  ;;  %v113_v58 = vld [vmem:[%s21864_s0 + $0x240] sm:$0xff]  ;;  %v13782_v60 = vcombine.low %v105_v54, %v109_v55 }
  0x1a   :  { %3645 = vmatpush1.bf16.msra.mxu0 %v18073_v10  ;;  %v117_v59 = vld [vmem:[%s21864_s0 + $0x260] sm:$0xff] }
  0x1b   :  { %3646 = vmatprep.subr.bf16.mxu0 %v21875_v0  ;;  %v13791_v61 = vcombine.high %v113_v58, %v117_v59  ;;  %v121_v63 = vld [vmem:[%s21864_s0 + $0x280] sm:$0xff]  ;;  %v13790_v2 = vcombine.low %v113_v58, %v117_v59 }
  0x1c   :  { %v125_v1 = vld [vmem:[%s21864_s0 + $0x2a0] sm:$0xff] }
  0x1d   :  { %v13799_v3 = vcombine.high %v121_v63, %v125_v1  ;;  %v129_v4 = vld [vmem:[%s21864_s0 + $0x2c0] sm:$0xff]  ;;  %v13798_v6 = vcombine.low %v121_v63, %v125_v1 }
  0x1e   :  { %3647 = vmatpush1.bf16.msra.mxu0 %v18074_v11  ;;  %v133_v5 = vld [vmem:[%s21864_s0 + $0x2e0] sm:$0xff] }
  0x1f   :  { %3648 = vmatprep.subr.bf16.mxu0 %v21875_v0  ;;  %v13807_v7 = vcombine.high %v129_v4, %v133_v5  ;;  %v137_v8 = vld [vmem:[%s21864_s0 + $0x300] sm:$0xff]  ;;  %v13806_v10 = vcombine.low %v129_v4, %v133_v5  ;;  %v18093_v4 = vld [vmem:[%s21863_s1 + $0xd0] sm:$0xff]  }
  0x20   :  { %v141_v9 = vld [vmem:[%s21864_s0 + $0x320] sm:$0xff] }
  0x21   :  { %v13815_v11 = vcombine.high %v137_v8, %v141_v9  ;;  %v161_v21 = vld [vmem:[%s21864_s0 + $0x3c0] sm:$0xff] }
  0x22   :  { %3649 = vmatpush1.bf16.msra.mxu0 %v18075_v12  ;;  %v145_v12 = vld [vmem:[%s21864_s0 + $0x340] sm:$0xff] }
  0x23   :  { %3650 = vmatprep.subr.bf16.mxu0 %v21875_v0  ;;  %v173_v26 = vld [vmem:[%s21864_s0 + $0x420] sm:$0xff] }
  0x24   :  { %v18091_v33 = vld [vmem:[%s21863_s1 + $0xc0] sm:$0xff]  }
  0x25   :  { %v193_v38 = vld [vmem:[%s21864_s0 + $0x4c0] sm:$0xff] }
  0x26   :  { %3651 = vmatpush1.bf16.msra.mxu0 %v18076_v13  ;;  %v149_v13 = vld [vmem:[%s21864_s0 + $0x360] sm:$0xff] }
  0x27   :  { %3652 = vmatprep.subr.bf16.mxu0 %v21875_v0  ;;  %v201_v42 = vld [vmem:[%s21864_s0 + $0x500] sm:$0xff] }
  0x28   :  { %v209_v46 = vld [vmem:[%s21864_s0 + $0x540] sm:$0xff] }
  0x29   :  { %v213_v47 = vld [vmem:[%s21864_s0 + $0x560] sm:$0xff] }
  0x2a   :  { %3653 = vmatpush1.bf16.msra.mxu0 %v18077_v14  ;;  %v13814_v14 = vcombine.low %v137_v8, %v141_v9  ;;  %v217_v51 = vld [vmem:[%s21864_s0 + $0x580] sm:$0xff] }
  0x2b   :  { %3654 = vmatprep.subr.bf16.mxu0 %v21875_v0  ;;  %v225_v55 = vld [vmem:[%s21864_s0 + $0x5c0] sm:$0xff] }
  0x2c   :  { %v233_v59 = vld [vmem:[%s21864_s0 + $0x600] sm:$0xff] }
  0x2d   :  { %v241_v63 = vld [vmem:[%s21864_s0 + $0x640] sm:$0xff] }
  0x2e   :  { %3655 = vmatpush1.bf16.msra.mxu0 %v18078_v15  ;;  %v13823_v15 = vcombine.high %v145_v12, %v149_v13  ;;  %v245_v1 = vld [vmem:[%s21864_s0 + $0x660] sm:$0xff] }
  0x2f   :  { %3656 = vmatprep.subr.bf16.mxu0 %v21875_v0  ;;  %v249_v5 = vld [vmem:[%s21864_s0 + $0x680] sm:$0xff] }
  0x30   :  { %v257_v9 = vld [vmem:[%s21864_s0 + $0x6c0] sm:$0xff] }
  0x32   :  { %3657 = vmatpush1.bf16.msra.mxu0 %v18079_v16  ;;  %v18090_v16 = vld [vmem:[%s21863_s1 + $0xb8] sm:$0xff]  }
  0x33   :  { %3658 = vmatprep.subr.bf16.mxu0 %v21875_v0 }
  0x36   :  { %3659 = vmatpush1.bf16.msra.mxu0 %v18080_v17  ;;  %v153_v17 = vld [vmem:[%s21864_s0 + $0x380] sm:$0xff] }
  0x37   :  { %3660 = vmatprep.subr.bf16.mxu0 %v21875_v0 }
  0x3a   :  { %3661 = vmatpush1.bf16.msra.mxu0 %v18081_v18  ;;  %v157_v18 = vld [vmem:[%s21864_s0 + $0x3a0] sm:$0xff] }
  0x3b   :  { %3662 = vmatprep.subr.bf16.mxu0 %v21875_v0  ;;  %v13831_v20 = vcombine.high %v153_v17, %v157_v18 }
  0x3e   :  { %3663 = vmatpush1.bf16.msra.mxu0 %v18082_v19  ;;  %v13822_v19 = vcombine.low %v145_v12, %v149_v13  ;;  %v265_v13 = vld [vmem:[%s21864_s0 + $0x700] sm:$0xff] }
  0x3f   :  { %4177 = vmatprep.subr.bf16.mxu0 %v21875_v0 }
  0x41   :  { %3665 = vmatmul.mubr.bf16.vlgmr.msra.gmra.mrb[0].mxu0 %v13718_v22  ;;  %v165_v22 = vld [vmem:[%s21864_s0 + $0x3e0] sm:$0xff] }
  0x42   :  { %4178 = vmatpush1.bf16.msra.mxu0 %v18083_v23  ;;  %3672 = vmatprep.mubr.bf16.mxu0 %v13727_v24  ;;  %v13830_v23 = vcombine.low %v153_v17, %v157_v18  ;;  %v13839_v24 = vcombine.high %v161_v21, %v165_v22  ;;  %v13838_v27 = vcombine.low %v161_v21, %v165_v22  ;;  %v273_v17 = vld [vmem:[%s21864_s0 + $0x740] sm:$0xff]  ;;  %v18094_v21 = vld [vmem:[%s21863_s1 + $0xd8] sm:$0xff]  }
  0x43   :  { %4179 = vmatprep.subr.bf16.mxu0 %v21875_v0  ;;  %v277_v18 = vld [vmem:[%s21864_s0 + $0x760] sm:$0xff] }
  0x44   :  { %v281_v22 = vld [vmem:[%s21864_s0 + $0x780] sm:$0xff] }
  0x46   :  { %4180 = vmatpush1.bf16.msra.mxu0 %v18084_v25  ;;  %v169_v25 = vld [vmem:[%s21864_s0 + $0x400] sm:$0xff] }
  0x47   :  { %4181 = vmatprep.subr.bf16.mxu0 %v21875_v0 }
  0x49   :  { %3673 = vmatmul.mubr.bf16.gmra.mrb[4].mxu0 %v13726_v28  ;;  %v13847_v28 = vcombine.high %v169_v25, %v173_v26 }
  0x4a   :  { %3680 = vmatprep.mubr.bf16.mxu0 %v13735_v29  ;;  %4182 = vmatpush1.bf16.msra.mxu0 %v18085_v30  ;;  %v177_v29 = vld [vmem:[%s21864_s0 + $0x440] sm:$0xff] }
  0x4b   :  { %4183 = vmatprep.subr.bf16.mxu0 %v21875_v0  ;;  %v181_v30 = vld [vmem:[%s21864_s0 + $0x460] sm:$0xff] }
  0x4c   :  { %v13855_v32 = vcombine.high %v177_v29, %v181_v30 }
  0x4e   :  { %4184 = vmatpush1.bf16.msra.mxu0 %v18086_v31  ;;  %v13846_v31 = vcombine.low %v169_v25, %v173_v26  ;;  %v289_v26 = vld [vmem:[%s21864_s0 + $0x7c0] sm:$0xff] }
  0x4f   :  { %4185 = vmatprep.subr.bf16.mxu0 %v21875_v0 }
  0x51   :  { %3681 = vmatmul.mubr.bf16.gmra.mrb[8].mxu0 %v13734_v34  ;;  %v185_v34 = vld [vmem:[%s21864_s0 + $0x480] sm:$0xff] }
  0x52   :  { %3688 = vmatprep.mubr.bf16.mxu0 %v13743_v35  ;;  %4186 = vmatpush1.bf16.msra.mxu0 %v18087_v36  ;;  %v189_v35 = vld [vmem:[%s21864_s0 + $0x4a0] sm:$0xff]  ;;  %v13854_v36 = vcombine.low %v177_v29, %v181_v30 }
  0x53   :  { %4187 = vmatprep.subr.bf16.mxu0 %v21875_v0  ;;  %v13863_v37 = vcombine.high %v185_v34, %v189_v35  ;;  %v297_v30 = vld [vmem:[%s21864_s0 + $0x800] sm:$0xff] }
  0x56   :  { %4188 = vmatpush1.bf16.msra.mxu0 %v18088_v45 }
  0x57   :  { %4189 = vmatprep.subr.bf16.mxu0 %v21875_v0 }
  0x59   :  { %3689 = vmatmul.mubr.bf16.gmra.mrb[12].mxu0 %v13742_v39  ;;  %v197_v39 = vld [vmem:[%s21864_s0 + $0x4e0] sm:$0xff] }
  0x5a   :  { %3696 = vmatprep.mubr.bf16.mxu0 %v13751_v40  ;;  %4190 = vmatpush1.bf16.msra.mxu0 %v18089_v62  ;;  %v13862_v40 = vcombine.low %v185_v34, %v189_v35  ;;  %v13871_v41 = vcombine.high %v193_v38, %v197_v39  ;;  %v305_v34 = vld [vmem:[%s21864_s0 + $0x840] sm:$0xff] }
  0x5b   :  { %4191 = vmatprep.subr.bf16.mxu0 %v21875_v0  ;;  %v309_v35 = vld [vmem:[%s21864_s0 + $0x860] sm:$0xff] }
  0x5e   :  { %4192 = vmatpush1.bf16.msra.mxu0 %v18090_v16 }
  0x5f   :  { %4193 = vmatprep.subr.bf16.mxu0 %v21875_v0 }
  0x61   :  { %3697 = vmatmul.mubr.bf16.gmra.mrb[16].mxu0 %v13750_v43  ;;  %v205_v43 = vld [vmem:[%s21864_s0 + $0x520] sm:$0xff] }
  0x62   :  { %3704 = vmatprep.mubr.bf16.mxu0 %v13759_v44  ;;  %4194 = vmatpush1.bf16.msra.mxu0 %v18091_v33  ;;  %v13870_v44 = vcombine.low %v193_v38, %v197_v39  ;;  %v13879_v45 = vcombine.high %v201_v42, %v205_v43  ;;  %v18095_v38 = vld [vmem:[%s21863_s1 + $0xe0] sm:$0xff]  }
  0x63   :  { %4195 = vmatprep.subr.bf16.mxu0 %v21875_v0  ;;  %v313_v39 = vld [vmem:[%s21864_s0 + $0x880] sm:$0xff] }
  0x66   :  { %4196 = vmatpush1.bf16.msra.mxu0 %v18092_v50 }
  0x67   :  { %4197 = vmatprep.subr.bf16.mxu0 %v21875_v0 }
  0x69   :  { %3705 = vmatmul.mubr.bf16.gmra.mrb[20].mxu0 %v13758_v48  ;;  %v13878_v48 = vcombine.low %v201_v42, %v205_v43  ;;  %v321_v43 = vld [vmem:[%s21864_s0 + $0x8c0] sm:$0xff] }
  0x6a   :  { %3712 = vmatprep.mubr.bf16.mxu0 %v13767_v49  ;;  %v13887_v49 = vcombine.high %v209_v46, %v213_v47  ;;  %4198 = vmatpush1.bf16.msra.mxu0 %v18093_v4 }
  0x6b   :  { %4199 = vmatprep.subr.bf16.mxu0 %v21875_v0 }
  0x6e   :  { %4200 = vmatpush1.bf16.msra.mxu0 %v18094_v21 }
  0x6f   :  { %4201 = vmatprep.subr.bf16.mxu0 %v21875_v0 }
  0x71   :  { %3713 = vmatmul.mubr.bf16.gmra.mrb[24].mxu0 %v13766_v52  ;;  %v221_v52 = vld [vmem:[%s21864_s0 + $0x5a0] sm:$0xff] }
  0x72   :  { %3720 = vmatprep.mubr.bf16.mxu0 %v13775_v53  ;;  %v13886_v53 = vcombine.low %v209_v46, %v213_v47  ;;  %v13895_v54 = vcombine.high %v217_v51, %v221_v52  ;;  %4202 = vmatpush1.bf16.msra.mxu0 %v18095_v38  ;;  %v329_v47 = vld [vmem:[%s21864_s0 + $0x900] sm:$0xff] }
  0x73   :  { %4203 = vmatprep.subr.bf16.mxu0 %v21875_v0 }
  0x79   :  { %3721 = vmatmul.mubr.bf16.gmra.mrb[28].mxu0 %v13774_v56  ;;  %v229_v56 = vld [vmem:[%s21864_s0 + $0x5e0] sm:$0xff] }
  0x7a   :  { %3728 = vmatprep.mubr.bf16.mxu0 %v13783_v57  ;;  %v13894_v57 = vcombine.low %v217_v51, %v221_v52  ;;  %v13903_v58 = vcombine.high %v225_v55, %v229_v56  ;;  %v337_v51 = vld [vmem:[%s21864_s0 + $0x940] sm:$0xff] }
  0x7b   :  { %v341_v52 = vld [vmem:[%s21864_s0 + $0x960] sm:$0xff] }
  0x81   :  { %3729 = vmatmul.mubr.bf16.gmra.mrb[32].mxu0 %v13782_v60  ;;  %v237_v60 = vld [vmem:[%s21864_s0 + $0x620] sm:$0xff] }
  0x82   :  { %3736 = vmatprep.mubr.bf16.mxu0 %v13791_v61  ;;  %v13902_v61 = vcombine.low %v225_v55, %v229_v56  ;;  %v13911_v62 = vcombine.high %v233_v59, %v237_v60  ;;  %v18096_v55 = vld [vmem:[%s21863_s1 + $0xe8] sm:$0xff]   ;;  %v345_v56 = vld [vmem:[%s21864_s0 + $0x980] sm:$0xff] }
  0x83   :  { %4204 = vmatpush1.bf16.msra.mxu0 %v18096_v55  ;;  %v465_v55 = vld [vmem:[%s21864_s0 + $0xd40] sm:$0xff] }
  0x84   :  { %4205 = vmatprep.subr.bf16.mxu0 %v21875_v0 }
  0x89   :  { %3737 = vmatmul.mubr.bf16.gmra.mrb[36].mxu0 %v13790_v2  ;;  %v13910_v2 = vcombine.low %v233_v59, %v237_v60  ;;  %v353_v60 = vld [vmem:[%s21864_s0 + $0x9c0] sm:$0xff] }
  0x8a   :  { %3744 = vmatprep.mubr.bf16.mxu0 %v13799_v3  ;;  %v13919_v3 = vcombine.high %v241_v63, %v245_v1 }
  0x91   :  { %3745 = vmatmul.mubr.bf16.gmra.mrb[40].mxu0 %v13798_v6  ;;  %v253_v6 = vld [vmem:[%s21864_s0 + $0x6a0] sm:$0xff] }
  0x92   :  { %3752 = vmatprep.mubr.bf16.mxu0 %v13807_v7  ;;  %v13918_v7 = vcombine.low %v241_v63, %v245_v1  ;;  %v13927_v8 = vcombine.high %v249_v5, %v253_v6  ;;  %v361_v1 = vld [vmem:[%s21864_s0 + $0xa00] sm:$0xff] }
  0x99   :  { %3753 = vmatmul.mubr.bf16.gmra.mrb[44].mxu0 %v13806_v10  ;;  %v261_v10 = vld [vmem:[%s21864_s0 + $0x6e0] sm:$0xff] }
  0x9a   :  { %3760 = vmatprep.mubr.bf16.mxu0 %v13815_v11  ;;  %v13926_v11 = vcombine.low %v249_v5, %v253_v6  ;;  %v13935_v12 = vcombine.high %v257_v9, %v261_v10  ;;  %v369_v5 = vld [vmem:[%s21864_s0 + $0xa40] sm:$0xff] }
  0x9b   :  { %v373_v6 = vld [vmem:[%s21864_s0 + $0xa60] sm:$0xff] }
  0xa1   :  { %3761 = vmatmul.mubr.bf16.gmra.mrb[48].mxu0 %v13814_v14  ;;  %v269_v14 = vld [vmem:[%s21864_s0 + $0x720] sm:$0xff] }
  0xa2   :  { %3768 = vmatprep.mubr.bf16.mxu0 %v13823_v15  ;;  %v13934_v15 = vcombine.low %v257_v9, %v261_v10  ;;  %v13943_v16 = vcombine.high %v265_v13, %v269_v14  ;;  %v18097_v9 = vld [vmem:[%s21863_s1 + $0xf0] sm:$0xff]   ;;  %v377_v10 = vld [vmem:[%s21864_s0 + $0xa80] sm:$0xff] }
  0xa3   :  { %4206 = vmatpush1.bf16.msra.mxu0 %v18097_v9  ;;  %v501_v9 = vld [vmem:[%s21864_s0 + $0xe60] sm:$0xff] }
  0xa4   :  { %4207 = vmatprep.subr.bf16.mxu0 %v21875_v0 }
  0xa9   :  { %3769 = vmatmul.mubr.bf16.gmra.mrb[52].mxu0 %v13822_v19  ;;  %v13942_v19 = vcombine.low %v265_v13, %v269_v14  ;;  %v385_v14 = vld [vmem:[%s21864_s0 + $0xac0] sm:$0xff] }
  0xaa   :  { %3776 = vmatprep.mubr.bf16.mxu0 %v13831_v20  ;;  %v13951_v20 = vcombine.high %v273_v17, %v277_v18 }
  0xb1   :  { %3777 = vmatmul.mubr.bf16.gmra.mrb[56].mxu0 %v13830_v23  ;;  %v285_v23 = vld [vmem:[%s21864_s0 + $0x7a0] sm:$0xff] }
  0xb2   :  { %3784 = vmatprep.mubr.bf16.mxu0 %v13839_v24  ;;  %v13950_v24 = vcombine.low %v273_v17, %v277_v18  ;;  %v13959_v25 = vcombine.high %v281_v22, %v285_v23  ;;  %v393_v18 = vld [vmem:[%s21864_s0 + $0xb00] sm:$0xff] }
  0xb9   :  { %3785 = vmatmul.mubr.bf16.gmra.mrb[60].mxu0 %v13838_v27  ;;  %v293_v27 = vld [vmem:[%s21864_s0 + $0x7e0] sm:$0xff] }
  0xba   :  { %3792 = vmatprep.mubr.bf16.mxu0 %v13847_v28  ;;  %v13958_v28 = vcombine.low %v281_v22, %v285_v23  ;;  %v13967_v29 = vcombine.high %v289_v26, %v293_v27  ;;  %v401_v22 = vld [vmem:[%s21864_s0 + $0xb40] sm:$0xff] }
  0xbb   :  { %v405_v23 = vld [vmem:[%s21864_s0 + $0xb60] sm:$0xff] }
  0xc1   :  { %3793 = vmatmul.mubr.bf16.gmra.mrb[64].mxu0 %v13846_v31  ;;  %v301_v31 = vld [vmem:[%s21864_s0 + $0x820] sm:$0xff] }
  0xc2   :  { %3800 = vmatprep.mubr.bf16.mxu0 %v13855_v32  ;;  %v13966_v32 = vcombine.low %v289_v26, %v293_v27  ;;  %v13975_v33 = vcombine.high %v297_v30, %v301_v31  ;;  %v18098_v26 = vld [vmem:[%s21863_s1 + $0xf8] sm:$0xff]   ;;  %v409_v27 = vld [vmem:[%s21864_s0 + $0xb80] sm:$0xff] }
  0xc3   :  { %4208 = vmatpush1.bf16.msra.mxu0 %v18098_v26 }
  0xc4   :  { %4722 = vmatprep.subr.bf16.mxu0 %v21875_v0 }
  0xc9   :  { %3801 = vmatmul.mubr.bf16.gmra.mrb[68].mxu0 %v13854_v36  ;;  %v13974_v36 = vcombine.low %v297_v30, %v301_v31  ;;  %v417_v31 = vld [vmem:[%s21864_s0 + $0xbc0] sm:$0xff] }
  0xca   :  { %3808 = vmatprep.mubr.bf16.mxu0 %v13863_v37  ;;  %v13983_v37 = vcombine.high %v305_v34, %v309_v35 }
  0xd1   :  { %3809 = vmatmul.mubr.bf16.gmra.mrb[72].mxu0 %v13862_v40  ;;  %v317_v40 = vld [vmem:[%s21864_s0 + $0x8a0] sm:$0xff] }
  0xd2   :  { %3816 = vmatprep.mubr.bf16.mxu0 %v13871_v41  ;;  %v13982_v41 = vcombine.low %v305_v34, %v309_v35  ;;  %v13991_v42 = vcombine.high %v313_v39, %v317_v40  ;;  %v425_v35 = vld [vmem:[%s21864_s0 + $0xc00] sm:$0xff] }
  0xd9   :  { %3817 = vmatmul.mubr.bf16.gmra.mrb[76].mxu0 %v13870_v44  ;;  %v325_v44 = vld [vmem:[%s21864_s0 + $0x8e0] sm:$0xff] }
  0xda   :  { %3824 = vmatprep.mubr.bf16.mxu0 %v13879_v45  ;;  %v13990_v45 = vcombine.low %v313_v39, %v317_v40  ;;  %v13999_v46 = vcombine.high %v321_v43, %v325_v44  ;;  %v433_v39 = vld [vmem:[%s21864_s0 + $0xc40] sm:$0xff] }
  0xdb   :  { %v437_v40 = vld [vmem:[%s21864_s0 + $0xc60] sm:$0xff] }
  0xe1   :  { %3825 = vmatmul.mubr.bf16.gmra.mrb[80].mxu0 %v13878_v48  ;;  %v333_v48 = vld [vmem:[%s21864_s0 + $0x920] sm:$0xff] }
  0xe2   :  { %3832 = vmatprep.mubr.bf16.mxu0 %v13887_v49  ;;  %v13998_v49 = vcombine.low %v321_v43, %v325_v44  ;;  %v14007_v50 = vcombine.high %v329_v47, %v333_v48  ;;  %v441_v43 = vld [vmem:[%s21864_s0 + $0xc80] sm:$0xff] }
  0xe3   :  { %v445_v44 = vld [vmem:[%s21864_s0 + $0xca0] sm:$0xff] }
  0xe9   :  { %3833 = vmatmul.mubr.bf16.gmra.mrb[84].mxu0 %v13886_v53  ;;  %v14006_v53 = vcombine.low %v329_v47, %v333_v48  ;;  %v449_v47 = vld [vmem:[%s21864_s0 + $0xcc0] sm:$0xff] }
  0xea   :  { %3840 = vmatprep.mubr.bf16.mxu0 %v13895_v54  ;;  %v14015_v54 = vcombine.high %v337_v51, %v341_v52  ;;  %v453_v48 = vld [vmem:[%s21864_s0 + $0xce0] sm:$0xff] }
  0xf1   :  { %3841 = vmatmul.mubr.bf16.gmra.mrb[88].mxu0 %v13894_v57  ;;  %v349_v57 = vld [vmem:[%s21864_s0 + $0x9a0] sm:$0xff] }
  0xf2   :  { %3848 = vmatprep.mubr.bf16.mxu0 %v13903_v58  ;;  %v14014_v58 = vcombine.low %v337_v51, %v341_v52  ;;  %v14023_v59 = vcombine.high %v345_v56, %v349_v57  ;;  %v457_v51 = vld [vmem:[%s21864_s0 + $0xd00] sm:$0xff] }
  0xf3   :  { %v461_v52 = vld [vmem:[%s21864_s0 + $0xd20] sm:$0xff] }
  0xf9   :  { %3849 = vmatmul.mubr.bf16.gmra.mrb[92].mxu0 %v13902_v61  ;;  %v357_v61 = vld [vmem:[%s21864_s0 + $0x9e0] sm:$0xff] }
  0xfa   :  { %3856 = vmatprep.mubr.bf16.mxu0 %v13911_v62  ;;  %v14022_v62 = vcombine.low %v345_v56, %v349_v57  ;;  %v14031_v63 = vcombine.high %v353_v60, %v357_v61  ;;  %v469_v56 = vld [vmem:[%s21864_s0 + $0xd60] sm:$0xff]  ;;  %v14134_v57 = vcombine.low %v457_v51, %v461_v52 }
 0x101   :  { %3857 = vmatmul.mubr.bf16.gmra.mrb[96].mxu0 %v13910_v2  ;;  %v365_v2 = vld [vmem:[%s21864_s0 + $0xa20] sm:$0xff] }
 0x102   :  { %3864 = vmatprep.mubr.bf16.mxu0 %v13919_v3  ;;  %v14030_v3 = vcombine.low %v353_v60, %v357_v61  ;;  %v14039_v4 = vcombine.high %v361_v1, %v365_v2  ;;  %v477_v60 = vld [vmem:[%s21864_s0 + $0xda0] sm:$0xff]  ;;  %v14142_v61 = vcombine.low %v465_v55, %v469_v56 }
 0x109   :  { %3865 = vmatmul.mubr.bf16.gmra.mrb[100].mxu0 %v13918_v7  ;;  %v14038_v7 = vcombine.low %v361_v1, %v365_v2  ;;  %v485_v1 = vld [vmem:[%s21864_s0 + $0xde0] sm:$0xff] }
 0x10a   :  { %3872 = vmatprep.mubr.bf16.mxu0 %v13927_v8  ;;  %v14047_v8 = vcombine.high %v369_v5, %v373_v6 }
 0x111   :  { %3873 = vmatmul.mubr.bf16.gmra.mrb[104].mxu0 %v13926_v11  ;;  %v381_v11 = vld [vmem:[%s21864_s0 + $0xaa0] sm:$0xff] }
 0x112   :  { %3880 = vmatprep.mubr.bf16.mxu0 %v13935_v12  ;;  %v14046_v12 = vcombine.low %v369_v5, %v373_v6  ;;  %v14055_v13 = vcombine.high %v377_v10, %v381_v11  ;;  %v493_v5 = vld [vmem:[%s21864_s0 + $0xe20] sm:$0xff] }
 0x119   :  { %3881 = vmatmul.mubr.bf16.gmra.mrb[108].mxu0 %v13934_v15  ;;  %v389_v15 = vld [vmem:[%s21864_s0 + $0xae0] sm:$0xff] }
 0x11a   :  { %3888 = vmatprep.mubr.bf16.mxu0 %v13943_v16  ;;  %v14054_v16 = vcombine.low %v377_v10, %v381_v11  ;;  %v14063_v17 = vcombine.high %v385_v14, %v389_v15 }
 0x121   :  { %3889 = vmatmul.mubr.bf16.gmra.mrb[112].mxu0 %v13942_v19  ;;  %v397_v19 = vld [vmem:[%s21864_s0 + $0xb20] sm:$0xff] }
 0x122   :  { %3896 = vmatprep.mubr.bf16.mxu0 %v13951_v20  ;;  %v14062_v20 = vcombine.low %v385_v14, %v389_v15  ;;  %v14071_v21 = vcombine.high %v393_v18, %v397_v19 }
 0x129   :  { %3897 = vmatmul.mubr.bf16.gmra.mrb[116].mxu0 %v13950_v24  ;;  %v14070_v24 = vcombine.low %v393_v18, %v397_v19 }
 0x12a   :  { %3904 = vmatprep.mubr.bf16.mxu0 %v13959_v25  ;;  %v14079_v25 = vcombine.high %v401_v22, %v405_v23 }
 0x131   :  { %3905 = vmatmul.mubr.bf16.gmra.mrb[120].mxu0 %v13958_v28  ;;  %v413_v28 = vld [vmem:[%s21864_s0 + $0xba0] sm:$0xff] }
 0x132   :  { %3912 = vmatprep.mubr.bf16.mxu0 %v13967_v29  ;;  %v14078_v29 = vcombine.low %v401_v22, %v405_v23  ;;  %v14087_v30 = vcombine.high %v409_v27, %v413_v28 }
 0x139   :  { %3913 = vmatmul.mubr.bf16.gmra.mrb[124].mxu0 %v13966_v32  ;;  %v421_v32 = vld [vmem:[%s21864_s0 + $0xbe0] sm:$0xff] }
 0x13a   :  { %3920 = vmatprep.mubr.bf16.mxu0 %v13975_v33  ;;  %v14086_v33 = vcombine.low %v409_v27, %v413_v28  ;;  %v14095_v34 = vcombine.high %v417_v31, %v421_v32  ;;  %v537_v28 = vld [vmem:[%s21864_s0 + $0xf80] sm:$0xff] }
 0x141   :  { %3921 = vmatmul.mubr.bf16.gmra.mrb[128].mxu0 %v13974_v36  ;;  %v429_v36 = vld [vmem:[%s21864_s0 + $0xc20] sm:$0xff] }
 0x142   :  { %3928 = vmatprep.mubr.bf16.mxu0 %v13983_v37  ;;  %v14094_v37 = vcombine.low %v417_v31, %v421_v32  ;;  %v14103_v38 = vcombine.high %v425_v35, %v429_v36  ;;  %v545_v32 = vld [vmem:[%s21864_s0 + $0xfc0] sm:$0xff] }
 0x149   :  { %3929 = vmatmul.mubr.bf16.gmra.mrb[132].mxu0 %v13982_v41  ;;  %v14102_v41 = vcombine.low %v425_v35, %v429_v36  ;;  %v42_v36 = vld [vmem:[%s21864_s0 + $0x8] sm:$0xff] }
 0x14a   :  { %3936 = vmatprep.mubr.bf16.mxu0 %v13991_v42  ;;  %v14111_v42 = vcombine.high %v433_v39, %v437_v40 }
 0x151   :  { %3937 = vmatmul.mubr.bf16.gmra.mrb[136].mxu0 %v13990_v45  ;;  %v14110_v45 = vcombine.low %v433_v39, %v437_v40  ;;  %v50_v40 = vld [vmem:[%s21864_s0 + $0x48] sm:$0xff] }
 0x152   :  { %3944 = vmatprep.mubr.bf16.mxu0 %v13999_v46  ;;  %v14119_v46 = vcombine.high %v441_v43, %v445_v44 }
 0x159   :  { %3945 = vmatmul.mubr.bf16.gmra.mrb[140].mxu0 %v13998_v49  ;;  %v14118_v49 = vcombine.low %v441_v43, %v445_v44  ;;  %v18099_v43 = vld [vmem:[%s21863_s1 + $0x100] sm:$0xff]  }
 0x15a   :  { %3952 = vmatprep.mubr.bf16.mxu0 %v14007_v50  ;;  %v14127_v50 = vcombine.high %v449_v47, %v453_v48 }
 0x161   :  { %3953 = vmatmul.mubr.bf16.gmra.mrb[144].mxu0 %v14006_v53  ;;  %v14126_v53 = vcombine.low %v449_v47, %v453_v48  ;;  %v62_v47 = vld [vmem:[%s21864_s0 + $0xa8] sm:$0xff] }
 0x162   :  { %3960 = vmatprep.mubr.bf16.mxu0 %v14015_v54  ;;  %v14135_v54 = vcombine.high %v457_v51, %v461_v52  ;;  %v18102_v51 = vld [vmem:[%s21863_s1 + $0x118] sm:$0xff]   ;;  %v66_v52 = vld [vmem:[%s21864_s0 + $0xc8] sm:$0xff] }
 0x169   :  { %3961 = vmatmul.mubr.bf16.gmra.mrb[148].mxu0 %v14014_v58  ;;  %v14143_v58 = vcombine.high %v465_v55, %v469_v56  ;;  %v18103_v56 = vld [vmem:[%s21863_s1 + $0x120] sm:$0xff]  }
 0x16a   :  { %3968 = vmatprep.mubr.bf16.mxu0 %v14023_v59  ;;  %v473_v59 = vld [vmem:[%s21864_s0 + $0xd80] sm:$0xff] }
 0x16b   :  { %v14150_v2 = vcombine.low %v473_v59, %v477_v60 }
 0x171   :  { %3969 = vmatmul.mubr.bf16.gmra.mrb[152].mxu0 %v14022_v62  ;;  %v14151_v62 = vcombine.high %v473_v59, %v477_v60 }
 0x172   :  { %3976 = vmatprep.mubr.bf16.mxu0 %v14031_v63  ;;  %v481_v63 = vld [vmem:[%s21864_s0 + $0xdc0] sm:$0xff] }
 0x173   :  { %v14158_v6 = vcombine.low %v481_v63, %v485_v1 }
 0x179   :  { %3977 = vmatmul.mubr.bf16.gmra.mrb[156].mxu0 %v14030_v3  ;;  %v14159_v3 = vcombine.high %v481_v63, %v485_v1 }
 0x17a   :  { %3984 = vmatprep.mubr.bf16.mxu0 %v14039_v4  ;;  %v489_v4 = vld [vmem:[%s21864_s0 + $0xe00] sm:$0xff] }
 0x17b   :  { %v14166_v10 = vcombine.low %v489_v4, %v493_v5 }
 0x181   :  { %3985 = vmatmul.mubr.bf16.gmra.mrb[160].mxu0 %v14038_v7  ;;  %v14167_v7 = vcombine.high %v489_v4, %v493_v5  ;;  %v94_v4 = vld [vmem:[%s21864_s0 + $0x1a8] sm:$0xff] }
 0x182   :  { %3992 = vmatprep.mubr.bf16.mxu0 %v14047_v8  ;;  %v497_v8 = vld [vmem:[%s21864_s0 + $0xe40] sm:$0xff] }
 0x183   :  { %v14175_v11 = vcombine.high %v497_v8, %v501_v9  ;;  %v14174_v14 = vcombine.low %v497_v8, %v501_v9  ;;  %v102_v8 = vld [vmem:[%s21864_s0 + $0x1e8] sm:$0xff] }
 0x189   :  { %3993 = vmatmul.mubr.bf16.gmra.mrb[164].mxu0 %v14046_v12  ;;  %v505_v12 = vld [vmem:[%s21864_s0 + $0xe80] sm:$0xff] }
 0x18a   :  { %4000 = vmatprep.mubr.bf16.mxu0 %v14055_v13  ;;  %v509_v13 = vld [vmem:[%s21864_s0 + $0xea0] sm:$0xff] }
 0x18b   :  { %v14183_v15 = vcombine.high %v505_v12, %v509_v13  ;;  %v14182_v18 = vcombine.low %v505_v12, %v509_v13  ;;  %v110_v12 = vld [vmem:[%s21864_s0 + $0x228] sm:$0xff] }
 0x191   :  { %4001 = vmatmul.mubr.bf16.gmra.mrb[168].mxu0 %v14054_v16  ;;  %v513_v16 = vld [vmem:[%s21864_s0 + $0xec0] sm:$0xff] }
 0x192   :  { %4008 = vmatprep.mubr.bf16.mxu0 %v14063_v17  ;;  %v517_v17 = vld [vmem:[%s21864_s0 + $0xee0] sm:$0xff] }
 0x193   :  { %v14191_v19 = vcombine.high %v513_v16, %v517_v17  ;;  %v14190_v22 = vcombine.low %v513_v16, %v517_v17  ;;  %v118_v16 = vld [vmem:[%s21864_s0 + $0x268] sm:$0xff] }
 0x199   :  { %4009 = vmatmul.mubr.bf16.gmra.mrb[172].mxu0 %v14062_v20  ;;  %v521_v20 = vld [vmem:[%s21864_s0 + $0xf00] sm:$0xff] }
 0x19a   :  { %4016 = vmatprep.mubr.bf16.mxu0 %v14071_v21  ;;  %v525_v21 = vld [vmem:[%s21864_s0 + $0xf20] sm:$0xff] }
 0x19b   :  { %v14199_v23 = vcombine.high %v521_v20, %v525_v21  ;;  %v14198_v26 = vcombine.low %v521_v20, %v525_v21  ;;  %v122_v20 = vld [vmem:[%s21864_s0 + $0x288] sm:$0xff] }
 0x19c   :  { %v126_v21 = vld [vmem:[%s21864_s0 + $0x2a8] sm:$0xff] }
 0x1a1   :  { %4017 = vmatmul.mubr.bf16.gmra.mrb[176].mxu0 %v14070_v24  ;;  %v529_v24 = vld [vmem:[%s21864_s0 + $0xf40] sm:$0xff] }
 0x1a2   :  { %4024 = vmatprep.mubr.bf16.mxu0 %v14079_v25  ;;  %v533_v25 = vld [vmem:[%s21864_s0 + $0xf60] sm:$0xff] }
 0x1a3   :  { %v14207_v27 = vcombine.high %v529_v24, %v533_v25 }
 0x1a9   :  { %4025 = vmatmul.mubr.bf16.gmra.mrb[180].mxu0 %v14078_v29  ;;  %v541_v29 = vld [vmem:[%s21864_s0 + $0xfa0] sm:$0xff] }
 0x1aa   :  { %4032 = vmatprep.mubr.bf16.mxu0 %v14087_v30  ;;  %v14206_v30 = vcombine.low %v529_v24, %v533_v25  ;;  %v14215_v31 = vcombine.high %v537_v28, %v541_v29  ;;  %v130_v24 = vld [vmem:[%s21864_s0 + $0x2c8] sm:$0xff] }
 0x1ab   :  { %v134_v25 = vld [vmem:[%s21864_s0 + $0x2e8] sm:$0xff] }
 0x1b1   :  { %4033 = vmatmul.mubr.bf16.gmra.mrb[184].mxu0 %v14086_v33  ;;  %v549_v33 = vld [vmem:[%s21864_s0 + $0xfe0] sm:$0xff] }
 0x1b2   :  { %4040 = vmatprep.mubr.bf16.mxu0 %v14095_v34  ;;  %v14214_v34 = vcombine.low %v537_v28, %v541_v29  ;;  %v14223_v35 = vcombine.high %v545_v32, %v549_v33  ;;  %v138_v28 = vld [vmem:[%s21864_s0 + $0x308] sm:$0xff] }
 0x1b3   :  { %v142_v29 = vld [vmem:[%s21864_s0 + $0x328] sm:$0xff] }
 0x1b9   :  { %4041 = vmatmul.mubr.bf16.gmra.mrb[188].mxu0 %v14094_v37  ;;  %v46_v37 = vld [vmem:[%s21864_s0 + $0x28] sm:$0xff] }
 0x1ba   :  { %4048 = vmatprep.mubr.bf16.mxu0 %v14103_v38  ;;  %v14222_v38 = vcombine.low %v545_v32, %v549_v33  ;;  %v13721_v39 = vcombine.high %v42_v36, %v46_v37  ;;  %v146_v32 = vld [vmem:[%s21864_s0 + $0x348] sm:$0xff] }
 0x1bb   :  { %v150_v33 = vld [vmem:[%s21864_s0 + $0x368] sm:$0xff] }
 0x1c1   :  { %4049 = vmatmul.mubr.bf16.gmra.mrb[192].mxu0 %v14102_v41  ;;  %v54_v41 = vld [vmem:[%s21864_s0 + $0x68] sm:$0xff] }
 0x1c2   :  { %4056 = vmatprep.mubr.bf16.mxu0 %v14111_v42  ;;  %v13720_v42 = vcombine.low %v42_v36, %v46_v37  ;;  %v13729_v44 = vcombine.high %v50_v40, %v54_v41  ;;  %v13728_v48 = vcombine.low %v50_v40, %v54_v41  ;;  %v18106_v36 = vld [vmem:[%s21863_s1 + $0x138] sm:$0xff]   ;;  %v154_v37 = vld [vmem:[%s21864_s0 + $0x388] sm:$0xff] }
 0x1c3   :  { %v162_v41 = vld [vmem:[%s21864_s0 + $0x3c8] sm:$0xff] }
 0x1c9   :  { %4057 = vmatmul.mubr.bf16.gmra.mrb[196].mxu0 %v14110_v45  ;;  %v18100_v45 = vld [vmem:[%s21863_s1 + $0x108] sm:$0xff]  }
 0x1ca   :  { %4064 = vmatprep.mubr.bf16.mxu0 %v14119_v46  ;;  %v58_v46 = vld [vmem:[%s21864_s0 + $0x88] sm:$0xff] }
 0x1d1   :  { %4065 = vmatmul.mubr.bf16.gmra.mrb[200].mxu0 %v14118_v49  ;;  %v13737_v49 = vcombine.high %v58_v46, %v62_v47 }
 0x1d2   :  { %4072 = vmatprep.mubr.bf16.mxu0 %v14127_v50  ;;  %v18101_v50 = vld [vmem:[%s21863_s1 + $0x110] sm:$0xff]  }
 0x1d9   :  { %4073 = vmatmul.mubr.bf16.gmra.mrb[204].mxu0 %v14126_v53  ;;  %v70_v53 = vld [vmem:[%s21864_s0 + $0xe8] sm:$0xff] }
 0x1da   :  { %4080 = vmatprep.mubr.bf16.mxu0 %v14135_v54  ;;  %v13736_v54 = vcombine.low %v58_v46, %v62_v47  ;;  %v13745_v55 = vcombine.high %v66_v52, %v70_v53  ;;  %v13744_v59 = vcombine.low %v66_v52, %v70_v53  ;;  %v174_v46 = vld [vmem:[%s21864_s0 + $0x428] sm:$0xff]  ;;  %v18107_v53 = vld [vmem:[%s21863_s1 + $0x140] sm:$0xff]  }
 0x1e1   :  { %4081 = vmatmul.mubr.bf16.gmra.mrb[208].mxu0 %v14134_v57  ;;  %v74_v57 = vld [vmem:[%s21864_s0 + $0x108] sm:$0xff] }
 0x1e2   :  { %4088 = vmatprep.mubr.bf16.mxu0 %v14143_v58  ;;  %v78_v58 = vld [vmem:[%s21864_s0 + $0x128] sm:$0xff] }
 0x1e3   :  { %v13753_v60 = vcombine.high %v74_v57, %v78_v58  ;;  %v13752_v63 = vcombine.low %v74_v57, %v78_v58  ;;  %v194_v58 = vld [vmem:[%s21864_s0 + $0x4c8] sm:$0xff] }
 0x1e9   :  { %4089 = vmatmul.mubr.bf16.gmra.mrb[212].mxu0 %v14142_v61  ;;  %v82_v61 = vld [vmem:[%s21864_s0 + $0x148] sm:$0xff] }
 0x1ea   :  { %4096 = vmatprep.mubr.bf16.mxu0 %v14151_v62  ;;  %v86_v62 = vld [vmem:[%s21864_s0 + $0x168] sm:$0xff] }
 0x1eb   :  { %v13761_v1 = vcombine.high %v82_v61, %v86_v62  ;;  %v13760_v5 = vcombine.low %v82_v61, %v86_v62  ;;  %v202_v62 = vld [vmem:[%s21864_s0 + $0x508] sm:$0xff] }
 0x1f1   :  { %4097 = vmatmul.mubr.bf16.gmra.mrb[216].mxu0 %v14150_v2  ;;  %v18104_v2 = vld [vmem:[%s21863_s1 + $0x128] sm:$0xff]  }
 0x1f2   :  { %4104 = vmatprep.mubr.bf16.mxu0 %v14159_v3  ;;  %v90_v3 = vld [vmem:[%s21864_s0 + $0x188] sm:$0xff] }
 0x1f3   :  { %v13768_v9 = vcombine.low %v90_v3, %v94_v4 }
 0x1f9   :  { %4105 = vmatmul.mubr.bf16.gmra.mrb[220].mxu0 %v14158_v6  ;;  %v13769_v6 = vcombine.high %v90_v3, %v94_v4  ;;  %v210_v3 = vld [vmem:[%s21864_s0 + $0x548] sm:$0xff] }
 0x1fa   :  { %4112 = vmatprep.mubr.bf16.mxu0 %v14167_v7  ;;  %v98_v7 = vld [vmem:[%s21864_s0 + $0x1c8] sm:$0xff] }
 0x1fb   :  { %v13776_v13 = vcombine.low %v98_v7, %v102_v8  ;;  %v214_v4 = vld [vmem:[%s21864_s0 + $0x568] sm:$0xff] }
 0x201   :  { %4113 = vmatmul.mubr.bf16.gmra.mrb[224].mxu0 %v14166_v10  ;;  %v13777_v10 = vcombine.high %v98_v7, %v102_v8 }
 0x202   :  { %4120 = vmatprep.mubr.bf16.mxu0 %v14175_v11  ;;  %v106_v11 = vld [vmem:[%s21864_s0 + $0x208] sm:$0xff] }
 0x203   :  { %v13784_v17 = vcombine.low %v106_v11, %v110_v12 }
 0x209   :  { %4121 = vmatmul.mubr.bf16.gmra.mrb[228].mxu0 %v14174_v14  ;;  %v13785_v14 = vcombine.high %v106_v11, %v110_v12  ;;  %v18108_v11 = vld [vmem:[%s21863_s1 + $0x148] sm:$0xff]  }
 0x20a   :  { %4128 = vmatprep.mubr.bf16.mxu0 %v14183_v15  ;;  %v114_v15 = vld [vmem:[%s21864_s0 + $0x248] sm:$0xff] }
 0x20b   :  { %v218_v12 = vld [vmem:[%s21864_s0 + $0x588] sm:$0xff] }
 0x211   :  { %4129 = vmatmul.mubr.bf16.gmra.mrb[232].mxu0 %v14182_v18  ;;  %v13793_v18 = vcombine.high %v114_v15, %v118_v16 }
 0x212   :  { %4136 = vmatprep.mubr.bf16.mxu0 %v14191_v19  ;;  %v18105_v19 = vld [vmem:[%s21863_s1 + $0x130] sm:$0xff]  }
 0x219   :  { %4137 = vmatmul.mubr.bf16.gmra.mrb[236].mxu0 %v14190_v22  ;;  %v13792_v22 = vcombine.low %v114_v15, %v118_v16  ;;  %v13888_v16 = vcombine.low %v210_v3, %v214_v4 }
 0x21a   :  { %4144 = vmatprep.mubr.bf16.mxu0 %v14199_v23  ;;  %v13801_v23 = vcombine.high %v122_v20, %v126_v21 }
 0x221   :  { %4145 = vmatmul.mubr.bf16.gmra.mrb[240].mxu0 %v14198_v26  ;;  %v13800_v26 = vcombine.low %v122_v20, %v126_v21  ;;  %v226_v20 = vld [vmem:[%s21864_s0 + $0x5c8] sm:$0xff] }
 0x222   :  { %4152 = vmatprep.mubr.bf16.mxu0 %v14207_v27  ;;  %v13809_v27 = vcombine.high %v130_v24, %v134_v25  ;;  %v230_v21 = vld [vmem:[%s21864_s0 + $0x5e8] sm:$0xff] }
 0x229   :  { %4153 = vmatmul.mubr.bf16.gmra.mrb[244].mxu0 %v14206_v30  ;;  %v13808_v30 = vcombine.low %v130_v24, %v134_v25 }
 0x22a   :  { %4160 = vmatprep.mubr.bf16.mxu0 %v14215_v31  ;;  %v13817_v31 = vcombine.high %v138_v28, %v142_v29 }
 0x231   :  { %4161 = vmatmul.mubr.bf16.gmra.mrb[248].mxu0 %v14214_v34  ;;  %v13816_v34 = vcombine.low %v138_v28, %v142_v29  ;;  %v234_v28 = vld [vmem:[%s21864_s0 + $0x608] sm:$0xff] }
 0x232   :  { %4168 = vmatprep.mubr.bf16.mxu0 %v14223_v35  ;;  %v13825_v35 = vcombine.high %v146_v32, %v150_v33  ;;  %v238_v29 = vld [vmem:[%s21864_s0 + $0x628] sm:$0xff] }
 0x239   :  { %4169 = vmatmul.mubr.bf16.gmra.mrb[252].mxu0 %v14222_v38  ;;  %v158_v38 = vld [vmem:[%s21864_s0 + $0x3a8] sm:$0xff] }
 0x23a   :  { %4209 = vmatprep.mubr.bf16.mxu0 %v13721_v39  ;;  %v13824_v39 = vcombine.low %v146_v32, %v150_v33  ;;  %v13833_v40 = vcombine.high %v154_v37, %v158_v38  ;;  %v13904_v32 = vcombine.low %v226_v20, %v230_v21 }
 0x241   :  { %4210 = vmatmul.mubr.bf16.vlgmr.msra.gmra.mrb[0].mxu0 %v13720_v42  ;;  %v166_v42 = vld [vmem:[%s21864_s0 + $0x3e8] sm:$0xff] }
 0x242   :  { %4723 = vmatpush1.bf16.msra.mxu0 %v18099_v43  ;;  %4217 = vmatprep.mubr.bf16.mxu0 %v13729_v44  ;;  %v13832_v43 = vcombine.low %v154_v37, %v158_v38  ;;  %v13841_v44 = vcombine.high %v162_v41, %v166_v42  ;;  %v13840_v47 = vcombine.low %v162_v41, %v166_v42  ;;  %v246_v37 = vld [vmem:[%s21864_s0 + $0x668] sm:$0xff] }
 0x243   :  { %4724 = vmatprep.subr.bf16.mxu0 %v21875_v0 }
 0x246   :  { %4725 = vmatpush1.bf16.msra.mxu0 %v18100_v45  ;;  %v170_v45 = vld [vmem:[%s21864_s0 + $0x408] sm:$0xff] }
 0x247   :  { %4726 = vmatprep.subr.bf16.mxu0 %v21875_v0 }
 0x249   :  { %4218 = vmatmul.mubr.bf16.gmra.mrb[4].mxu0 %v13728_v48  ;;  %v13849_v48 = vcombine.high %v170_v45, %v174_v46 }
 0x24a   :  { %4225 = vmatprep.mubr.bf16.mxu0 %v13737_v49  ;;  %4727 = vmatpush1.bf16.msra.mxu0 %v18101_v50  ;;  %v178_v49 = vld [vmem:[%s21864_s0 + $0x448] sm:$0xff] }
 0x24b   :  { %4728 = vmatprep.subr.bf16.mxu0 %v21875_v0  ;;  %v182_v50 = vld [vmem:[%s21864_s0 + $0x468] sm:$0xff] }
 0x24c   :  { %v13857_v52 = vcombine.high %v178_v49, %v182_v50 }
 0x24e   :  { %4729 = vmatpush1.bf16.msra.mxu0 %v18102_v51  ;;  %v13848_v51 = vcombine.low %v170_v45, %v174_v46  ;;  %v250_v45 = vld [vmem:[%s21864_s0 + $0x688] sm:$0xff] }
 0x24f   :  { %4730 = vmatprep.subr.bf16.mxu0 %v21875_v0  ;;  %v254_v46 = vld [vmem:[%s21864_s0 + $0x6a8] sm:$0xff] }
 0x251   :  { %4226 = vmatmul.mubr.bf16.gmra.mrb[8].mxu0 %v13736_v54  ;;  %v186_v54 = vld [vmem:[%s21864_s0 + $0x488] sm:$0xff] }
 0x252   :  { %4233 = vmatprep.mubr.bf16.mxu0 %v13745_v55  ;;  %4731 = vmatpush1.bf16.msra.mxu0 %v18103_v56  ;;  %v190_v55 = vld [vmem:[%s21864_s0 + $0x4a8] sm:$0xff]  ;;  %v13856_v56 = vcombine.low %v178_v49, %v182_v50 }
 0x253   :  { %4732 = vmatprep.subr.bf16.mxu0 %v21875_v0  ;;  %v13865_v57 = vcombine.high %v186_v54, %v190_v55 }
 0x256   :  { %4733 = vmatpush1.bf16.msra.mxu0 %v18104_v2 }
 0x257   :  { %4734 = vmatprep.subr.bf16.mxu0 %v21875_v0 }
 0x259   :  { %4234 = vmatmul.mubr.bf16.gmra.mrb[12].mxu0 %v13744_v59  ;;  %v198_v59 = vld [vmem:[%s21864_s0 + $0x4e8] sm:$0xff] }
 0x25a   :  { %4241 = vmatprep.mubr.bf16.mxu0 %v13753_v60  ;;  %4735 = vmatpush1.bf16.msra.mxu0 %v18105_v19  ;;  %v13864_v60 = vcombine.low %v186_v54, %v190_v55  ;;  %v13873_v61 = vcombine.high %v194_v58, %v198_v59  ;;  %v262_v54 = vld [vmem:[%s21864_s0 + $0x6e8] sm:$0xff] }
 0x25b   :  { %4736 = vmatprep.subr.bf16.mxu0 %v21875_v0 }
 0x25e   :  { %4737 = vmatpush1.bf16.msra.mxu0 %v18106_v36  ;;  %v242_v36 = vld [vmem:[%s21864_s0 + $0x648] sm:$0xff] }
 0x25f   :  { %4738 = vmatprep.subr.bf16.mxu0 %v21875_v0  ;;  %v13921_v42 = vcombine.high %v242_v36, %v246_v37  ;;  %v13920_v49 = vcombine.low %v242_v36, %v246_v37  ;;  %v338_v36 = vld [vmem:[%s21864_s0 + $0x948] sm:$0xff] }
 0x260   :  { %v342_v37 = vld [vmem:[%s21864_s0 + $0x968] sm:$0xff] }
 0x261   :  { %4242 = vmatmul.mubr.bf16.gmra.mrb[16].mxu0 %v13752_v63  ;;  %v206_v63 = vld [vmem:[%s21864_s0 + $0x528] sm:$0xff] }
 0x262   :  { %4249 = vmatprep.mubr.bf16.mxu0 %v13761_v1  ;;  %4739 = vmatpush1.bf16.msra.mxu0 %v18107_v53  ;;  %v13872_v1 = vcombine.low %v194_v58, %v198_v59  ;;  %v13881_v2 = vcombine.high %v202_v62, %v206_v63  ;;  %v13880_v7 = vcombine.low %v202_v62, %v206_v63  ;;  %v258_v53 = vld [vmem:[%s21864_s0 + $0x6c8] sm:$0xff] }
 0x263   :  { %4740 = vmatprep.subr.bf16.mxu0 %v21875_v0  ;;  %v13937_v59 = vcombine.high %v258_v53, %v262_v54  ;;  %v270_v62 = vld [vmem:[%s21864_s0 + $0x728] sm:$0xff]  ;;  %v13936_v63 = vcombine.low %v258_v53, %v262_v54 }
 0x264   :  { %v370_v53 = vld [vmem:[%s21864_s0 + $0xa48] sm:$0xff] }
 0x265   :  { %v374_v54 = vld [vmem:[%s21864_s0 + $0xa68] sm:$0xff] }
 0x266   :  { %4741 = vmatpush1.bf16.msra.mxu0 %v18108_v11  ;;  %v290_v11 = vld [vmem:[%s21864_s0 + $0x7c8] sm:$0xff] }
 0x267   :  { %4742 = vmatprep.subr.bf16.mxu0 %v21875_v0 }
 0x269   :  { %4250 = vmatmul.mubr.bf16.gmra.mrb[20].mxu0 %v13760_v5 }
 0x26a   :  { %4257 = vmatprep.mubr.bf16.mxu0 %v13769_v6 }
 0x271   :  { %4258 = vmatmul.mubr.bf16.gmra.mrb[24].mxu0 %v13768_v9  ;;  %v13889_v9 = vcombine.high %v210_v3, %v214_v4  ;;  %v278_v3 = vld [vmem:[%s21864_s0 + $0x768] sm:$0xff] }
 0x272   :  { %4265 = vmatprep.mubr.bf16.mxu0 %v13777_v10 }
 0x279   :  { %4266 = vmatmul.mubr.bf16.gmra.mrb[28].mxu0 %v13776_v13  ;;  %v222_v13 = vld [vmem:[%s21864_s0 + $0x5a8] sm:$0xff] }
 0x27a   :  { %4273 = vmatprep.mubr.bf16.mxu0 %v13785_v14  ;;  %v13896_v24 = vcombine.low %v218_v12, %v222_v13 }
 0x281   :  { %4274 = vmatmul.mubr.bf16.gmra.mrb[32].mxu0 %v13784_v17 }
 0x282   :  { %4281 = vmatprep.mubr.bf16.mxu0 %v13793_v18  ;;  %v13897_v18 = vcombine.high %v218_v12, %v222_v13  ;;  %v294_v12 = vld [vmem:[%s21864_s0 + $0x7e8] sm:$0xff] }
 0x289   :  { %4282 = vmatmul.mubr.bf16.gmra.mrb[36].mxu0 %v13792_v22 }
 0x28a   :  { %4289 = vmatprep.mubr.bf16.mxu0 %v13801_v23 }
 0x291   :  { %4290 = vmatmul.mubr.bf16.gmra.mrb[40].mxu0 %v13800_v26  ;;  %v13905_v26 = vcombine.high %v226_v20, %v230_v21  ;;  %v310_v20 = vld [vmem:[%s21864_s0 + $0x868] sm:$0xff] }
 0x292   :  { %4297 = vmatprep.mubr.bf16.mxu0 %v13809_v27 }
 0x299   :  { %4298 = vmatmul.mubr.bf16.gmra.mrb[44].mxu0 %v13808_v30 }
 0x29a   :  { %4305 = vmatprep.mubr.bf16.mxu0 %v13817_v31 }
 0x2a1   :  { %4306 = vmatmul.mubr.bf16.gmra.mrb[48].mxu0 %v13816_v34  ;;  %v13913_v34 = vcombine.high %v234_v28, %v238_v29 }
 0x2a2   :  { %4313 = vmatprep.mubr.bf16.mxu0 %v13825_v35 }
 0x2a9   :  { %4314 = vmatmul.mubr.bf16.gmra.mrb[52].mxu0 %v13824_v39 }
 0x2aa   :  { %4321 = vmatprep.mubr.bf16.mxu0 %v13833_v40  ;;  %v13912_v40 = vcombine.low %v234_v28, %v238_v29  ;;  %v322_v28 = vld [vmem:[%s21864_s0 + $0x8c8] sm:$0xff] }
 0x2ab   :  { %v326_v29 = vld [vmem:[%s21864_s0 + $0x8e8] sm:$0xff] }
 0x2b1   :  { %4322 = vmatmul.mubr.bf16.gmra.mrb[56].mxu0 %v13832_v43 }
 0x2b2   :  { %4329 = vmatprep.mubr.bf16.mxu0 %v13841_v44  ;;  %v18109_v44 = vld [vmem:[%s21863_s1 + $0x150] sm:$0xff]  }
 0x2b3   :  { %4743 = vmatpush1.bf16.msra.mxu0 %v18109_v44 }
 0x2b4   :  { %4744 = vmatprep.subr.bf16.mxu0 %v21875_v0 }
 0x2b9   :  { %4330 = vmatmul.mubr.bf16.gmra.mrb[60].mxu0 %v13840_v47 }
 0x2ba   :  { %4337 = vmatprep.mubr.bf16.mxu0 %v13849_v48 }
 0x2c1   :  { %4338 = vmatmul.mubr.bf16.gmra.mrb[64].mxu0 %v13848_v51  ;;  %v13929_v51 = vcombine.high %v250_v45, %v254_v46 }
 0x2c2   :  { %4345 = vmatprep.mubr.bf16.mxu0 %v13857_v52 }
 0x2c9   :  { %4346 = vmatmul.mubr.bf16.gmra.mrb[68].mxu0 %v13856_v56 }
 0x2ca   :  { %4353 = vmatprep.mubr.bf16.mxu0 %v13865_v57  ;;  %v13928_v57 = vcombine.low %v250_v45, %v254_v46  ;;  %v354_v45 = vld [vmem:[%s21864_s0 + $0x9c8] sm:$0xff] }
 0x2cb   :  { %v358_v46 = vld [vmem:[%s21864_s0 + $0x9e8] sm:$0xff] }
 0x2d1   :  { %4354 = vmatmul.mubr.bf16.gmra.mrb[72].mxu0 %v13864_v60 }
 0x2d2   :  { %4361 = vmatprep.mubr.bf16.mxu0 %v13873_v61  ;;  %v266_v61 = vld [vmem:[%s21864_s0 + $0x708] sm:$0xff] }
 0x2d3   :  { %v13944_v4 = vcombine.low %v266_v61, %v270_v62 }
 0x2d9   :  { %4362 = vmatmul.mubr.bf16.gmra.mrb[76].mxu0 %v13872_v1  ;;  %v13945_v1 = vcombine.high %v266_v61, %v270_v62  ;;  %v386_v62 = vld [vmem:[%s21864_s0 + $0xac8] sm:$0xff] }
 0x2da   :  { %4369 = vmatprep.mubr.bf16.mxu0 %v13881_v2  ;;  %v274_v2 = vld [vmem:[%s21864_s0 + $0x748] sm:$0xff] }
 0x2dc   :  { %v4122_v5 = vpop.f32.mrb[228].mxu0 }
 0x2dd   :  { %v4124_v6 = vpop.f32.mrb[229].mxu0  ;;  %v13953_v5 = vcombine.high %v274_v2, %v278_v3 }
 0x2de   :  { %v4125_v8 = vpop.f32.mrb[230].mxu0  ;;  %v18110_v6 = vld [vmem:[%s21863_s1 + $0x158] sm:$0xff]  }
 0x2df   :  { %v4127_v10 = vpop.f32.mrb[231].mxu0  ;;  %v286_v8 = vld [vmem:[%s21864_s0 + $0x7a8] sm:$0xff]  ;;  %4745 = vmatpush1.bf16.msra.mxu0 %v18110_v6 }
 0x2e0   :  { %4746 = vmatprep.subr.bf16.mxu0 %v21875_v0 }
 0x2e1   :  { %4370 = vmatmul.mubr.bf16.gmra.mrb[80].mxu0 %v13880_v7  ;;  %v282_v7 = vld [vmem:[%s21864_s0 + $0x788] sm:$0xff] }
 0x2e2   :  { %4377 = vmatprep.mubr.bf16.mxu0 %v13889_v9  ;;  %v13952_v9 = vcombine.low %v274_v2, %v278_v3  ;;  %v13961_v10 = vcombine.high %v282_v7, %v286_v8  ;;  %v13960_v13 = vcombine.low %v282_v7, %v286_v8  ;;  %v394_v3 = vld [vmem:[%s21864_s0 + $0xb08] sm:$0xff] }
 0x2e3   :  { %v402_v7 = vld [vmem:[%s21864_s0 + $0xb48] sm:$0xff] }
 0x2e4   :  { %v4130_v14 = vpop.f32.mrb[232].mxu0  ;;  %v406_v8 = vld [vmem:[%s21864_s0 + $0xb68] sm:$0xff] }
 0x2e5   :  { %v4132_v15 = vpop.f32.mrb[233].mxu0  ;;  %v13969_v14 = vcombine.high %v290_v11, %v294_v12 }
 0x2e6   :  { %v4133_v17 = vpop.f32.mrb[234].mxu0  ;;  %v298_v15 = vld [vmem:[%s21864_s0 + $0x808] sm:$0xff] }
 0x2e7   :  { %v4135_v19 = vpop.f32.mrb[235].mxu0  ;;  %v13968_v17 = vcombine.low %v290_v11, %v294_v12  ;;  %v18114_v11 = vld [vmem:[%s21863_s1 + $0x178] sm:$0xff]   ;;  %v410_v12 = vld [vmem:[%s21864_s0 + $0xb88] sm:$0xff] }
 0x2e8   :  { %v306_v19 = vld [vmem:[%s21864_s0 + $0x848] sm:$0xff] }
 0x2e9   :  { %4378 = vmatmul.mubr.bf16.gmra.mrb[84].mxu0 %v13888_v16  ;;  %v302_v16 = vld [vmem:[%s21864_s0 + $0x828] sm:$0xff] }
 0x2ea   :  { %4385 = vmatprep.mubr.bf16.mxu0 %v13897_v18  ;;  %v13977_v18 = vcombine.high %v298_v15, %v302_v16  ;;  %v13976_v21 = vcombine.low %v298_v15, %v302_v16  ;;  %v418_v16 = vld [vmem:[%s21864_s0 + $0xbc8] sm:$0xff] }
 0x2ec   :  { %v4138_v22 = vpop.f32.mrb[236].mxu0 }
 0x2ed   :  { %v4140_v23 = vpop.f32.mrb[237].mxu0  ;;  %v13985_v22 = vcombine.high %v306_v19, %v310_v20 }
 0x2ee   :  { %v4141_v25 = vpop.f32.mrb[238].mxu0  ;;  %v18111_v23 = vld [vmem:[%s21863_s1 + $0x160] sm:$0xff]  }
 0x2ef   :  { %v4143_v27 = vpop.f32.mrb[239].mxu0  ;;  %v318_v25 = vld [vmem:[%s21864_s0 + $0x8a8] sm:$0xff]  ;;  %4747 = vmatpush1.bf16.msra.mxu0 %v18111_v23 }
 0x2f0   :  { %4748 = vmatprep.subr.bf16.mxu0 %v21875_v0 }
 0x2f1   :  { %4386 = vmatmul.mubr.bf16.gmra.mrb[88].mxu0 %v13896_v24  ;;  %v314_v24 = vld [vmem:[%s21864_s0 + $0x888] sm:$0xff] }
 0x2f2   :  { %4393 = vmatprep.mubr.bf16.mxu0 %v13905_v26  ;;  %v13984_v26 = vcombine.low %v306_v19, %v310_v20  ;;  %v13993_v27 = vcombine.high %v314_v24, %v318_v25  ;;  %v426_v20 = vld [vmem:[%s21864_s0 + $0xc08] sm:$0xff] }
 0x2f4   :  { %v4146_v30 = vpop.f32.mrb[240].mxu0 }
 0x2f5   :  { %v4148_v31 = vpop.f32.mrb[241].mxu0  ;;  %v13992_v30 = vcombine.low %v314_v24, %v318_v25  ;;  %v434_v24 = vld [vmem:[%s21864_s0 + $0xc48] sm:$0xff] }
 0x2f6   :  { %v4149_v33 = vpop.f32.mrb[242].mxu0  ;;  %v14001_v31 = vcombine.high %v322_v28, %v326_v29  ;;  %v438_v25 = vld [vmem:[%s21864_s0 + $0xc68] sm:$0xff] }
 0x2f7   :  { %v4151_v35 = vpop.f32.mrb[243].mxu0  ;;  %v334_v33 = vld [vmem:[%s21864_s0 + $0x928] sm:$0xff] }
 0x2f9   :  { %4394 = vmatmul.mubr.bf16.gmra.mrb[92].mxu0 %v13904_v32  ;;  %v330_v32 = vld [vmem:[%s21864_s0 + $0x908] sm:$0xff] }
 0x2fa   :  { %4401 = vmatprep.mubr.bf16.mxu0 %v13913_v34  ;;  %v14000_v34 = vcombine.low %v322_v28, %v326_v29  ;;  %v14009_v35 = vcombine.high %v330_v32, %v334_v33  ;;  %v442_v28 = vld [vmem:[%s21864_s0 + $0xc88] sm:$0xff] }
 0x2fb   :  { %v446_v29 = vld [vmem:[%s21864_s0 + $0xca8] sm:$0xff] }
 0x2fc   :  { %v4154_v38 = vpop.f32.mrb[244].mxu0 }
 0x2fd   :  { %v4156_v39 = vpop.f32.mrb[245].mxu0  ;;  %v14008_v38 = vcombine.low %v330_v32, %v334_v33  ;;  %v450_v32 = vld [vmem:[%s21864_s0 + $0xcc8] sm:$0xff] }
 0x2fe   :  { %v4157_v41 = vpop.f32.mrb[246].mxu0  ;;  %v14017_v39 = vcombine.high %v338_v36, %v342_v37  ;;  %v454_v33 = vld [vmem:[%s21864_s0 + $0xce8] sm:$0xff] }
 0x2ff   :  { %v4159_v43 = vpop.f32.mrb[247].mxu0  ;;  %v346_v41 = vld [vmem:[%s21864_s0 + $0x988] sm:$0xff] }
 0x300   :  { %v14016_v43 = vcombine.low %v338_v36, %v342_v37  ;;  %v458_v36 = vld [vmem:[%s21864_s0 + $0xd08] sm:$0xff] }
 0x301   :  { %4402 = vmatmul.mubr.bf16.gmra.mrb[96].mxu0 %v13912_v40  ;;  %v18112_v40 = vld [vmem:[%s21863_s1 + $0x168] sm:$0xff]  }
 0x302   :  { %4409 = vmatprep.mubr.bf16.mxu0 %v13921_v42  ;;  %v350_v42 = vld [vmem:[%s21864_s0 + $0x9a8] sm:$0xff]  ;;  %4749 = vmatpush1.bf16.msra.mxu0 %v18112_v40 }
 0x303   :  { %4750 = vmatprep.subr.bf16.mxu0 %v21875_v0  ;;  %v14025_v44 = vcombine.high %v346_v41, %v350_v42  ;;  %v462_v37 = vld [vmem:[%s21864_s0 + $0xd28] sm:$0xff] }
 0x304   :  { %v4162_v47 = vpop.f32.mrb[248].mxu0  ;;  %v466_v40 = vld [vmem:[%s21864_s0 + $0xd48] sm:$0xff] }
 0x305   :  { %v4164_v48 = vpop.f32.mrb[249].mxu0  ;;  %v14024_v47 = vcombine.low %v346_v41, %v350_v42  ;;  %v470_v41 = vld [vmem:[%s21864_s0 + $0xd68] sm:$0xff]  ;;  %v14136_v42 = vcombine.low %v458_v36, %v462_v37 }
 0x306   :  { %v4165_v50 = vpop.f32.mrb[250].mxu0  ;;  %v14033_v48 = vcombine.high %v354_v45, %v358_v46 }
 0x307   :  { %v4167_v52 = vpop.f32.mrb[251].mxu0  ;;  %v366_v50 = vld [vmem:[%s21864_s0 + $0xa28] sm:$0xff] }
 0x309   :  { %4410 = vmatmul.mubr.bf16.gmra.mrb[100].mxu0 %v13920_v49  ;;  %v362_v49 = vld [vmem:[%s21864_s0 + $0xa08] sm:$0xff] }
 0x30a   :  { %4417 = vmatprep.mubr.bf16.mxu0 %v13929_v51  ;;  %v14032_v51 = vcombine.low %v354_v45, %v358_v46  ;;  %v14041_v52 = vcombine.high %v362_v49, %v366_v50  ;;  %v478_v45 = vld [vmem:[%s21864_s0 + $0xda8] sm:$0xff]  ;;  %v14144_v46 = vcombine.low %v466_v40, %v470_v41 }
 0x30c   :  { %v4170_v55 = vpop.f32.mrb[252].mxu0 }
 0x30d   :  { %v4172_v56 = vpop.f32.mrb[253].mxu0  ;;  %v14040_v55 = vcombine.low %v362_v49, %v366_v50  ;;  %v486_v49 = vld [vmem:[%s21864_s0 + $0xde8] sm:$0xff] }
 0x30e   :  { %v4173_v58 = vpop.f32.mrb[254].mxu0  ;;  %v14049_v56 = vcombine.high %v370_v53, %v374_v54 }
 0x30f   :  { %v4175_v60 = vpop.f32.mrb[255].mxu0  ;;  %v378_v58 = vld [vmem:[%s21864_s0 + $0xa88] sm:$0xff] }
 0x310   :  { %v14048_v60 = vcombine.low %v370_v53, %v374_v54  ;;  %v494_v53 = vld [vmem:[%s21864_s0 + $0xe28] sm:$0xff] }
 0x311   :  { %4418 = vmatmul.mubr.bf16.gmra.mrb[104].mxu0 %v13928_v57  ;;  %v18113_v57 = vld [vmem:[%s21863_s1 + $0x170] sm:$0xff]  }
 0x312   :  { %4425 = vmatprep.mubr.bf16.mxu0 %v13937_v59  ;;  %v382_v59 = vld [vmem:[%s21864_s0 + $0xaa8] sm:$0xff]  ;;  %4751 = vmatpush1.bf16.msra.mxu0 %v18113_v57 }
 0x313   :  { %4752 = vmatprep.subr.bf16.mxu0 %v21875_v0  ;;  %v14057_v61 = vcombine.high %v378_v58, %v382_v59  ;;  %v502_v57 = vld [vmem:[%s21864_s0 + $0xe68] sm:$0xff] }
 0x316   :  { %4753 = vmatpush1.bf16.msra.mxu0 %v18114_v11 }
 0x317   :  { %5267 = vmatprep.subr.bf16.mxu0 %v21875_v0 }
 0x319   :  { %4426 = vmatmul.mubr.bf16.gmra.mrb[108].mxu0 %v13936_v63  ;;  %v390_v63 = vld [vmem:[%s21864_s0 + $0xae8] sm:$0xff] }
 0x31a   :  { %4433 = vmatprep.mubr.bf16.mxu0 %v13945_v1  ;;  %v14056_v1 = vcombine.low %v378_v58, %v382_v59  ;;  %v14065_v2 = vcombine.high %v386_v62, %v390_v63 }
 0x321   :  { %4434 = vmatmul.mubr.bf16.gmra.mrb[112].mxu0 %v13944_v4  ;;  %v398_v4 = vld [vmem:[%s21864_s0 + $0xb28] sm:$0xff] }
 0x322   :  { %4441 = vmatprep.mubr.bf16.mxu0 %v13953_v5  ;;  %v14064_v5 = vcombine.low %v386_v62, %v390_v63  ;;  %v14073_v6 = vcombine.high %v394_v3, %v398_v4 }
 0x329   :  { %4442 = vmatmul.mubr.bf16.gmra.mrb[116].mxu0 %v13952_v9  ;;  %v14072_v9 = vcombine.low %v394_v3, %v398_v4 }
 0x32a   :  { %4449 = vmatprep.mubr.bf16.mxu0 %v13961_v10  ;;  %v14081_v10 = vcombine.high %v402_v7, %v406_v8 }
 0x331   :  { %4450 = vmatmul.mubr.bf16.gmra.mrb[120].mxu0 %v13960_v13  ;;  %v414_v13 = vld [vmem:[%s21864_s0 + $0xba8] sm:$0xff] }
 0x332   :  { %4457 = vmatprep.mubr.bf16.mxu0 %v13969_v14  ;;  %v14080_v14 = vcombine.low %v402_v7, %v406_v8  ;;  %v14089_v15 = vcombine.high %v410_v12, %v414_v13 }
 0x339   :  { %4458 = vmatmul.mubr.bf16.gmra.mrb[124].mxu0 %v13968_v17  ;;  %v422_v17 = vld [vmem:[%s21864_s0 + $0xbe8] sm:$0xff] }
 0x33a   :  { %4465 = vmatprep.mubr.bf16.mxu0 %v13977_v18  ;;  %v14088_v18 = vcombine.low %v410_v12, %v414_v13  ;;  %v14097_v19 = vcombine.high %v418_v16, %v422_v17  ;;  %v538_v13 = vld [vmem:[%s21864_s0 + $0xf88] sm:$0xff] }
 0x341   :  { %4466 = vmatmul.mubr.bf16.gmra.mrb[128].mxu0 %v13976_v21  ;;  %v430_v21 = vld [vmem:[%s21864_s0 + $0xc28] sm:$0xff] }
 0x342   :  { %4473 = vmatprep.mubr.bf16.mxu0 %v13985_v22  ;;  %v14096_v22 = vcombine.low %v418_v16, %v422_v17  ;;  %v14105_v23 = vcombine.high %v426_v20, %v430_v21  ;;  %v546_v17 = vld [vmem:[%s21864_s0 + $0xfc8] sm:$0xff] }
 0x349   :  { %4474 = vmatmul.mubr.bf16.gmra.mrb[132].mxu0 %v13984_v26  ;;  %v14104_v26 = vcombine.low %v426_v20, %v430_v21  ;;  %v43_v21 = vld [vmem:[%s21864_s0 + $0x10] sm:$0xff] }
 0x34a   :  { %4481 = vmatprep.mubr.bf16.mxu0 %v13993_v27  ;;  %v14113_v27 = vcombine.high %v434_v24, %v438_v25 }
 0x351   :  { %4482 = vmatmul.mubr.bf16.gmra.mrb[136].mxu0 %v13992_v30  ;;  %v14112_v30 = vcombine.low %v434_v24, %v438_v25  ;;  %v51_v25 = vld [vmem:[%s21864_s0 + $0x50] sm:$0xff] }
 0x352   :  { %4489 = vmatprep.mubr.bf16.mxu0 %v14001_v31  ;;  %v14121_v31 = vcombine.high %v442_v28, %v446_v29 }
 0x359   :  { %4490 = vmatmul.mubr.bf16.gmra.mrb[140].mxu0 %v14000_v34  ;;  %v14120_v34 = vcombine.low %v442_v28, %v446_v29  ;;  %v18115_v28 = vld [vmem:[%s21863_s1 + $0x180] sm:$0xff]  }
 0x35a   :  { %4497 = vmatprep.mubr.bf16.mxu0 %v14009_v35  ;;  %v14129_v35 = vcombine.high %v450_v32, %v454_v33 }
 0x361   :  { %4498 = vmatmul.mubr.bf16.gmra.mrb[144].mxu0 %v14008_v38  ;;  %v14128_v38 = vcombine.low %v450_v32, %v454_v33  ;;  %v63_v32 = vld [vmem:[%s21864_s0 + $0xb0] sm:$0xff] }
 0x362   :  { %4505 = vmatprep.mubr.bf16.mxu0 %v14017_v39  ;;  %v14137_v39 = vcombine.high %v458_v36, %v462_v37  ;;  %v18118_v36 = vld [vmem:[%s21863_s1 + $0x198] sm:$0xff]   ;;  %v67_v37 = vld [vmem:[%s21864_s0 + $0xd0] sm:$0xff] }
 0x369   :  { %4506 = vmatmul.mubr.bf16.gmra.mrb[148].mxu0 %v14016_v43  ;;  %v14145_v43 = vcombine.high %v466_v40, %v470_v41  ;;  %v18119_v41 = vld [vmem:[%s21863_s1 + $0x1a0] sm:$0xff]  }
 0x36a   :  { %4513 = vmatprep.mubr.bf16.mxu0 %v14025_v44  ;;  %v474_v44 = vld [vmem:[%s21864_s0 + $0xd88] sm:$0xff] }
 0x36b   :  { %v14152_v50 = vcombine.low %v474_v44, %v478_v45 }
 0x371   :  { %4514 = vmatmul.mubr.bf16.gmra.mrb[152].mxu0 %v14024_v47  ;;  %v14153_v47 = vcombine.high %v474_v44, %v478_v45 }
 0x372   :  { %4521 = vmatprep.mubr.bf16.mxu0 %v14033_v48  ;;  %v482_v48 = vld [vmem:[%s21864_s0 + $0xdc8] sm:$0xff] }
 0x373   :  { %v14160_v54 = vcombine.low %v482_v48, %v486_v49 }
 0x379   :  { %4522 = vmatmul.mubr.bf16.gmra.mrb[156].mxu0 %v14032_v51  ;;  %v14161_v51 = vcombine.high %v482_v48, %v486_v49 }
 0x37a   :  { %4529 = vmatprep.mubr.bf16.mxu0 %v14041_v52  ;;  %v490_v52 = vld [vmem:[%s21864_s0 + $0xe08] sm:$0xff] }
 0x37b   :  { %v14168_v58 = vcombine.low %v490_v52, %v494_v53 }
 0x381   :  { %4530 = vmatmul.mubr.bf16.gmra.mrb[160].mxu0 %v14040_v55  ;;  %v14169_v55 = vcombine.high %v490_v52, %v494_v53  ;;  %v95_v52 = vld [vmem:[%s21864_s0 + $0x1b0] sm:$0xff] }
 0x382   :  { %4537 = vmatprep.mubr.bf16.mxu0 %v14049_v56  ;;  %v498_v56 = vld [vmem:[%s21864_s0 + $0xe48] sm:$0xff] }
 0x383   :  { %v14177_v59 = vcombine.high %v498_v56, %v502_v57  ;;  %v14176_v62 = vcombine.low %v498_v56, %v502_v57  ;;  %v103_v56 = vld [vmem:[%s21864_s0 + $0x1f0] sm:$0xff] }
 0x389   :  { %4538 = vmatmul.mubr.bf16.gmra.mrb[164].mxu0 %v14048_v60  ;;  %v506_v60 = vld [vmem:[%s21864_s0 + $0xe88] sm:$0xff] }
 0x38a   :  { %4545 = vmatprep.mubr.bf16.mxu0 %v14057_v61  ;;  %v510_v61 = vld [vmem:[%s21864_s0 + $0xea8] sm:$0xff] }
 0x38b   :  { %v14185_v63 = vcombine.high %v506_v60, %v510_v61  ;;  %v14184_v3 = vcombine.low %v506_v60, %v510_v61  ;;  %v111_v60 = vld [vmem:[%s21864_s0 + $0x230] sm:$0xff] }
 0x391   :  { %4546 = vmatmul.mubr.bf16.gmra.mrb[168].mxu0 %v14056_v1  ;;  %v514_v1 = vld [vmem:[%s21864_s0 + $0xec8] sm:$0xff] }
 0x392   :  { %4553 = vmatprep.mubr.bf16.mxu0 %v14065_v2  ;;  %v518_v2 = vld [vmem:[%s21864_s0 + $0xee8] sm:$0xff] }
 0x393   :  { %v14193_v4 = vcombine.high %v514_v1, %v518_v2  ;;  %v14192_v7 = vcombine.low %v514_v1, %v518_v2  ;;  %v119_v1 = vld [vmem:[%s21864_s0 + $0x270] sm:$0xff] }
 0x399   :  { %4554 = vmatmul.mubr.bf16.gmra.mrb[172].mxu0 %v14064_v5  ;;  %v522_v5 = vld [vmem:[%s21864_s0 + $0xf08] sm:$0xff] }
 0x39a   :  { %4561 = vmatprep.mubr.bf16.mxu0 %v14073_v6  ;;  %v526_v6 = vld [vmem:[%s21864_s0 + $0xf28] sm:$0xff] }
 0x39b   :  { %v14201_v8 = vcombine.high %v522_v5, %v526_v6  ;;  %v14200_v11 = vcombine.low %v522_v5, %v526_v6  ;;  %v123_v5 = vld [vmem:[%s21864_s0 + $0x290] sm:$0xff] }
 0x39c   :  { %v127_v6 = vld [vmem:[%s21864_s0 + $0x2b0] sm:$0xff] }
 0x3a1   :  { %4562 = vmatmul.mubr.bf16.gmra.mrb[176].mxu0 %v14072_v9  ;;  %v530_v9 = vld [vmem:[%s21864_s0 + $0xf48] sm:$0xff] }
 0x3a2   :  { %4569 = vmatprep.mubr.bf16.mxu0 %v14081_v10  ;;  %v534_v10 = vld [vmem:[%s21864_s0 + $0xf68] sm:$0xff] }
 0x3a3   :  { %v14209_v12 = vcombine.high %v530_v9, %v534_v10 }
 0x3a9   :  { %4570 = vmatmul.mubr.bf16.gmra.mrb[180].mxu0 %v14080_v14  ;;  %v542_v14 = vld [vmem:[%s21864_s0 + $0xfa8] sm:$0xff] }
 0x3aa   :  { %4577 = vmatprep.mubr.bf16.mxu0 %v14089_v15  ;;  %v14208_v15 = vcombine.low %v530_v9, %v534_v10  ;;  %v14217_v16 = vcombine.high %v538_v13, %v542_v14  ;;  %v131_v9 = vld [vmem:[%s21864_s0 + $0x2d0] sm:$0xff] }
 0x3ab   :  { %v135_v10 = vld [vmem:[%s21864_s0 + $0x2f0] sm:$0xff] }
 0x3b1   :  { %4578 = vmatmul.mubr.bf16.gmra.mrb[184].mxu0 %v14088_v18  ;;  %v550_v18 = vld [vmem:[%s21864_s0 + $0xfe8] sm:$0xff] }
 0x3b2   :  { %4585 = vmatprep.mubr.bf16.mxu0 %v14097_v19  ;;  %v14216_v19 = vcombine.low %v538_v13, %v542_v14  ;;  %v14225_v20 = vcombine.high %v546_v17, %v550_v18  ;;  %v139_v13 = vld [vmem:[%s21864_s0 + $0x310] sm:$0xff] }
 0x3b3   :  { %v143_v14 = vld [vmem:[%s21864_s0 + $0x330] sm:$0xff] }
 0x3b9   :  { %4586 = vmatmul.mubr.bf16.gmra.mrb[188].mxu0 %v14096_v22  ;;  %v47_v22 = vld [vmem:[%s21864_s0 + $0x30] sm:$0xff] }
 0x3ba   :  { %4593 = vmatprep.mubr.bf16.mxu0 %v14105_v23  ;;  %v14224_v23 = vcombine.low %v546_v17, %v550_v18  ;;  %v13723_v24 = vcombine.high %v43_v21, %v47_v22  ;;  %v147_v17 = vld [vmem:[%s21864_s0 + $0x350] sm:$0xff] }
 0x3bb   :  { %v151_v18 = vld [vmem:[%s21864_s0 + $0x370] sm:$0xff] }
 0x3c1   :  { %4594 = vmatmul.mubr.bf16.gmra.mrb[192].mxu0 %v14104_v26  ;;  %v55_v26 = vld [vmem:[%s21864_s0 + $0x70] sm:$0xff] }
 0x3c2   :  { %4601 = vmatprep.mubr.bf16.mxu0 %v14113_v27  ;;  %v13722_v27 = vcombine.low %v43_v21, %v47_v22  ;;  %v13731_v29 = vcombine.high %v51_v25, %v55_v26  ;;  %v13730_v33 = vcombine.low %v51_v25, %v55_v26  ;;  %v18122_v21 = vld [vmem:[%s21863_s1 + $0x1b8] sm:$0xff]   ;;  %v155_v22 = vld [vmem:[%s21864_s0 + $0x390] sm:$0xff] }
 0x3c3   :  { %v163_v26 = vld [vmem:[%s21864_s0 + $0x3d0] sm:$0xff] }
 0x3c9   :  { %4602 = vmatmul.mubr.bf16.gmra.mrb[196].mxu0 %v14112_v30  ;;  %v18116_v30 = vld [vmem:[%s21863_s1 + $0x188] sm:$0xff]  }
 0x3ca   :  { %4609 = vmatprep.mubr.bf16.mxu0 %v14121_v31  ;;  %v59_v31 = vld [vmem:[%s21864_s0 + $0x90] sm:$0xff] }
 0x3d1   :  { %4610 = vmatmul.mubr.bf16.gmra.mrb[200].mxu0 %v14120_v34  ;;  %v13739_v34 = vcombine.high %v59_v31, %v63_v32 }
 0x3d2   :  { %4617 = vmatprep.mubr.bf16.mxu0 %v14129_v35  ;;  %v18117_v35 = vld [vmem:[%s21863_s1 + $0x190] sm:$0xff]  }
 0x3d9   :  { %4618 = vmatmul.mubr.bf16.gmra.mrb[204].mxu0 %v14128_v38  ;;  %v71_v38 = vld [vmem:[%s21864_s0 + $0xf0] sm:$0xff] }
 0x3da   :  { %4625 = vmatprep.mubr.bf16.mxu0 %v14137_v39  ;;  %v13738_v39 = vcombine.low %v59_v31, %v63_v32  ;;  %v13747_v40 = vcombine.high %v67_v37, %v71_v38  ;;  %v13746_v44 = vcombine.low %v67_v37, %v71_v38  ;;  %v175_v31 = vld [vmem:[%s21864_s0 + $0x430] sm:$0xff]  ;;  %v18123_v38 = vld [vmem:[%s21863_s1 + $0x1c0] sm:$0xff]  }
 0x3e1   :  { %4626 = vmatmul.mubr.bf16.gmra.mrb[208].mxu0 %v14136_v42  ;;  %v75_v42 = vld [vmem:[%s21864_s0 + $0x110] sm:$0xff] }
 0x3e2   :  { %4633 = vmatprep.mubr.bf16.mxu0 %v14145_v43  ;;  %v79_v43 = vld [vmem:[%s21864_s0 + $0x130] sm:$0xff] }
 0x3e3   :  { %v13755_v45 = vcombine.high %v75_v42, %v79_v43  ;;  %v13754_v48 = vcombine.low %v75_v42, %v79_v43  ;;  %v195_v43 = vld [vmem:[%s21864_s0 + $0x4d0] sm:$0xff] }
 0x3e9   :  { %4634 = vmatmul.mubr.bf16.gmra.mrb[212].mxu0 %v14144_v46  ;;  %v83_v46 = vld [vmem:[%s21864_s0 + $0x150] sm:$0xff] }
 0x3ea   :  { %4641 = vmatprep.mubr.bf16.mxu0 %v14153_v47  ;;  %v87_v47 = vld [vmem:[%s21864_s0 + $0x170] sm:$0xff] }
 0x3eb   :  { %v13763_v49 = vcombine.high %v83_v46, %v87_v47  ;;  %v13762_v53 = vcombine.low %v83_v46, %v87_v47  ;;  %v203_v47 = vld [vmem:[%s21864_s0 + $0x510] sm:$0xff] }
 0x3f1   :  { %4642 = vmatmul.mubr.bf16.gmra.mrb[216].mxu0 %v14152_v50  ;;  %v18120_v50 = vld [vmem:[%s21863_s1 + $0x1a8] sm:$0xff]  }
 0x3f2   :  { %4649 = vmatprep.mubr.bf16.mxu0 %v14161_v51  ;;  %v91_v51 = vld [vmem:[%s21864_s0 + $0x190] sm:$0xff] }
 0x3f3   :  { %v13770_v57 = vcombine.low %v91_v51, %v95_v52 }
 0x3f9   :  { %4650 = vmatmul.mubr.bf16.gmra.mrb[220].mxu0 %v14160_v54  ;;  %v13771_v54 = vcombine.high %v91_v51, %v95_v52  ;;  %v211_v51 = vld [vmem:[%s21864_s0 + $0x550] sm:$0xff] }
 0x3fa   :  { %4657 = vmatprep.mubr.bf16.mxu0 %v14169_v55  ;;  %v99_v55 = vld [vmem:[%s21864_s0 + $0x1d0] sm:$0xff] }
 0x3fb   :  { %v13778_v61 = vcombine.low %v99_v55, %v103_v56  ;;  %v215_v52 = vld [vmem:[%s21864_s0 + $0x570] sm:$0xff] }
 0x401   :  { %4658 = vmatmul.mubr.bf16.gmra.mrb[224].mxu0 %v14168_v58  ;;  %v13779_v58 = vcombine.high %v99_v55, %v103_v56 }
 0x402   :  { %4665 = vmatprep.mubr.bf16.mxu0 %v14177_v59  ;;  %v107_v59 = vld [vmem:[%s21864_s0 + $0x210] sm:$0xff] }
 0x403   :  { %v13786_v2 = vcombine.low %v107_v59, %v111_v60 }
 0x409   :  { %4666 = vmatmul.mubr.bf16.gmra.mrb[228].mxu0 %v14176_v62  ;;  %v13787_v62 = vcombine.high %v107_v59, %v111_v60  ;;  %v18124_v59 = vld [vmem:[%s21863_s1 + $0x1c8] sm:$0xff]   ;;  %v219_v60 = vld [vmem:[%s21864_s0 + $0x590] sm:$0xff] }
 0x40a   :  { %4673 = vmatprep.mubr.bf16.mxu0 %v14185_v63  ;;  %v115_v63 = vld [vmem:[%s21864_s0 + $0x250] sm:$0xff] }
 0x411   :  { %4674 = vmatmul.mubr.bf16.gmra.mrb[232].mxu0 %v14184_v3  ;;  %v13795_v3 = vcombine.high %v115_v63, %v119_v1 }
 0x412   :  { %4681 = vmatprep.mubr.bf16.mxu0 %v14193_v4  ;;  %v18121_v4 = vld [vmem:[%s21863_s1 + $0x1b0] sm:$0xff]  }
 0x419   :  { %4682 = vmatmul.mubr.bf16.gmra.mrb[236].mxu0 %v14192_v7  ;;  %v13794_v7 = vcombine.low %v115_v63, %v119_v1  ;;  %v13890_v1 = vcombine.low %v211_v51, %v215_v52 }
 0x41a   :  { %4689 = vmatprep.mubr.bf16.mxu0 %v14201_v8  ;;  %v13803_v8 = vcombine.high %v123_v5, %v127_v6 }
 0x421   :  { %4690 = vmatmul.mubr.bf16.gmra.mrb[240].mxu0 %v14200_v11  ;;  %v13802_v11 = vcombine.low %v123_v5, %v127_v6  ;;  %v227_v5 = vld [vmem:[%s21864_s0 + $0x5d0] sm:$0xff] }
 0x422   :  { %4697 = vmatprep.mubr.bf16.mxu0 %v14209_v12  ;;  %v13811_v12 = vcombine.high %v131_v9, %v135_v10  ;;  %v231_v6 = vld [vmem:[%s21864_s0 + $0x5f0] sm:$0xff] }
 0x429   :  { %4698 = vmatmul.mubr.bf16.gmra.mrb[244].mxu0 %v14208_v15  ;;  %v13810_v15 = vcombine.low %v131_v9, %v135_v10 }
 0x42a   :  { %4705 = vmatprep.mubr.bf16.mxu0 %v14217_v16  ;;  %v13819_v16 = vcombine.high %v139_v13, %v143_v14 }
 0x431   :  { %4706 = vmatmul.mubr.bf16.gmra.mrb[248].mxu0 %v14216_v19  ;;  %v13818_v19 = vcombine.low %v139_v13, %v143_v14  ;;  %v235_v13 = vld [vmem:[%s21864_s0 + $0x610] sm:$0xff] }
 0x432   :  { %4713 = vmatprep.mubr.bf16.mxu0 %v14225_v20  ;;  %v13827_v20 = vcombine.high %v147_v17, %v151_v18  ;;  %v239_v14 = vld [vmem:[%s21864_s0 + $0x630] sm:$0xff] }
 0x439   :  { %4714 = vmatmul.mubr.bf16.gmra.mrb[252].mxu0 %v14224_v23  ;;  %v159_v23 = vld [vmem:[%s21864_s0 + $0x3b0] sm:$0xff] }
 0x43a   :  { %4754 = vmatprep.mubr.bf16.mxu0 %v13723_v24  ;;  %v13826_v24 = vcombine.low %v147_v17, %v151_v18  ;;  %v13835_v25 = vcombine.high %v155_v22, %v159_v23  ;;  %v13906_v17 = vcombine.low %v227_v5, %v231_v6 }
 0x441   :  { %4755 = vmatmul.mubr.bf16.vlgmr.msra.gmra.mrb[0].mxu0 %v13722_v27  ;;  %v167_v27 = vld [vmem:[%s21864_s0 + $0x3f0] sm:$0xff] }
 0x442   :  { %5268 = vmatpush1.bf16.msra.mxu0 %v18115_v28  ;;  %4762 = vmatprep.mubr.bf16.mxu0 %v13731_v29  ;;  %v13834_v28 = vcombine.low %v155_v22, %v159_v23  ;;  %v13843_v29 = vcombine.high %v163_v26, %v167_v27  ;;  %v13842_v32 = vcombine.low %v163_v26, %v167_v27  ;;  %v247_v22 = vld [vmem:[%s21864_s0 + $0x670] sm:$0xff] }
 0x443   :  { %5269 = vmatprep.subr.bf16.mxu0 %v21875_v0 }
 0x446   :  { %5270 = vmatpush1.bf16.msra.mxu0 %v18116_v30  ;;  %v171_v30 = vld [vmem:[%s21864_s0 + $0x410] sm:$0xff] }
 0x447   :  { %5271 = vmatprep.subr.bf16.mxu0 %v21875_v0 }
 0x449   :  { %4763 = vmatmul.mubr.bf16.gmra.mrb[4].mxu0 %v13730_v33  ;;  %v13851_v33 = vcombine.high %v171_v30, %v175_v31 }
 0x44a   :  { %4770 = vmatprep.mubr.bf16.mxu0 %v13739_v34  ;;  %5272 = vmatpush1.bf16.msra.mxu0 %v18117_v35  ;;  %v179_v34 = vld [vmem:[%s21864_s0 + $0x450] sm:$0xff] }
 0x44b   :  { %5273 = vmatprep.subr.bf16.mxu0 %v21875_v0  ;;  %v183_v35 = vld [vmem:[%s21864_s0 + $0x470] sm:$0xff] }
 0x44c   :  { %v13859_v37 = vcombine.high %v179_v34, %v183_v35 }
 0x44e   :  { %5274 = vmatpush1.bf16.msra.mxu0 %v18118_v36  ;;  %v13850_v36 = vcombine.low %v171_v30, %v175_v31  ;;  %v251_v30 = vld [vmem:[%s21864_s0 + $0x690] sm:$0xff] }
 0x44f   :  { %5275 = vmatprep.subr.bf16.mxu0 %v21875_v0  ;;  %v255_v31 = vld [vmem:[%s21864_s0 + $0x6b0] sm:$0xff] }
 0x451   :  { %4771 = vmatmul.mubr.bf16.gmra.mrb[8].mxu0 %v13738_v39  ;;  %v187_v39 = vld [vmem:[%s21864_s0 + $0x490] sm:$0xff] }
 0x452   :  { %4778 = vmatprep.mubr.bf16.mxu0 %v13747_v40  ;;  %5276 = vmatpush1.bf16.msra.mxu0 %v18119_v41  ;;  %v191_v40 = vld [vmem:[%s21864_s0 + $0x4b0] sm:$0xff]  ;;  %v13858_v41 = vcombine.low %v179_v34, %v183_v35 }
 0x453   :  { %5277 = vmatprep.subr.bf16.mxu0 %v21875_v0  ;;  %v13867_v42 = vcombine.high %v187_v39, %v191_v40 }
 0x456   :  { %5278 = vmatpush1.bf16.msra.mxu0 %v18120_v50 }
 0x457   :  { %5279 = vmatprep.subr.bf16.mxu0 %v21875_v0 }
 0x459   :  { %4779 = vmatmul.mubr.bf16.gmra.mrb[12].mxu0 %v13746_v44  ;;  %v199_v44 = vld [vmem:[%s21864_s0 + $0x4f0] sm:$0xff] }
 0x45a   :  { %4786 = vmatprep.mubr.bf16.mxu0 %v13755_v45  ;;  %5280 = vmatpush1.bf16.msra.mxu0 %v18121_v4  ;;  %v13866_v45 = vcombine.low %v187_v39, %v191_v40  ;;  %v13875_v46 = vcombine.high %v195_v43, %v199_v44  ;;  %v263_v39 = vld [vmem:[%s21864_s0 + $0x6f0] sm:$0xff] }
 0x45b   :  { %5281 = vmatprep.subr.bf16.mxu0 %v21875_v0 }
 0x45e   :  { %5282 = vmatpush1.bf16.msra.mxu0 %v18122_v21  ;;  %v243_v21 = vld [vmem:[%s21864_s0 + $0x650] sm:$0xff] }
 0x45f   :  { %5283 = vmatprep.subr.bf16.mxu0 %v21875_v0  ;;  %v13923_v27 = vcombine.high %v243_v21, %v247_v22  ;;  %v13922_v34 = vcombine.low %v243_v21, %v247_v22  ;;  %v339_v21 = vld [vmem:[%s21864_s0 + $0x950] sm:$0xff] }
 0x460   :  { %v343_v22 = vld [vmem:[%s21864_s0 + $0x970] sm:$0xff] }
 0x461   :  { %4787 = vmatmul.mubr.bf16.gmra.mrb[16].mxu0 %v13754_v48  ;;  %v207_v48 = vld [vmem:[%s21864_s0 + $0x530] sm:$0xff] }
 0x462   :  { %4794 = vmatprep.mubr.bf16.mxu0 %v13763_v49  ;;  %5284 = vmatpush1.bf16.msra.mxu0 %v18123_v38  ;;  %v13874_v49 = vcombine.low %v195_v43, %v199_v44  ;;  %v13883_v50 = vcombine.high %v203_v47, %v207_v48  ;;  %v13882_v55 = vcombine.low %v203_v47, %v207_v48  ;;  %v259_v38 = vld [vmem:[%s21864_s0 + $0x6d0] sm:$0xff] }
 0x463   :  { %5285 = vmatprep.subr.bf16.mxu0 %v21875_v0  ;;  %v13939_v44 = vcombine.high %v259_v38, %v263_v39  ;;  %v271_v47 = vld [vmem:[%s21864_s0 + $0x730] sm:$0xff]  ;;  %v13938_v48 = vcombine.low %v259_v38, %v263_v39 }
 0x464   :  { %v371_v38 = vld [vmem:[%s21864_s0 + $0xa50] sm:$0xff] }
 0x465   :  { %v375_v39 = vld [vmem:[%s21864_s0 + $0xa70] sm:$0xff] }
 0x466   :  { %5286 = vmatpush1.bf16.msra.mxu0 %v18124_v59  ;;  %v291_v59 = vld [vmem:[%s21864_s0 + $0x7d0] sm:$0xff] }
 0x467   :  { %5287 = vmatprep.subr.bf16.mxu0 %v21875_v0 }
 0x469   :  { %4795 = vmatmul.mubr.bf16.gmra.mrb[20].mxu0 %v13762_v53 }
 0x46a   :  { %4802 = vmatprep.mubr.bf16.mxu0 %v13771_v54 }
 0x471   :  { %4803 = vmatmul.mubr.bf16.gmra.mrb[24].mxu0 %v13770_v57  ;;  %v13891_v57 = vcombine.high %v211_v51, %v215_v52  ;;  %v279_v51 = vld [vmem:[%s21864_s0 + $0x770] sm:$0xff] }
 0x472   :  { %4810 = vmatprep.mubr.bf16.mxu0 %v13779_v58 }
 0x479   :  { %4811 = vmatmul.mubr.bf16.gmra.mrb[28].mxu0 %v13778_v61  ;;  %v223_v61 = vld [vmem:[%s21864_s0 + $0x5b0] sm:$0xff] }
 0x47a   :  { %4818 = vmatprep.mubr.bf16.mxu0 %v13787_v62  ;;  %v13898_v9 = vcombine.low %v219_v60, %v223_v61 }
 0x481   :  { %4819 = vmatmul.mubr.bf16.gmra.mrb[32].mxu0 %v13786_v2 }
 0x482   :  { %4826 = vmatprep.mubr.bf16.mxu0 %v13795_v3  ;;  %v13899_v3 = vcombine.high %v219_v60, %v223_v61  ;;  %v295_v60 = vld [vmem:[%s21864_s0 + $0x7f0] sm:$0xff] }
 0x489   :  { %4827 = vmatmul.mubr.bf16.gmra.mrb[36].mxu0 %v13794_v7 }
 0x48a   :  { %4834 = vmatprep.mubr.bf16.mxu0 %v13803_v8 }
 0x491   :  { %4835 = vmatmul.mubr.bf16.gmra.mrb[40].mxu0 %v13802_v11  ;;  %v13907_v11 = vcombine.high %v227_v5, %v231_v6  ;;  %v311_v5 = vld [vmem:[%s21864_s0 + $0x870] sm:$0xff] }
 0x492   :  { %4842 = vmatprep.mubr.bf16.mxu0 %v13811_v12 }
 0x499   :  { %4843 = vmatmul.mubr.bf16.gmra.mrb[44].mxu0 %v13810_v15 }
 0x49a   :  { %4850 = vmatprep.mubr.bf16.mxu0 %v13819_v16 }
 0x4a1   :  { %4851 = vmatmul.mubr.bf16.gmra.mrb[48].mxu0 %v13818_v19  ;;  %v13915_v19 = vcombine.high %v235_v13, %v239_v14 }
 0x4a2   :  { %4858 = vmatprep.mubr.bf16.mxu0 %v13827_v20 }
 0x4a9   :  { %4859 = vmatmul.mubr.bf16.gmra.mrb[52].mxu0 %v13826_v24 }
 0x4aa   :  { %4866 = vmatprep.mubr.bf16.mxu0 %v13835_v25  ;;  %v13914_v25 = vcombine.low %v235_v13, %v239_v14  ;;  %v323_v13 = vld [vmem:[%s21864_s0 + $0x8d0] sm:$0xff] }
 0x4ab   :  { %v327_v14 = vld [vmem:[%s21864_s0 + $0x8f0] sm:$0xff] }
 0x4b1   :  { %4867 = vmatmul.mubr.bf16.gmra.mrb[56].mxu0 %v13834_v28 }
 0x4b2   :  { %4874 = vmatprep.mubr.bf16.mxu0 %v13843_v29  ;;  %v18125_v29 = vld [vmem:[%s21863_s1 + $0x1d0] sm:$0xff]  }
 0x4b3   :  { %5288 = vmatpush1.bf16.msra.mxu0 %v18125_v29 }
 0x4b4   :  { %5289 = vmatprep.subr.bf16.mxu0 %v21875_v0 }
 0x4b9   :  { %4875 = vmatmul.mubr.bf16.gmra.mrb[60].mxu0 %v13842_v32 }
 0x4ba   :  { %4882 = vmatprep.mubr.bf16.mxu0 %v13851_v33 }
 0x4c1   :  { %4883 = vmatmul.mubr.bf16.gmra.mrb[64].mxu0 %v13850_v36  ;;  %v13931_v36 = vcombine.high %v251_v30, %v255_v31 }
 0x4c2   :  { %4890 = vmatprep.mubr.bf16.mxu0 %v13859_v37 }
 0x4c9   :  { %4891 = vmatmul.mubr.bf16.gmra.mrb[68].mxu0 %v13858_v41 }
 0x4ca   :  { %4898 = vmatprep.mubr.bf16.mxu0 %v13867_v42  ;;  %v13930_v42 = vcombine.low %v251_v30, %v255_v31  ;;  %v355_v30 = vld [vmem:[%s21864_s0 + $0x9d0] sm:$0xff] }
 0x4cb   :  { %v359_v31 = vld [vmem:[%s21864_s0 + $0x9f0] sm:$0xff] }
 0x4d1   :  { %4899 = vmatmul.mubr.bf16.gmra.mrb[72].mxu0 %v13866_v45 }
 0x4d2   :  { %4906 = vmatprep.mubr.bf16.mxu0 %v13875_v46  ;;  %v267_v46 = vld [vmem:[%s21864_s0 + $0x710] sm:$0xff] }
 0x4d3   :  { %v13946_v52 = vcombine.low %v267_v46, %v271_v47 }
 0x4d9   :  { %4907 = vmatmul.mubr.bf16.gmra.mrb[76].mxu0 %v13874_v49  ;;  %v13947_v49 = vcombine.high %v267_v46, %v271_v47  ;;  %v387_v47 = vld [vmem:[%s21864_s0 + $0xad0] sm:$0xff] }
 0x4da   :  { %4914 = vmatprep.mubr.bf16.mxu0 %v13883_v50  ;;  %v275_v50 = vld [vmem:[%s21864_s0 + $0x750] sm:$0xff] }
 0x4dc   :  { %v4667_v53 = vpop.f32.mrb[228].mxu0 }
 0x4dd   :  { %v4669_v54 = vpop.f32.mrb[229].mxu0  ;;  %v13955_v53 = vcombine.high %v275_v50, %v279_v51 }
 0x4de   :  { %v4670_v56 = vpop.f32.mrb[230].mxu0  ;;  %v18126_v54 = vld [vmem:[%s21863_s1 + $0x1d8] sm:$0xff]  }
 0x4df   :  { %v4672_v58 = vpop.f32.mrb[231].mxu0  ;;  %v287_v56 = vld [vmem:[%s21864_s0 + $0x7b0] sm:$0xff]  ;;  %5290 = vmatpush1.bf16.msra.mxu0 %v18126_v54 }
 0x4e0   :  { %5291 = vmatprep.subr.bf16.mxu0 %v21875_v0 }
 0x4e1   :  { %4915 = vmatmul.mubr.bf16.gmra.mrb[80].mxu0 %v13882_v55  ;;  %v283_v55 = vld [vmem:[%s21864_s0 + $0x790] sm:$0xff] }
 0x4e2   :  { %4922 = vmatprep.mubr.bf16.mxu0 %v13891_v57  ;;  %v13954_v57 = vcombine.low %v275_v50, %v279_v51  ;;  %v13963_v58 = vcombine.high %v283_v55, %v287_v56  ;;  %v13962_v61 = vcombine.low %v283_v55, %v287_v56  ;;  %v395_v51 = vld [vmem:[%s21864_s0 + $0xb10] sm:$0xff] }
 0x4e3   :  { %v403_v55 = vld [vmem:[%s21864_s0 + $0xb50] sm:$0xff] }
 0x4e4   :  { %v4675_v62 = vpop.f32.mrb[232].mxu0  ;;  %v407_v56 = vld [vmem:[%s21864_s0 + $0xb70] sm:$0xff] }
 0x4e5   :  { %v4677_v63 = vpop.f32.mrb[233].mxu0  ;;  %v13971_v62 = vcombine.high %v291_v59, %v295_v60 }
 0x4e6   :  { %v4678_v2 = vpop.f32.mrb[234].mxu0  ;;  %v299_v63 = vld [vmem:[%s21864_s0 + $0x810] sm:$0xff] }
 0x4e7   :  { %v4680_v4 = vpop.f32.mrb[235].mxu0  ;;  %v13970_v2 = vcombine.low %v291_v59, %v295_v60  ;;  %v18130_v59 = vld [vmem:[%s21863_s1 + $0x1f8] sm:$0xff]   ;;  %v411_v60 = vld [vmem:[%s21864_s0 + $0xb90] sm:$0xff] }
 0x4e8   :  { %v307_v4 = vld [vmem:[%s21864_s0 + $0x850] sm:$0xff] }
 0x4e9   :  { %4923 = vmatmul.mubr.bf16.gmra.mrb[84].mxu0 %v13890_v1  ;;  %v303_v1 = vld [vmem:[%s21864_s0 + $0x830] sm:$0xff] }
 0x4ea   :  { %4930 = vmatprep.mubr.bf16.mxu0 %v13899_v3  ;;  %v13979_v3 = vcombine.high %v299_v63, %v303_v1  ;;  %v13978_v6 = vcombine.low %v299_v63, %v303_v1  ;;  %v419_v1 = vld [vmem:[%s21864_s0 + $0xbd0] sm:$0xff] }
 0x4ec   :  { %v4683_v7 = vpop.f32.mrb[236].mxu0 }
 0x4ed   :  { %v4685_v8 = vpop.f32.mrb[237].mxu0  ;;  %v13987_v7 = vcombine.high %v307_v4, %v311_v5 }
 0x4ee   :  { %v4686_v10 = vpop.f32.mrb[238].mxu0  ;;  %v18127_v8 = vld [vmem:[%s21863_s1 + $0x1e0] sm:$0xff]  }
 0x4ef   :  { %v4688_v12 = vpop.f32.mrb[239].mxu0  ;;  %v319_v10 = vld [vmem:[%s21864_s0 + $0x8b0] sm:$0xff]  ;;  %5292 = vmatpush1.bf16.msra.mxu0 %v18127_v8 }
 0x4f0   :  { %5293 = vmatprep.subr.bf16.mxu0 %v21875_v0 }
 0x4f1   :  { %4931 = vmatmul.mubr.bf16.gmra.mrb[88].mxu0 %v13898_v9  ;;  %v315_v9 = vld [vmem:[%s21864_s0 + $0x890] sm:$0xff] }
 0x4f2   :  { %4938 = vmatprep.mubr.bf16.mxu0 %v13907_v11  ;;  %v13986_v11 = vcombine.low %v307_v4, %v311_v5  ;;  %v13995_v12 = vcombine.high %v315_v9, %v319_v10  ;;  %v427_v5 = vld [vmem:[%s21864_s0 + $0xc10] sm:$0xff] }
 0x4f4   :  { %v4691_v15 = vpop.f32.mrb[240].mxu0 }
 0x4f5   :  { %v4693_v16 = vpop.f32.mrb[241].mxu0  ;;  %v13994_v15 = vcombine.low %v315_v9, %v319_v10  ;;  %v435_v9 = vld [vmem:[%s21864_s0 + $0xc50] sm:$0xff] }
 0x4f6   :  { %v4694_v18 = vpop.f32.mrb[242].mxu0  ;;  %v14003_v16 = vcombine.high %v323_v13, %v327_v14  ;;  %v439_v10 = vld [vmem:[%s21864_s0 + $0xc70] sm:$0xff] }
 0x4f7   :  { %v4696_v20 = vpop.f32.mrb[243].mxu0  ;;  %v335_v18 = vld [vmem:[%s21864_s0 + $0x930] sm:$0xff] }
 0x4f9   :  { %4939 = vmatmul.mubr.bf16.gmra.mrb[92].mxu0 %v13906_v17  ;;  %v331_v17 = vld [vmem:[%s21864_s0 + $0x910] sm:$0xff] }
 0x4fa   :  { %4946 = vmatprep.mubr.bf16.mxu0 %v13915_v19  ;;  %v14002_v19 = vcombine.low %v323_v13, %v327_v14  ;;  %v14011_v20 = vcombine.high %v331_v17, %v335_v18  ;;  %v443_v13 = vld [vmem:[%s21864_s0 + $0xc90] sm:$0xff] }
 0x4fb   :  { %v447_v14 = vld [vmem:[%s21864_s0 + $0xcb0] sm:$0xff] }
 0x4fc   :  { %v4699_v23 = vpop.f32.mrb[244].mxu0 }
 0x4fd   :  { %v4701_v24 = vpop.f32.mrb[245].mxu0  ;;  %v14010_v23 = vcombine.low %v331_v17, %v335_v18  ;;  %v451_v17 = vld [vmem:[%s21864_s0 + $0xcd0] sm:$0xff] }
 0x4fe   :  { %v4702_v26 = vpop.f32.mrb[246].mxu0  ;;  %v14019_v24 = vcombine.high %v339_v21, %v343_v22  ;;  %v455_v18 = vld [vmem:[%s21864_s0 + $0xcf0] sm:$0xff] }
 0x4ff   :  { %v4704_v28 = vpop.f32.mrb[247].mxu0  ;;  %v347_v26 = vld [vmem:[%s21864_s0 + $0x990] sm:$0xff] }
 0x500   :  { %v14018_v28 = vcombine.low %v339_v21, %v343_v22  ;;  %v459_v21 = vld [vmem:[%s21864_s0 + $0xd10] sm:$0xff] }
 0x501   :  { %4947 = vmatmul.mubr.bf16.gmra.mrb[96].mxu0 %v13914_v25  ;;  %v18128_v25 = vld [vmem:[%s21863_s1 + $0x1e8] sm:$0xff]   ;;  %v463_v22 = vld [vmem:[%s21864_s0 + $0xd30] sm:$0xff] }
 0x502   :  { %4954 = vmatprep.mubr.bf16.mxu0 %v13923_v27  ;;  %v351_v27 = vld [vmem:[%s21864_s0 + $0x9b0] sm:$0xff]  ;;  %5294 = vmatpush1.bf16.msra.mxu0 %v18128_v25 }
 0x503   :  { %5295 = vmatprep.subr.bf16.mxu0 %v21875_v0  ;;  %v14027_v29 = vcombine.high %v347_v26, %v351_v27  ;;  %v467_v25 = vld [vmem:[%s21864_s0 + $0xd50] sm:$0xff] }
 0x504   :  { %v4707_v32 = vpop.f32.mrb[248].mxu0 }
 0x505   :  { %v4709_v33 = vpop.f32.mrb[249].mxu0  ;;  %v14026_v32 = vcombine.low %v347_v26, %v351_v27  ;;  %v471_v26 = vld [vmem:[%s21864_s0 + $0xd70] sm:$0xff]  ;;  %v14138_v27 = vcombine.low %v459_v21, %v463_v22 }
 0x506   :  { %v4710_v35 = vpop.f32.mrb[250].mxu0  ;;  %v14035_v33 = vcombine.high %v355_v30, %v359_v31 }
 0x507   :  { %v4712_v37 = vpop.f32.mrb[251].mxu0  ;;  %v367_v35 = vld [vmem:[%s21864_s0 + $0xa30] sm:$0xff] }
 0x509   :  { %4955 = vmatmul.mubr.bf16.gmra.mrb[100].mxu0 %v13922_v34  ;;  %v363_v34 = vld [vmem:[%s21864_s0 + $0xa10] sm:$0xff] }
 0x50a   :  { %4962 = vmatprep.mubr.bf16.mxu0 %v13931_v36  ;;  %v14034_v36 = vcombine.low %v355_v30, %v359_v31  ;;  %v14043_v37 = vcombine.high %v363_v34, %v367_v35  ;;  %v479_v30 = vld [vmem:[%s21864_s0 + $0xdb0] sm:$0xff]  ;;  %v14146_v31 = vcombine.low %v467_v25, %v471_v26 }
 0x50c   :  { %v4715_v40 = vpop.f32.mrb[252].mxu0 }
 0x50d   :  { %v4717_v41 = vpop.f32.mrb[253].mxu0  ;;  %v14042_v40 = vcombine.low %v363_v34, %v367_v35  ;;  %v487_v34 = vld [vmem:[%s21864_s0 + $0xdf0] sm:$0xff] }
 0x50e   :  { %v4718_v43 = vpop.f32.mrb[254].mxu0  ;;  %v14051_v41 = vcombine.high %v371_v38, %v375_v39 }
 0x50f   :  { %v4720_v45 = vpop.f32.mrb[255].mxu0  ;;  %v379_v43 = vld [vmem:[%s21864_s0 + $0xa90] sm:$0xff] }
 0x510   :  { %v14050_v45 = vcombine.low %v371_v38, %v375_v39  ;;  %v495_v38 = vld [vmem:[%s21864_s0 + $0xe30] sm:$0xff] }
 0x511   :  { %4963 = vmatmul.mubr.bf16.gmra.mrb[104].mxu0 %v13930_v42  ;;  %v18129_v42 = vld [vmem:[%s21863_s1 + $0x1f0] sm:$0xff]  }
 0x512   :  { %4970 = vmatprep.mubr.bf16.mxu0 %v13939_v44  ;;  %v383_v44 = vld [vmem:[%s21864_s0 + $0xab0] sm:$0xff]  ;;  %5296 = vmatpush1.bf16.msra.mxu0 %v18129_v42 }
 0x513   :  { %5297 = vmatprep.subr.bf16.mxu0 %v21875_v0  ;;  %v14059_v46 = vcombine.high %v379_v43, %v383_v44  ;;  %v503_v42 = vld [vmem:[%s21864_s0 + $0xe70] sm:$0xff] }
 0x516   :  { %5298 = vmatpush1.bf16.msra.mxu0 %v18130_v59 }
 0x519   :  { %4971 = vmatmul.mubr.bf16.gmra.mrb[108].mxu0 %v13938_v48  ;;  %v391_v48 = vld [vmem:[%s21864_s0 + $0xaf0] sm:$0xff] }
 0x51a   :  { %4978 = vmatprep.mubr.bf16.mxu0 %v13947_v49  ;;  %v14058_v49 = vcombine.low %v379_v43, %v383_v44  ;;  %v14067_v50 = vcombine.high %v387_v47, %v391_v48 }
 0x521   :  { %4979 = vmatmul.mubr.bf16.gmra.mrb[112].mxu0 %v13946_v52  ;;  %v399_v52 = vld [vmem:[%s21864_s0 + $0xb30] sm:$0xff] }
 0x522   :  { %4986 = vmatprep.mubr.bf16.mxu0 %v13955_v53  ;;  %v14066_v53 = vcombine.low %v387_v47, %v391_v48  ;;  %v14075_v54 = vcombine.high %v395_v51, %v399_v52 }
 0x529   :  { %4987 = vmatmul.mubr.bf16.gmra.mrb[116].mxu0 %v13954_v57  ;;  %v14074_v57 = vcombine.low %v395_v51, %v399_v52 }
 0x52a   :  { %4994 = vmatprep.mubr.bf16.mxu0 %v13963_v58  ;;  %v14083_v58 = vcombine.high %v403_v55, %v407_v56 }
 0x531   :  { %4995 = vmatmul.mubr.bf16.gmra.mrb[120].mxu0 %v13962_v61  ;;  %v415_v61 = vld [vmem:[%s21864_s0 + $0xbb0] sm:$0xff] }
 0x532   :  { %5002 = vmatprep.mubr.bf16.mxu0 %v13971_v62  ;;  %v14082_v62 = vcombine.low %v403_v55, %v407_v56  ;;  %v14091_v63 = vcombine.high %v411_v60, %v415_v61 }
 0x539   :  { %5003 = vmatmul.mubr.bf16.gmra.mrb[124].mxu0 %v13970_v2  ;;  %v423_v2 = vld [vmem:[%s21864_s0 + $0xbf0] sm:$0xff] }
 0x53a   :  { %5010 = vmatprep.mubr.bf16.mxu0 %v13979_v3  ;;  %v14090_v3 = vcombine.low %v411_v60, %v415_v61  ;;  %v14099_v4 = vcombine.high %v419_v1, %v423_v2  ;;  %v539_v61 = vld [vmem:[%s21864_s0 + $0xf90] sm:$0xff] }
 0x541   :  { %5011 = vmatmul.mubr.bf16.gmra.mrb[128].mxu0 %v13978_v6  ;;  %v431_v6 = vld [vmem:[%s21864_s0 + $0xc30] sm:$0xff] }
 0x542   :  { %5018 = vmatprep.mubr.bf16.mxu0 %v13987_v7  ;;  %v14098_v7 = vcombine.low %v419_v1, %v423_v2  ;;  %v14107_v8 = vcombine.high %v427_v5, %v431_v6  ;;  %v547_v2 = vld [vmem:[%s21864_s0 + $0xfd0] sm:$0xff] }
 0x549   :  { %5019 = vmatmul.mubr.bf16.gmra.mrb[132].mxu0 %v13986_v11  ;;  %v14106_v11 = vcombine.low %v427_v5, %v431_v6  ;;  %v44_v6 = vld [vmem:[%s21864_s0 + $0x18] sm:$0xff] }
 0x54a   :  { %5026 = vmatprep.mubr.bf16.mxu0 %v13995_v12  ;;  %v14115_v12 = vcombine.high %v435_v9, %v439_v10 }
 0x551   :  { %5027 = vmatmul.mubr.bf16.gmra.mrb[136].mxu0 %v13994_v15  ;;  %v14114_v15 = vcombine.low %v435_v9, %v439_v10  ;;  %v52_v10 = vld [vmem:[%s21864_s0 + $0x58] sm:$0xff] }
 0x552   :  { %5034 = vmatprep.mubr.bf16.mxu0 %v14003_v16  ;;  %v14123_v16 = vcombine.high %v443_v13, %v447_v14 }
 0x559   :  { %5035 = vmatmul.mubr.bf16.gmra.mrb[140].mxu0 %v14002_v19  ;;  %v14122_v19 = vcombine.low %v443_v13, %v447_v14  ;;  %v60_v14 = vld [vmem:[%s21864_s0 + $0x98] sm:$0xff] }
 0x55a   :  { %5042 = vmatprep.mubr.bf16.mxu0 %v14011_v20  ;;  %v14131_v20 = vcombine.high %v451_v17, %v455_v18 }
 0x561   :  { %5043 = vmatmul.mubr.bf16.gmra.mrb[144].mxu0 %v14010_v23  ;;  %v14130_v23 = vcombine.low %v451_v17, %v455_v18  ;;  %v68_v18 = vld [vmem:[%s21864_s0 + $0xd8] sm:$0xff] }
 0x562   :  { %5050 = vmatprep.mubr.bf16.mxu0 %v14019_v24  ;;  %v14139_v24 = vcombine.high %v459_v21, %v463_v22  ;;  %v76_v22 = vld [vmem:[%s21864_s0 + $0x118] sm:$0xff] }
 0x569   :  { %5051 = vmatmul.mubr.bf16.gmra.mrb[148].mxu0 %v14018_v28  ;;  %v14147_v28 = vcombine.high %v467_v25, %v471_v26  ;;  %v84_v26 = vld [vmem:[%s21864_s0 + $0x158] sm:$0xff] }
 0x56a   :  { %5058 = vmatprep.mubr.bf16.mxu0 %v14027_v29  ;;  %v475_v29 = vld [vmem:[%s21864_s0 + $0xd90] sm:$0xff] }
 0x56b   :  { %v14154_v35 = vcombine.low %v475_v29, %v479_v30 }
 0x571   :  { %5059 = vmatmul.mubr.bf16.gmra.mrb[152].mxu0 %v14026_v32  ;;  %v14155_v32 = vcombine.high %v475_v29, %v479_v30  ;;  %v92_v30 = vld [vmem:[%s21864_s0 + $0x198] sm:$0xff] }
 0x572   :  { %5066 = vmatprep.mubr.bf16.mxu0 %v14035_v33  ;;  %v483_v33 = vld [vmem:[%s21864_s0 + $0xdd0] sm:$0xff] }
 0x573   :  { %v14162_v39 = vcombine.low %v483_v33, %v487_v34 }
 0x579   :  { %5067 = vmatmul.mubr.bf16.gmra.mrb[156].mxu0 %v14034_v36  ;;  %v14163_v36 = vcombine.high %v483_v33, %v487_v34  ;;  %v100_v34 = vld [vmem:[%s21864_s0 + $0x1d8] sm:$0xff] }
 0x57a   :  { %5074 = vmatprep.mubr.bf16.mxu0 %v14043_v37  ;;  %v491_v37 = vld [vmem:[%s21864_s0 + $0xe10] sm:$0xff] }
 0x57b   :  { %v14170_v43 = vcombine.low %v491_v37, %v495_v38 }
 0x581   :  { %5075 = vmatmul.mubr.bf16.gmra.mrb[160].mxu0 %v14042_v40  ;;  %v14171_v40 = vcombine.high %v491_v37, %v495_v38  ;;  %v108_v38 = vld [vmem:[%s21864_s0 + $0x218] sm:$0xff] }
 0x582   :  { %5082 = vmatprep.mubr.bf16.mxu0 %v14051_v41  ;;  %v499_v41 = vld [vmem:[%s21864_s0 + $0xe50] sm:$0xff] }
 0x583   :  { %v14179_v44 = vcombine.high %v499_v41, %v503_v42  ;;  %v14178_v47 = vcombine.low %v499_v41, %v503_v42  ;;  %v116_v42 = vld [vmem:[%s21864_s0 + $0x258] sm:$0xff] }
 0x589   :  { %5083 = vmatmul.mubr.bf16.gmra.mrb[164].mxu0 %v14050_v45  ;;  %v507_v45 = vld [vmem:[%s21864_s0 + $0xe90] sm:$0xff] }
 0x58a   :  { %5090 = vmatprep.mubr.bf16.mxu0 %v14059_v46  ;;  %v511_v46 = vld [vmem:[%s21864_s0 + $0xeb0] sm:$0xff] }
 0x58b   :  { %v14187_v48 = vcombine.high %v507_v45, %v511_v46  ;;  %v14186_v51 = vcombine.low %v507_v45, %v511_v46  ;;  %v124_v46 = vld [vmem:[%s21864_s0 + $0x298] sm:$0xff] }
 0x591   :  { %5091 = vmatmul.mubr.bf16.gmra.mrb[168].mxu0 %v14058_v49  ;;  %v515_v49 = vld [vmem:[%s21864_s0 + $0xed0] sm:$0xff] }
 0x592   :  { %5098 = vmatprep.mubr.bf16.mxu0 %v14067_v50  ;;  %v519_v50 = vld [vmem:[%s21864_s0 + $0xef0] sm:$0xff] }
 0x593   :  { %v14195_v52 = vcombine.high %v515_v49, %v519_v50  ;;  %v14194_v55 = vcombine.low %v515_v49, %v519_v50  ;;  %v132_v50 = vld [vmem:[%s21864_s0 + $0x2d8] sm:$0xff] }
 0x599   :  { %5099 = vmatmul.mubr.bf16.gmra.mrb[172].mxu0 %v14066_v53  ;;  %v523_v53 = vld [vmem:[%s21864_s0 + $0xf10] sm:$0xff] }
 0x59a   :  { %5106 = vmatprep.mubr.bf16.mxu0 %v14075_v54  ;;  %v527_v54 = vld [vmem:[%s21864_s0 + $0xf30] sm:$0xff] }
 0x59b   :  { %v14203_v56 = vcombine.high %v523_v53, %v527_v54  ;;  %v14202_v59 = vcombine.low %v523_v53, %v527_v54 }
 0x5a1   :  { %5107 = vmatmul.mubr.bf16.gmra.mrb[176].mxu0 %v14074_v57  ;;  %v531_v57 = vld [vmem:[%s21864_s0 + $0xf50] sm:$0xff] }
 0x5a2   :  { %5114 = vmatprep.mubr.bf16.mxu0 %v14083_v58  ;;  %v535_v58 = vld [vmem:[%s21864_s0 + $0xf70] sm:$0xff] }
 0x5a3   :  { %v14211_v60 = vcombine.high %v531_v57, %v535_v58 }
 0x5a9   :  { %5115 = vmatmul.mubr.bf16.gmra.mrb[180].mxu0 %v14082_v62  ;;  %v543_v62 = vld [vmem:[%s21864_s0 + $0xfb0] sm:$0xff] }
 0x5aa   :  { %5122 = vmatprep.mubr.bf16.mxu0 %v14091_v63  ;;  %v14210_v63 = vcombine.low %v531_v57, %v535_v58  ;;  %v14219_v1 = vcombine.high %v539_v61, %v543_v62  ;;  %v144_v57 = vld [vmem:[%s21864_s0 + $0x338] sm:$0xff]  ;;  %v18133_v58 = vld [vmem:[%s21865_s3 + $0x50] sm:$0xff]  }
 0x5b1   :  { %5123 = vmatmul.mubr.bf16.gmra.mrb[184].mxu0 %v14090_v3  ;;  %v551_v3 = vld [vmem:[%s21864_s0 + $0xff0] sm:$0xff] }
 0x5b2   :  { %5130 = vmatprep.mubr.bf16.mxu0 %v14099_v4  ;;  %v14218_v4 = vcombine.low %v539_v61, %v543_v62  ;;  %v14227_v5 = vcombine.high %v547_v2, %v551_v3  ;;  %v18134_v61 = vld [vmem:[%s21865_s3 + $0x58] sm:$0xff]  }
 0x5b3   :  { %v148_v62 = vld [vmem:[%s21864_s0 + $0x358] sm:$0xff] }
 0x5b9   :  { %5131 = vmatmul.mubr.bf16.gmra.mrb[188].mxu0 %v14098_v7  ;;  %v48_v7 = vld [vmem:[%s21864_s0 + $0x38] sm:$0xff] }
 0x5ba   :  { %5138 = vmatprep.mubr.bf16.mxu0 %v14107_v8  ;;  %v14226_v8 = vcombine.low %v547_v2, %v551_v3  ;;  %v13725_v9 = vcombine.high %v44_v6, %v48_v7 }
 0x5c1   :  { %5139 = vmatmul.mubr.bf16.gmra.mrb[192].mxu0 %v14106_v11  ;;  %v56_v11 = vld [vmem:[%s21864_s0 + $0x78] sm:$0xff] }
 0x5c2   :  { %5146 = vmatprep.mubr.bf16.mxu0 %v14115_v12  ;;  %v13724_v12 = vcombine.low %v44_v6, %v48_v7  ;;  %v13733_v13 = vcombine.high %v52_v10, %v56_v11  ;;  %v160_v6 = vld [vmem:[%s21864_s0 + $0x3b8] sm:$0xff]  ;;  %v18137_v7 = vld [vmem:[%s21865_s3 + $0x70] sm:$0xff]  }
 0x5c9   :  { %5147 = vmatmul.mubr.bf16.gmra.mrb[196].mxu0 %v14114_v15  ;;  %v64_v15 = vld [vmem:[%s21864_s0 + $0xb8] sm:$0xff] }
 0x5ca   :  { %5154 = vmatprep.mubr.bf16.mxu0 %v14123_v16  ;;  %v13732_v16 = vcombine.low %v52_v10, %v56_v11  ;;  %v13741_v17 = vcombine.high %v60_v14, %v64_v15  ;;  %v18138_v10 = vld [vmem:[%s21865_s3 + $0x78] sm:$0xff]  }
 0x5cb   :  { %v164_v11 = vld [vmem:[%s21864_s0 + $0x3d8] sm:$0xff] }
 0x5d1   :  { %5155 = vmatmul.mubr.bf16.gmra.mrb[200].mxu0 %v14122_v19  ;;  %v72_v19 = vld [vmem:[%s21864_s0 + $0xf8] sm:$0xff] }
 0x5d2   :  { %5162 = vmatprep.mubr.bf16.mxu0 %v14131_v20  ;;  %v13740_v20 = vcombine.low %v60_v14, %v64_v15  ;;  %v13749_v21 = vcombine.high %v68_v18, %v72_v19  ;;  %v172_v15 = vld [vmem:[%s21864_s0 + $0x418] sm:$0xff] }
 0x5d9   :  { %5163 = vmatmul.mubr.bf16.gmra.mrb[204].mxu0 %v14130_v23  ;;  %v80_v23 = vld [vmem:[%s21864_s0 + $0x138] sm:$0xff] }
 0x5da   :  { %5170 = vmatprep.mubr.bf16.mxu0 %v14139_v24  ;;  %v13748_v24 = vcombine.low %v68_v18, %v72_v19  ;;  %v13757_v25 = vcombine.high %v76_v22, %v80_v23  ;;  %v180_v19 = vld [vmem:[%s21864_s0 + $0x458] sm:$0xff] }
 0x5e1   :  { %5171 = vmatmul.mubr.bf16.gmra.mrb[208].mxu0 %v14138_v27  ;;  %v88_v27 = vld [vmem:[%s21864_s0 + $0x178] sm:$0xff] }
 0x5e2   :  { %5178 = vmatprep.mubr.bf16.mxu0 %v14147_v28  ;;  %v13756_v28 = vcombine.low %v76_v22, %v80_v23  ;;  %v13765_v29 = vcombine.high %v84_v26, %v88_v27  ;;  %v188_v23 = vld [vmem:[%s21864_s0 + $0x498] sm:$0xff] }
 0x5e9   :  { %5179 = vmatmul.mubr.bf16.gmra.mrb[212].mxu0 %v14146_v31  ;;  %v96_v31 = vld [vmem:[%s21864_s0 + $0x1b8] sm:$0xff] }
 0x5ea   :  { %5186 = vmatprep.mubr.bf16.mxu0 %v14155_v32  ;;  %v13764_v32 = vcombine.low %v84_v26, %v88_v27  ;;  %v13773_v33 = vcombine.high %v92_v30, %v96_v31  ;;  %v196_v27 = vld [vmem:[%s21864_s0 + $0x4d8] sm:$0xff] }
 0x5f1   :  { %5187 = vmatmul.mubr.bf16.gmra.mrb[216].mxu0 %v14154_v35  ;;  %v104_v35 = vld [vmem:[%s21864_s0 + $0x1f8] sm:$0xff] }
 0x5f2   :  { %5194 = vmatprep.mubr.bf16.mxu0 %v14163_v36  ;;  %v13772_v36 = vcombine.low %v92_v30, %v96_v31  ;;  %v13781_v37 = vcombine.high %v100_v34, %v104_v35  ;;  %v204_v31 = vld [vmem:[%s21864_s0 + $0x518] sm:$0xff] }
 0x5f9   :  { %5195 = vmatmul.mubr.bf16.gmra.mrb[220].mxu0 %v14162_v39  ;;  %v112_v39 = vld [vmem:[%s21864_s0 + $0x238] sm:$0xff] }
 0x5fa   :  { %5202 = vmatprep.mubr.bf16.mxu0 %v14171_v40  ;;  %v13780_v40 = vcombine.low %v100_v34, %v104_v35  ;;  %v13789_v41 = vcombine.high %v108_v38, %v112_v39  ;;  %v212_v35 = vld [vmem:[%s21864_s0 + $0x558] sm:$0xff] }
 0x601   :  { %5203 = vmatmul.mubr.bf16.gmra.mrb[224].mxu0 %v14170_v43  ;;  %v120_v43 = vld [vmem:[%s21864_s0 + $0x278] sm:$0xff] }
 0x602   :  { %5210 = vmatprep.mubr.bf16.mxu0 %v14179_v44  ;;  %v13788_v44 = vcombine.low %v108_v38, %v112_v39  ;;  %v13797_v45 = vcombine.high %v116_v42, %v120_v43 }
 0x609   :  { %5211 = vmatmul.mubr.bf16.gmra.mrb[228].mxu0 %v14178_v47  ;;  %v128_v47 = vld [vmem:[%s21864_s0 + $0x2b8] sm:$0xff] }
 0x60a   :  { %5218 = vmatprep.mubr.bf16.mxu0 %v14187_v48  ;;  %v13796_v48 = vcombine.low %v116_v42, %v120_v43  ;;  %v13805_v49 = vcombine.high %v124_v46, %v128_v47  ;;  %v13804_v53 = vcombine.low %v124_v46, %v128_v47  ;;  %v220_v43 = vld [vmem:[%s21864_s0 + $0x598] sm:$0xff] }
 0x611   :  { %5219 = vmatmul.mubr.bf16.gmra.mrb[232].mxu0 %v14186_v51  ;;  %v136_v51 = vld [vmem:[%s21864_s0 + $0x2f8] sm:$0xff] }
 0x612   :  { %5226 = vmatprep.mubr.bf16.mxu0 %v14195_v52  ;;  %v18131_v52 = vld [vmem:[%s21865_s3 + $0x40] sm:$0xff]   ;;  %v13813_v54 = vcombine.high %v132_v50, %v136_v51 }
 0x613   :  { %15478 = vmatprep.subr.bf16.mxu1 %v18131_v52 }
 0x614   :  { %15479 = vmatpush3.bf16.msra.mxu1 %v18131_v52  ;;  %v232_v52 = vld [vmem:[%s21864_s0 + $0x5f8] sm:$0xff] }
 0x619   :  { %5227 = vmatmul.mubr.bf16.gmra.mrb[236].mxu0 %v14194_v55  ;;  %v18132_v55 = vld [vmem:[%s21865_s3 + $0x48] sm:$0xff]  }
 0x61a   :  { %5234 = vmatprep.mubr.bf16.mxu0 %v14203_v56  ;;  %v140_v56 = vld [vmem:[%s21864_s0 + $0x318] sm:$0xff]  ;;  %15480 = vmatprep.subr.bf16.mxu1 %v18132_v55 }
 0x61b   :  { %15481 = vmatpush3.bf16.msra.mxu1 %v18132_v55  ;;  %v13820_v2 = vcombine.low %v140_v56, %v144_v57 }
 0x61c   :  { %15482 = vmatprep.subr.bf16.mxu1 %v18133_v58 }
 0x61f   :  { %15483 = vmatpush3.bf16.msra.mxu1 %v18133_v58 }
 0x620   :  { %15484 = vmatprep.subr.bf16.mxu1 %v18134_v61 }
 0x621   :  { %5235 = vmatmul.mubr.bf16.gmra.mrb[240].mxu0 %v14202_v59  ;;  %v13812_v59 = vcombine.low %v132_v50, %v136_v51  ;;  %v228_v51 = vld [vmem:[%s21864_s0 + $0x5d8] sm:$0xff] }
 0x622   :  { %5242 = vmatprep.mubr.bf16.mxu0 %v14211_v60  ;;  %v13821_v60 = vcombine.high %v140_v56, %v144_v57  ;;  %v13909_v57 = vcombine.high %v228_v51, %v232_v52 }
 0x623   :  { %15485 = vmatpush3.bf16.msra.mxu1 %v18134_v61 }
 0x629   :  { %5243 = vmatmul.mubr.bf16.gmra.mrb[244].mxu0 %v14210_v63  ;;  %v152_v63 = vld [vmem:[%s21864_s0 + $0x378] sm:$0xff] }
 0x62a   :  { %5250 = vmatprep.mubr.bf16.mxu0 %v14219_v1  ;;  %v18135_v1 = vld [vmem:[%s21865_s3 + $0x60] sm:$0xff]   ;;  %v13829_v3 = vcombine.high %v148_v62, %v152_v63 }
 0x62b   :  { %15486 = vmatprep.subr.bf16.mxu1 %v18135_v1 }
 0x62c   :  { %15487 = vmatpush3.bf16.msra.mxu1 %v18135_v1 }
 0x631   :  { %5251 = vmatmul.mubr.bf16.gmra.mrb[248].mxu0 %v14218_v4  ;;  %v18136_v4 = vld [vmem:[%s21865_s3 + $0x68] sm:$0xff]  }
 0x632   :  { %5258 = vmatprep.mubr.bf16.mxu0 %v14227_v5  ;;  %v156_v5 = vld [vmem:[%s21864_s0 + $0x398] sm:$0xff]  ;;  %15488 = vmatprep.subr.bf16.mxu1 %v18136_v4 }
 0x633   :  { %15489 = vmatpush3.bf16.msra.mxu1 %v18136_v4  ;;  %v244_v4 = vld [vmem:[%s21864_s0 + $0x658] sm:$0xff] }
 0x634   :  { %15490 = vmatprep.subr.bf16.mxu1 %v18137_v7 }
 0x637   :  { %15491 = vmatpush3.bf16.msra.mxu1 %v18137_v7 }
 0x638   :  { %15492 = vmatprep.subr.bf16.mxu1 %v18138_v10 }
 0x639   :  { %5259 = vmatmul.mubr.bf16.gmra.mrb[252].mxu0 %v14226_v8  ;;  %v13828_v8 = vcombine.low %v148_v62, %v152_v63  ;;  %v13908_v63 = vcombine.low %v228_v51, %v232_v52 }
 0x63a   :  { %5299 = vmatprep.mubr.bf16.mxu0 %v13725_v9  ;;  %v13837_v9 = vcombine.high %v156_v5, %v160_v6 }
 0x63b   :  { %15493 = vmatpush3.bf16.msra.mxu1 %v18138_v10 }
 0x641   :  { %5300 = vmatmul.mubr.bf16.vlgmr.msra.gmra.mrb[0].mxu0 %v13724_v12  ;;  %v168_v12 = vld [vmem:[%s21864_s0 + $0x3f8] sm:$0xff] }
 0x642   :  { %5307 = vmatprep.mubr.bf16.mxu0 %v13733_v13  ;;  %v13836_v13 = vcombine.low %v156_v5, %v160_v6  ;;  %v13845_v14 = vcombine.high %v164_v11, %v168_v12  ;;  %v248_v5 = vld [vmem:[%s21864_s0 + $0x678] sm:$0xff] }
 0x643   :  { %v13925_v10 = vcombine.high %v244_v4, %v248_v5 }
 0x649   :  { %5308 = vmatmul.mubr.bf16.gmra.mrb[4].mxu0 %v13732_v16  ;;  %v176_v16 = vld [vmem:[%s21864_s0 + $0x438] sm:$0xff] }
 0x64a   :  { %5315 = vmatprep.mubr.bf16.mxu0 %v13741_v17  ;;  %v13844_v17 = vcombine.low %v164_v11, %v168_v12  ;;  %v13853_v18 = vcombine.high %v172_v15, %v176_v16  ;;  %v252_v12 = vld [vmem:[%s21864_s0 + $0x698] sm:$0xff] }
 0x651   :  { %5316 = vmatmul.mubr.bf16.gmra.mrb[8].mxu0 %v13740_v20  ;;  %v184_v20 = vld [vmem:[%s21864_s0 + $0x478] sm:$0xff] }
 0x652   :  { %5323 = vmatprep.mubr.bf16.mxu0 %v13749_v21  ;;  %v13852_v21 = vcombine.low %v172_v15, %v176_v16  ;;  %v13861_v22 = vcombine.high %v180_v19, %v184_v20  ;;  %v13924_v16 = vcombine.low %v244_v4, %v248_v5  ;;  %v292_v5 = vld [vmem:[%s21864_s0 + $0x7d8] sm:$0xff] }
 0x659   :  { %5324 = vmatmul.mubr.bf16.gmra.mrb[12].mxu0 %v13748_v24  ;;  %v192_v24 = vld [vmem:[%s21864_s0 + $0x4b8] sm:$0xff] }
 0x65a   :  { %5331 = vmatprep.mubr.bf16.mxu0 %v13757_v25  ;;  %v13860_v25 = vcombine.low %v180_v19, %v184_v20  ;;  %v13869_v26 = vcombine.high %v188_v23, %v192_v24  ;;  %v260_v20 = vld [vmem:[%s21864_s0 + $0x6d8] sm:$0xff] }
 0x661   :  { %5332 = vmatmul.mubr.bf16.gmra.mrb[16].mxu0 %v13756_v28  ;;  %v200_v28 = vld [vmem:[%s21864_s0 + $0x4f8] sm:$0xff] }
 0x662   :  { %5339 = vmatprep.mubr.bf16.mxu0 %v13765_v29  ;;  %v13868_v29 = vcombine.low %v188_v23, %v192_v24  ;;  %v13877_v30 = vcombine.high %v196_v27, %v200_v28 }
 0x669   :  { %5340 = vmatmul.mubr.bf16.gmra.mrb[20].mxu0 %v13764_v32  ;;  %v208_v32 = vld [vmem:[%s21864_s0 + $0x538] sm:$0xff] }
 0x66a   :  { %5347 = vmatprep.mubr.bf16.mxu0 %v13773_v33  ;;  %v13876_v33 = vcombine.low %v196_v27, %v200_v28  ;;  %v13885_v34 = vcombine.high %v204_v31, %v208_v32  ;;  %v13884_v39 = vcombine.low %v204_v31, %v208_v32  ;;  %v19899_v28 = vld [vmem:[%s21866_s2] ss:$0 sm:$0xff] }
 0x671   :  { %5348 = vmatmul.mubr.bf16.gmra.mrb[24].mxu0 %v13772_v36  ;;  %v216_v36 = vld [vmem:[%s21864_s0 + $0x578] sm:$0xff] }
 0x672   :  { %5355 = vmatprep.mubr.bf16.mxu0 %v13781_v37  ;;  %v13892_v47 = vcombine.low %v212_v35, %v216_v36 }
 0x679   :  { %5356 = vmatmul.mubr.bf16.gmra.mrb[28].mxu0 %v13780_v40 }
 0x67a   :  { %5363 = vmatprep.mubr.bf16.mxu0 %v13789_v41  ;;  %v13893_v41 = vcombine.high %v212_v35, %v216_v36 }
 0x681   :  { %5364 = vmatmul.mubr.bf16.gmra.mrb[32].mxu0 %v13788_v44  ;;  %v224_v44 = vld [vmem:[%s21864_s0 + $0x5b8] sm:$0xff] }
 0x682   :  { %5371 = vmatprep.mubr.bf16.mxu0 %v13797_v45  ;;  %v13900_v55 = vcombine.low %v220_v43, %v224_v44 }
 0x689   :  { %5372 = vmatmul.mubr.bf16.gmra.mrb[36].mxu0 %v13796_v48 }
 0x68a   :  { %5379 = vmatprep.mubr.bf16.mxu0 %v13805_v49  ;;  %v13901_v49 = vcombine.high %v220_v43, %v224_v44  ;;  %v280_v43 = vld [vmem:[%s21864_s0 + $0x778] sm:$0xff] }
 0x691   :  { %5380 = vmatmul.mubr.bf16.gmra.mrb[40].mxu0 %v13804_v53 }
 0x692   :  { %5387 = vmatprep.mubr.bf16.mxu0 %v13813_v54 }
 0x699   :  { %5388 = vmatmul.mubr.bf16.gmra.mrb[44].mxu0 %v13812_v59  ;;  %v236_v59 = vld [vmem:[%s21864_s0 + $0x618] sm:$0xff] }
 0x69a   :  { %5395 = vmatprep.mubr.bf16.mxu0 %v13821_v60  ;;  %v240_v60 = vld [vmem:[%s21864_s0 + $0x638] sm:$0xff] }
 0x6a1   :  { %5396 = vmatmul.mubr.bf16.gmra.mrb[48].mxu0 %v13820_v2  ;;  %v13917_v2 = vcombine.high %v236_v59, %v240_v60 }
 0x6a2   :  { %5403 = vmatprep.mubr.bf16.mxu0 %v13829_v3 }
 0x6a9   :  { %5404 = vmatmul.mubr.bf16.gmra.mrb[52].mxu0 %v13828_v8  ;;  %v13916_v8 = vcombine.low %v236_v59, %v240_v60 }
 0x6aa   :  { %5411 = vmatprep.mubr.bf16.mxu0 %v13837_v9 }
 0x6b1   :  { %5412 = vmatmul.mubr.bf16.gmra.mrb[56].mxu0 %v13836_v13  ;;  %v256_v13 = vld [vmem:[%s21864_s0 + $0x6b8] sm:$0xff] }
 0x6b2   :  { %5419 = vmatprep.mubr.bf16.mxu0 %v13845_v14  ;;  %v13932_v24 = vcombine.low %v252_v12, %v256_v13 }
 0x6b9   :  { %5420 = vmatmul.mubr.bf16.gmra.mrb[60].mxu0 %v13844_v17 }
 0x6ba   :  { %5427 = vmatprep.mubr.bf16.mxu0 %v13853_v18  ;;  %v13933_v18 = vcombine.high %v252_v12, %v256_v13 }
 0x6c1   :  { %5428 = vmatmul.mubr.bf16.gmra.mrb[64].mxu0 %v13852_v21  ;;  %v264_v21 = vld [vmem:[%s21864_s0 + $0x6f8] sm:$0xff] }
 0x6c2   :  { %5435 = vmatprep.mubr.bf16.mxu0 %v13861_v22 }
 0x6c9   :  { %5436 = vmatmul.mubr.bf16.gmra.mrb[68].mxu0 %v13860_v25 }
 0x6ca   :  { %5443 = vmatprep.mubr.bf16.mxu0 %v13869_v26  ;;  %v13941_v26 = vcombine.high %v260_v20, %v264_v21 }
 0x6d1   :  { %5444 = vmatmul.mubr.bf16.gmra.mrb[72].mxu0 %v13868_v29  ;;  %v268_v29 = vld [vmem:[%s21864_s0 + $0x718] sm:$0xff] }
 0x6d2   :  { %5451 = vmatprep.mubr.bf16.mxu0 %v13877_v30  ;;  %v272_v30 = vld [vmem:[%s21864_s0 + $0x738] sm:$0xff] }
 0x6d3   :  { %v13949_v36 = vcombine.high %v268_v29, %v272_v30 }
 0x6d9   :  { %5452 = vmatmul.mubr.bf16.gmra.mrb[76].mxu0 %v13876_v33 }
 0x6da   :  { %5459 = vmatprep.mubr.bf16.mxu0 %v13885_v34  ;;  %v13940_v34 = vcombine.low %v260_v20, %v264_v21 }
 0x6dc   :  { %v5212_v37 = vpop.f32.mrb[228].mxu0 }
 0x6dd   :  { %v5214_v38 = vpop.f32.mrb[229].mxu0 }
 0x6de   :  { %v5215_v40 = vpop.f32.mrb[230].mxu0 }
 0x6df   :  { %v5217_v42 = vpop.f32.mrb[231].mxu0 }
 0x6e0   :  { %v276_v42 = vld [vmem:[%s21864_s0 + $0x758] sm:$0xff] }
 0x6e1   :  { %5460 = vmatmul.mubr.bf16.gmra.mrb[80].mxu0 %v13884_v39  ;;  %v13956_v60 = vcombine.low %v276_v42, %v280_v43 }
 0x6e2   :  { %5467 = vmatprep.mubr.bf16.mxu0 %v13893_v41 }
 0x6e4   :  { %v5220_v45 = vpop.f32.mrb[232].mxu0 }
 0x6e5   :  { %v5222_v46 = vpop.f32.mrb[233].mxu0 }
 0x6e6   :  { %v5223_v48 = vpop.f32.mrb[234].mxu0 }
 0x6e7   :  { %v5225_v50 = vpop.f32.mrb[235].mxu0 }
 0x6e9   :  { %5468 = vmatmul.mubr.bf16.gmra.mrb[84].mxu0 %v13892_v47  ;;  %v13948_v47 = vcombine.low %v268_v29, %v272_v30 }
 0x6ea   :  { %5475 = vmatprep.mubr.bf16.mxu0 %v13901_v49  ;;  %v13957_v49 = vcombine.high %v276_v42, %v280_v43 }
 0x6ec   :  { %v5228_v53 = vpop.f32.mrb[236].mxu0 }
 0x6ed   :  { %v5230_v54 = vpop.f32.mrb[237].mxu0 }
 0x6ee   :  { %v5231_v56 = vpop.f32.mrb[238].mxu0 }
 0x6ef   :  { %v5233_v58 = vpop.f32.mrb[239].mxu0  ;;  %v288_v56 = vld [vmem:[%s21864_s0 + $0x7b8] sm:$0xff] }
 0x6f1   :  { %5476 = vmatmul.mubr.bf16.gmra.mrb[88].mxu0 %v13900_v55  ;;  %v284_v55 = vld [vmem:[%s21864_s0 + $0x798] sm:$0xff] }
 0x6f2   :  { %5483 = vmatprep.mubr.bf16.mxu0 %v13909_v57 }
 0x6f4   :  { %v5236_v61 = vpop.f32.mrb[240].mxu0 }
 0x6f5   :  { %v5238_v62 = vpop.f32.mrb[241].mxu0 }
 0x6f6   :  { %v5239_v1 = vpop.f32.mrb[242].mxu0  ;;  %v13965_v62 = vcombine.high %v284_v55, %v288_v56 }
 0x6f7   :  { %v5241_v3 = vpop.f32.mrb[243].mxu0 }
 0x6f9   :  { %5484 = vmatmul.mubr.bf16.gmra.mrb[92].mxu0 %v13908_v63 }
 0x6fa   :  { %5491 = vmatprep.mubr.bf16.mxu0 %v13917_v2 }
 0x6fc   :  { %v5244_v6 = vpop.f32.mrb[244].mxu0 }
 0x6fd   :  { %v5246_v7 = vpop.f32.mrb[245].mxu0  ;;  %v296_v6 = vld [vmem:[%s21864_s0 + $0x7f8] sm:$0xff] }
 0x6fe   :  { %v5247_v9 = vpop.f32.mrb[246].mxu0  ;;  %v13973_v12 = vcombine.high %v292_v5, %v296_v6 }
 0x6ff   :  { %v5249_v11 = vpop.f32.mrb[247].mxu0 }
 0x701   :  { %5492 = vmatmul.mubr.bf16.gmra.mrb[96].mxu0 %v13916_v8 }
 0x702   :  { %5499 = vmatprep.mubr.bf16.mxu0 %v13925_v10  ;;  %v13964_v10 = vcombine.low %v284_v55, %v288_v56 }
 0x704   :  { %v5252_v14 = vpop.f32.mrb[248].mxu0 }
 0x705   :  { %v5254_v15 = vpop.f32.mrb[249].mxu0 }
 0x706   :  { %v5255_v17 = vpop.f32.mrb[250].mxu0 }
 0x707   :  { %v5257_v19 = vpop.f32.mrb[251].mxu0 }
 0x708   :  { %v304_v19 = vld [vmem:[%s21864_s0 + $0x838] sm:$0xff] }
 0x709   :  { %5500 = vmatmul.mubr.bf16.gmra.mrb[100].mxu0 %v13924_v16 }
 0x70a   :  { %5507 = vmatprep.mubr.bf16.mxu0 %v13933_v18  ;;  %v300_v18 = vld [vmem:[%s21864_s0 + $0x818] sm:$0xff] }
 0x70c   :  { %v5260_v22 = vpop.f32.mrb[252].mxu0 }
 0x70d   :  { %v5262_v23 = vpop.f32.mrb[253].mxu0 }
 0x70e   :  { %v5263_v25 = vpop.f32.mrb[254].mxu0  ;;  %v13972_v23 = vcombine.low %v292_v5, %v296_v6 }
 0x70f   :  { %v5265_v27 = vpop.f32.mrb[255].mxu0  ;;  %v13981_v25 = vcombine.high %v300_v18, %v304_v19 }
 0x711   :  { %5508 = vmatmul.mubr.bf16.gmra.mrb[104].mxu0 %v13932_v24 }
 0x712   :  { %5515 = vmatprep.mubr.bf16.mxu0 %v13941_v26 }
 0x714   :  { %v5301_v31 = vpop.f32.mrb[0].mxu0 }
 0x715   :  { %v16721_v32 = vadd.f32 %v19899_v28, %v5301_v31  ;;  %v5303_v33 = vpop.f32.mrb[1].mxu0 }
 0x716   :  { %v5304_v35 = vpop.f32.mrb[2].mxu0  ;;  %v312_v33 = vld [vmem:[%s21864_s0 + $0x878] sm:$0xff] }
 0x717   :  { %v16722_v37 = vadd.f32 %v19899_v28, %v5304_v35  ;;  %v5306_v38 = vpop.f32.mrb[3].mxu0  ;;  %v5812_v39 = vmax.f32 %v16721_v32, 0.0  ;;  %v308_v32 = vld [vmem:[%s21864_s0 + $0x858] sm:$0xff] }
 0x719   :  { %v5813_v40 = vmax.f32 %v16722_v37, 0.0  ;;  %5516 = vmatmul.mubr.bf16.gmra.mrb[108].mxu0 %v13940_v34  ;;  %v13980_v37 = vcombine.low %v300_v18, %v304_v19 }
 0x71a   :  { %5523 = vmatprep.mubr.bf16.mxu0 %v13949_v36 }
 0x71b   :  { %v19909_v41 = vpack.c.bf16 %v5813_v40, %v5812_v39  ;;  %v13989_v39 = vcombine.high %v308_v32, %v312_v33 }
 0x71c   :  { %v5309_v44 = vpop.f32.mrb[4].mxu0 }
 0x71d   :  { %v16723_v45 = vadd.f32 %v19899_v28, %v5309_v44  ;;  %v5311_v46 = vpop.f32.mrb[5].mxu0 }
 0x71e   :  { %v5312_v48 = vpop.f32.mrb[6].mxu0  ;;  %v316_v46 = vld [vmem:[%s21864_s0 + $0x898] sm:$0xff] }
 0x71f   :  { %v16724_v50 = vadd.f32 %v19899_v28, %v5312_v48  ;;  %v5314_v51 = vpop.f32.mrb[7].mxu0  ;;  %v5814_v52 = vmax.f32 %v16723_v45, 0.0 }
 0x720   :  { %v13988_v51 = vcombine.low %v308_v32, %v312_v33 }
 0x721   :  { %v5815_v53 = vmax.f32 %v16724_v50, 0.0  ;;  %5524 = vmatmul.mubr.bf16.gmra.mrb[112].mxu0 %v13948_v47  ;;  %v320_v47 = vld [vmem:[%s21864_s0 + $0x8b8] sm:$0xff] }
 0x722   :  { %5531 = vmatprep.mubr.bf16.mxu0 %v13957_v49 }
 0x723   :  { %v19919_v54 = vpack.c.bf16 %v5815_v53, %v5814_v52  ;;  %v13997_v53 = vcombine.high %v316_v46, %v320_v47 }
 0x724   :  { %v5317_v57 = vpop.f32.mrb[8].mxu0 }
 0x725   :  { %v16725_v58 = vadd.f32 %v19899_v28, %v5317_v57  ;;  %v5319_v59 = vpop.f32.mrb[9].mxu0  ;;  %15494 = vmatprep.mubr.bf16.mxu1 %v19919_v54 }
 0x726   :  { %v5320_v61 = vpop.f32.mrb[10].mxu0 }
 0x727   :  { %v16726_v63 = vadd.f32 %v19899_v28, %v5320_v61  ;;  %v5322_v1 = vpop.f32.mrb[11].mxu0  ;;  %v5816_v2 = vmax.f32 %v16725_v58, 0.0  ;;  %v328_v61 = vld [vmem:[%s21864_s0 + $0x8f8] sm:$0xff] }
 0x729   :  { %v5817_v3 = vmax.f32 %v16726_v63, 0.0  ;;  %5532 = vmatmul.mubr.bf16.gmra.mrb[116].mxu0 %v13956_v60  ;;  %v324_v60 = vld [vmem:[%s21864_s0 + $0x8d8] sm:$0xff] }
 0x72a   :  { %5539 = vmatprep.mubr.bf16.mxu0 %v13965_v62  ;;  %v14005_v5 = vcombine.high %v324_v60, %v328_v61 }
 0x72b   :  { %v19930_v4 = vpack.c.bf16 %v5817_v3, %v5816_v2  ;;  %v13996_v2 = vcombine.low %v316_v46, %v320_v47 }
 0x72c   :  { %v5325_v7 = vpop.f32.mrb[12].mxu0 }
 0x72d   :  { %v16727_v8 = vadd.f32 %v19899_v28, %v5325_v7  ;;  %v5327_v9 = vpop.f32.mrb[13].mxu0  ;;  %15495 = vmatmul.mubr.bf16.vlgmr.msra.gmra.mrb[0].mxu1 %v19930_v4 }
 0x72e   :  { %v5328_v11 = vpop.f32.mrb[14].mxu0 }
 0x72f   :  { %v16728_v13 = vadd.f32 %v19899_v28, %v5328_v11  ;;  %v5330_v14 = vpop.f32.mrb[15].mxu0  ;;  %v5818_v15 = vmax.f32 %v16727_v8, 0.0  ;;  %v332_v11 = vld [vmem:[%s21864_s0 + $0x918] sm:$0xff] }
 0x731   :  { %v5819_v16 = vmax.f32 %v16728_v13, 0.0  ;;  %5540 = vmatmul.mubr.bf16.gmra.mrb[120].mxu0 %v13964_v10 }
 0x732   :  { %5547 = vmatprep.mubr.bf16.mxu0 %v13973_v12  ;;  %v336_v12 = vld [vmem:[%s21864_s0 + $0x938] sm:$0xff] }
 0x733   :  { %v19941_v17 = vpack.c.bf16 %v5819_v16, %v5818_v15  ;;  %v14004_v16 = vcombine.low %v324_v60, %v328_v61  ;;  %v14013_v19 = vcombine.high %v332_v11, %v336_v12  ;;  %v14012_v32 = vcombine.low %v332_v11, %v336_v12  ;;  %v368_v11 = vld [vmem:[%s21864_s0 + $0xa38] sm:$0xff] }
 0x734   :  { %v5333_v20 = vpop.f32.mrb[16].mxu0 }
 0x735   :  { %v16729_v21 = vadd.f32 %v19899_v28, %v5333_v20  ;;  %v5335_v22 = vpop.f32.mrb[17].mxu0  ;;  %15498 = vmatprep.mubr.bf16.mxu1 %v19941_v17 }
 0x736   :  { %v5336_v24 = vpop.f32.mrb[18].mxu0 }
 0x737   :  { %v16730_v26 = vadd.f32 %v19899_v28, %v5336_v24  ;;  %v5338_v27 = vpop.f32.mrb[19].mxu0  ;;  %v5820_v29 = vmax.f32 %v16729_v21, 0.0 }
 0x739   :  { %v5821_v30 = vmax.f32 %v16730_v26, 0.0  ;;  %5548 = vmatmul.mubr.bf16.gmra.mrb[124].mxu0 %v13972_v23  ;;  %v344_v26 = vld [vmem:[%s21864_s0 + $0x978] sm:$0xff] }
 0x73a   :  { %5555 = vmatprep.mubr.bf16.mxu0 %v13981_v25  ;;  %v340_v25 = vld [vmem:[%s21864_s0 + $0x958] sm:$0xff] }
 0x73b   :  { %v19952_v31 = vpack.c.bf16 %v5821_v30, %v5820_v29  ;;  %v14020_v47 = vcombine.low %v340_v25, %v344_v26 }
 0x73c   :  { %v5341_v34 = vpop.f32.mrb[20].mxu0 }
 0x73d   :  { %v16731_v35 = vadd.f32 %v19899_v28, %v5341_v34  ;;  %v5343_v36 = vpop.f32.mrb[21].mxu0  ;;  %15499 = vmatmul.mubr.bf16.gmra.mrb[4].mxu1 %v19952_v31  ;;  %v14021_v34 = vcombine.high %v340_v25, %v344_v26  ;;  %v372_v25 = vld [vmem:[%s21864_s0 + $0xa58] sm:$0xff] }
 0x73e   :  { %v5344_v38 = vpop.f32.mrb[22].mxu0  ;;  %v376_v26 = vld [vmem:[%s21864_s0 + $0xa78] sm:$0xff] }
 0x73f   :  { %v16732_v40 = vadd.f32 %v19899_v28, %v5344_v38  ;;  %v5346_v42 = vpop.f32.mrb[23].mxu0  ;;  %v5822_v43 = vmax.f32 %v16731_v35, 0.0 }
 0x740   :  { %v352_v42 = vld [vmem:[%s21864_s0 + $0x9b8] sm:$0xff] }
 0x741   :  { %v5823_v44 = vmax.f32 %v16732_v40, 0.0  ;;  %5556 = vmatmul.mubr.bf16.gmra.mrb[128].mxu0 %v13980_v37  ;;  %v348_v40 = vld [vmem:[%s21864_s0 + $0x998] sm:$0xff] }
 0x742   :  { %5563 = vmatprep.mubr.bf16.mxu0 %v13989_v39 }
 0x743   :  { %v19963_v45 = vpack.c.bf16 %v5823_v44, %v5822_v43 }
 0x744   :  { %v5349_v48 = vpop.f32.mrb[24].mxu0 }
 0x745   :  { %v16733_v49 = vadd.f32 %v19899_v28, %v5349_v48  ;;  %v5351_v50 = vpop.f32.mrb[25].mxu0  ;;  %15502 = vmatprep.mubr.bf16.mxu1 %v19963_v45 }
 0x746   :  { %v5352_v52 = vpop.f32.mrb[26].mxu0 }
 0x747   :  { %v16734_v55 = vadd.f32 %v19899_v28, %v5352_v52  ;;  %v5354_v56 = vpop.f32.mrb[27].mxu0  ;;  %v5824_v57 = vmax.f32 %v16733_v49, 0.0  ;;  %v14029_v49 = vcombine.high %v348_v40, %v352_v42  ;;  %v18139_v52 = vld [vmem:[%s21865_s3] sm:$0xff]  }
 0x748   :  { %15590 = vmatprep.subr.bf16.mxu1 %v18139_v52 }
 0x749   :  { %v5825_v58 = vmax.f32 %v16734_v55, 0.0  ;;  %5564 = vmatmul.mubr.bf16.gmra.mrb[132].mxu0 %v13988_v51  ;;  %15591 = vmatpush3.bf16.msra.mxu1 %v18139_v52 }
 0x74a   :  { %5571 = vmatprep.mubr.bf16.mxu0 %v13997_v53 }
 0x74b   :  { %v19974_v59 = vpack.c.bf16 %v5825_v58, %v5824_v57  ;;  %v356_v57 = vld [vmem:[%s21864_s0 + $0x9d8] sm:$0xff] }
 0x74c   :  { %v5357_v62 = vpop.f32.mrb[28].mxu0  ;;  %v360_v58 = vld [vmem:[%s21864_s0 + $0x9f8] sm:$0xff] }
 0x74d   :  { %v16735_v63 = vadd.f32 %v19899_v28, %v5357_v62  ;;  %v5359_v1 = vpop.f32.mrb[29].mxu0  ;;  %15503 = vmatmul.mubr.bf16.gmra.mrb[8].mxu1 %v19974_v59 }
 0x74e   :  { %v5360_v3 = vpop.f32.mrb[30].mxu0 }
 0x74f   :  { %v16736_v6 = vadd.f32 %v19899_v28, %v5360_v3  ;;  %v5362_v7 = vpop.f32.mrb[31].mxu0  ;;  %v5826_v8 = vmax.f32 %v16735_v63, 0.0  ;;  %v14028_v63 = vcombine.low %v348_v40, %v352_v42 }
 0x751   :  { %v5827_v9 = vmax.f32 %v16736_v6, 0.0  ;;  %5572 = vmatmul.mubr.bf16.gmra.mrb[136].mxu0 %v13996_v2  ;;  %v14037_v2 = vcombine.high %v356_v57, %v360_v58 }
 0x752   :  { %5579 = vmatprep.mubr.bf16.mxu0 %v14005_v5 }
 0x753   :  { %v19985_v10 = vpack.c.bf16 %v5827_v9, %v5826_v8  ;;  %v364_v9 = vld [vmem:[%s21864_s0 + $0xa18] sm:$0xff] }
 0x754   :  { %v5365_v13 = vpop.f32.mrb[32].mxu0 }
 0x755   :  { %v16737_v14 = vadd.f32 %v19899_v28, %v5365_v13  ;;  %v5367_v15 = vpop.f32.mrb[33].mxu0  ;;  %15506 = vmatprep.mubr.bf16.mxu1 %v19985_v10 }
 0x756   :  { %v5368_v18 = vpop.f32.mrb[34].mxu0  ;;  %v14036_v15 = vcombine.low %v356_v57, %v360_v58 }
 0x757   :  { %v16738_v20 = vadd.f32 %v19899_v28, %v5368_v18  ;;  %v5370_v21 = vpop.f32.mrb[35].mxu0  ;;  %v5828_v22 = vmax.f32 %v16737_v14, 0.0  ;;  %v14045_v18 = vcombine.high %v364_v9, %v368_v11 }
 0x759   :  { %v5829_v23 = vmax.f32 %v16738_v20, 0.0  ;;  %5580 = vmatmul.mubr.bf16.gmra.mrb[140].mxu0 %v14004_v16 }
 0x75a   :  { %5587 = vmatprep.mubr.bf16.mxu0 %v14013_v19 }
 0x75b   :  { %v19996_v24 = vpack.c.bf16 %v5829_v23, %v5828_v22 }
 0x75c   :  { %v5373_v27 = vpop.f32.mrb[36].mxu0 }
 0x75d   :  { %v16739_v29 = vadd.f32 %v19899_v28, %v5373_v27  ;;  %v5375_v30 = vpop.f32.mrb[37].mxu0  ;;  %15507 = vmatmul.mubr.bf16.gmra.mrb[12].mxu1 %v19996_v24 }
 0x75e   :  { %v5376_v33 = vpop.f32.mrb[38].mxu0 }
 0x75f   :  { %v16740_v35 = vadd.f32 %v19899_v28, %v5376_v33  ;;  %v5378_v36 = vpop.f32.mrb[39].mxu0  ;;  %v5830_v37 = vmax.f32 %v16739_v29, 0.0 }
 0x761   :  { %v5831_v38 = vmax.f32 %v16740_v35, 0.0  ;;  %5588 = vmatmul.mubr.bf16.gmra.mrb[144].mxu0 %v14012_v32  ;;  %v14044_v32 = vcombine.low %v364_v9, %v368_v11 }
 0x762   :  { %5595 = vmatprep.mubr.bf16.mxu0 %v14021_v34  ;;  %v14053_v34 = vcombine.high %v372_v25, %v376_v26 }
 0x763   :  { %v20007_v39 = vpack.c.bf16 %v5831_v38, %v5830_v37  ;;  %v18140_v37 = vld [vmem:[%s21865_s3 + $0x8] sm:$0xff]  }
 0x764   :  { %v5381_v43 = vpop.f32.mrb[40].mxu0  ;;  %15592 = vmatprep.subr.bf16.mxu1 %v18140_v37 }
 0x765   :  { %v16741_v44 = vadd.f32 %v19899_v28, %v5381_v43  ;;  %v5383_v46 = vpop.f32.mrb[41].mxu0  ;;  %15510 = vmatprep.mubr.bf16.mxu1 %v20007_v39  ;;  %15593 = vmatpush3.bf16.msra.mxu1 %v18140_v37  ;;  %v380_v43 = vld [vmem:[%s21864_s0 + $0xa98] sm:$0xff] }
 0x766   :  { %v5384_v48 = vpop.f32.mrb[42].mxu0 }
 0x767   :  { %v16742_v50 = vadd.f32 %v19899_v28, %v5384_v48  ;;  %v5386_v51 = vpop.f32.mrb[43].mxu0  ;;  %v5832_v53 = vmax.f32 %v16741_v44, 0.0  ;;  %v384_v44 = vld [vmem:[%s21864_s0 + $0xab8] sm:$0xff] }
 0x768   :  { %v14061_v51 = vcombine.high %v380_v43, %v384_v44 }
 0x769   :  { %v5833_v55 = vmax.f32 %v16742_v50, 0.0  ;;  %5596 = vmatmul.mubr.bf16.gmra.mrb[148].mxu0 %v14020_v47 }
 0x76a   :  { %5603 = vmatprep.mubr.bf16.mxu0 %v14029_v49  ;;  %v14052_v49 = vcombine.low %v372_v25, %v376_v26  ;;  %v18141_v26 = vld [vmem:[%s21865_s3 + $0x10] sm:$0xff]  }
 0x76b   :  { %v20021_v56 = vpack.c.bf16 %v5833_v55, %v5832_v53  ;;  %15594 = vmatprep.subr.bf16.mxu1 %v18141_v26 }
 0x76c   :  { %v5389_v60 = vpop.f32.mrb[44].mxu0  ;;  %15595 = vmatpush3.bf16.msra.mxu1 %v18141_v26 }
 0x76d   :  { %v16743_v61 = vadd.f32 %v19899_v28, %v5389_v60  ;;  %v5391_v62 = vpop.f32.mrb[45].mxu0  ;;  %15511 = vmatmul.mubr.bf16.gmra.mrb[16].mxu1 %v20021_v56  ;;  %v388_v60 = vld [vmem:[%s21864_s0 + $0xad8] sm:$0xff] }
 0x76e   :  { %v5392_v1 = vpop.f32.mrb[46].mxu0 }
 0x76f   :  { %v16744_v3 = vadd.f32 %v19899_v28, %v5392_v1  ;;  %v5394_v5 = vpop.f32.mrb[47].mxu0  ;;  %v5834_v6 = vmax.f32 %v16743_v61, 0.0  ;;  %v392_v61 = vld [vmem:[%s21864_s0 + $0xaf8] sm:$0xff] }
 0x770   :  { %v14069_v5 = vcombine.high %v388_v60, %v392_v61 }
 0x771   :  { %v5835_v7 = vmax.f32 %v16744_v3, 0.0  ;;  %5604 = vmatmul.mubr.bf16.gmra.mrb[152].mxu0 %v14028_v63 }
 0x772   :  { %5611 = vmatprep.mubr.bf16.mxu0 %v14037_v2  ;;  %v14060_v2 = vcombine.low %v380_v43, %v384_v44 }
 0x773   :  { %v20032_v8 = vpack.c.bf16 %v5835_v7, %v5834_v6 }
 0x774   :  { %v5397_v12 = vpop.f32.mrb[48].mxu0 }
 0x775   :  { %v16745_v13 = vadd.f32 %v19899_v28, %v5397_v12  ;;  %v5399_v14 = vpop.f32.mrb[49].mxu0  ;;  %15514 = vmatprep.mubr.bf16.mxu1 %v20032_v8 }
 0x776   :  { %v5400_v16 = vpop.f32.mrb[50].mxu0  ;;  %v400_v14 = vld [vmem:[%s21864_s0 + $0xb38] sm:$0xff] }
 0x777   :  { %v16746_v19 = vadd.f32 %v19899_v28, %v5400_v16  ;;  %v5402_v20 = vpop.f32.mrb[51].mxu0  ;;  %v5836_v21 = vmax.f32 %v16745_v13, 0.0  ;;  %v396_v13 = vld [vmem:[%s21864_s0 + $0xb18] sm:$0xff] }
 0x778   :  { %v14076_v37 = vcombine.low %v396_v13, %v400_v14 }
 0x779   :  { %v5837_v22 = vmax.f32 %v16746_v19, 0.0  ;;  %5612 = vmatmul.mubr.bf16.gmra.mrb[156].mxu0 %v14036_v15  ;;  %v14068_v19 = vcombine.low %v388_v60, %v392_v61 }
 0x77a   :  { %5619 = vmatprep.mubr.bf16.mxu0 %v14045_v18 }
 0x77b   :  { %v20043_v23 = vpack.c.bf16 %v5837_v22, %v5836_v21  ;;  %v14077_v21 = vcombine.high %v396_v13, %v400_v14 }
 0x77c   :  { %v5405_v27 = vpop.f32.mrb[52].mxu0 }
 0x77d   :  { %v16747_v29 = vadd.f32 %v19899_v28, %v5405_v27  ;;  %v5407_v30 = vpop.f32.mrb[53].mxu0  ;;  %15515 = vmatmul.mubr.bf16.gmra.mrb[20].mxu1 %v20043_v23 }
 0x77e   :  { %v5408_v33 = vpop.f32.mrb[54].mxu0 }
 0x77f   :  { %v16748_v35 = vadd.f32 %v19899_v28, %v5408_v33  ;;  %v5410_v36 = vpop.f32.mrb[55].mxu0  ;;  %v5838_v38 = vmax.f32 %v16747_v29, 0.0  ;;  %v408_v33 = vld [vmem:[%s21864_s0 + $0xb78] sm:$0xff] }
 0x781   :  { %v5839_v40 = vmax.f32 %v16748_v35, 0.0  ;;  %5620 = vmatmul.mubr.bf16.gmra.mrb[160].mxu0 %v14044_v32  ;;  %v404_v32 = vld [vmem:[%s21864_s0 + $0xb58] sm:$0xff] }
 0x782   :  { %5627 = vmatprep.mubr.bf16.mxu0 %v14053_v34 }
 0x783   :  { %v20057_v42 = vpack.c.bf16 %v5839_v40, %v5838_v38  ;;  %v14085_v40 = vcombine.high %v404_v32, %v408_v33 }
 0x784   :  { %v5413_v46 = vpop.f32.mrb[56].mxu0 }
 0x785   :  { %v16749_v47 = vadd.f32 %v19899_v28, %v5413_v46  ;;  %v5415_v48 = vpop.f32.mrb[57].mxu0  ;;  %15518 = vmatprep.mubr.bf16.mxu1 %v20057_v42 }
 0x786   :  { %v5416_v50 = vpop.f32.mrb[58].mxu0 }
 0x787   :  { %v16750_v52 = vadd.f32 %v19899_v28, %v5416_v50  ;;  %v5418_v53 = vpop.f32.mrb[59].mxu0  ;;  %v5840_v55 = vmax.f32 %v16749_v47, 0.0  ;;  %v416_v50 = vld [vmem:[%s21864_s0 + $0xbb8] sm:$0xff] }
 0x789   :  { %v5841_v57 = vmax.f32 %v16750_v52, 0.0  ;;  %5628 = vmatmul.mubr.bf16.gmra.mrb[164].mxu0 %v14052_v49  ;;  %v412_v49 = vld [vmem:[%s21864_s0 + $0xb98] sm:$0xff] }
 0x78a   :  { %5635 = vmatprep.mubr.bf16.mxu0 %v14061_v51  ;;  %v14093_v60 = vcombine.high %v412_v49, %v416_v50 }
 0x78b   :  { %v20068_v58 = vpack.c.bf16 %v5841_v57, %v5840_v55  ;;  %v14084_v55 = vcombine.low %v404_v32, %v408_v33 }
 0x78c   :  { %v5421_v62 = vpop.f32.mrb[60].mxu0 }
 0x78d   :  { %v16751_v63 = vadd.f32 %v19899_v28, %v5421_v62  ;;  %v5423_v1 = vpop.f32.mrb[61].mxu0  ;;  %15519 = vmatmul.mubr.bf16.gmra.mrb[24].mxu1 %v20068_v58 }
 0x78e   :  { %v5424_v3 = vpop.f32.mrb[62].mxu0 }
 0x78f   :  { %v16752_v6 = vadd.f32 %v19899_v28, %v5424_v3  ;;  %v5426_v7 = vpop.f32.mrb[63].mxu0  ;;  %v5842_v9 = vmax.f32 %v16751_v63, 0.0  ;;  %v420_v3 = vld [vmem:[%s21864_s0 + $0xbd8] sm:$0xff] }
 0x791   :  { %v5843_v11 = vmax.f32 %v16752_v6, 0.0  ;;  %5636 = vmatmul.mubr.bf16.gmra.mrb[168].mxu0 %v14060_v2 }
 0x792   :  { %5643 = vmatprep.mubr.bf16.mxu0 %v14069_v5  ;;  %v424_v5 = vld [vmem:[%s21864_s0 + $0xbf8] sm:$0xff] }
 0x793   :  { %v20079_v12 = vpack.c.bf16 %v5843_v11, %v5842_v9  ;;  %v14092_v11 = vcombine.low %v412_v49, %v416_v50  ;;  %v14101_v14 = vcombine.high %v420_v3, %v424_v5  ;;  %v14100_v32 = vcombine.low %v420_v3, %v424_v5 }
 0x794   :  { %v5429_v15 = vpop.f32.mrb[64].mxu0 }
 0x795   :  { %v16753_v16 = vadd.f32 %v19899_v28, %v5429_v15  ;;  %v5431_v18 = vpop.f32.mrb[65].mxu0  ;;  %15522 = vmatprep.mubr.bf16.mxu1 %v20079_v12 }
 0x796   :  { %v5432_v20 = vpop.f32.mrb[66].mxu0  ;;  %v18142_v18 = vld [vmem:[%s21865_s3 + $0x18] sm:$0xff]  }
 0x797   :  { %v16754_v22 = vadd.f32 %v19899_v28, %v5432_v20  ;;  %v5434_v25 = vpop.f32.mrb[67].mxu0  ;;  %v5844_v27 = vmax.f32 %v16753_v16, 0.0  ;;  %15596 = vmatprep.subr.bf16.mxu1 %v18142_v18 }
 0x798   :  { %15597 = vmatpush3.bf16.msra.mxu1 %v18142_v18  ;;  %v432_v25 = vld [vmem:[%s21864_s0 + $0xc38] sm:$0xff] }
 0x799   :  { %v5845_v29 = vmax.f32 %v16754_v22, 0.0  ;;  %5644 = vmatmul.mubr.bf16.gmra.mrb[172].mxu0 %v14068_v19  ;;  %v428_v22 = vld [vmem:[%s21864_s0 + $0xc18] sm:$0xff] }
 0x79a   :  { %5651 = vmatprep.mubr.bf16.mxu0 %v14077_v21  ;;  %v14108_v50 = vcombine.low %v428_v22, %v432_v25 }
 0x79b   :  { %v20093_v30 = vpack.c.bf16 %v5845_v29, %v5844_v27 }
 0x79c   :  { %v5437_v34 = vpop.f32.mrb[68].mxu0 }
 0x79d   :  { %v16755_v35 = vadd.f32 %v19899_v28, %v5437_v34  ;;  %v5439_v36 = vpop.f32.mrb[69].mxu0  ;;  %15523 = vmatmul.mubr.bf16.gmra.mrb[28].mxu1 %v20093_v30  ;;  %v14109_v34 = vcombine.high %v428_v22, %v432_v25 }
 0x79e   :  { %v5440_v38 = vpop.f32.mrb[70].mxu0 }
 0x79f   :  { %v16756_v43 = vadd.f32 %v19899_v28, %v5440_v38  ;;  %v5442_v44 = vpop.f32.mrb[71].mxu0  ;;  %v5846_v46 = vmax.f32 %v16755_v35, 0.0 }
 0x7a0   :  { %v440_v44 = vld [vmem:[%s21864_s0 + $0xc78] sm:$0xff] }
 0x7a1   :  { %v5847_v47 = vmax.f32 %v16756_v43, 0.0  ;;  %5652 = vmatmul.mubr.bf16.gmra.mrb[176].mxu0 %v14076_v37  ;;  %v436_v43 = vld [vmem:[%s21864_s0 + $0xc58] sm:$0xff] }
 0x7a2   :  { %5659 = vmatprep.mubr.bf16.mxu0 %v14085_v40 }
 0x7a3   :  { %v20104_v48 = vpack.c.bf16 %v5847_v47, %v5846_v46 }
 0x7a4   :  { %v5445_v51 = vpop.f32.mrb[72].mxu0 }
 0x7a5   :  { %v16757_v52 = vadd.f32 %v19899_v28, %v5445_v51  ;;  %v5447_v53 = vpop.f32.mrb[73].mxu0  ;;  %15526 = vmatprep.mubr.bf16.mxu1 %v20104_v48 }
 0x7a6   :  { %v5448_v57 = vpop.f32.mrb[74].mxu0 }
 0x7a7   :  { %v16758_v61 = vadd.f32 %v19899_v28, %v5448_v57  ;;  %v5450_v62 = vpop.f32.mrb[75].mxu0  ;;  %v5848_v63 = vmax.f32 %v16757_v52, 0.0  ;;  %v14117_v52 = vcombine.high %v436_v43, %v440_v44 }
 0x7a8   :  { %v444_v62 = vld [vmem:[%s21864_s0 + $0xc98] sm:$0xff] }
 0x7a9   :  { %v5849_v1 = vmax.f32 %v16758_v61, 0.0  ;;  %5660 = vmatmul.mubr.bf16.gmra.mrb[180].mxu0 %v14084_v55 }
 0x7aa   :  { %5667 = vmatprep.mubr.bf16.mxu0 %v14093_v60 }
 0x7ab   :  { %v20115_v2 = vpack.c.bf16 %v5849_v1, %v5848_v63  ;;  %v448_v63 = vld [vmem:[%s21864_s0 + $0xcb8] sm:$0xff] }
 0x7ac   :  { %v5453_v6 = vpop.f32.mrb[76].mxu0 }
 0x7ad   :  { %v16759_v7 = vadd.f32 %v19899_v28, %v5453_v6  ;;  %v5455_v9 = vpop.f32.mrb[77].mxu0  ;;  %15527 = vmatmul.mubr.bf16.gmra.mrb[32].mxu1 %v20115_v2  ;;  %v14116_v6 = vcombine.low %v436_v43, %v440_v44  ;;  %v464_v43 = vld [vmem:[%s21864_s0 + $0xd38] sm:$0xff] }
 0x7ae   :  { %v5456_v13 = vpop.f32.mrb[78].mxu0  ;;  %v14125_v9 = vcombine.high %v444_v62, %v448_v63 }
 0x7af   :  { %v16760_v15 = vadd.f32 %v19899_v28, %v5456_v13  ;;  %v5458_v16 = vpop.f32.mrb[79].mxu0  ;;  %v5850_v19 = vmax.f32 %v16759_v7, 0.0 }
 0x7b1   :  { %v5851_v20 = vmax.f32 %v16760_v15, 0.0  ;;  %5668 = vmatmul.mubr.bf16.gmra.mrb[184].mxu0 %v14092_v11 }
 0x7b2   :  { %5675 = vmatprep.mubr.bf16.mxu0 %v14101_v14  ;;  %v18143_v14 = vld [vmem:[%s21865_s3 + $0x20] sm:$0xff]  }
 0x7b3   :  { %v20129_v21 = vpack.c.bf16 %v5851_v20, %v5850_v19  ;;  %15598 = vmatprep.subr.bf16.mxu1 %v18143_v14  ;;  %v452_v19 = vld [vmem:[%s21864_s0 + $0xcd8] sm:$0xff] }
 0x7b4   :  { %v5461_v26 = vpop.f32.mrb[80].mxu0  ;;  %15599 = vmatpush3.bf16.msra.mxu1 %v18143_v14  ;;  %v456_v20 = vld [vmem:[%s21864_s0 + $0xcf8] sm:$0xff]  ;;  %v18144_v14 = vld [vmem:[%s21865_s3 + $0x28] sm:$0xff]  }
 0x7b5   :  { %v16761_v27 = vadd.f32 %v19899_v28, %v5461_v26  ;;  %v5463_v29 = vpop.f32.mrb[81].mxu0  ;;  %15530 = vmatprep.mubr.bf16.mxu1 %v20129_v21  ;;  %15600 = vmatprep.subr.bf16.mxu1 %v18144_v14 }
 0x7b6   :  { %v5464_v33 = vpop.f32.mrb[82].mxu0 }
 0x7b7   :  { %v16762_v35 = vadd.f32 %v19899_v28, %v5464_v33  ;;  %v5466_v36 = vpop.f32.mrb[83].mxu0  ;;  %v5852_v37 = vmax.f32 %v16761_v27, 0.0  ;;  %v14124_v27 = vcombine.low %v444_v62, %v448_v63  ;;  %v468_v62 = vld [vmem:[%s21864_s0 + $0xd58] sm:$0xff] }
 0x7b8   :  { %v472_v63 = vld [vmem:[%s21864_s0 + $0xd78] sm:$0xff]  ;;  %15601 = vmatpush3.bf16.msra.mxu1 %v18144_v14 }
 0x7b9   :  { %v5853_v38 = vmax.f32 %v16762_v35, 0.0  ;;  %5676 = vmatmul.mubr.bf16.gmra.mrb[188].mxu0 %v14100_v32  ;;  %v14133_v32 = vcombine.high %v452_v19, %v456_v20 }
 0x7ba   :  { %5683 = vmatprep.mubr.bf16.mxu0 %v14109_v34 }
 0x7bb   :  { %v20140_v40 = vpack.c.bf16 %v5853_v38, %v5852_v37  ;;  %v460_v38 = vld [vmem:[%s21864_s0 + $0xd18] sm:$0xff] }
 0x7bc   :  { %v5469_v46 = vpop.f32.mrb[84].mxu0 }
 0x7bd   :  { %v16763_v47 = vadd.f32 %v19899_v28, %v5469_v46  ;;  %v5471_v49 = vpop.f32.mrb[85].mxu0  ;;  %15531 = vmatmul.mubr.bf16.gmra.mrb[36].mxu1 %v20140_v40 }
 0x7be   :  { %v5472_v51 = vpop.f32.mrb[86].mxu0  ;;  %v14132_v49 = vcombine.low %v452_v19, %v456_v20  ;;  %v476_v20 = vld [vmem:[%s21864_s0 + $0xd98] sm:$0xff] }
 0x7bf   :  { %v16764_v53 = vadd.f32 %v19899_v28, %v5472_v51  ;;  %v5474_v55 = vpop.f32.mrb[87].mxu0  ;;  %v5854_v57 = vmax.f32 %v16763_v47, 0.0  ;;  %v14141_v51 = vcombine.high %v460_v38, %v464_v43 }
 0x7c1   :  { %v5855_v60 = vmax.f32 %v16764_v53, 0.0  ;;  %5684 = vmatmul.mubr.bf16.gmra.mrb[192].mxu0 %v14108_v50 }
 0x7c2   :  { %5691 = vmatprep.mubr.bf16.mxu0 %v14117_v52 }
 0x7c3   :  { %v20151_v61 = vpack.c.bf16 %v5855_v60, %v5854_v57 }
 0x7c4   :  { %v5477_v1 = vpop.f32.mrb[88].mxu0 }
 0x7c5   :  { %v16765_v3 = vadd.f32 %v19899_v28, %v5477_v1  ;;  %v5479_v5 = vpop.f32.mrb[89].mxu0  ;;  %15534 = vmatprep.mubr.bf16.mxu1 %v20151_v61 }
 0x7c6   :  { %v5480_v7 = vpop.f32.mrb[90].mxu0 }
 0x7c7   :  { %v16766_v11 = vadd.f32 %v19899_v28, %v5480_v7  ;;  %v5482_v13 = vpop.f32.mrb[91].mxu0  ;;  %v5856_v15 = vmax.f32 %v16765_v3, 0.0 }
 0x7c9   :  { %v5857_v16 = vmax.f32 %v16766_v11, 0.0  ;;  %5692 = vmatmul.mubr.bf16.gmra.mrb[196].mxu0 %v14116_v6  ;;  %v14140_v6 = vcombine.low %v460_v38, %v464_v43 }
 0x7ca   :  { %5699 = vmatprep.mubr.bf16.mxu0 %v14125_v9  ;;  %v14149_v9 = vcombine.high %v468_v62, %v472_v63 }
 0x7cb   :  { %v20165_v18 = vpack.c.bf16 %v5857_v16, %v5856_v15 }
 0x7cc   :  { %v5485_v22 = vpop.f32.mrb[92].mxu0 }
 0x7cd   :  { %v16767_v25 = vadd.f32 %v19899_v28, %v5485_v22  ;;  %v5487_v26 = vpop.f32.mrb[93].mxu0  ;;  %15535 = vmatmul.mubr.bf16.gmra.mrb[40].mxu1 %v20165_v18  ;;  %v480_v22 = vld [vmem:[%s21864_s0 + $0xdb8] sm:$0xff] }
 0x7ce   :  { %v5488_v29 = vpop.f32.mrb[94].mxu0 }
 0x7cf   :  { %v16768_v33 = vadd.f32 %v19899_v28, %v5488_v29  ;;  %v5490_v34 = vpop.f32.mrb[95].mxu0  ;;  %v5858_v35 = vmax.f32 %v16767_v25, 0.0  ;;  %v14148_v29 = vcombine.low %v468_v62, %v472_v63 }
 0x7d1   :  { %v5859_v36 = vmax.f32 %v16768_v33, 0.0  ;;  %5700 = vmatmul.mubr.bf16.gmra.mrb[200].mxu0 %v14124_v27  ;;  %v14157_v33 = vcombine.high %v476_v20, %v480_v22 }
 0x7d2   :  { %5707 = vmatprep.mubr.bf16.mxu0 %v14133_v32 }
 0x7d3   :  { %v20176_v37 = vpack.c.bf16 %v5859_v36, %v5858_v35 }
 0x7d4   :  { %v5493_v44 = vpop.f32.mrb[96].mxu0 }
 0x7d5   :  { %v16769_v46 = vadd.f32 %v19899_v28, %v5493_v44  ;;  %v5495_v47 = vpop.f32.mrb[97].mxu0  ;;  %15538 = vmatprep.mubr.bf16.mxu1 %v20176_v37  ;;  %v484_v44 = vld [vmem:[%s21864_s0 + $0xdd8] sm:$0xff] }
 0x7d6   :  { %v5496_v50 = vpop.f32.mrb[98].mxu0 }
 0x7d7   :  { %v16770_v52 = vadd.f32 %v19899_v28, %v5496_v50  ;;  %v5498_v53 = vpop.f32.mrb[99].mxu0  ;;  %v5860_v55 = vmax.f32 %v16769_v46, 0.0  ;;  %v488_v46 = vld [vmem:[%s21864_s0 + $0xdf8] sm:$0xff] }
 0x7d8   :  { %v14165_v53 = vcombine.high %v484_v44, %v488_v46 }
 0x7d9   :  { %v5861_v57 = vmax.f32 %v16770_v52, 0.0  ;;  %5708 = vmatmul.mubr.bf16.gmra.mrb[204].mxu0 %v14132_v49 }
 0x7da   :  { %5715 = vmatprep.mubr.bf16.mxu0 %v14141_v51  ;;  %v14156_v51 = vcombine.low %v476_v20, %v480_v22  ;;  %v18145_v20 = vld [vmem:[%s21865_s3 + $0x30] sm:$0xff]  }
 0x7db   :  { %v20187_v60 = vpack.c.bf16 %v5861_v57, %v5860_v55  ;;  %15602 = vmatprep.subr.bf16.mxu1 %v18145_v20 }
 0x7dc   :  { %v5501_v1 = vpop.f32.mrb[100].mxu0  ;;  %15603 = vmatpush3.bf16.msra.mxu1 %v18145_v20 }
 0x7dd   :  { %v16771_v3 = vadd.f32 %v19899_v28, %v5501_v1  ;;  %v5503_v5 = vpop.f32.mrb[101].mxu0  ;;  %15539 = vmatmul.mubr.bf16.gmra.mrb[44].mxu1 %v20187_v60 }
 0x7de   :  { %v5504_v7 = vpop.f32.mrb[102].mxu0  ;;  %v496_v5 = vld [vmem:[%s21864_s0 + $0xe38] sm:$0xff] }
 0x7df   :  { %v16772_v11 = vadd.f32 %v19899_v28, %v5504_v7  ;;  %v5506_v13 = vpop.f32.mrb[103].mxu0  ;;  %v5862_v15 = vmax.f32 %v16771_v3, 0.0  ;;  %v492_v3 = vld [vmem:[%s21864_s0 + $0xe18] sm:$0xff] }
 0x7e0   :  { %v14173_v14 = vcombine.high %v492_v3, %v496_v5 }
 0x7e1   :  { %v5863_v16 = vmax.f32 %v16772_v11, 0.0  ;;  %5716 = vmatmul.mubr.bf16.gmra.mrb[208].mxu0 %v14140_v6  ;;  %v14164_v11 = vcombine.low %v484_v44, %v488_v46 }
 0x7e2   :  { %5723 = vmatprep.mubr.bf16.mxu0 %v14149_v9 }
 0x7e3   :  { %v20201_v19 = vpack.c.bf16 %v5863_v16, %v5862_v15 }
 0x7e4   :  { %v5509_v25 = vpop.f32.mrb[104].mxu0 }
 0x7e5   :  { %v16773_v26 = vadd.f32 %v19899_v28, %v5509_v25  ;;  %v5511_v27 = vpop.f32.mrb[105].mxu0  ;;  %15542 = vmatprep.mubr.bf16.mxu1 %v20201_v19 }
 0x7e6   :  { %v5512_v32 = vpop.f32.mrb[106].mxu0 }
 0x7e7   :  { %v16774_v34 = vadd.f32 %v19899_v28, %v5512_v32  ;;  %v5514_v35 = vpop.f32.mrb[107].mxu0  ;;  %v5864_v36 = vmax.f32 %v16773_v26, 0.0 }
 0x7e9   :  { %v5865_v38 = vmax.f32 %v16774_v34, 0.0  ;;  %5724 = vmatmul.mubr.bf16.gmra.mrb[212].mxu0 %v14148_v29 }
 0x7ea   :  { %5731 = vmatprep.mubr.bf16.mxu0 %v14157_v33  ;;  %v14172_v33 = vcombine.low %v492_v3, %v496_v5 }
 0x7eb   :  { %v20212_v43 = vpack.c.bf16 %v5865_v38, %v5864_v36 }
 0x7ec   :  { %v5517_v47 = vpop.f32.mrb[108].mxu0 }
 0x7ed   :  { %v16775_v49 = vadd.f32 %v19899_v28, %v5517_v47  ;;  %v5519_v50 = vpop.f32.mrb[109].mxu0  ;;  %15543 = vmatmul.mubr.bf16.gmra.mrb[48].mxu1 %v20212_v43 }
 0x7ee   :  { %v5520_v52 = vpop.f32.mrb[110].mxu0 }
 0x7ef   :  { %v16776_v55 = vadd.f32 %v19899_v28, %v5520_v52  ;;  %v5522_v57 = vpop.f32.mrb[111].mxu0  ;;  %v5866_v62 = vmax.f32 %v16775_v49, 0.0 }
 0x7f1   :  { %v5867_v63 = vmax.f32 %v16776_v55, 0.0  ;;  %5732 = vmatmul.mubr.bf16.gmra.mrb[216].mxu0 %v14156_v51 }
 0x7f2   :  { %5739 = vmatprep.mubr.bf16.mxu0 %v14165_v53 }
 0x7f3   :  { %v20223_v1 = vpack.c.bf16 %v5867_v63, %v5866_v62 }
 0x7f4   :  { %v5525_v6 = vpop.f32.mrb[112].mxu0 }
 0x7f5   :  { %v16777_v7 = vadd.f32 %v19899_v28, %v5525_v6  ;;  %v5527_v9 = vpop.f32.mrb[113].mxu0  ;;  %15546 = vmatprep.mubr.bf16.mxu1 %v20223_v1 }
 0x7f6   :  { %v5528_v13 = vpop.f32.mrb[114].mxu0 }
 0x7f7   :  { %v16778_v15 = vadd.f32 %v19899_v28, %v5528_v13  ;;  %v5530_v16 = vpop.f32.mrb[115].mxu0  ;;  %v5868_v22 = vmax.f32 %v16777_v7, 0.0  ;;  %v20254_v7 = vld [vmem:[%s21866_s2] ss:$0 sm:$0xff]  ;;  %v18146_v13 = vld [vmem:[%s21865_s3 + $0x38] sm:$0xff]  }
 0x7f8   :  { %15604 = vmatprep.subr.bf16.mxu1 %v18146_v13 }
 0x7f9   :  { %v5869_v25 = vmax.f32 %v16778_v15, 0.0  ;;  %5740 = vmatmul.mubr.bf16.gmra.mrb[220].mxu0 %v14164_v11  ;;  %15605 = vmatpush3.bf16.msra.mxu1 %v18146_v13 }
 0x7fa   :  { %5747 = vmatprep.mubr.bf16.mxu0 %v14173_v14 }
 0x7fb   :  { %v20237_v26 = vpack.c.bf16 %v5869_v25, %v5868_v22 }
 0x7fc   :  { %v5533_v27 = vpop.f32.mrb[116].mxu0 }
 0x7fd   :  { %v16779_v29 = vadd.f32 %v19899_v28, %v5533_v27  ;;  %v5535_v32 = vpop.f32.mrb[117].mxu0  ;;  %15547 = vmatmul.mubr.bf16.gmra.mrb[52].mxu1 %v20237_v26 }
 0x7fe   :  { %v5536_v34 = vpop.f32.mrb[118].mxu0 }
 0x7ff   :  { %v16780_v35 = vadd.f32 %v19899_v28, %v5536_v34  ;;  %v5538_v36 = vpop.f32.mrb[119].mxu0  ;;  %v5870_v38 = vmax.f32 %v16779_v29, 0.0 }
 0x801   :  { %v5871_v44 = vmax.f32 %v16780_v35, 0.0  ;;  %5748 = vmatmul.mubr.bf16.gmra.mrb[224].mxu0 %v14172_v33 }
 0x803   :  { %v20242_v46 = vpack.c.bf16 %v5871_v44, %v5870_v38 }
 0x804   :  { %v5541_v47 = vpop.f32.mrb[120].mxu0 }
 0x805   :  { %v16781_v49 = vadd.f32 %v19899_v28, %v5541_v47  ;;  %v5543_v50 = vpop.f32.mrb[121].mxu0  ;;  %15550 = vmatprep.mubr.bf16.mxu1 %v20242_v46 }
 0x806   :  { %v5544_v51 = vpop.f32.mrb[122].mxu0 }
 0x807   :  { %v16782_v52 = vadd.f32 %v19899_v28, %v5544_v51  ;;  %v5546_v53 = vpop.f32.mrb[123].mxu0  ;;  %v5872_v55 = vmax.f32 %v16781_v49, 0.0 }
 0x809   :  { %v5873_v57 = vmax.f32 %v16782_v52, 0.0 }
 0x80b   :  { %v20247_v62 = vpack.c.bf16 %v5873_v57, %v5872_v55 }
 0x80c   :  { %v5549_v63 = vpop.f32.mrb[124].mxu0 }
 0x80d   :  { %v16783_v3 = vadd.f32 %v19899_v28, %v5549_v63  ;;  %v5551_v5 = vpop.f32.mrb[125].mxu0  ;;  %15551 = vmatmul.mubr.bf16.gmra.mrb[56].mxu1 %v20247_v62 }
 0x80e   :  { %v5552_v6 = vpop.f32.mrb[126].mxu0 }
 0x80f   :  { %v16784_v9 = vadd.f32 %v20254_v7, %v5552_v6  ;;  %v5554_v11 = vpop.f32.mrb[127].mxu0  ;;  %v5874_v14 = vmax.f32 %v16783_v3, 0.0  ;;  %v20278_v6 = vld [vmem:[%s21865_s3 + $0x80] sm:$0xff]  }
 0x810   :  { %15702 = vmatprep.subr.bf16.mxu1 %v20278_v6 }
 0x811   :  { %v5875_v15 = vmax.f32 %v16784_v9, 0.0 }
 0x813   :  { %v20260_v28 = vpack.c.bf16 %v5875_v15, %v5874_v14 }
 0x814   :  { %v5557_v16 = vpop.f32.mrb[128].mxu0 }
 0x815   :  { %v16785_v20 = vadd.f32 %v20254_v7, %v5557_v16  ;;  %v5559_v22 = vpop.f32.mrb[129].mxu0  ;;  %15554 = vmatprep.mubr.bf16.mxu1 %v20260_v28 }
 0x816   :  { %v5560_v25 = vpop.f32.mrb[130].mxu0 }
 0x817   :  { %v16786_v27 = vadd.f32 %v20254_v7, %v5560_v25  ;;  %v5562_v29 = vpop.f32.mrb[131].mxu0  ;;  %v5876_v32 = vmax.f32 %v16785_v20, 0.0 }
 0x819   :  { %v5877_v33 = vmax.f32 %v16786_v27, 0.0 }
 0x81b   :  { %v20265_v34 = vpack.c.bf16 %v5877_v33, %v5876_v32 }
 0x81c   :  { %v5565_v35 = vpop.f32.mrb[132].mxu0 }
 0x81d   :  { %v16787_v36 = vadd.f32 %v20254_v7, %v5565_v35  ;;  %v5567_v38 = vpop.f32.mrb[133].mxu0  ;;  %15555 = vmatmul.mubr.bf16.gmra.mrb[60].mxu1 %v20265_v34 }
 0x81e   :  { %v5568_v44 = vpop.f32.mrb[134].mxu0 }
 0x81f   :  { %v16788_v47 = vadd.f32 %v20254_v7, %v5568_v44  ;;  %v5570_v49 = vpop.f32.mrb[135].mxu0  ;;  %v5878_v50 = vmax.f32 %v16787_v36, 0.0 }
 0x821   :  { %v5879_v51 = vmax.f32 %v16788_v47, 0.0 }
 0x823   :  { %v20270_v52 = vpack.c.bf16 %v5879_v51, %v5878_v50 }
 0x824   :  { %v5573_v53 = vpop.f32.mrb[136].mxu0 }
 0x825   :  { %v16789_v55 = vadd.f32 %v20254_v7, %v5573_v53  ;;  %v5575_v57 = vpop.f32.mrb[137].mxu0  ;;  %15558 = vmatprep.mubr.bf16.mxu1 %v20270_v52 }
 0x826   :  { %v5576_v63 = vpop.f32.mrb[138].mxu0 }
 0x827   :  { %v16790_v3 = vadd.f32 %v20254_v7, %v5576_v63  ;;  %v5578_v5 = vpop.f32.mrb[139].mxu0  ;;  %v5880_v9 = vmax.f32 %v16789_v55, 0.0 }
 0x829   :  { %v5881_v11 = vmax.f32 %v16790_v3, 0.0 }
 0x82b   :  { %v20281_v13 = vpack.c.bf16 %v5881_v11, %v5880_v9 }
 0x82c   :  { %v5581_v14 = vpop.f32.mrb[140].mxu0 }
 0x82d   :  { %v16791_v15 = vadd.f32 %v20254_v7, %v5581_v14  ;;  %v5583_v16 = vpop.f32.mrb[141].mxu0  ;;  %15559 = vmatmul.mubr.bf16.gmra.mrb[64].mxu1 %v20281_v13 }
 0x82e   :  { %v5584_v20 = vpop.f32.mrb[142].mxu0 }
 0x82f   :  { %v16792_v22 = vadd.f32 %v20254_v7, %v5584_v20  ;;  %v5586_v25 = vpop.f32.mrb[143].mxu0  ;;  %v5882_v27 = vmax.f32 %v16791_v15, 0.0 }
 0x831   :  { %v5883_v29 = vmax.f32 %v16792_v22, 0.0 }
 0x833   :  { %v20286_v32 = vpack.c.bf16 %v5883_v29, %v5882_v27 }
 0x834   :  { %v5589_v33 = vpop.f32.mrb[144].mxu0 }
 0x835   :  { %v16793_v35 = vadd.f32 %v20254_v7, %v5589_v33  ;;  %v5591_v36 = vpop.f32.mrb[145].mxu0  ;;  %15562 = vmatprep.mubr.bf16.mxu1 %v20286_v32 }
 0x836   :  { %v5592_v38 = vpop.f32.mrb[146].mxu0 }
 0x837   :  { %v16794_v44 = vadd.f32 %v20254_v7, %v5592_v38  ;;  %v5594_v47 = vpop.f32.mrb[147].mxu0  ;;  %v5884_v49 = vmax.f32 %v16793_v35, 0.0 }
 0x839   :  { %v5885_v50 = vmax.f32 %v16794_v44, 0.0 }
 0x83b   :  { %v20291_v51 = vpack.c.bf16 %v5885_v50, %v5884_v49 }
 0x83c   :  { %v5597_v53 = vpop.f32.mrb[148].mxu0 }
 0x83d   :  { %v16795_v55 = vadd.f32 %v20254_v7, %v5597_v53  ;;  %v5599_v57 = vpop.f32.mrb[149].mxu0  ;;  %15563 = vmatmul.mubr.bf16.gmra.mrb[68].mxu1 %v20291_v51 }
 0x83e   :  { %v5600_v63 = vpop.f32.mrb[150].mxu0 }
 0x83f   :  { %v16796_v3 = vadd.f32 %v20254_v7, %v5600_v63  ;;  %v5602_v5 = vpop.f32.mrb[151].mxu0  ;;  %v5886_v9 = vmax.f32 %v16795_v55, 0.0 }
 0x841   :  { %v5887_v11 = vmax.f32 %v16796_v3, 0.0 }
 0x843   :  { %v20296_v14 = vpack.c.bf16 %v5887_v11, %v5886_v9 }
 0x844   :  { %v5605_v15 = vpop.f32.mrb[152].mxu0 }
 0x845   :  { %v16797_v16 = vadd.f32 %v20254_v7, %v5605_v15  ;;  %v5607_v20 = vpop.f32.mrb[153].mxu0  ;;  %15566 = vmatprep.mubr.bf16.mxu1 %v20296_v14 }
 0x846   :  { %v5608_v22 = vpop.f32.mrb[154].mxu0 }
 0x847   :  { %v16798_v25 = vadd.f32 %v20254_v7, %v5608_v22  ;;  %v5610_v27 = vpop.f32.mrb[155].mxu0  ;;  %v5888_v29 = vmax.f32 %v16797_v16, 0.0 }
 0x849   :  { %v5889_v33 = vmax.f32 %v16798_v25, 0.0 }
 0x84b   :  { %v20301_v35 = vpack.c.bf16 %v5889_v33, %v5888_v29 }
 0x84c   :  { %v5613_v36 = vpop.f32.mrb[156].mxu0 }
 0x84d   :  { %v16799_v38 = vadd.f32 %v20254_v7, %v5613_v36  ;;  %v5615_v44 = vpop.f32.mrb[157].mxu0  ;;  %15567 = vmatmul.mubr.bf16.gmra.mrb[72].mxu1 %v20301_v35 }
 0x84e   :  { %v5616_v47 = vpop.f32.mrb[158].mxu0 }
 0x84f   :  { %v16800_v49 = vadd.f32 %v20254_v7, %v5616_v47  ;;  %v5618_v50 = vpop.f32.mrb[159].mxu0  ;;  %v5890_v53 = vmax.f32 %v16799_v38, 0.0 }
 0x851   :  { %v5891_v55 = vmax.f32 %v16800_v49, 0.0 }
 0x853   :  { %v20306_v57 = vpack.c.bf16 %v5891_v55, %v5890_v53 }
 0x854   :  { %v5621_v63 = vpop.f32.mrb[160].mxu0 }
 0x855   :  { %v16801_v3 = vadd.f32 %v20254_v7, %v5621_v63  ;;  %v5623_v5 = vpop.f32.mrb[161].mxu0  ;;  %15570 = vmatprep.mubr.bf16.mxu1 %v20306_v57 }
 0x856   :  { %v5624_v9 = vpop.f32.mrb[162].mxu0 }
 0x857   :  { %v16802_v11 = vadd.f32 %v20254_v7, %v5624_v9  ;;  %v5626_v15 = vpop.f32.mrb[163].mxu0  ;;  %v5892_v16 = vmax.f32 %v16801_v3, 0.0 }
 0x859   :  { %v5893_v20 = vmax.f32 %v16802_v11, 0.0 }
 0x85b   :  { %v20311_v22 = vpack.c.bf16 %v5893_v20, %v5892_v16 }
 0x85c   :  { %v5629_v25 = vpop.f32.mrb[164].mxu0 }
 0x85d   :  { %v16803_v27 = vadd.f32 %v20254_v7, %v5629_v25  ;;  %v5631_v29 = vpop.f32.mrb[165].mxu0  ;;  %15571 = vmatmul.mubr.bf16.gmra.mrb[76].mxu1 %v20311_v22 }
 0x85e   :  { %v5632_v33 = vpop.f32.mrb[166].mxu0 }
 0x85f   :  { %v16804_v36 = vadd.f32 %v20254_v7, %v5632_v33  ;;  %v5634_v38 = vpop.f32.mrb[167].mxu0  ;;  %v5894_v44 = vmax.f32 %v16803_v27, 0.0 }
 0x861   :  { %v5895_v47 = vmax.f32 %v16804_v36, 0.0 }
 0x863   :  { %v20316_v49 = vpack.c.bf16 %v5895_v47, %v5894_v44 }
 0x864   :  { %v5637_v50 = vpop.f32.mrb[168].mxu0 }
 0x865   :  { %v16805_v53 = vadd.f32 %v20254_v7, %v5637_v50  ;;  %v5639_v55 = vpop.f32.mrb[169].mxu0  ;;  %15574 = vmatprep.mubr.bf16.mxu1 %v20316_v49 }
 0x866   :  { %v5640_v63 = vpop.f32.mrb[170].mxu0 }
 0x867   :  { %v16806_v3 = vadd.f32 %v20254_v7, %v5640_v63  ;;  %v5642_v5 = vpop.f32.mrb[171].mxu0  ;;  %v5896_v9 = vmax.f32 %v16805_v53, 0.0 }
 0x869   :  { %v5897_v11 = vmax.f32 %v16806_v3, 0.0 }
 0x86b   :  { %v20321_v15 = vpack.c.bf16 %v5897_v11, %v5896_v9 }
 0x86c   :  { %v5645_v16 = vpop.f32.mrb[172].mxu0 }
 0x86d   :  { %v16807_v20 = vadd.f32 %v20254_v7, %v5645_v16  ;;  %v5647_v25 = vpop.f32.mrb[173].mxu0  ;;  %15575 = vmatmul.mubr.bf16.gmra.mrb[80].mxu1 %v20321_v15 }
 0x86e   :  { %v5648_v27 = vpop.f32.mrb[174].mxu0 }
 0x86f   :  { %v16808_v29 = vadd.f32 %v20254_v7, %v5648_v27  ;;  %v5650_v33 = vpop.f32.mrb[175].mxu0  ;;  %v5898_v36 = vmax.f32 %v16807_v20, 0.0 }
 0x871   :  { %v5899_v38 = vmax.f32 %v16808_v29, 0.0 }
 0x873   :  { %v20326_v44 = vpack.c.bf16 %v5899_v38, %v5898_v36 }
 0x874   :  { %v5653_v47 = vpop.f32.mrb[176].mxu0 }
 0x875   :  { %v16809_v50 = vadd.f32 %v20254_v7, %v5653_v47  ;;  %v5655_v53 = vpop.f32.mrb[177].mxu0  ;;  %15578 = vmatprep.mubr.bf16.mxu1 %v20326_v44 }
 0x876   :  { %v5656_v55 = vpop.f32.mrb[178].mxu0 }
 0x877   :  { %v16810_v63 = vadd.f32 %v20254_v7, %v5656_v55  ;;  %v5658_v3 = vpop.f32.mrb[179].mxu0  ;;  %v5900_v5 = vmax.f32 %v16809_v50, 0.0 }
 0x879   :  { %v5901_v9 = vmax.f32 %v16810_v63, 0.0 }
 0x87b   :  { %v20331_v11 = vpack.c.bf16 %v5901_v9, %v5900_v5 }
 0x87c   :  { %v5661_v16 = vpop.f32.mrb[180].mxu0 }
 0x87d   :  { %v16811_v20 = vadd.f32 %v20254_v7, %v5661_v16  ;;  %v5663_v25 = vpop.f32.mrb[181].mxu0  ;;  %15579 = vmatmul.mubr.bf16.gmra.mrb[84].mxu1 %v20331_v11 }
 0x87e   :  { %v5664_v27 = vpop.f32.mrb[182].mxu0 }
 0x87f   :  { %v16812_v29 = vadd.f32 %v20254_v7, %v5664_v27  ;;  %v5666_v33 = vpop.f32.mrb[183].mxu0  ;;  %v5902_v36 = vmax.f32 %v16811_v20, 0.0 }
 0x881   :  { %v5903_v38 = vmax.f32 %v16812_v29, 0.0 }
 0x883   :  { %v20336_v47 = vpack.c.bf16 %v5903_v38, %v5902_v36 }
 0x884   :  { %v5669_v53 = vpop.f32.mrb[184].mxu0 }
 0x885   :  { %v16813_v50 = vadd.f32 %v20254_v7, %v5669_v53  ;;  %v5671_v55 = vpop.f32.mrb[185].mxu0  ;;  %15582 = vmatprep.mubr.bf16.mxu1 %v20336_v47 }
 0x886   :  { %v5672_v63 = vpop.f32.mrb[186].mxu0 }
 0x887   :  { %v16814_v3 = vadd.f32 %v20254_v7, %v5672_v63  ;;  %v5674_v5 = vpop.f32.mrb[187].mxu0  ;;  %v5904_v9 = vmax.f32 %v16813_v50, 0.0 }
 0x889   :  { %v5905_v16 = vmax.f32 %v16814_v3, 0.0 }
 0x88b   :  { %v20341_v25 = vpack.c.bf16 %v5905_v16, %v5904_v9 }
 0x88c   :  { %v5677_v27 = vpop.f32.mrb[188].mxu0 }
 0x88d   :  { %21879 = vst [vmem:[#allocation5_spill] sm:$0xff] %v20341_v25  ;;  %v16815_v20 = vadd.f32 %v20254_v7, %v5677_v27  ;;  %v5679_v29 = vpop.f32.mrb[189].mxu0  ;;  %15583 = vmatmul.mubr.bf16.gmra.mrb[88].mxu1 %v20341_v25 }
 0x88e   :  { %v5680_v33 = vpop.f32.mrb[190].mxu0 }
 0x88f   :  { %v16816_v36 = vadd.f32 %v20254_v7, %v5680_v33  ;;  %v5682_v38 = vpop.f32.mrb[191].mxu0  ;;  %v5906_v53 = vmax.f32 %v16815_v20, 0.0 }
 0x891   :  { %v5907_v55 = vmax.f32 %v16816_v36, 0.0 }
 0x893   :  { %v20346_v0 = vpack.c.bf16 %v5907_v55, %v5906_v53 }
 0x894   :  { %v5685_v63 = vpop.f32.mrb[192].mxu0 }
 0x895   :  { %v16817_v50 = vadd.f32 %v20254_v7, %v5685_v63  ;;  %v5687_v3 = vpop.f32.mrb[193].mxu0  ;;  %15586 = vmatprep.mubr.bf16.mxu1 %v20346_v0 }
 0x896   :  { %v5688_v5 = vpop.f32.mrb[194].mxu0 }
 0x897   :  { %v16818_v9 = vadd.f32 %v20254_v7, %v5688_v5  ;;  %v5690_v16 = vpop.f32.mrb[195].mxu0  ;;  %v5908_v27 = vmax.f32 %v16817_v50, 0.0  ;;  %v18148_v50 = vld [vmem:[%s21865_s3 + $0x88] sm:$0xff]  }
 0x899   :  { %v5909_v29 = vmax.f32 %v16818_v9, 0.0 }
 0x89b   :  { %v20351_v25 = vpack.c.bf16 %v5909_v29, %v5908_v27 }
 0x89c   :  { %v5693_v33 = vpop.f32.mrb[196].mxu0 }
 0x89d   :  { %v16819_v20 = vadd.f32 %v20254_v7, %v5693_v33  ;;  %v5695_v36 = vpop.f32.mrb[197].mxu0  ;;  %15587 = vmatmul.mubr.bf16.gmra.mrb[92].mxu1 %v20351_v25 }
 0x89e   :  { %v5696_v38 = vpop.f32.mrb[198].mxu0  ;;  %15606 = vmatprep.mubr.bf16.mxu1 %v19909_v41 }
 0x89f   :  { %v16820_v53 = vadd.f32 %v20254_v7, %v5696_v38  ;;  %v5698_v55 = vpop.f32.mrb[199].mxu0  ;;  %v5910_v63 = vmax.f32 %v16819_v20, 0.0  ;;  %v18149_v20 = vld [vmem:[%s21865_s3 + $0x90] sm:$0xff]  }
 0x8a1   :  { %v5911_v3 = vmax.f32 %v16820_v53, 0.0 }
 0x8a3   :  { %v20357_v5 = vpack.c.bf16 %v5911_v3, %v5910_v63 }
 0x8a4   :  { %v5701_v9 = vpop.f32.mrb[200].mxu0 }
 0x8a5   :  { %v16821_v16 = vadd.f32 %v20254_v7, %v5701_v9  ;;  %v5703_v27 = vpop.f32.mrb[201].mxu0  ;;  %15607 = vmatmul.mubr.bf16.vlgmr.msra.gmra.mrb[0].mxu1 %v19919_v54  ;;  %v18150_v54 = vld [vmem:[%s21865_s3 + $0x98] sm:$0xff]   ;;  %v18151_v9 = vld [vmem:[%s21865_s3 + $0xa0] sm:$0xff]  }
 0x8a6   :  { %v5704_v29 = vpop.f32.mrb[202].mxu0  ;;  %15610 = vmatprep.mubr.bf16.mxu1 %v19930_v4  ;;  %15703 = vmatpush3.bf16.msra.mxu1 %v20278_v6 }
 0x8a7   :  { %v16822_v41 = vadd.f32 %v20254_v7, %v5704_v29  ;;  %v5706_v33 = vpop.f32.mrb[203].mxu0  ;;  %15704 = vmatprep.subr.bf16.mxu1 %v18148_v50  ;;  %v5912_v36 = vmax.f32 %v16821_v16, 0.0 }
 0x8a9   :  { %v5913_v38 = vmax.f32 %v16822_v41, 0.0 }
 0x8aa   :  { %15705 = vmatpush3.bf16.msra.mxu1 %v18148_v50 }
 0x8ab   :  { %v20370_v53 = vpack.c.bf16 %v5913_v38, %v5912_v36  ;;  %15706 = vmatprep.subr.bf16.mxu1 %v18149_v20 }
 0x8ac   :  { %v5709_v4 = vpop.f32.mrb[204].mxu0 }
 0x8ad   :  { %v16823_v6 = vadd.f32 %v20254_v7, %v5709_v4  ;;  %v5711_v55 = vpop.f32.mrb[205].mxu0  ;;  %15611 = vmatmul.mubr.bf16.gmra.mrb[4].mxu1 %v19941_v17  ;;  %v18152_v17 = vld [vmem:[%s21865_s3 + $0xa8] sm:$0xff]  }
 0x8ae   :  { %v5712_v63 = vpop.f32.mrb[206].mxu0  ;;  %15614 = vmatprep.mubr.bf16.mxu1 %v19952_v31  ;;  %15707 = vmatpush3.bf16.msra.mxu1 %v18149_v20 }
 0x8af   :  { %v16824_v3 = vadd.f32 %v20254_v7, %v5712_v63  ;;  %v5714_v50 = vpop.f32.mrb[207].mxu0  ;;  %15708 = vmatprep.subr.bf16.mxu1 %v18150_v54  ;;  %v5914_v16 = vmax.f32 %v16823_v6, 0.0 }
 0x8b1   :  { %v5915_v27 = vmax.f32 %v16824_v3, 0.0 }
 0x8b2   :  { %15709 = vmatpush3.bf16.msra.mxu1 %v18150_v54  ;;  %v18153_v54 = vld [vmem:[%s21865_s3 + $0xb0] sm:$0xff]  }
 0x8b3   :  { %v20382_v29 = vpack.c.bf16 %v5915_v27, %v5914_v16  ;;  %15710 = vmatprep.subr.bf16.mxu1 %v18151_v9 }
 0x8b4   :  { %v5717_v31 = vpop.f32.mrb[208].mxu0 }
 0x8b5   :  { %v16825_v41 = vadd.f32 %v20254_v7, %v5717_v31  ;;  %v5719_v33 = vpop.f32.mrb[209].mxu0  ;;  %15615 = vmatmul.mubr.bf16.gmra.mrb[8].mxu1 %v19963_v45 }
 0x8b6   :  { %v5720_v20 = vpop.f32.mrb[210].mxu0  ;;  %15618 = vmatprep.mubr.bf16.mxu1 %v19974_v59  ;;  %15711 = vmatpush3.bf16.msra.mxu1 %v18151_v9 }
 0x8b7   :  { %v16826_v36 = vadd.f32 %v20254_v7, %v5720_v20  ;;  %v5722_v38 = vpop.f32.mrb[211].mxu0  ;;  %15712 = vmatprep.subr.bf16.mxu1 %v18152_v17  ;;  %v5916_v4 = vmax.f32 %v16825_v41, 0.0 }
 0x8b9   :  { %v5917_v6 = vmax.f32 %v16826_v36, 0.0 }
 0x8ba   :  { %15713 = vmatpush3.bf16.msra.mxu1 %v18152_v17 }
 0x8bb   :  { %v20394_v55 = vpack.c.bf16 %v5917_v6, %v5916_v4  ;;  %15714 = vmatprep.subr.bf16.mxu1 %v18153_v54 }
 0x8bc   :  { %v5725_v63 = vpop.f32.mrb[212].mxu0 }
 0x8bd   :  { %v16827_v45 = vadd.f32 %v20254_v7, %v5725_v63  ;;  %v5727_v3 = vpop.f32.mrb[213].mxu0  ;;  %15619 = vmatmul.mubr.bf16.gmra.mrb[12].mxu1 %v19985_v10 }
 0x8be   :  { %v5728_v59 = vpop.f32.mrb[214].mxu0  ;;  %15622 = vmatprep.mubr.bf16.mxu1 %v19996_v24  ;;  %15715 = vmatpush3.bf16.msra.mxu1 %v18153_v54  ;;  %v18154_v3 = vld [vmem:[%s21865_s3 + $0xb8] sm:$0xff]  }
 0x8bf   :  { %v16828_v50 = vadd.f32 %v20254_v7, %v5728_v59  ;;  %v5730_v9 = vpop.f32.mrb[215].mxu0  ;;  %v5918_v16 = vmax.f32 %v16827_v45, 0.0  ;;  %15716 = vmatprep.subr.bf16.mxu1 %v18154_v3 }
 0x8c1   :  { %v5919_v27 = vmax.f32 %v16828_v50, 0.0 }
 0x8c2   :  { %15717 = vmatpush3.bf16.msra.mxu1 %v18154_v3  ;;  %v18156_v3 = vld [vmem:[%s21865_s3 + $0xc8] sm:$0xff]  }
 0x8c3   :  { %v20400_v31 = vpack.c.bf16 %v5919_v27, %v5918_v16 }
 0x8c4   :  { %v5733_v17 = vpop.f32.mrb[216].mxu0 }
 0x8c5   :  { %v16829_v41 = vadd.f32 %v20254_v7, %v5733_v17  ;;  %v5735_v33 = vpop.f32.mrb[217].mxu0  ;;  %15623 = vmatmul.mubr.bf16.gmra.mrb[16].mxu1 %v20007_v39 }
 0x8c6   :  { %v5736_v20 = vpop.f32.mrb[218].mxu0  ;;  %15626 = vmatprep.mubr.bf16.mxu1 %v20021_v56 }
 0x8c7   :  { %v16830_v10 = vadd.f32 %v20254_v7, %v5736_v20  ;;  %v5738_v36 = vpop.f32.mrb[219].mxu0  ;;  %v5920_v38 = vmax.f32 %v16829_v41, 0.0 }
 0x8c9   :  { %v5921_v54 = vmax.f32 %v16830_v10, 0.0 }
 0x8cb   :  { %v20406_v4 = vpack.c.bf16 %v5921_v54, %v5920_v38 }
 0x8cc   :  { %v5741_v6 = vpop.f32.mrb[220].mxu0 }
 0x8cd   :  { %v16831_v63 = vadd.f32 %v20254_v7, %v5741_v6  ;;  %v5743_v45 = vpop.f32.mrb[221].mxu0  ;;  %15627 = vmatmul.mubr.bf16.gmra.mrb[20].mxu1 %v20032_v8 }
 0x8ce   :  { %v5744_v59 = vpop.f32.mrb[222].mxu0  ;;  %15630 = vmatprep.mubr.bf16.mxu1 %v20043_v23 }
 0x8cf   :  { %v16832_v50 = vadd.f32 %v20254_v7, %v5744_v59  ;;  %v5746_v9 = vpop.f32.mrb[223].mxu0  ;;  %v5922_v16 = vmax.f32 %v16831_v63, 0.0  ;;  %v18155_v63 = vld [vmem:[%s21865_s3 + $0xc0] sm:$0xff]   ;;  %v18157_v59 = vld [vmem:[%s21865_s3 + $0xd0] sm:$0xff]  }
 0x8d0   :  { %15814 = vmatprep.subr.bf16.mxu1 %v18155_v63  ;;  %v18160_v9 = vld [vmem:[%s21865_s3 + $0xe8] sm:$0xff]  }
 0x8d1   :  { %v5923_v27 = vmax.f32 %v16832_v50, 0.0  ;;  %v18159_v50 = vld [vmem:[%s21865_s3 + $0xe0] sm:$0xff]  }
 0x8d3   :  { %v20415_v17 = vpack.c.bf16 %v5923_v27, %v5922_v16  ;;  %v18161_v16 = vld [vmem:[%s21865_s3 + $0xf0] sm:$0xff]   ;;  %v18162_v27 = vld [vmem:[%s21865_s3 + $0xf8] sm:$0xff]  }
 0x8d4   :  { %v5749_v41 = vpop.f32.mrb[224].mxu0 }
 0x8d5   :  { %v16833_v33 = vadd.f32 %v20254_v7, %v5749_v41  ;;  %v5751_v20 = vpop.f32.mrb[225].mxu0  ;;  %15631 = vmatmul.mubr.bf16.gmra.mrb[24].mxu1 %v20057_v42  ;;  %v18163_v41 = vld [vmem:[%s21867_s5 + $0x20] sm:$0xff]  }
 0x8d6   :  { %v5752_v10 = vpop.f32.mrb[226].mxu0  ;;  %15634 = vmatprep.mubr.bf16.mxu1 %v20068_v58  ;;  %v18165_v20 = vld [vmem:[%s21867_s5 + $0x30] sm:$0xff]  }
 0x8d7   :  { %v16834_v36 = vadd.f32 %v20254_v7, %v5752_v10  ;;  %v5754_v38 = vpop.f32.mrb[227].mxu0  ;;  %v5924_v54 = vmax.f32 %v16833_v33, 0.0  ;;  %v21880_v7 = vld [vmem:[#allocation5_spill] sm:$0xff] }
 0x8d8   :  { %v18164_v33 = vld [vmem:[%s21867_s5 + $0x28] sm:$0xff]  }
 0x8d9   :  { %v5925_v6 = vmax.f32 %v16834_v36, 0.0  ;;  %v18168_v38 = vld [vmem:[%s21867_s5 + $0x8] sm:$0xff]  }
 0x8db   :  { %v20421_v45 = vpack.c.bf16 %v5925_v6, %v5924_v54 }
 0x8dd   :  { %15635 = vmatmul.mubr.bf16.gmra.mrb[28].mxu1 %v20079_v12 }
 0x8de   :  { %15638 = vmatprep.mubr.bf16.mxu1 %v20093_v30 }
 0x8e5   :  { %15639 = vmatmul.mubr.bf16.gmra.mrb[32].mxu1 %v20104_v48 }
 0x8e6   :  { %15642 = vmatprep.mubr.bf16.mxu1 %v20115_v2 }
 0x8ed   :  { %15643 = vmatmul.mubr.bf16.gmra.mrb[36].mxu1 %v20129_v21 }
 0x8ee   :  { %15646 = vmatprep.mubr.bf16.mxu1 %v20140_v40 }
 0x8f5   :  { %15647 = vmatmul.mubr.bf16.gmra.mrb[40].mxu1 %v20151_v61 }
 0x8f6   :  { %15650 = vmatprep.mubr.bf16.mxu1 %v20165_v18 }
 0x8fd   :  { %15651 = vmatmul.mubr.bf16.gmra.mrb[44].mxu1 %v20176_v37 }
 0x8fe   :  { %15654 = vmatprep.mubr.bf16.mxu1 %v20187_v60 }
 0x905   :  { %15655 = vmatmul.mubr.bf16.gmra.mrb[48].mxu1 %v20201_v19 }
 0x906   :  { %15658 = vmatprep.mubr.bf16.mxu1 %v20212_v43 }
 0x90d   :  { %15659 = vmatmul.mubr.bf16.gmra.mrb[52].mxu1 %v20223_v1 }
 0x90e   :  { %15662 = vmatprep.mubr.bf16.mxu1 %v20237_v26 }
 0x915   :  { %15663 = vmatmul.mubr.bf16.gmra.mrb[56].mxu1 %v20242_v46 }
 0x916   :  { %15666 = vmatprep.mubr.bf16.mxu1 %v20247_v62 }
 0x91d   :  { %15667 = vmatmul.mubr.bf16.gmra.mrb[60].mxu1 %v20260_v28 }
 0x91e   :  { %15670 = vmatprep.mubr.bf16.mxu1 %v20265_v34 }
 0x925   :  { %15671 = vmatmul.mubr.bf16.gmra.mrb[64].mxu1 %v20270_v52 }
 0x926   :  { %15674 = vmatprep.mubr.bf16.mxu1 %v20281_v13 }
 0x92d   :  { %15675 = vmatmul.mubr.bf16.gmra.mrb[68].mxu1 %v20286_v32 }
 0x92e   :  { %15678 = vmatprep.mubr.bf16.mxu1 %v20291_v51 }
 0x935   :  { %15679 = vmatmul.mubr.bf16.gmra.mrb[72].mxu1 %v20296_v14 }
 0x936   :  { %15682 = vmatprep.mubr.bf16.mxu1 %v20301_v35 }
 0x93d   :  { %15683 = vmatmul.mubr.bf16.gmra.mrb[76].mxu1 %v20306_v57 }
 0x93e   :  { %15686 = vmatprep.mubr.bf16.mxu1 %v20311_v22 }
 0x945   :  { %15687 = vmatmul.mubr.bf16.gmra.mrb[80].mxu1 %v20316_v49 }
 0x946   :  { %15690 = vmatprep.mubr.bf16.mxu1 %v20321_v15 }
 0x94d   :  { %15691 = vmatmul.mubr.bf16.gmra.mrb[84].mxu1 %v20326_v44 }
 0x94e   :  { %15694 = vmatprep.mubr.bf16.mxu1 %v20331_v11 }
 0x955   :  { %15695 = vmatmul.mubr.bf16.gmra.mrb[88].mxu1 %v20336_v47 }
 0x956   :  { %15698 = vmatprep.mubr.bf16.mxu1 %v21880_v7 }
 0x95d   :  { %15699 = vmatmul.mubr.bf16.gmra.mrb[92].mxu1 %v20346_v0 }
 0x95e   :  { %15718 = vmatprep.mubr.bf16.mxu1 %v19996_v24  ;;  %v18158_v24 = vld [vmem:[%s21865_s3 + $0xd8] sm:$0xff]  }
 0x965   :  { %15719 = vmatmul.mubr.bf16.vlgmr.msra.gmra.mrb[0].mxu1 %v20007_v39 }
 0x966   :  { %15722 = vmatprep.mubr.bf16.mxu1 %v20021_v56  ;;  %15815 = vmatpush3.bf16.msra.mxu1 %v18155_v63 }
 0x967   :  { %15816 = vmatprep.subr.bf16.mxu1 %v18156_v3 }
 0x96a   :  { %15817 = vmatpush3.bf16.msra.mxu1 %v18156_v3 }
 0x96b   :  { %15818 = vmatprep.subr.bf16.mxu1 %v18157_v59 }
 0x96d   :  { %15723 = vmatmul.mubr.bf16.gmra.mrb[4].mxu1 %v20032_v8 }
 0x96e   :  { %15726 = vmatprep.mubr.bf16.mxu1 %v20043_v23  ;;  %15819 = vmatpush3.bf16.msra.mxu1 %v18157_v59 }
 0x96f   :  { %15820 = vmatprep.subr.bf16.mxu1 %v18158_v24 }
 0x972   :  { %15821 = vmatpush3.bf16.msra.mxu1 %v18158_v24 }
 0x973   :  { %15822 = vmatprep.subr.bf16.mxu1 %v18159_v50 }
 0x975   :  { %15727 = vmatmul.mubr.bf16.gmra.mrb[8].mxu1 %v20057_v42 }
 0x976   :  { %15730 = vmatprep.mubr.bf16.mxu1 %v20068_v58  ;;  %15823 = vmatpush3.bf16.msra.mxu1 %v18159_v50 }
 0x977   :  { %15824 = vmatprep.subr.bf16.mxu1 %v18160_v9 }
 0x97a   :  { %15825 = vmatpush3.bf16.msra.mxu1 %v18160_v9  ;;  %v18169_v9 = vld [vmem:[%s21867_s5 + $0x10] sm:$0xff]  }
 0x97b   :  { %15826 = vmatprep.subr.bf16.mxu1 %v18161_v16 }
 0x97d   :  { %15731 = vmatmul.mubr.bf16.gmra.mrb[12].mxu1 %v20079_v12 }
 0x97e   :  { %15734 = vmatprep.mubr.bf16.mxu1 %v20093_v30  ;;  %15827 = vmatpush3.bf16.msra.mxu1 %v18161_v16 }
 0x97f   :  { %15828 = vmatprep.subr.bf16.mxu1 %v18162_v27 }
 0x982   :  { %15829 = vmatpush3.bf16.msra.mxu1 %v18162_v27 }
 0x983   :  { %15926 = vmatprep.subr.bf16.mxu1 %v18163_v41 }
 0x985   :  { %15735 = vmatmul.mubr.bf16.gmra.mrb[16].mxu1 %v20104_v48 }
 0x986   :  { %15738 = vmatprep.mubr.bf16.mxu1 %v20115_v2 }
 0x98d   :  { %15739 = vmatmul.mubr.bf16.gmra.mrb[20].mxu1 %v20129_v21 }
 0x98e   :  { %15742 = vmatprep.mubr.bf16.mxu1 %v20140_v40 }
 0x995   :  { %15743 = vmatmul.mubr.bf16.gmra.mrb[24].mxu1 %v20151_v61 }
 0x996   :  { %15746 = vmatprep.mubr.bf16.mxu1 %v20165_v18 }
 0x99d   :  { %15747 = vmatmul.mubr.bf16.gmra.mrb[28].mxu1 %v20176_v37 }
 0x99e   :  { %15750 = vmatprep.mubr.bf16.mxu1 %v20187_v60 }
 0x9a5   :  { %15751 = vmatmul.mubr.bf16.gmra.mrb[32].mxu1 %v20201_v19 }
 0x9a6   :  { %15754 = vmatprep.mubr.bf16.mxu1 %v20212_v43 }
 0x9ad   :  { %15755 = vmatmul.mubr.bf16.gmra.mrb[36].mxu1 %v20223_v1 }
 0x9ae   :  { %15758 = vmatprep.mubr.bf16.mxu1 %v20237_v26 }
 0x9b5   :  { %15759 = vmatmul.mubr.bf16.gmra.mrb[40].mxu1 %v20242_v46 }
 0x9b6   :  { %15762 = vmatprep.mubr.bf16.mxu1 %v20247_v62 }
 0x9bd   :  { %15763 = vmatmul.mubr.bf16.gmra.mrb[44].mxu1 %v20260_v28 }
 0x9be   :  { %15766 = vmatprep.mubr.bf16.mxu1 %v20265_v34 }
 0x9c5   :  { %15767 = vmatmul.mubr.bf16.gmra.mrb[48].mxu1 %v20270_v52 }
 0x9c6   :  { %15770 = vmatprep.mubr.bf16.mxu1 %v20281_v13 }
 0x9cd   :  { %15771 = vmatmul.mubr.bf16.gmra.mrb[52].mxu1 %v20286_v32 }
 0x9ce   :  { %15774 = vmatprep.mubr.bf16.mxu1 %v20291_v51 }
 0x9d5   :  { %15775 = vmatmul.mubr.bf16.gmra.mrb[56].mxu1 %v20296_v14 }
 0x9d6   :  { %15778 = vmatprep.mubr.bf16.mxu1 %v20301_v35 }
 0x9dd   :  { %15779 = vmatmul.mubr.bf16.gmra.mrb[60].mxu1 %v20306_v57 }
 0x9de   :  { %15782 = vmatprep.mubr.bf16.mxu1 %v20311_v22 }
 0x9e5   :  { %15783 = vmatmul.mubr.bf16.gmra.mrb[64].mxu1 %v20316_v49 }
 0x9e6   :  { %15786 = vmatprep.mubr.bf16.mxu1 %v20321_v15 }
 0x9ed   :  { %15787 = vmatmul.mubr.bf16.gmra.mrb[68].mxu1 %v20326_v44 }
 0x9ee   :  { %15790 = vmatprep.mubr.bf16.mxu1 %v20331_v11 }
 0x9f5   :  { %15791 = vmatmul.mubr.bf16.gmra.mrb[72].mxu1 %v20336_v47 }
 0x9f6   :  { %15794 = vmatprep.mubr.bf16.mxu1 %v21880_v7 }
 0x9fd   :  { %15795 = vmatmul.mubr.bf16.gmra.mrb[76].mxu1 %v20346_v0 }
 0x9fe   :  { %15798 = vmatprep.mubr.bf16.mxu1 %v20351_v25 }
 0xa05   :  { %15799 = vmatmul.mubr.bf16.gmra.mrb[80].mxu1 %v20357_v5 }
 0xa06   :  { %15802 = vmatprep.mubr.bf16.mxu1 %v20370_v53 }
 0xa0d   :  { %15803 = vmatmul.mubr.bf16.gmra.mrb[84].mxu1 %v20382_v29 }
 0xa0e   :  { %15806 = vmatprep.mubr.bf16.mxu1 %v20394_v55 }
 0xa15   :  { %15807 = vmatmul.mubr.bf16.gmra.mrb[88].mxu1 %v20400_v31 }
 0xa16   :  { %15810 = vmatprep.mubr.bf16.mxu1 %v20406_v4 }
 0xa1d   :  { %15811 = vmatmul.mubr.bf16.gmra.mrb[92].mxu1 %v20415_v17 }
 0xa1e   :  { %15830 = vmatprep.mubr.bf16.mxu1 %v20007_v39  ;;  %v18166_v39 = vld [vmem:[%s21867_s5 + $0x38] sm:$0xff]  }
 0xa25   :  { %15831 = vmatmul.mubr.bf16.vlgmr.msra.gmra.mrb[0].mxu1 %v20021_v56  ;;  %v21881_v56 = vmov 0  }
 0xa26   :  { %15834 = vmatprep.mubr.bf16.mxu1 %v20032_v8  ;;  %15927 = vmatpush3.bf16.msra.mxu1 %v18163_v41  ;;  %8628 = vst.msk [vmem:[#allocation3 + $0x180] sm:$0xff] %vm8579_vm0, %v21881_v56  ;;  %8629 = vst.msk [vmem:[#allocation3 + $0x188] sm:$0xff] %vm8579_vm0, %v21881_v56  ;;  %v20578_v8 = vld [vmem:[%s21867_s5] sm:$0xff]  }
 0xa27   :  { %15928 = vmatprep.subr.bf16.mxu1 %v18164_v33 }
 0xa2a   :  { %15929 = vmatpush3.bf16.msra.mxu1 %v18164_v33 }
 0xa2b   :  { %15930 = vmatprep.subr.bf16.mxu1 %v18165_v20 }
 0xa2d   :  { %15835 = vmatmul.mubr.bf16.gmra.mrb[4].mxu1 %v20043_v23 }
 0xa2e   :  { %15838 = vmatprep.mubr.bf16.mxu1 %v20057_v42  ;;  %15931 = vmatpush3.bf16.msra.mxu1 %v18165_v20 }
 0xa2f   :  { %15932 = vmatprep.subr.bf16.mxu1 %v18166_v39 }
 0xa32   :  { %15933 = vmatpush3.bf16.msra.mxu1 %v18166_v39 }
 0xa33   :  { %15998 = vmatprep.subr.bf16.mxu1 %v20578_v8 }
 0xa35   :  { %15839 = vmatmul.mubr.bf16.gmra.mrb[8].mxu1 %v20068_v58 }
 0xa36   :  { %15842 = vmatprep.mubr.bf16.mxu1 %v20079_v12 }
 0xa3d   :  { %15843 = vmatmul.mubr.bf16.gmra.mrb[12].mxu1 %v20093_v30 }
 0xa3e   :  { %15846 = vmatprep.mubr.bf16.mxu1 %v20104_v48 }
 0xa45   :  { %15847 = vmatmul.mubr.bf16.gmra.mrb[16].mxu1 %v20115_v2 }
 0xa46   :  { %15850 = vmatprep.mubr.bf16.mxu1 %v20129_v21 }
 0xa4d   :  { %15851 = vmatmul.mubr.bf16.gmra.mrb[20].mxu1 %v20140_v40 }
 0xa4e   :  { %15854 = vmatprep.mubr.bf16.mxu1 %v20151_v61 }
 0xa55   :  { %15855 = vmatmul.mubr.bf16.gmra.mrb[24].mxu1 %v20165_v18 }
 0xa56   :  { %15858 = vmatprep.mubr.bf16.mxu1 %v20176_v37 }
 0xa5d   :  { %15859 = vmatmul.mubr.bf16.gmra.mrb[28].mxu1 %v20187_v60 }
 0xa5e   :  { %15862 = vmatprep.mubr.bf16.mxu1 %v20201_v19 }
 0xa65   :  { %15863 = vmatmul.mubr.bf16.gmra.mrb[32].mxu1 %v20212_v43 }
 0xa66   :  { %15866 = vmatprep.mubr.bf16.mxu1 %v20223_v1 }
 0xa6d   :  { %15867 = vmatmul.mubr.bf16.gmra.mrb[36].mxu1 %v20237_v26 }
 0xa6e   :  { %15870 = vmatprep.mubr.bf16.mxu1 %v20242_v46 }
 0xa75   :  { %15871 = vmatmul.mubr.bf16.gmra.mrb[40].mxu1 %v20247_v62 }
 0xa76   :  { %15874 = vmatprep.mubr.bf16.mxu1 %v20260_v28 }
 0xa7d   :  { %15875 = vmatmul.mubr.bf16.gmra.mrb[44].mxu1 %v20265_v34 }
 0xa7e   :  { %15878 = vmatprep.mubr.bf16.mxu1 %v20270_v52 }
 0xa85   :  { %15879 = vmatmul.mubr.bf16.gmra.mrb[48].mxu1 %v20281_v13 }
 0xa86   :  { %15882 = vmatprep.mubr.bf16.mxu1 %v20286_v32 }
 0xa8d   :  { %15883 = vmatmul.mubr.bf16.gmra.mrb[52].mxu1 %v20291_v51 }
 0xa8e   :  { %15886 = vmatprep.mubr.bf16.mxu1 %v20296_v14 }
 0xa95   :  { %15887 = vmatmul.mubr.bf16.gmra.mrb[56].mxu1 %v20301_v35 }
 0xa96   :  { %15890 = vmatprep.mubr.bf16.mxu1 %v20306_v57 }
 0xa9d   :  { %15891 = vmatmul.mubr.bf16.gmra.mrb[60].mxu1 %v20311_v22 }
 0xa9e   :  { %15894 = vmatprep.mubr.bf16.mxu1 %v20316_v49 }
 0xaa5   :  { %15895 = vmatmul.mubr.bf16.gmra.mrb[64].mxu1 %v20321_v15 }
 0xaa6   :  { %15898 = vmatprep.mubr.bf16.mxu1 %v20326_v44 }
 0xaad   :  { %15899 = vmatmul.mubr.bf16.gmra.mrb[68].mxu1 %v20331_v11 }
 0xaae   :  { %15902 = vmatprep.mubr.bf16.mxu1 %v20336_v47 }
 0xab5   :  { %15903 = vmatmul.mubr.bf16.gmra.mrb[72].mxu1 %v21880_v7 }
 0xab6   :  { %15906 = vmatprep.mubr.bf16.mxu1 %v20346_v0  ;;  %v20601_v0 = vld [vmem:[%s21868_s4] ss:$0 sm:$0xff] }
 0xabd   :  { %15907 = vmatmul.mubr.bf16.gmra.mrb[76].mxu1 %v20351_v25 }
 0xabe   :  { %15910 = vmatprep.mubr.bf16.mxu1 %v20357_v5 }
 0xac5   :  { %15911 = vmatmul.mubr.bf16.gmra.mrb[80].mxu1 %v20370_v53 }
 0xac6   :  { %15914 = vmatprep.mubr.bf16.mxu1 %v20382_v29 }
 0xacd   :  { %15915 = vmatmul.mubr.bf16.gmra.mrb[84].mxu1 %v20394_v55 }
 0xace   :  { %15918 = vmatprep.mubr.bf16.mxu1 %v20400_v31 }
 0xad5   :  { %15919 = vmatmul.mubr.bf16.gmra.mrb[88].mxu1 %v20406_v4 }
 0xad6   :  { %15922 = vmatprep.mubr.bf16.mxu1 %v20415_v17 }
 0xadd   :  { %15923 = vmatmul.mubr.bf16.gmra.mrb[92].mxu1 %v20421_v45 }
 0xaf8   :  { %v15832_v23 = vpop.f32.mrb[0].mxu1 }
 0xaf9   :  { %v8341_v42 = vadd.f32 %v15832_v23, %v20601_v0  ;;  %v7853_v58 = vpop.f32.mrb[1].mxu1 }
 0xafa   :  { %v8339_v12 = vadd.f32 %v20601_v0, %v7853_v58  ;;  %v15833_v30 = vpop.f32.mrb[2].mxu1 }
 0xafb   :  { %v8342_v48 = vadd.f32 %v15833_v30, %v20601_v0  ;;  %v7856_v2 = vpop.f32.mrb[3].mxu1  ;;  %v8437_v40 = vmax.f32 %v8341_v42, 0.0 }
 0xafc   :  { %v8340_v21 = vadd.f32 %v20601_v0, %v7856_v2  ;;  %v8435_v18 = vmax.f32 %v8339_v12, 0.0 }
 0xafd   :  { %v8438_v61 = vmax.f32 %v8342_v48, 0.0 }
 0xafe   :  { %v8436_v37 = vmax.f32 %v8340_v21, 0.0 }
 0xaff   :  { %v8532_v60 = vpack.c.bf16 %v8438_v61, %v8437_v40  ;;  %v20664_v61 = vld [vmem:[%s21867_s5 + $0x40] sm:$0xff]  }
 0xb00   :  { %v8531_v19 = vpack.c.bf16 %v8436_v37, %v8435_v18  ;;  %v15836_v43 = vpop.f32.mrb[4].mxu1 }
 0xb01   :  { %8581 = vst.msk [vmem:[#allocation3 + $0x8] sm:$0xff] %vm8579_vm0, %v8532_v60  ;;  %v8345_v1 = vadd.f32 %v15836_v43, %v20601_v0  ;;  %v7869_v26 = vpop.f32.mrb[5].mxu1 }
 0xb02   :  { %8580 = vst.msk [vmem:[#allocation3] sm:$0xff] %vm8579_vm0, %v8531_v19  ;;  %v8343_v46 = vadd.f32 %v20601_v0, %v7869_v26  ;;  %v15837_v62 = vpop.f32.mrb[6].mxu1 }
 0xb03   :  { %v8346_v28 = vadd.f32 %v15837_v62, %v20601_v0  ;;  %v7872_v34 = vpop.f32.mrb[7].mxu1  ;;  %v8441_v13 = vmax.f32 %v8345_v1, 0.0 }
 0xb04   :  { %v8344_v52 = vadd.f32 %v20601_v0, %v7872_v34  ;;  %v8439_v51 = vmax.f32 %v8343_v46, 0.0 }
 0xb05   :  { %v8442_v32 = vmax.f32 %v8346_v28, 0.0 }
 0xb06   :  { %v8440_v14 = vmax.f32 %v8344_v52, 0.0 }
 0xb07   :  { %v8534_v35 = vpack.c.bf16 %v8442_v32, %v8441_v13 }
 0xb08   :  { %v8533_v57 = vpack.c.bf16 %v8440_v14, %v8439_v51  ;;  %v15840_v22 = vpop.f32.mrb[8].mxu1  ;;  %v20613_v49 = vld [vmem:[#allocation3 + $0x8] sm:$0xff] }
 0xb09   :  { %8583 = vst.msk [vmem:[#allocation3 + $0x18] sm:$0xff] %vm8579_vm0, %v8534_v35  ;;  %v8349_v15 = vadd.f32 %v15840_v22, %v20601_v0  ;;  %v7885_v44 = vpop.f32.mrb[9].mxu1  ;;  %15934 = vmatprep.mubr.msk.bf16.mxu1 %vm8579_vm0, %v20613_v49 }
 0xb0a   :  { %8582 = vst.msk [vmem:[#allocation3 + $0x10] sm:$0xff] %vm8579_vm0, %v8533_v57  ;;  %v8347_v11 = vadd.f32 %v20601_v0, %v7885_v44  ;;  %v15841_v47 = vpop.f32.mrb[10].mxu1 }
 0xb0b   :  { %v8350_v25 = vadd.f32 %v15841_v47, %v20601_v0  ;;  %v7888_v5 = vpop.f32.mrb[11].mxu1  ;;  %v8445_v29 = vmax.f32 %v8349_v15, 0.0 }
 0xb0c   :  { %v8348_v53 = vadd.f32 %v20601_v0, %v7888_v5  ;;  %v8443_v31 = vmax.f32 %v8347_v11, 0.0 }
 0xb0d   :  { %v8446_v55 = vmax.f32 %v8350_v25, 0.0 }
 0xb0e   :  { %v8444_v4 = vmax.f32 %v8348_v53, 0.0 }
 0xb0f   :  { %v8536_v17 = vpack.c.bf16 %v8446_v55, %v8445_v29 }
 0xb10   :  { %v8535_v10 = vpack.c.bf16 %v8444_v4, %v8443_v31  ;;  %v15844_v36 = vpop.f32.mrb[12].mxu1  ;;  %v20634_v3 = vld [vmem:[#allocation3 + $0x18] sm:$0xff] }
 0xb11   :  { %8585 = vst.msk [vmem:[#allocation3 + $0x28] sm:$0xff] %vm8579_vm0, %v8536_v17  ;;  %v8353_v54 = vadd.f32 %v15844_v36, %v20601_v0  ;;  %v7901_v6 = vpop.f32.mrb[13].mxu1  ;;  %v20628_v45 = vld [vmem:[#allocation3 + $0x10] sm:$0xff] }
 0xb12   :  { %8584 = vst.msk [vmem:[#allocation3 + $0x20] sm:$0xff] %vm8579_vm0, %v8535_v10  ;;  %v8351_v63 = vadd.f32 %v20601_v0, %v7901_v6  ;;  %v15845_v7 = vpop.f32.mrb[14].mxu1  ;;  %15935 = vmatmul.mubr.msk.bf16.vlgmr.msra.gmra.mrb[96].mxu1 %vm8579_vm0, %v20628_v45 }
 0xb13   :  { %v8354_v59 = vadd.f32 %v15845_v7, %v20601_v0  ;;  %v7904_v24 = vpop.f32.mrb[15].mxu1  ;;  %15938 = vmatprep.mubr.msk.bf16.mxu1 %vm8579_vm0, %v20634_v3  ;;  %15999 = vmatpush3.bf16.msra.mxu1 %v20578_v8  ;;  %v8449_v16 = vmax.f32 %v8353_v54, 0.0  ;;  %v18170_v8 = vld [vmem:[%s21867_s5 + $0x18] sm:$0xff]  }
 0xb14   :  { %v8352_v50 = vadd.f32 %v20601_v0, %v7904_v24  ;;  %16000 = vmatprep.subr.bf16.mxu1 %v18168_v38  ;;  %v8447_v41 = vmax.f32 %v8351_v63, 0.0 }
 0xb15   :  { %v8450_v27 = vmax.f32 %v8354_v59, 0.0 }
 0xb16   :  { %v8448_v33 = vmax.f32 %v8352_v50, 0.0 }
 0xb17   :  { %v8538_v20 = vpack.c.bf16 %v8450_v27, %v8449_v16  ;;  %16001 = vmatpush3.bf16.msra.mxu1 %v18168_v38 }
 0xb18   :  { %v8537_v39 = vpack.c.bf16 %v8448_v33, %v8447_v41  ;;  %v15848_v56 = vpop.f32.mrb[16].mxu1  ;;  %16002 = vmatprep.subr.bf16.mxu1 %v18169_v9  ;;  %v20655_v48 = vld [vmem:[#allocation3 + $0x28] sm:$0xff] }
 0xb19   :  { %8587 = vst.msk [vmem:[#allocation3 + $0x38] sm:$0xff] %vm8579_vm0, %v8538_v20  ;;  %v8357_v23 = vadd.f32 %v15848_v56, %v20601_v0  ;;  %v7917_v42 = vpop.f32.mrb[17].mxu1  ;;  %v20649_v58 = vld [vmem:[#allocation3 + $0x20] sm:$0xff] }
 0xb1a   :  { %8586 = vst.msk [vmem:[#allocation3 + $0x30] sm:$0xff] %vm8579_vm0, %v8537_v39  ;;  %v8355_v12 = vadd.f32 %v20601_v0, %v7917_v42  ;;  %v15849_v30 = vpop.f32.mrb[18].mxu1  ;;  %15939 = vmatmul.mubr.msk.bf16.gmra.mrb[100].mxu1 %vm8579_vm0, %v20649_v58 }
 0xb1b   :  { %v8358_v2 = vadd.f32 %v15849_v30, %v20601_v0  ;;  %v7920_v21 = vpop.f32.mrb[19].mxu1  ;;  %15942 = vmatprep.mubr.msk.bf16.mxu1 %vm8579_vm0, %v20655_v48  ;;  %16003 = vmatpush3.bf16.msra.mxu1 %v18169_v9  ;;  %v8453_v18 = vmax.f32 %v8357_v23, 0.0 }
 0xb1c   :  { %v8356_v40 = vadd.f32 %v20601_v0, %v7920_v21  ;;  %16004 = vmatprep.subr.bf16.mxu1 %v18170_v8  ;;  %v8451_v60 = vmax.f32 %v8355_v12, 0.0 }
 0xb1d   :  { %v8454_v37 = vmax.f32 %v8358_v2, 0.0 }
 0xb1e   :  { %v8452_v19 = vmax.f32 %v8356_v40, 0.0 }
 0xb1f   :  { %v8540_v43 = vpack.c.bf16 %v8454_v37, %v8453_v18  ;;  %16005 = vmatpush3.bf16.msra.mxu1 %v18170_v8 }
 0xb20   :  { %v8539_v1 = vpack.c.bf16 %v8452_v19, %v8451_v60  ;;  %v15852_v26 = vpop.f32.mrb[20].mxu1  ;;  %16070 = vmatprep.subr.bf16.mxu1 %v20664_v61  ;;  %v20675_v13 = vld [vmem:[#allocation3 + $0x38] sm:$0xff] }
 0xb21   :  { %8589 = vst.msk [vmem:[#allocation3 + $0x48] sm:$0xff] %vm8579_vm0, %v8540_v43  ;;  %v8361_v46 = vadd.f32 %v15852_v26, %v20601_v0  ;;  %v7933_v62 = vpop.f32.mrb[21].mxu1  ;;  %v20669_v28 = vld [vmem:[#allocation3 + $0x30] sm:$0xff] }
 0xb22   :  { %8588 = vst.msk [vmem:[#allocation3 + $0x40] sm:$0xff] %vm8579_vm0, %v8539_v1  ;;  %v8359_v34 = vadd.f32 %v20601_v0, %v7933_v62  ;;  %v15853_v52 = vpop.f32.mrb[22].mxu1  ;;  %15943 = vmatmul.mubr.msk.bf16.gmra.mrb[104].mxu1 %vm8579_vm0, %v20669_v28 }
 0xb23   :  { %v8362_v32 = vadd.f32 %v15853_v52, %v20601_v0  ;;  %v7936_v51 = vpop.f32.mrb[23].mxu1  ;;  %15946 = vmatprep.mubr.msk.bf16.mxu1 %vm8579_vm0, %v20675_v13  ;;  %v8457_v35 = vmax.f32 %v8361_v46, 0.0 }
 0xb24   :  { %v8360_v14 = vadd.f32 %v20601_v0, %v7936_v51  ;;  %v8455_v22 = vmax.f32 %v8359_v34, 0.0 }
 0xb25   :  { %v8458_v57 = vmax.f32 %v8362_v32, 0.0 }
 0xb26   :  { %v8456_v15 = vmax.f32 %v8360_v14, 0.0 }
 0xb27   :  { %v8542_v44 = vpack.c.bf16 %v8458_v57, %v8457_v35 }
 0xb28   :  { %v8541_v11 = vpack.c.bf16 %v8456_v15, %v8455_v22  ;;  %v15856_v47 = vpop.f32.mrb[24].mxu1  ;;  %v20689_v31 = vld [vmem:[#allocation3 + $0x48] sm:$0xff] }
 0xb29   :  { %8591 = vst.msk [vmem:[#allocation3 + $0x58] sm:$0xff] %vm8579_vm0, %v8542_v44  ;;  %v8365_v25 = vadd.f32 %v15856_v47, %v20601_v0  ;;  %v7949_v5 = vpop.f32.mrb[25].mxu1  ;;  %v20683_v53 = vld [vmem:[#allocation3 + $0x40] sm:$0xff] }
 0xb2a   :  { %8590 = vst.msk [vmem:[#allocation3 + $0x50] sm:$0xff] %vm8579_vm0, %v8541_v11  ;;  %v8363_v29 = vadd.f32 %v20601_v0, %v7949_v5  ;;  %v15857_v55 = vpop.f32.mrb[26].mxu1  ;;  %15947 = vmatmul.mubr.msk.bf16.gmra.mrb[108].mxu1 %vm8579_vm0, %v20683_v53 }
 0xb2b   :  { %v8366_v4 = vadd.f32 %v15857_v55, %v20601_v0  ;;  %v7952_v17 = vpop.f32.mrb[27].mxu1  ;;  %15950 = vmatprep.mubr.msk.bf16.mxu1 %vm8579_vm0, %v20689_v31  ;;  %v8461_v36 = vmax.f32 %v8365_v25, 0.0 }
 0xb2c   :  { %v8364_v10 = vadd.f32 %v20601_v0, %v7952_v17  ;;  %v8459_v54 = vmax.f32 %v8363_v29, 0.0 }
 0xb2d   :  { %v8462_v38 = vmax.f32 %v8366_v4, 0.0 }
 0xb2e   :  { %v8460_v6 = vmax.f32 %v8364_v10, 0.0 }
 0xb2f   :  { %v8544_v63 = vpack.c.bf16 %v8462_v38, %v8461_v36 }
 0xb30   :  { %v8543_v7 = vpack.c.bf16 %v8460_v6, %v8459_v54  ;;  %v15860_v59 = vpop.f32.mrb[28].mxu1  ;;  %v20703_v41 = vld [vmem:[#allocation3 + $0x58] sm:$0xff] }
 0xb31   :  { %8593 = vst.msk [vmem:[#allocation3 + $0x68] sm:$0xff] %vm8579_vm0, %v8544_v63  ;;  %v8369_v24 = vadd.f32 %v15860_v59, %v20601_v0  ;;  %v7965_v50 = vpop.f32.mrb[29].mxu1  ;;  %v20697_v9 = vld [vmem:[#allocation3 + $0x50] sm:$0xff] }
 0xb32   :  { %8592 = vst.msk [vmem:[#allocation3 + $0x60] sm:$0xff] %vm8579_vm0, %v8543_v7  ;;  %v8367_v16 = vadd.f32 %v20601_v0, %v7965_v50  ;;  %v15861_v27 = vpop.f32.mrb[30].mxu1  ;;  %15951 = vmatmul.mubr.msk.bf16.gmra.mrb[112].mxu1 %vm8579_vm0, %v20697_v9 }
 0xb33   :  { %v8370_v33 = vadd.f32 %v15861_v27, %v20601_v0  ;;  %v7968_v20 = vpop.f32.mrb[31].mxu1  ;;  %15954 = vmatprep.mubr.msk.bf16.mxu1 %vm8579_vm0, %v20703_v41  ;;  %v8465_v56 = vmax.f32 %v8369_v24, 0.0 }
 0xb34   :  { %v8368_v39 = vadd.f32 %v20601_v0, %v7968_v20  ;;  %v8463_v23 = vmax.f32 %v8367_v16, 0.0 }
 0xb35   :  { %v8466_v8 = vmax.f32 %v8370_v33, 0.0 }
 0xb36   :  { %v8464_v42 = vmax.f32 %v8368_v39, 0.0 }
 0xb37   :  { %v8546_v12 = vpack.c.bf16 %v8466_v8, %v8465_v56 }
 0xb38   :  { %v8545_v30 = vpack.c.bf16 %v8464_v42, %v8463_v23  ;;  %v15864_v2 = vpop.f32.mrb[32].mxu1  ;;  %v20717_v19 = vld [vmem:[#allocation3 + $0x68] sm:$0xff] }
 0xb39   :  { %8595 = vst.msk [vmem:[#allocation3 + $0x78] sm:$0xff] %vm8579_vm0, %v8546_v12  ;;  %v8373_v21 = vadd.f32 %v15864_v2, %v20601_v0  ;;  %v7981_v40 = vpop.f32.mrb[33].mxu1  ;;  %v20711_v18 = vld [vmem:[#allocation3 + $0x60] sm:$0xff] }
 0xb3a   :  { %8594 = vst.msk [vmem:[#allocation3 + $0x70] sm:$0xff] %vm8579_vm0, %v8545_v30  ;;  %v8371_v37 = vadd.f32 %v20601_v0, %v7981_v40  ;;  %v15865_v60 = vpop.f32.mrb[34].mxu1  ;;  %15955 = vmatmul.mubr.msk.bf16.gmra.mrb[116].mxu1 %vm8579_vm0, %v20711_v18 }
 0xb3b   :  { %v8374_v43 = vadd.f32 %v15865_v60, %v20601_v0  ;;  %v7984_v1 = vpop.f32.mrb[35].mxu1  ;;  %15958 = vmatprep.mubr.msk.bf16.mxu1 %vm8579_vm0, %v20717_v19  ;;  %v8469_v46 = vmax.f32 %v8373_v21, 0.0 }
 0xb3c   :  { %v8372_v26 = vadd.f32 %v20601_v0, %v7984_v1  ;;  %v8467_v34 = vmax.f32 %v8371_v37, 0.0 }
 0xb3d   :  { %v8470_v62 = vmax.f32 %v8374_v43, 0.0 }
 0xb3e   :  { %v8468_v52 = vmax.f32 %v8372_v26, 0.0 }
 0xb3f   :  { %v8548_v32 = vpack.c.bf16 %v8470_v62, %v8469_v46 }
 0xb40   :  { %v8547_v51 = vpack.c.bf16 %v8468_v52, %v8467_v34  ;;  %v15868_v14 = vpop.f32.mrb[36].mxu1  ;;  %v20731_v11 = vld [vmem:[#allocation3 + $0x78] sm:$0xff] }
 0xb41   :  { %8597 = vst.msk [vmem:[#allocation3 + $0x88] sm:$0xff] %vm8579_vm0, %v8548_v32  ;;  %v8377_v35 = vadd.f32 %v15868_v14, %v20601_v0  ;;  %v7997_v57 = vpop.f32.mrb[37].mxu1  ;;  %v20725_v22 = vld [vmem:[#allocation3 + $0x70] sm:$0xff] }
 0xb42   :  { %8596 = vst.msk [vmem:[#allocation3 + $0x80] sm:$0xff] %vm8579_vm0, %v8547_v51  ;;  %v8375_v15 = vadd.f32 %v20601_v0, %v7997_v57  ;;  %v15869_v44 = vpop.f32.mrb[38].mxu1  ;;  %15959 = vmatmul.mubr.msk.bf16.gmra.mrb[120].mxu1 %vm8579_vm0, %v20725_v22 }
 0xb43   :  { %v8378_v47 = vadd.f32 %v15869_v44, %v20601_v0  ;;  %v8000_v25 = vpop.f32.mrb[39].mxu1  ;;  %15962 = vmatprep.mubr.msk.bf16.mxu1 %vm8579_vm0, %v20731_v11  ;;  %v8473_v29 = vmax.f32 %v8377_v35, 0.0 }
 0xb44   :  { %v8376_v5 = vadd.f32 %v20601_v0, %v8000_v25  ;;  %v8471_v4 = vmax.f32 %v8375_v15, 0.0 }
 0xb45   :  { %v8474_v55 = vmax.f32 %v8378_v47, 0.0 }
 0xb46   :  { %v8472_v17 = vmax.f32 %v8376_v5, 0.0 }
 0xb47   :  { %v8550_v10 = vpack.c.bf16 %v8474_v55, %v8473_v29 }
 0xb48   :  { %v8549_v36 = vpack.c.bf16 %v8472_v17, %v8471_v4  ;;  %v15872_v38 = vpop.f32.mrb[40].mxu1  ;;  %v20745_v24 = vld [vmem:[#allocation3 + $0x88] sm:$0xff] }
 0xb49   :  { %8599 = vst.msk [vmem:[#allocation3 + $0x98] sm:$0xff] %vm8579_vm0, %v8550_v10  ;;  %v8381_v54 = vadd.f32 %v15872_v38, %v20601_v0  ;;  %v8013_v6 = vpop.f32.mrb[41].mxu1  ;;  %v20739_v63 = vld [vmem:[#allocation3 + $0x80] sm:$0xff] }
 0xb4a   :  { %8598 = vst.msk [vmem:[#allocation3 + $0x90] sm:$0xff] %vm8579_vm0, %v8549_v36  ;;  %v8379_v7 = vadd.f32 %v20601_v0, %v8013_v6  ;;  %v15873_v59 = vpop.f32.mrb[42].mxu1  ;;  %15963 = vmatmul.mubr.msk.bf16.gmra.mrb[124].mxu1 %vm8579_vm0, %v20739_v63 }
 0xb4b   :  { %v8382_v50 = vadd.f32 %v15873_v59, %v20601_v0  ;;  %v8016_v16 = vpop.f32.mrb[43].mxu1  ;;  %15966 = vmatprep.mubr.msk.bf16.mxu1 %vm8579_vm0, %v20745_v24  ;;  %v8477_v33 = vmax.f32 %v8381_v54, 0.0 }
 0xb4c   :  { %v8380_v27 = vadd.f32 %v20601_v0, %v8016_v16  ;;  %v8475_v39 = vmax.f32 %v8379_v7, 0.0 }
 0xb4d   :  { %v8478_v20 = vmax.f32 %v8382_v50, 0.0 }
 0xb4e   :  { %v8476_v56 = vmax.f32 %v8380_v27, 0.0 }
 0xb4f   :  { %v8552_v8 = vpack.c.bf16 %v8478_v20, %v8477_v33 }
 0xb50   :  { %v8551_v23 = vpack.c.bf16 %v8476_v56, %v8475_v39  ;;  %v15876_v42 = vpop.f32.mrb[44].mxu1  ;;  %v20759_v37 = vld [vmem:[#allocation3 + $0x98] sm:$0xff] }
 0xb51   :  { %8601 = vst.msk [vmem:[#allocation3 + $0xa8] sm:$0xff] %vm8579_vm0, %v8552_v8  ;;  %v8385_v12 = vadd.f32 %v15876_v42, %v20601_v0  ;;  %v8029_v30 = vpop.f32.mrb[45].mxu1  ;;  %v20753_v2 = vld [vmem:[#allocation3 + $0x90] sm:$0xff] }
 0xb52   :  { %8600 = vst.msk [vmem:[#allocation3 + $0xa0] sm:$0xff] %vm8579_vm0, %v8551_v23  ;;  %v8383_v21 = vadd.f32 %v20601_v0, %v8029_v30  ;;  %v15877_v40 = vpop.f32.mrb[46].mxu1  ;;  %15967 = vmatmul.mubr.msk.bf16.gmra.mrb[128].mxu1 %vm8579_vm0, %v20753_v2 }
 0xb53   :  { %v8386_v60 = vadd.f32 %v15877_v40, %v20601_v0  ;;  %v8032_v43 = vpop.f32.mrb[47].mxu1  ;;  %15970 = vmatprep.mubr.msk.bf16.mxu1 %vm8579_vm0, %v20759_v37  ;;  %v8481_v26 = vmax.f32 %v8385_v12, 0.0 }
 0xb54   :  { %v8384_v1 = vadd.f32 %v20601_v0, %v8032_v43  ;;  %v8479_v62 = vmax.f32 %v8383_v21, 0.0 }
 0xb55   :  { %v8482_v46 = vmax.f32 %v8386_v60, 0.0 }
 0xb56   :  { %v8480_v34 = vmax.f32 %v8384_v1, 0.0 }
 0xb57   :  { %v8554_v52 = vpack.c.bf16 %v8482_v46, %v8481_v26 }
 0xb58   :  { %v8553_v32 = vpack.c.bf16 %v8480_v34, %v8479_v62  ;;  %v15880_v51 = vpop.f32.mrb[48].mxu1  ;;  %v20773_v47 = vld [vmem:[#allocation3 + $0xa8] sm:$0xff] }
 0xb59   :  { %8603 = vst.msk [vmem:[#allocation3 + $0xb8] sm:$0xff] %vm8579_vm0, %v8554_v52  ;;  %v8389_v14 = vadd.f32 %v15880_v51, %v20601_v0  ;;  %v8045_v35 = vpop.f32.mrb[49].mxu1  ;;  %v20767_v57 = vld [vmem:[#allocation3 + $0xa0] sm:$0xff] }
 0xb5a   :  { %8602 = vst.msk [vmem:[#allocation3 + $0xb0] sm:$0xff] %vm8579_vm0, %v8553_v32  ;;  %v8387_v15 = vadd.f32 %v20601_v0, %v8045_v35  ;;  %v15881_v44 = vpop.f32.mrb[50].mxu1  ;;  %15971 = vmatmul.mubr.msk.bf16.gmra.mrb[132].mxu1 %vm8579_vm0, %v20767_v57 }
 0xb5b   :  { %v8390_v25 = vadd.f32 %v15881_v44, %v20601_v0  ;;  %v8048_v5 = vpop.f32.mrb[51].mxu1  ;;  %15974 = vmatprep.mubr.msk.bf16.mxu1 %vm8579_vm0, %v20773_v47  ;;  %v8485_v55 = vmax.f32 %v8389_v14, 0.0 }
 0xb5c   :  { %v8388_v29 = vadd.f32 %v20601_v0, %v8048_v5  ;;  %v8483_v17 = vmax.f32 %v8387_v15, 0.0 }
 0xb5d   :  { %v8486_v4 = vmax.f32 %v8390_v25, 0.0 }
 0xb5e   :  { %v8484_v10 = vmax.f32 %v8388_v29, 0.0 }
 0xb5f   :  { %v8556_v36 = vpack.c.bf16 %v8486_v4, %v8485_v55 }
 0xb60   :  { %v8555_v38 = vpack.c.bf16 %v8484_v10, %v8483_v17  ;;  %v15884_v54 = vpop.f32.mrb[52].mxu1  ;;  %v20787_v27 = vld [vmem:[#allocation3 + $0xb8] sm:$0xff] }
 0xb61   :  { %8605 = vst.msk [vmem:[#allocation3 + $0xc8] sm:$0xff] %vm8579_vm0, %v8556_v36  ;;  %v8393_v6 = vadd.f32 %v15884_v54, %v20601_v0  ;;  %v8061_v7 = vpop.f32.mrb[53].mxu1  ;;  %v20781_v59 = vld [vmem:[#allocation3 + $0xb0] sm:$0xff] }
 0xb62   :  { %8604 = vst.msk [vmem:[#allocation3 + $0xc0] sm:$0xff] %vm8579_vm0, %v8555_v38  ;;  %v8391_v50 = vadd.f32 %v20601_v0, %v8061_v7  ;;  %v15885_v16 = vpop.f32.mrb[54].mxu1  ;;  %15975 = vmatmul.mubr.msk.bf16.gmra.mrb[136].mxu1 %vm8579_vm0, %v20781_v59 }
 0xb63   :  { %v8394_v33 = vadd.f32 %v15885_v16, %v20601_v0  ;;  %v8064_v20 = vpop.f32.mrb[55].mxu1  ;;  %15978 = vmatprep.mubr.msk.bf16.mxu1 %vm8579_vm0, %v20787_v27  ;;  %v8489_v56 = vmax.f32 %v8393_v6, 0.0 }
 0xb64   :  { %v8392_v39 = vadd.f32 %v20601_v0, %v8064_v20  ;;  %v8487_v23 = vmax.f32 %v8391_v50, 0.0 }
 0xb65   :  { %v8490_v8 = vmax.f32 %v8394_v33, 0.0 }
 0xb66   :  { %v8488_v42 = vmax.f32 %v8392_v39, 0.0 }
 0xb67   :  { %v8558_v12 = vpack.c.bf16 %v8490_v8, %v8489_v56 }
 0xb68   :  { %v8557_v30 = vpack.c.bf16 %v8488_v42, %v8487_v23  ;;  %v15888_v21 = vpop.f32.mrb[56].mxu1  ;;  %v20801_v46 = vld [vmem:[#allocation3 + $0xc8] sm:$0xff] }
 0xb69   :  { %8607 = vst.msk [vmem:[#allocation3 + $0xd8] sm:$0xff] %vm8579_vm0, %v8558_v12  ;;  %v8397_v40 = vadd.f32 %v15888_v21, %v20601_v0  ;;  %v8077_v60 = vpop.f32.mrb[57].mxu1  ;;  %v20795_v43 = vld [vmem:[#allocation3 + $0xc0] sm:$0xff] }
 0xb6a   :  { %8606 = vst.msk [vmem:[#allocation3 + $0xd0] sm:$0xff] %vm8579_vm0, %v8557_v30  ;;  %v8395_v1 = vadd.f32 %v20601_v0, %v8077_v60  ;;  %v15889_v26 = vpop.f32.mrb[58].mxu1  ;;  %15979 = vmatmul.mubr.msk.bf16.gmra.mrb[140].mxu1 %vm8579_vm0, %v20795_v43 }
 0xb6b   :  { %v8398_v62 = vadd.f32 %v15889_v26, %v20601_v0  ;;  %v8080_v34 = vpop.f32.mrb[59].mxu1  ;;  %15982 = vmatprep.mubr.msk.bf16.mxu1 %vm8579_vm0, %v20801_v46  ;;  %v8493_v32 = vmax.f32 %v8397_v40, 0.0 }
 0xb6c   :  { %v8396_v52 = vadd.f32 %v20601_v0, %v8080_v34  ;;  %v8491_v14 = vmax.f32 %v8395_v1, 0.0 }
 0xb6d   :  { %v8494_v51 = vmax.f32 %v8398_v62, 0.0 }
 0xb6e   :  { %v8492_v35 = vmax.f32 %v8396_v52, 0.0 }
 0xb6f   :  { %v8560_v15 = vpack.c.bf16 %v8494_v51, %v8493_v32 }
 0xb70   :  { %v8559_v44 = vpack.c.bf16 %v8492_v35, %v8491_v14  ;;  %v15892_v25 = vpop.f32.mrb[60].mxu1  ;;  %v20815_v10 = vld [vmem:[#allocation3 + $0xd8] sm:$0xff] }
 0xb71   :  { %8609 = vst.msk [vmem:[#allocation3 + $0xe8] sm:$0xff] %vm8579_vm0, %v8560_v15  ;;  %v8401_v5 = vadd.f32 %v15892_v25, %v20601_v0  ;;  %v8093_v29 = vpop.f32.mrb[61].mxu1  ;;  %v20809_v55 = vld [vmem:[#allocation3 + $0xd0] sm:$0xff] }
 0xb72   :  { %8608 = vst.msk [vmem:[#allocation3 + $0xe0] sm:$0xff] %vm8579_vm0, %v8559_v44  ;;  %v8399_v4 = vadd.f32 %v20601_v0, %v8093_v29  ;;  %v15893_v17 = vpop.f32.mrb[62].mxu1  ;;  %15983 = vmatmul.mubr.msk.bf16.gmra.mrb[144].mxu1 %vm8579_vm0, %v20809_v55 }
 0xb73   :  { %v8402_v36 = vadd.f32 %v15893_v17, %v20601_v0  ;;  %v8096_v38 = vpop.f32.mrb[63].mxu1  ;;  %15986 = vmatprep.mubr.msk.bf16.mxu1 %vm8579_vm0, %v20815_v10  ;;  %v8497_v6 = vmax.f32 %v8401_v5, 0.0 }
 0xb74   :  { %v8400_v54 = vadd.f32 %v20601_v0, %v8096_v38  ;;  %v8495_v50 = vmax.f32 %v8399_v4, 0.0 }
 0xb75   :  { %v8498_v7 = vmax.f32 %v8402_v36, 0.0 }
 0xb76   :  { %v8496_v16 = vmax.f32 %v8400_v54, 0.0 }
 0xb77   :  { %v8562_v33 = vpack.c.bf16 %v8498_v7, %v8497_v6 }
 0xb78   :  { %v8561_v20 = vpack.c.bf16 %v8496_v16, %v8495_v50  ;;  %v15896_v39 = vpop.f32.mrb[64].mxu1  ;;  %v20829_v30 = vld [vmem:[#allocation3 + $0xe8] sm:$0xff] }
 0xb79   :  { %8611 = vst.msk [vmem:[#allocation3 + $0xf8] sm:$0xff] %vm8579_vm0, %v8562_v33  ;;  %v8405_v56 = vadd.f32 %v15896_v39, %v20601_v0  ;;  %v8109_v8 = vpop.f32.mrb[65].mxu1  ;;  %v20823_v23 = vld [vmem:[#allocation3 + $0xe0] sm:$0xff] }
 0xb7a   :  { %8610 = vst.msk [vmem:[#allocation3 + $0xf0] sm:$0xff] %vm8579_vm0, %v8561_v20  ;;  %v8403_v42 = vadd.f32 %v20601_v0, %v8109_v8  ;;  %v15897_v12 = vpop.f32.mrb[66].mxu1  ;;  %15987 = vmatmul.mubr.msk.bf16.gmra.mrb[148].mxu1 %vm8579_vm0, %v20823_v23 }
 0xb7b   :  { %v8406_v21 = vadd.f32 %v15897_v12, %v20601_v0  ;;  %v8112_v40 = vpop.f32.mrb[67].mxu1  ;;  %15990 = vmatprep.mubr.msk.bf16.mxu1 %vm8579_vm0, %v20829_v30  ;;  %v8501_v1 = vmax.f32 %v8405_v56, 0.0 }
 0xb7c   :  { %v8404_v60 = vadd.f32 %v20601_v0, %v8112_v40  ;;  %v8499_v62 = vmax.f32 %v8403_v42, 0.0  ;;  %v8644_v42 = vld [vmem:[#allocation3] sm:$0xff] }
 0xb7d   :  { %v8502_v26 = vmax.f32 %v8406_v21, 0.0 }
 0xb7e   :  { %v8500_v34 = vmax.f32 %v8404_v60, 0.0 }
 0xb7f   :  { %v8564_v52 = vpack.c.bf16 %v8502_v26, %v8501_v1 }
 0xb80   :  { %v8563_v32 = vpack.c.bf16 %v8500_v34, %v8499_v62  ;;  %v15900_v51 = vpop.f32.mrb[68].mxu1  ;;  %v20843_v5 = vld [vmem:[#allocation3 + $0xf8] sm:$0xff] }
 0xb81   :  { %8613 = vst.msk [vmem:[#allocation3 + $0x108] sm:$0xff] %vm8579_vm0, %v8564_v52  ;;  %v8409_v14 = vadd.f32 %v15900_v51, %v20601_v0  ;;  %v8125_v35 = vpop.f32.mrb[69].mxu1  ;;  %v20837_v15 = vld [vmem:[#allocation3 + $0xf0] sm:$0xff]  ;;  %v18172_v51 = vld [vmem:[%s21867_s5 + $0x48] sm:$0xff]  }
 0xb82   :  { %8612 = vst.msk [vmem:[#allocation3 + $0x100] sm:$0xff] %vm8579_vm0, %v8563_v32  ;;  %v8407_v44 = vadd.f32 %v20601_v0, %v8125_v35  ;;  %v15901_v25 = vpop.f32.mrb[70].mxu1  ;;  %15991 = vmatmul.mubr.msk.bf16.gmra.mrb[152].mxu1 %vm8579_vm0, %v20837_v15 }
 0xb83   :  { %v8410_v29 = vadd.f32 %v15901_v25, %v20601_v0  ;;  %v8128_v4 = vpop.f32.mrb[71].mxu1  ;;  %15994 = vmatprep.mubr.msk.bf16.mxu1 %vm8579_vm0, %v20843_v5  ;;  %v8505_v36 = vmax.f32 %v8409_v14, 0.0 }
 0xb84   :  { %v8408_v17 = vadd.f32 %v20601_v0, %v8128_v4  ;;  %v8503_v54 = vmax.f32 %v8407_v44, 0.0 }
 0xb85   :  { %v8506_v38 = vmax.f32 %v8410_v29, 0.0 }
 0xb86   :  { %v8504_v6 = vmax.f32 %v8408_v17, 0.0 }
 0xb87   :  { %v8566_v7 = vpack.c.bf16 %v8506_v38, %v8505_v36  ;;  %v18173_v36 = vld [vmem:[%s21867_s5 + $0x50] sm:$0xff]  }
 0xb88   :  { %v8565_v50 = vpack.c.bf16 %v8504_v6, %v8503_v54  ;;  %v15904_v16 = vpop.f32.mrb[72].mxu1 }
 0xb89   :  { %8615 = vst.msk [vmem:[#allocation3 + $0x118] sm:$0xff] %vm8579_vm0, %v8566_v7  ;;  %v8413_v33 = vadd.f32 %v15904_v16, %v20601_v0  ;;  %v8141_v20 = vpop.f32.mrb[73].mxu1  ;;  %v20851_v39 = vld [vmem:[#allocation3 + $0x100] sm:$0xff] }
 0xb8a   :  { %8614 = vst.msk [vmem:[#allocation3 + $0x110] sm:$0xff] %vm8579_vm0, %v8565_v50  ;;  %v8411_v56 = vadd.f32 %v20601_v0, %v8141_v20  ;;  %v15905_v8 = vpop.f32.mrb[74].mxu1  ;;  %15995 = vmatmul.mubr.msk.bf16.gmra.mrb[156].mxu1 %vm8579_vm0, %v20851_v39 }
 0xb8b   :  { %v8414_v12 = vadd.f32 %v15905_v8, %v20601_v0  ;;  %v8144_v21 = vpop.f32.mrb[75].mxu1  ;;  %16006 = vmatprep.mubr.msk.bf16.mxu1 %vm8579_vm0, %v8644_v42  ;;  %v8509_v60 = vmax.f32 %v8413_v33, 0.0 }
 0xb8c   :  { %v8412_v40 = vadd.f32 %v20601_v0, %v8144_v21  ;;  %v8507_v26 = vmax.f32 %v8411_v56, 0.0 }
 0xb8d   :  { %v8510_v1 = vmax.f32 %v8414_v12, 0.0 }
 0xb8e   :  { %v8508_v62 = vmax.f32 %v8412_v40, 0.0  ;;  %v20893_v40 = vld [vmem:[%s21867_s5 + $0x60] sm:$0xff]  }
 0xb8f   :  { %v8568_v34 = vpack.c.bf16 %v8510_v1, %v8509_v60 }
 0xb90   :  { %v8567_v52 = vpack.c.bf16 %v8508_v62, %v8507_v26  ;;  %v15908_v32 = vpop.f32.mrb[76].mxu1 }
 0xb91   :  { %8617 = vst.msk [vmem:[#allocation3 + $0x128] sm:$0xff] %vm8579_vm0, %v8568_v34  ;;  %v8417_v14 = vadd.f32 %v15908_v32, %v20601_v0  ;;  %v8157_v35 = vpop.f32.mrb[77].mxu1 }
 0xb92   :  { %8616 = vst.msk [vmem:[#allocation3 + $0x120] sm:$0xff] %vm8579_vm0, %v8567_v52  ;;  %v8415_v44 = vadd.f32 %v20601_v0, %v8157_v35  ;;  %v15909_v25 = vpop.f32.mrb[78].mxu1  ;;  %16007 = vmatmul.mubr.msk.bf16.vlgmr.msra.gmra.mrb[96].mxu1 %vm8579_vm0, %v20613_v49 }
 0xb93   :  { %v8418_v29 = vadd.f32 %v15909_v25, %v20601_v0  ;;  %v8160_v4 = vpop.f32.mrb[79].mxu1  ;;  %16010 = vmatprep.mubr.msk.bf16.mxu1 %vm8579_vm0, %v20628_v45  ;;  %16071 = vmatpush3.bf16.msra.mxu1 %v20664_v61  ;;  %v8513_v38 = vmax.f32 %v8417_v14, 0.0  ;;  %v18174_v61 = vld [vmem:[%s21867_s5 + $0x58] sm:$0xff]  }
 0xb94   :  { %v8416_v17 = vadd.f32 %v20601_v0, %v8160_v4  ;;  %16072 = vmatprep.subr.bf16.mxu1 %v18172_v51  ;;  %v8511_v6 = vmax.f32 %v8415_v44, 0.0 }
 0xb95   :  { %v8514_v54 = vmax.f32 %v8418_v29, 0.0 }
 0xb96   :  { %v8512_v7 = vmax.f32 %v8416_v17, 0.0 }
 0xb97   :  { %v8570_v49 = vpack.c.bf16 %v8514_v54, %v8513_v38  ;;  %16073 = vmatpush3.bf16.msra.mxu1 %v18172_v51 }
 0xb98   :  { %v8569_v50 = vpack.c.bf16 %v8512_v7, %v8511_v6  ;;  %v15912_v16 = vpop.f32.mrb[80].mxu1  ;;  %16074 = vmatprep.subr.bf16.mxu1 %v18173_v36 }
 0xb99   :  { %8619 = vst.msk [vmem:[#allocation3 + $0x138] sm:$0xff] %vm8579_vm0, %v8570_v49  ;;  %v8421_v33 = vadd.f32 %v15912_v16, %v20601_v0  ;;  %v8173_v20 = vpop.f32.mrb[81].mxu1 }
 0xb9a   :  { %8618 = vst.msk [vmem:[#allocation3 + $0x130] sm:$0xff] %vm8579_vm0, %v8569_v50  ;;  %v8419_v56 = vadd.f32 %v20601_v0, %v8173_v20  ;;  %v15913_v8 = vpop.f32.mrb[82].mxu1  ;;  %16011 = vmatmul.mubr.msk.bf16.gmra.mrb[100].mxu1 %vm8579_vm0, %v20634_v3 }
 0xb9b   :  { %v8422_v42 = vadd.f32 %v15913_v8, %v20601_v0  ;;  %v8176_v12 = vpop.f32.mrb[83].mxu1  ;;  %16014 = vmatprep.mubr.msk.bf16.mxu1 %vm8579_vm0, %v20649_v58  ;;  %16075 = vmatpush3.bf16.msra.mxu1 %v18173_v36  ;;  %v8517_v60 = vmax.f32 %v8421_v33, 0.0 }
 0xb9c   :  { %v8420_v21 = vadd.f32 %v20601_v0, %v8176_v12  ;;  %16076 = vmatprep.subr.bf16.mxu1 %v18174_v61  ;;  %v8515_v26 = vmax.f32 %v8419_v56, 0.0 }
 0xb9d   :  { %v8518_v1 = vmax.f32 %v8422_v42, 0.0 }
 0xb9e   :  { %v8516_v62 = vmax.f32 %v8420_v21, 0.0 }
 0xb9f   :  { %v8572_v34 = vpack.c.bf16 %v8518_v1, %v8517_v60  ;;  %16077 = vmatpush3.bf16.msra.mxu1 %v18174_v61 }
 0xba0   :  { %v8571_v52 = vpack.c.bf16 %v8516_v62, %v8515_v26  ;;  %v15916_v32 = vpop.f32.mrb[84].mxu1  ;;  %16142 = vmatprep.subr.bf16.mxu1 %v20893_v40 }
 0xba1   :  { %8621 = vst.msk [vmem:[#allocation3 + $0x148] sm:$0xff] %vm8579_vm0, %v8572_v34  ;;  %v8425_v51 = vadd.f32 %v15916_v32, %v20601_v0  ;;  %v8189_v14 = vpop.f32.mrb[85].mxu1 }
 0xba2   :  { %8620 = vst.msk [vmem:[#allocation3 + $0x140] sm:$0xff] %vm8579_vm0, %v8571_v52  ;;  %v8423_v35 = vadd.f32 %v20601_v0, %v8189_v14  ;;  %v15917_v44 = vpop.f32.mrb[86].mxu1  ;;  %16015 = vmatmul.mubr.msk.bf16.gmra.mrb[160].mxu1 %vm8579_vm0, %v20655_v48 }
 0xba3   :  { %v8426_v25 = vadd.f32 %v15917_v44, %v20601_v0  ;;  %v8192_v29 = vpop.f32.mrb[87].mxu1  ;;  %16018 = vmatprep.mubr.msk.bf16.mxu1 %vm8579_vm0, %v20669_v28  ;;  %v8521_v17 = vmax.f32 %v8425_v51, 0.0 }
 0xba4   :  { %v8424_v4 = vadd.f32 %v20601_v0, %v8192_v29  ;;  %v8519_v38 = vmax.f32 %v8423_v35, 0.0 }
 0xba5   :  { %v8522_v36 = vmax.f32 %v8426_v25, 0.0 }
 0xba6   :  { %v8520_v54 = vmax.f32 %v8424_v4, 0.0 }
 0xba7   :  { %v8574_v6 = vpack.c.bf16 %v8522_v36, %v8521_v17 }
 0xba8   :  { %v8573_v7 = vpack.c.bf16 %v8520_v54, %v8519_v38  ;;  %v15920_v49 = vpop.f32.mrb[88].mxu1 }
 0xba9   :  { %8623 = vst.msk [vmem:[#allocation3 + $0x158] sm:$0xff] %vm8579_vm0, %v8574_v6  ;;  %v8429_v50 = vadd.f32 %v15920_v49, %v20601_v0  ;;  %v8205_v16 = vpop.f32.mrb[89].mxu1 }
 0xbaa   :  { %8622 = vst.msk [vmem:[#allocation3 + $0x150] sm:$0xff] %vm8579_vm0, %v8573_v7  ;;  %v8427_v61 = vadd.f32 %v20601_v0, %v8205_v16  ;;  %v15921_v33 = vpop.f32.mrb[90].mxu1  ;;  %16019 = vmatmul.mubr.msk.bf16.gmra.mrb[164].mxu1 %vm8579_vm0, %v20675_v13 }
 0xbab   :  { %v8430_v20 = vadd.f32 %v15921_v33, %v20601_v0  ;;  %v8208_v56 = vpop.f32.mrb[91].mxu1  ;;  %16022 = vmatprep.mubr.msk.bf16.mxu1 %vm8579_vm0, %v20683_v53  ;;  %v8525_v42 = vmax.f32 %v8429_v50, 0.0  ;;  %v18176_v33 = vld [vmem:[%s21867_s5 + $0x68] sm:$0xff]  }
 0xbac   :  { %v8428_v8 = vadd.f32 %v20601_v0, %v8208_v56  ;;  %v8523_v21 = vmax.f32 %v8427_v61, 0.0 }
 0xbad   :  { %v8526_v12 = vmax.f32 %v8430_v20, 0.0  ;;  %v18177_v20 = vld [vmem:[%s21867_s5 + $0x70] sm:$0xff]  }
 0xbae   :  { %v8524_v60 = vmax.f32 %v8428_v8, 0.0 }
 0xbaf   :  { %v8576_v1 = vpack.c.bf16 %v8526_v12, %v8525_v42 }
 0xbb0   :  { %v8575_v26 = vpack.c.bf16 %v8524_v60, %v8523_v21  ;;  %v15924_v62 = vpop.f32.mrb[92].mxu1 }
 0xbb1   :  { %8625 = vst.msk [vmem:[#allocation3 + $0x168] sm:$0xff] %vm8579_vm0, %v8576_v1  ;;  %v8433_v34 = vadd.f32 %v15924_v62, %v20601_v0  ;;  %v8221_v52 = vpop.f32.mrb[93].mxu1 }
 0xbb2   :  { %8624 = vst.msk [vmem:[#allocation3 + $0x160] sm:$0xff] %vm8579_vm0, %v8575_v26  ;;  %v8431_v32 = vadd.f32 %v20601_v0, %v8221_v52  ;;  %v15925_v51 = vpop.f32.mrb[94].mxu1  ;;  %16023 = vmatmul.mubr.msk.bf16.gmra.mrb[112].mxu1 %vm8579_vm0, %v20689_v31 }
 0xbb3   :  { %v8434_v14 = vadd.f32 %v15925_v51, %v20601_v0  ;;  %v8224_v35 = vpop.f32.mrb[95].mxu1  ;;  %16026 = vmatprep.mubr.msk.bf16.mxu1 %vm8579_vm0, %v20697_v9  ;;  %v8529_v25 = vmax.f32 %v8433_v34, 0.0 }
 0xbb4   :  { %v8432_v44 = vadd.f32 %v20601_v0, %v8224_v35  ;;  %v8527_v4 = vmax.f32 %v8431_v32, 0.0 }
 0xbb5   :  { %v8530_v29 = vmax.f32 %v8434_v14, 0.0 }
 0xbb6   :  { %v8528_v17 = vmax.f32 %v8432_v44, 0.0 }
 0xbb7   :  { %v8578_v36 = vpack.c.bf16 %v8530_v29, %v8529_v25 }
 0xbb8   :  { %v8577_v38 = vpack.c.bf16 %v8528_v17, %v8527_v4 }
 0xbb9   :  { %8627 = vst.msk [vmem:[#allocation3 + $0x178] sm:$0xff] %vm8579_vm0, %v8578_v36 }
 0xbba   :  { %8626 = vst.msk [vmem:[#allocation3 + $0x170] sm:$0xff] %vm8579_vm0, %v8577_v38  ;;  %16027 = vmatmul.mubr.msk.bf16.gmra.mrb[116].mxu1 %vm8579_vm0, %v20703_v41 }
 0xbbb   :  { %16030 = vmatprep.mubr.msk.bf16.mxu1 %vm8579_vm0, %v20711_v18 }
 0xbc2   :  { %16031 = vmatmul.mubr.msk.bf16.gmra.mrb[168].mxu1 %vm8579_vm0, %v20717_v19 }
 0xbc3   :  { %16034 = vmatprep.mubr.msk.bf16.mxu1 %vm8579_vm0, %v20725_v22 }
 0xbca   :  { %16035 = vmatmul.mubr.msk.bf16.gmra.mrb[172].mxu1 %vm8579_vm0, %v20731_v11 }
 0xbcb   :  { %16038 = vmatprep.mubr.msk.bf16.mxu1 %vm8579_vm0, %v20739_v63 }
 0xbd2   :  { %16039 = vmatmul.mubr.msk.bf16.gmra.mrb[128].mxu1 %vm8579_vm0, %v20745_v24 }
 0xbd3   :  { %16042 = vmatprep.mubr.msk.bf16.mxu1 %vm8579_vm0, %v20753_v2 }
 0xbda   :  { %16043 = vmatmul.mubr.msk.bf16.gmra.mrb[132].mxu1 %vm8579_vm0, %v20759_v37 }
 0xbdb   :  { %16046 = vmatprep.mubr.msk.bf16.mxu1 %vm8579_vm0, %v20767_v57 }
 0xbe2   :  { %16047 = vmatmul.mubr.msk.bf16.gmra.mrb[176].mxu1 %vm8579_vm0, %v20773_v47 }
 0xbe3   :  { %16050 = vmatprep.mubr.msk.bf16.mxu1 %vm8579_vm0, %v20781_v59 }
 0xbea   :  { %16051 = vmatmul.mubr.msk.bf16.gmra.mrb[180].mxu1 %vm8579_vm0, %v20787_v27 }
 0xbeb   :  { %16054 = vmatprep.mubr.msk.bf16.mxu1 %vm8579_vm0, %v20795_v43 }
 0xbf2   :  { %16055 = vmatmul.mubr.msk.bf16.gmra.mrb[144].mxu1 %vm8579_vm0, %v20801_v46 }
 0xbf3   :  { %16058 = vmatprep.mubr.msk.bf16.mxu1 %vm8579_vm0, %v20809_v55 }
 0xbf5   :  { %v15944_v0 = vpop.f32.mrb[104].mxu1 }
 0xbf6   :  { %v8880_v54 = vpop.f32.mrb[105].mxu1 }
 0xbf7   :  { %v15945_v6 = vpop.f32.mrb[106].mxu1 }
 0xbf8   :  { %v8882_v7 = vpop.f32.mrb[107].mxu1 }
 0xbf9   :  { %v21048_v7 = vld [vmem:[#allocation3 + $0x108] sm:$0xff] }
 0xbfa   :  { %16059 = vmatmul.mubr.msk.bf16.gmra.mrb[148].mxu1 %vm8579_vm0, %v20815_v10 }
 0xbfb   :  { %16062 = vmatprep.mubr.msk.bf16.mxu1 %vm8579_vm0, %v20823_v23 }
 0xbfd   :  { %v15948_v49 = vpop.f32.mrb[108].mxu1 }
 0xbfe   :  { %v8892_v50 = vpop.f32.mrb[109].mxu1  ;;  %v9805_v49 = vld [vmem:[#allocation3 + $0x40] sm:$0xff] }
 0xbff   :  { %v15949_v16 = vpop.f32.mrb[110].mxu1  ;;  %v18180_v50 = vld [vmem:[%s21867_s5 + $0x88] sm:$0xff]  }
 0xc00   :  { %v8894_v61 = vpop.f32.mrb[111].mxu1  ;;  %v21056_v16 = vld [vmem:[#allocation3 + $0x48] sm:$0xff] }
 0xc01   :  { %v18181_v61 = vld [vmem:[%s21867_s5 + $0x90] sm:$0xff]  }
 0xc02   :  { %16063 = vmatmul.mubr.msk.bf16.gmra.mrb[184].mxu1 %vm8579_vm0, %v20829_v30 }
 0xc03   :  { %16066 = vmatprep.mubr.msk.bf16.mxu1 %vm8579_vm0, %v20837_v15 }
 0xc0a   :  { %16067 = vmatmul.mubr.msk.bf16.gmra.mrb[188].mxu1 %vm8579_vm0, %v20843_v5 }
 0xc0b   :  { %16078 = vmatprep.mubr.msk.bf16.mxu1 %vm8579_vm0, %v20628_v45 }
 0xc12   :  { %16079 = vmatmul.mubr.msk.bf16.vlgmr.msra.gmra.mrb[96].mxu1 %vm8579_vm0, %v20634_v3  ;;  %v18178_v3 = vld [vmem:[%s21867_s5 + $0x78] sm:$0xff]  }
 0xc13   :  { %16082 = vmatprep.mubr.msk.bf16.mxu1 %vm8579_vm0, %v20649_v58  ;;  %16143 = vmatpush3.bf16.msra.mxu1 %v20893_v40  ;;  %v20993_v58 = vld [vmem:[%s21867_s5 + $0x80] sm:$0xff]  }
 0xc14   :  { %16144 = vmatprep.subr.bf16.mxu1 %v18176_v33 }
 0xc15   :  { %v15960_v56 = vpop.f32.mrb[120].mxu1 }
 0xc16   :  { %v8936_v8 = vpop.f32.mrb[121].mxu1 }
 0xc17   :  { %v15961_v45 = vpop.f32.mrb[122].mxu1  ;;  %16145 = vmatpush3.bf16.msra.mxu1 %v18176_v33 }
 0xc18   :  { %v8938_v42 = vpop.f32.mrb[123].mxu1  ;;  %16146 = vmatprep.subr.bf16.mxu1 %v18177_v20  ;;  %v18182_v45 = vld [vmem:[%s21867_s5 + $0x98] sm:$0xff]  }
 0xc1a   :  { %16083 = vmatmul.mubr.msk.bf16.gmra.mrb[100].mxu1 %vm8579_vm0, %v20655_v48 }
 0xc1b   :  { %16086 = vmatprep.mubr.msk.bf16.mxu1 %vm8579_vm0, %v20669_v28  ;;  %16147 = vmatpush3.bf16.msra.mxu1 %v18177_v20 }
 0xc1c   :  { %16148 = vmatprep.subr.bf16.mxu1 %v18178_v3 }
 0xc1d   :  { %v15964_v40 = vpop.f32.mrb[124].mxu1 }
 0xc1e   :  { %v8948_v12 = vpop.f32.mrb[125].mxu1 }
 0xc1f   :  { %v15965_v21 = vpop.f32.mrb[126].mxu1  ;;  %16149 = vmatpush3.bf16.msra.mxu1 %v18178_v3 }
 0xc20   :  { %v8950_v60 = vpop.f32.mrb[127].mxu1  ;;  %16214 = vmatprep.subr.bf16.mxu1 %v20993_v58 }
 0xc22   :  { %16087 = vmatmul.mubr.msk.bf16.gmra.mrb[192].mxu1 %vm8579_vm0, %v20675_v13 }
 0xc23   :  { %16090 = vmatprep.mubr.msk.bf16.mxu1 %vm8579_vm0, %v20683_v53 }
 0xc2a   :  { %16091 = vmatmul.mubr.msk.bf16.gmra.mrb[196].mxu1 %vm8579_vm0, %v20689_v31 }
 0xc2b   :  { %16094 = vmatprep.mubr.msk.bf16.mxu1 %vm8579_vm0, %v20697_v9 }
 0xc32   :  { %16095 = vmatmul.mubr.msk.bf16.gmra.mrb[112].mxu1 %vm8579_vm0, %v20703_v41 }
 0xc33   :  { %16098 = vmatprep.mubr.msk.bf16.mxu1 %vm8579_vm0, %v20711_v18 }
 0xc35   :  { %v15976_v48 = vpop.f32.mrb[136].mxu1 }
 0xc36   :  { %v8992_v28 = vpop.f32.mrb[137].mxu1 }
 0xc37   :  { %v15977_v1 = vpop.f32.mrb[138].mxu1 }
 0xc38   :  { %v8994_v26 = vpop.f32.mrb[139].mxu1 }
 0xc39   :  { %v21125_v26 = vld [vmem:[#allocation3 + $0x118] sm:$0xff] }
 0xc3a   :  { %16099 = vmatmul.mubr.msk.bf16.gmra.mrb[116].mxu1 %vm8579_vm0, %v20717_v19 }
 0xc3b   :  { %16102 = vmatprep.mubr.msk.bf16.mxu1 %vm8579_vm0, %v20725_v22 }
 0xc3d   :  { %v15980_v13 = vpop.f32.mrb[140].mxu1 }
 0xc3e   :  { %v9004_v53 = vpop.f32.mrb[141].mxu1  ;;  %v21129_v13 = vld [vmem:[#allocation3 + $0x120] sm:$0xff] }
 0xc3f   :  { %v15981_v31 = vpop.f32.mrb[142].mxu1 }
 0xc40   :  { %v9006_v62 = vpop.f32.mrb[143].mxu1 }
 0xc42   :  { %16103 = vmatmul.mubr.msk.bf16.gmra.mrb[200].mxu1 %vm8579_vm0, %v20731_v11 }
 0xc43   :  { %16106 = vmatprep.mubr.msk.bf16.mxu1 %vm8579_vm0, %v20739_v63 }
 0xc4a   :  { %16107 = vmatmul.mubr.msk.bf16.gmra.mrb[204].mxu1 %vm8579_vm0, %v20745_v24 }
 0xc4b   :  { %16110 = vmatprep.mubr.msk.bf16.mxu1 %vm8579_vm0, %v20753_v2 }
 0xc52   :  { %16111 = vmatmul.mubr.msk.bf16.gmra.mrb[128].mxu1 %vm8579_vm0, %v20759_v37 }
 0xc53   :  { %16114 = vmatprep.mubr.msk.bf16.mxu1 %vm8579_vm0, %v20767_v57 }
 0xc55   :  { %v15992_v34 = vpop.f32.mrb[152].mxu1 }
 0xc56   :  { %v9048_v52 = vpop.f32.mrb[153].mxu1 }
 0xc57   :  { %v15993_v32 = vpop.f32.mrb[154].mxu1  ;;  %v21133_v52 = vld [vmem:[#allocation3 + $0x128] sm:$0xff] }
 0xc58   :  { %v9050_v51 = vpop.f32.mrb[155].mxu1  ;;  %v21137_v32 = vld [vmem:[#allocation3 + $0x130] sm:$0xff] }
 0xc59   :  { %v21141_v51 = vld [vmem:[#allocation3 + $0x138] sm:$0xff] }
 0xc5a   :  { %16115 = vmatmul.mubr.msk.bf16.gmra.mrb[132].mxu1 %vm8579_vm0, %v20773_v47 }
 0xc5b   :  { %16118 = vmatprep.mubr.msk.bf16.mxu1 %vm8579_vm0, %v20781_v59 }
 0xc5d   :  { %v15996_v14 = vpop.f32.mrb[156].mxu1 }
 0xc5e   :  { %v9060_v35 = vpop.f32.mrb[157].mxu1  ;;  %v18184_v14 = vld [vmem:[%s21867_s5 + $0xa8] sm:$0xff]  }
 0xc5f   :  { %v15997_v44 = vpop.f32.mrb[158].mxu1  ;;  %v21150_v35 = vld [vmem:[#allocation3 + $0x50] sm:$0xff] }
 0xc60   :  { %v9062_v25 = vpop.f32.mrb[159].mxu1  ;;  %v21154_v44 = vld [vmem:[#allocation3 + $0x58] sm:$0xff] }
 0xc61   :  { %v18185_v25 = vld [vmem:[%s21867_s5 + $0xb0] sm:$0xff]  }
 0xc62   :  { %16119 = vmatmul.mubr.msk.bf16.gmra.mrb[208].mxu1 %vm8579_vm0, %v20787_v27 }
 0xc63   :  { %16122 = vmatprep.mubr.msk.bf16.mxu1 %vm8579_vm0, %v20795_v43 }
 0xc6a   :  { %16123 = vmatmul.mubr.msk.bf16.gmra.mrb[212].mxu1 %vm8579_vm0, %v20801_v46 }
 0xc6b   :  { %16126 = vmatprep.mubr.msk.bf16.mxu1 %vm8579_vm0, %v20809_v55 }
 0xc72   :  { %16127 = vmatmul.mubr.msk.bf16.gmra.mrb[144].mxu1 %vm8579_vm0, %v20815_v10 }
 0xc73   :  { %16130 = vmatprep.mubr.msk.bf16.mxu1 %vm8579_vm0, %v20823_v23 }
 0xc75   :  { %v16016_v29 = vpop.f32.mrb[160].mxu1 }
 0xc76   :  { %v9164_v4 = vpop.f32.mrb[161].mxu1 }
 0xc77   :  { %v16017_v17 = vpop.f32.mrb[162].mxu1 }
 0xc78   :  { %v9166_v36 = vpop.f32.mrb[163].mxu1 }
 0xc7a   :  { %16131 = vmatmul.mubr.msk.bf16.gmra.mrb[148].mxu1 %vm8579_vm0, %v20829_v30 }
 0xc7b   :  { %16134 = vmatprep.mubr.msk.bf16.mxu1 %vm8579_vm0, %v20837_v15 }
 0xc7d   :  { %v16020_v38 = vpop.f32.mrb[164].mxu1 }
 0xc7e   :  { %v9176_v0 = vpop.f32.mrb[165].mxu1  ;;  %v18186_v38 = vld [vmem:[%s21867_s5 + $0xb8] sm:$0xff]  }
 0xc7f   :  { %v16021_v54 = vpop.f32.mrb[166].mxu1  ;;  %v21165_v0 = vld [vmem:[#allocation3 + $0x60] sm:$0xff] }
 0xc80   :  { %v9178_v6 = vpop.f32.mrb[167].mxu1  ;;  %v21169_v54 = vld [vmem:[#allocation3 + $0x68] sm:$0xff] }
 0xc81   :  { %v21176_v6 = vld [vmem:[%s21867_s5 + $0xc0] sm:$0xff]  }
 0xc82   :  { %16135 = vmatmul.mubr.msk.bf16.gmra.mrb[216].mxu1 %vm8579_vm0, %v20843_v5 }
 0xc83   :  { %16138 = vmatprep.mubr.msk.bf16.mxu1 %vm8579_vm0, %v20851_v39 }
 0xc8a   :  { %16139 = vmatmul.mubr.msk.bf16.gmra.mrb[220].mxu1 %vm8579_vm0, %v21048_v7 }
 0xc8b   :  { %16150 = vmatprep.mubr.msk.bf16.mxu1 %vm8579_vm0, %v9805_v49 }
 0xc92   :  { %16151 = vmatmul.mubr.msk.bf16.vlgmr.msra.gmra.mrb[96].mxu1 %vm8579_vm0, %v21056_v16 }
 0xc93   :  { %16154 = vmatprep.mubr.msk.bf16.mxu1 %vm8579_vm0, %v20697_v9  ;;  %16215 = vmatpush3.bf16.msra.mxu1 %v20993_v58  ;;  %v21076_v9 = vld [vmem:[%s21867_s5 + $0xa0] sm:$0xff]  }
 0xc94   :  { %16216 = vmatprep.subr.bf16.mxu1 %v18180_v50 }
 0xc95   :  { %v16032_v33 = vpop.f32.mrb[168].mxu1 }
 0xc96   :  { %v9220_v20 = vpop.f32.mrb[169].mxu1  ;;  %v21179_v33 = vld [vmem:[#allocation3 + $0x70] sm:$0xff] }
 0xc97   :  { %v16033_v56 = vpop.f32.mrb[170].mxu1  ;;  %16217 = vmatpush3.bf16.msra.mxu1 %v18180_v50  ;;  %v21183_v20 = vld [vmem:[#allocation3 + $0x78] sm:$0xff] }
 0xc98   :  { %v9222_v8 = vpop.f32.mrb[171].mxu1  ;;  %16218 = vmatprep.subr.bf16.mxu1 %v18181_v61  ;;  %v21187_v56 = vld [vmem:[#allocation3 + $0x80] sm:$0xff] }
 0xc99   :  { %v21191_v8 = vld [vmem:[#allocation3 + $0x88] sm:$0xff] }
 0xc9a   :  { %16155 = vmatmul.mubr.msk.bf16.gmra.mrb[100].mxu1 %vm8579_vm0, %v20703_v41 }
 0xc9b   :  { %16158 = vmatprep.mubr.msk.bf16.mxu1 %vm8579_vm0, %v20711_v18  ;;  %16219 = vmatpush3.bf16.msra.mxu1 %v18181_v61 }
 0xc9c   :  { %16220 = vmatprep.subr.bf16.mxu1 %v18182_v45 }
 0xc9d   :  { %v16036_v42 = vpop.f32.mrb[172].mxu1 }
 0xc9e   :  { %v9232_v3 = vpop.f32.mrb[173].mxu1 }
 0xc9f   :  { %v16037_v58 = vpop.f32.mrb[174].mxu1  ;;  %16221 = vmatpush3.bf16.msra.mxu1 %v18182_v45  ;;  %v21195_v45 = vld [vmem:[#allocation3 + $0x90] sm:$0xff] }
 0xca0   :  { %v9234_v40 = vpop.f32.mrb[175].mxu1  ;;  %16286 = vmatprep.subr.bf16.mxu1 %v21076_v9 }
 0xca2   :  { %16159 = vmatmul.mubr.msk.bf16.gmra.mrb[224].mxu1 %vm8579_vm0, %v20717_v19 }
 0xca3   :  { %16162 = vmatprep.mubr.msk.bf16.mxu1 %vm8579_vm0, %v20725_v22 }
 0xcaa   :  { %16163 = vmatmul.mubr.msk.bf16.gmra.mrb[228].mxu1 %vm8579_vm0, %v20731_v11 }
 0xcab   :  { %16166 = vmatprep.mubr.msk.bf16.mxu1 %vm8579_vm0, %v20739_v63 }
 0xcb2   :  { %16167 = vmatmul.mubr.msk.bf16.gmra.mrb[112].mxu1 %vm8579_vm0, %v20745_v24 }
 0xcb3   :  { %16170 = vmatprep.mubr.msk.bf16.mxu1 %vm8579_vm0, %v20753_v2 }
 0xcb5   :  { %v16048_v41 = vpop.f32.mrb[176].mxu1 }
 0xcb6   :  { %v9276_v18 = vpop.f32.mrb[177].mxu1  ;;  %v21203_v41 = vld [vmem:[#allocation3 + $0xa0] sm:$0xff] }
 0xcb7   :  { %v16049_v12 = vpop.f32.mrb[178].mxu1  ;;  %v21207_v18 = vld [vmem:[#allocation3 + $0xa8] sm:$0xff] }
 0xcb8   :  { %v9278_v21 = vpop.f32.mrb[179].mxu1 }
 0xcba   :  { %16171 = vmatmul.mubr.msk.bf16.gmra.mrb[116].mxu1 %vm8579_vm0, %v20759_v37 }
 0xcbb   :  { %16174 = vmatprep.mubr.msk.bf16.mxu1 %vm8579_vm0, %v20767_v57 }
 0xcbd   :  { %v16052_v19 = vpop.f32.mrb[180].mxu1 }
 0xcbe   :  { %v9288_v22 = vpop.f32.mrb[181].mxu1 }
 0xcbf   :  { %v16053_v11 = vpop.f32.mrb[182].mxu1 }
 0xcc0   :  { %v9290_v63 = vpop.f32.mrb[183].mxu1  ;;  %v21211_v11 = vld [vmem:[#allocation3 + $0xb0] sm:$0xff] }
 0xcc1   :  { %v21215_v63 = vld [vmem:[#allocation3 + $0xb8] sm:$0xff] }
 0xcc2   :  { %16175 = vmatmul.mubr.msk.bf16.gmra.mrb[232].mxu1 %vm8579_vm0, %v20773_v47 }
 0xcc3   :  { %16178 = vmatprep.mubr.msk.bf16.mxu1 %vm8579_vm0, %v20781_v59 }
 0xcca   :  { %16179 = vmatmul.mubr.msk.bf16.gmra.mrb[236].mxu1 %vm8579_vm0, %v20787_v27 }
 0xccb   :  { %16182 = vmatprep.mubr.msk.bf16.mxu1 %vm8579_vm0, %v20795_v43 }
 0xcd2   :  { %16183 = vmatmul.mubr.msk.bf16.gmra.mrb[128].mxu1 %vm8579_vm0, %v20801_v46  ;;  %v21121_v46 = vld [vmem:[#allocation3 + $0x110] sm:$0xff] }
 0xcd3   :  { %16186 = vmatprep.mubr.msk.bf16.mxu1 %vm8579_vm0, %v20809_v55 }
 0xcd5   :  { %v16064_v24 = vpop.f32.mrb[184].mxu1 }
 0xcd6   :  { %v9332_v2 = vpop.f32.mrb[185].mxu1  ;;  %v21219_v24 = vld [vmem:[#allocation3 + $0xc0] sm:$0xff] }
 0xcd7   :  { %v16065_v37 = vpop.f32.mrb[186].mxu1  ;;  %v21223_v2 = vld [vmem:[#allocation3 + $0xc8] sm:$0xff] }
 0xcd8   :  { %v9334_v57 = vpop.f32.mrb[187].mxu1 }
 0xcda   :  { %16187 = vmatmul.mubr.msk.bf16.gmra.mrb[132].mxu1 %vm8579_vm0, %v20815_v10 }
 0xcdb   :  { %16190 = vmatprep.mubr.msk.bf16.mxu1 %vm8579_vm0, %v20823_v23 }
 0xcdd   :  { %v16068_v47 = vpop.f32.mrb[188].mxu1 }
 0xcde   :  { %v9344_v59 = vpop.f32.mrb[189].mxu1 }
 0xcdf   :  { %v16069_v27 = vpop.f32.mrb[190].mxu1 }
 0xce0   :  { %v9346_v43 = vpop.f32.mrb[191].mxu1 }
 0xce2   :  { %16191 = vmatmul.mubr.msk.bf16.gmra.mrb[240].mxu1 %vm8579_vm0, %v20829_v30 }
 0xce3   :  { %16194 = vmatprep.mubr.msk.bf16.mxu1 %vm8579_vm0, %v20837_v15 }
 0xcea   :  { %16195 = vmatmul.mubr.msk.bf16.gmra.mrb[244].mxu1 %vm8579_vm0, %v20843_v5 }
 0xceb   :  { %16198 = vmatprep.mubr.msk.bf16.mxu1 %vm8579_vm0, %v20851_v39 }
 0xcf2   :  { %16199 = vmatmul.mubr.msk.bf16.gmra.mrb[144].mxu1 %vm8579_vm0, %v21048_v7 }
 0xcf3   :  { %16202 = vmatprep.mubr.msk.bf16.mxu1 %vm8579_vm0, %v21121_v46 }
 0xcf5   :  { %v16088_v60 = vpop.f32.mrb[192].mxu1 }
 0xcf6   :  { %v9582_v48 = vpop.f32.mrb[193].mxu1 }
 0xcf7   :  { %v16089_v28 = vpop.f32.mrb[194].mxu1 }
 0xcf8   :  { %v9584_v1 = vpop.f32.mrb[195].mxu1 }
 0xcf9   :  { %v21255_v1 = vld [vmem:[#allocation3 + $0x140] sm:$0xff] }
 0xcfa   :  { %16203 = vmatmul.mubr.msk.bf16.gmra.mrb[148].mxu1 %vm8579_vm0, %v21125_v26 }
 0xcfb   :  { %16206 = vmatprep.mubr.msk.bf16.mxu1 %vm8579_vm0, %v21129_v13 }
 0xcfd   :  { %v16092_v53 = vpop.f32.mrb[196].mxu1 }
 0xcfe   :  { %v9594_v31 = vpop.f32.mrb[197].mxu1  ;;  %v18188_v53 = vld [vmem:[%s21867_s5 + $0xc8] sm:$0xff]  }
 0xcff   :  { %v16093_v62 = vpop.f32.mrb[198].mxu1  ;;  %v18189_v31 = vld [vmem:[%s21867_s5 + $0xd0] sm:$0xff]  }
 0xd00   :  { %v9596_v34 = vpop.f32.mrb[199].mxu1 }
 0xd02   :  { %16207 = vmatmul.mubr.msk.bf16.gmra.mrb[248].mxu1 %vm8579_vm0, %v21133_v52 }
 0xd03   :  { %16210 = vmatprep.mubr.msk.bf16.mxu1 %vm8579_vm0, %v21137_v32 }
 0xd0a   :  { %16211 = vmatmul.mubr.msk.bf16.gmra.mrb[252].mxu1 %vm8579_vm0, %v21141_v51 }
 0xd0b   :  { %16222 = vmatprep.mubr.msk.bf16.mxu1 %vm8579_vm0, %v21056_v16 }
 0xd12   :  { %16223 = vmatmul.mubr.msk.bf16.vlgmr.msra.gmra.mrb[96].mxu1 %vm8579_vm0, %v21150_v35 }
 0xd13   :  { %16226 = vmatprep.mubr.msk.bf16.mxu1 %vm8579_vm0, %v21154_v44  ;;  %16287 = vmatpush3.bf16.msra.mxu1 %v21076_v9  ;;  %v21199_v9 = vld [vmem:[#allocation3 + $0x98] sm:$0xff] }
 0xd14   :  { %16288 = vmatprep.subr.bf16.mxu1 %v18184_v14 }
 0xd15   :  { %v16104_v29 = vpop.f32.mrb[200].mxu1 }
 0xd16   :  { %v9638_v4 = vpop.f32.mrb[201].mxu1 }
 0xd17   :  { %v16105_v17 = vpop.f32.mrb[202].mxu1  ;;  %16289 = vmatpush3.bf16.msra.mxu1 %v18184_v14 }
 0xd18   :  { %v9640_v36 = vpop.f32.mrb[203].mxu1  ;;  %16290 = vmatprep.subr.bf16.mxu1 %v18185_v25 }
 0xd1a   :  { %16227 = vmatmul.mubr.msk.bf16.gmra.mrb[100].mxu1 %vm8579_vm0, %v21165_v0 }
 0xd1b   :  { %16230 = vmatprep.mubr.msk.bf16.mxu1 %vm8579_vm0, %v21169_v54  ;;  %16291 = vmatpush3.bf16.msra.mxu1 %v18185_v25  ;;  %v21282_v25 = vld [vmem:[%s21867_s5 + $0xe0] sm:$0xff]  }
 0xd1c   :  { %16292 = vmatprep.subr.bf16.mxu1 %v18186_v38 }
 0xd1d   :  { %v16108_v49 = vpop.f32.mrb[204].mxu1 }
 0xd1e   :  { %v9650_v50 = vpop.f32.mrb[205].mxu1 }
 0xd1f   :  { %v16109_v16 = vpop.f32.mrb[206].mxu1  ;;  %16293 = vmatpush3.bf16.msra.mxu1 %v18186_v38 }
 0xd20   :  { %v9652_v61 = vpop.f32.mrb[207].mxu1  ;;  %16358 = vmatprep.subr.bf16.mxu1 %v21176_v6 }
 0xd22   :  { %16231 = vmatmul.mubr.msk.bf16.gmra.mrb[0].mxu1 %vm8579_vm0, %v21179_v33 }
 0xd23   :  { %16234 = vmatprep.mubr.msk.bf16.mxu1 %vm8579_vm0, %v21183_v20 }
 0xd2a   :  { %16235 = vmatmul.mubr.msk.bf16.gmra.mrb[4].mxu1 %vm8579_vm0, %v21187_v56 }
 0xd2b   :  { %16238 = vmatprep.mubr.msk.bf16.mxu1 %vm8579_vm0, %v21191_v8 }
 0xd32   :  { %16239 = vmatmul.mubr.msk.bf16.gmra.mrb[112].mxu1 %vm8579_vm0, %v21195_v45 }
 0xd33   :  { %16242 = vmatprep.mubr.msk.bf16.mxu1 %vm8579_vm0, %v21199_v9 }
 0xd35   :  { %v16120_v42 = vpop.f32.mrb[208].mxu1 }
 0xd36   :  { %v9694_v3 = vpop.f32.mrb[209].mxu1  ;;  %v21315_v42 = vld [vmem:[#allocation3 + $0xe0] sm:$0xff] }
 0xd37   :  { %v16121_v58 = vpop.f32.mrb[210].mxu1 }
 0xd38   :  { %v9696_v40 = vpop.f32.mrb[211].mxu1 }
 0xd3a   :  { %16243 = vmatmul.mubr.msk.bf16.gmra.mrb[116].mxu1 %vm8579_vm0, %v21203_v41 }
 0xd3b   :  { %16246 = vmatprep.mubr.msk.bf16.mxu1 %vm8579_vm0, %v21207_v18 }
 0xd3d   :  { %v16124_v12 = vpop.f32.mrb[212].mxu1 }
 0xd3e   :  { %v9706_v21 = vpop.f32.mrb[213].mxu1 }
 0xd3f   :  { %v16125_v19 = vpop.f32.mrb[214].mxu1  ;;  %v21319_v21 = vld [vmem:[#allocation3 + $0xe8] sm:$0xff] }
 0xd40   :  { %v9708_v22 = vpop.f32.mrb[215].mxu1  ;;  %v21323_v19 = vld [vmem:[#allocation3 + $0xf0] sm:$0xff] }
 0xd42   :  { %16247 = vmatmul.mubr.msk.bf16.gmra.mrb[8].mxu1 %vm8579_vm0, %v21211_v11 }
 0xd43   :  { %16250 = vmatprep.mubr.msk.bf16.mxu1 %vm8579_vm0, %v21215_v63 }
 0xd4a   :  { %16251 = vmatmul.mubr.msk.bf16.gmra.mrb[12].mxu1 %vm8579_vm0, %v21219_v24 }
 0xd4b   :  { %16254 = vmatprep.mubr.msk.bf16.mxu1 %vm8579_vm0, %v21223_v2 }
 0xd52   :  { %16255 = vmatmul.mubr.msk.bf16.gmra.mrb[128].mxu1 %vm8579_vm0, %v20809_v55 }
 0xd53   :  { %16258 = vmatprep.mubr.msk.bf16.mxu1 %vm8579_vm0, %v20815_v10 }
 0xd55   :  { %v16136_v37 = vpop.f32.mrb[216].mxu1 }
 0xd56   :  { %v9750_v57 = vpop.f32.mrb[217].mxu1 }
 0xd57   :  { %v16137_v47 = vpop.f32.mrb[218].mxu1 }
 0xd58   :  { %v9752_v59 = vpop.f32.mrb[219].mxu1 }
 0xd59   :  { %v21327_v59 = vld [vmem:[#allocation3 + $0xf8] sm:$0xff] }
 0xd5a   :  { %16259 = vmatmul.mubr.msk.bf16.gmra.mrb[132].mxu1 %vm8579_vm0, %v20823_v23 }
 0xd5b   :  { %16262 = vmatprep.mubr.msk.bf16.mxu1 %vm8579_vm0, %v20829_v30 }
 0xd5d   :  { %v16140_v27 = vpop.f32.mrb[220].mxu1 }
 0xd5e   :  { %v9762_v43 = vpop.f32.mrb[221].mxu1  ;;  %v21331_v27 = vld [vmem:[#allocation3 + $0x100] sm:$0xff] }
 0xd5f   :  { %v16141_v60 = vpop.f32.mrb[222].mxu1 }
 0xd60   :  { %v9764_v48 = vpop.f32.mrb[223].mxu1 }
 0xd62   :  { %16263 = vmatmul.mubr.msk.bf16.gmra.mrb[16].mxu1 %vm8579_vm0, %v20837_v15 }
 0xd63   :  { %16266 = vmatprep.mubr.msk.bf16.mxu1 %vm8579_vm0, %v20843_v5 }
 0xd6a   :  { %16267 = vmatmul.mubr.msk.bf16.gmra.mrb[20].mxu1 %vm8579_vm0, %v20851_v39 }
 0xd6b   :  { %16270 = vmatprep.mubr.msk.bf16.mxu1 %vm8579_vm0, %v21048_v7 }
 0xd72   :  { %16271 = vmatmul.mubr.msk.bf16.gmra.mrb[144].mxu1 %vm8579_vm0, %v21121_v46 }
 0xd73   :  { %16274 = vmatprep.mubr.msk.bf16.mxu1 %vm8579_vm0, %v21125_v26 }
 0xd75   :  { %v16160_v55 = vpop.f32.mrb[224].mxu1 }
 0xd76   :  { %v10032_v10 = vpop.f32.mrb[225].mxu1 }
 0xd77   :  { %v16161_v23 = vpop.f32.mrb[226].mxu1 }
 0xd78   :  { %v10034_v30 = vpop.f32.mrb[227].mxu1 }
 0xd7a   :  { %16275 = vmatmul.mubr.msk.bf16.gmra.mrb[148].mxu1 %vm8579_vm0, %v21129_v13 }
 0xd7b   :  { %16278 = vmatprep.mubr.msk.bf16.mxu1 %vm8579_vm0, %v21133_v52 }
 0xd7d   :  { %v16164_v15 = vpop.f32.mrb[228].mxu1 }
 0xd7e   :  { %v10044_v5 = vpop.f32.mrb[229].mxu1 }
 0xd7f   :  { %v16165_v39 = vpop.f32.mrb[230].mxu1  ;;  %v21351_v5 = vld [vmem:[#allocation3 + $0x148] sm:$0xff] }
 0xd80   :  { %v10046_v28 = vpop.f32.mrb[231].mxu1  ;;  %v18192_v39 = vld [vmem:[%s21867_s5 + $0xe8] sm:$0xff]  }
 0xd81   :  { %v18193_v28 = vld [vmem:[%s21867_s5 + $0xf0] sm:$0xff]  }
 0xd82   :  { %16279 = vmatmul.mubr.msk.bf16.gmra.mrb[24].mxu1 %vm8579_vm0, %v21137_v32 }
 0xd83   :  { %16282 = vmatprep.mubr.msk.bf16.mxu1 %vm8579_vm0, %v21141_v51 }
 0xd8a   :  { %16283 = vmatmul.mubr.msk.bf16.gmra.mrb[28].mxu1 %vm8579_vm0, %v21255_v1 }
 0xd8b   :  { %16294 = vmatprep.mubr.msk.bf16.mxu1 %vm8579_vm0, %v21150_v35 }
 0xd92   :  { %16295 = vmatmul.mubr.msk.bf16.vlgmr.msra.gmra.mrb[96].mxu1 %vm8579_vm0, %v21154_v44  ;;  %v18190_v44 = vld [vmem:[%s21867_s5 + $0xd8] sm:$0xff]  }
 0xd93   :  { %16298 = vmatprep.mubr.msk.bf16.mxu1 %vm8579_vm0, %v21165_v0  ;;  %16359 = vmatpush3.bf16.msra.mxu1 %v21176_v6 }
 0xd94   :  { %16360 = vmatprep.subr.bf16.mxu1 %v18188_v53 }
 0xd95   :  { %v16176_v62 = vpop.f32.mrb[232].mxu1 }
 0xd96   :  { %v10088_v34 = vpop.f32.mrb[233].mxu1 }
 0xd97   :  { %v16177_v14 = vpop.f32.mrb[234].mxu1  ;;  %16361 = vmatpush3.bf16.msra.mxu1 %v18188_v53  ;;  %v18194_v34 = vld [vmem:[%s21867_s5 + $0xf8] sm:$0xff]  }
 0xd98   :  { %v10090_v35 = vpop.f32.mrb[235].mxu1  ;;  %16362 = vmatprep.subr.bf16.mxu1 %v18189_v31  ;;  %v21378_v14 = vld [vmem:[%s21867_s5 + $0x100] sm:$0xff]  }
 0xd9a   :  { %16299 = vmatmul.mubr.msk.bf16.gmra.mrb[100].mxu1 %vm8579_vm0, %v21169_v54 }
 0xd9b   :  { %16302 = vmatprep.mubr.msk.bf16.mxu1 %vm8579_vm0, %v21179_v33  ;;  %16363 = vmatpush3.bf16.msra.mxu1 %v18189_v31  ;;  %v21307_v33 = vld [vmem:[#allocation3 + $0xd0] sm:$0xff] }
 0xd9c   :  { %16364 = vmatprep.subr.bf16.mxu1 %v18190_v44 }
 0xd9d   :  { %v16180_v29 = vpop.f32.mrb[236].mxu1 }
 0xd9e   :  { %v10100_v4 = vpop.f32.mrb[237].mxu1 }
 0xd9f   :  { %v16181_v17 = vpop.f32.mrb[238].mxu1  ;;  %16365 = vmatpush3.bf16.msra.mxu1 %v18190_v44 }
 0xda0   :  { %v10102_v36 = vpop.f32.mrb[239].mxu1  ;;  %16430 = vmatprep.subr.bf16.mxu1 %v21282_v25 }
 0xda2   :  { %16303 = vmatmul.mubr.msk.bf16.gmra.mrb[32].mxu1 %vm8579_vm0, %v21183_v20  ;;  %v21311_v20 = vld [vmem:[#allocation3 + $0xd8] sm:$0xff] }
 0xda3   :  { %16306 = vmatprep.mubr.msk.bf16.mxu1 %vm8579_vm0, %v21187_v56 }
 0xdaa   :  { %16307 = vmatmul.mubr.msk.bf16.gmra.mrb[36].mxu1 %vm8579_vm0, %v21191_v8 }
 0xdab   :  { %16310 = vmatprep.mubr.msk.bf16.mxu1 %vm8579_vm0, %v21195_v45 }
 0xdb2   :  { %16311 = vmatmul.mubr.msk.bf16.gmra.mrb[112].mxu1 %vm8579_vm0, %v21199_v9 }
 0xdb3   :  { %16314 = vmatprep.mubr.msk.bf16.mxu1 %vm8579_vm0, %v21203_v41 }
 0xdb5   :  { %v16192_v38 = vpop.f32.mrb[240].mxu1 }
 0xdb6   :  { %v10144_v0 = vpop.f32.mrb[241].mxu1 }
 0xdb7   :  { %v16193_v54 = vpop.f32.mrb[242].mxu1 }
 0xdb8   :  { %v10146_v6 = vpop.f32.mrb[243].mxu1 }
 0xdba   :  { %16315 = vmatmul.mubr.msk.bf16.gmra.mrb[116].mxu1 %vm8579_vm0, %v21207_v18 }
 0xdbb   :  { %16318 = vmatprep.mubr.msk.bf16.mxu1 %vm8579_vm0, %v21211_v11 }
 0xdbd   :  { %v16196_v49 = vpop.f32.mrb[244].mxu1 }
 0xdbe   :  { %v10156_v50 = vpop.f32.mrb[245].mxu1 }
 0xdbf   :  { %v16197_v16 = vpop.f32.mrb[246].mxu1 }
 0xdc0   :  { %v10158_v61 = vpop.f32.mrb[247].mxu1 }
 0xdc2   :  { %16319 = vmatmul.mubr.msk.bf16.gmra.mrb[40].mxu1 %vm8579_vm0, %v21215_v63 }
 0xdc3   :  { %16322 = vmatprep.mubr.msk.bf16.mxu1 %vm8579_vm0, %v21219_v24 }
 0xdca   :  { %16323 = vmatmul.mubr.msk.bf16.gmra.mrb[44].mxu1 %vm8579_vm0, %v21223_v2 }
 0xdcb   :  { %16326 = vmatprep.mubr.msk.bf16.mxu1 %vm8579_vm0, %v21307_v33 }
 0xdd2   :  { %16327 = vmatmul.mubr.msk.bf16.gmra.mrb[128].mxu1 %vm8579_vm0, %v21311_v20 }
 0xdd3   :  { %16330 = vmatprep.mubr.msk.bf16.mxu1 %vm8579_vm0, %v21315_v42 }
 0xdd5   :  { %v16208_v3 = vpop.f32.mrb[248].mxu1 }
 0xdd6   :  { %v10200_v58 = vpop.f32.mrb[249].mxu1 }
 0xdd7   :  { %v16209_v40 = vpop.f32.mrb[250].mxu1 }
 0xdd8   :  { %v10202_v12 = vpop.f32.mrb[251].mxu1 }
 0xdda   :  { %16331 = vmatmul.mubr.msk.bf16.gmra.mrb[132].mxu1 %vm8579_vm0, %v21319_v21 }
 0xddb   :  { %16334 = vmatprep.mubr.msk.bf16.mxu1 %vm8579_vm0, %v21323_v19 }
 0xddd   :  { %v16212_v22 = vpop.f32.mrb[252].mxu1 }
 0xdde   :  { %v10212_v37 = vpop.f32.mrb[253].mxu1 }
 0xddf   :  { %v16213_v57 = vpop.f32.mrb[254].mxu1 }
 0xde0   :  { %v10214_v47 = vpop.f32.mrb[255].mxu1 }
 0xde2   :  { %16335 = vmatmul.mubr.msk.bf16.gmra.mrb[48].mxu1 %vm8579_vm0, %v21327_v59 }
 0xde3   :  { %16338 = vmatprep.mubr.msk.bf16.mxu1 %vm8579_vm0, %v21331_v27 }
 0xdea   :  { %16339 = vmatmul.mubr.msk.bf16.gmra.mrb[52].mxu1 %vm8579_vm0, %v21048_v7 }
 0xdeb   :  { %16342 = vmatprep.mubr.msk.bf16.mxu1 %vm8579_vm0, %v21121_v46 }
 0xdf2   :  { %16343 = vmatmul.mubr.msk.bf16.gmra.mrb[144].mxu1 %vm8579_vm0, %v21125_v26 }
 0xdf3   :  { %16346 = vmatprep.mubr.msk.bf16.mxu1 %vm8579_vm0, %v21129_v13 }
 0xdf5   :  { %v16232_v43 = vpop.f32.mrb[0].mxu1 }
 0xdf6   :  { %v10482_v60 = vpop.f32.mrb[1].mxu1 }
 0xdf7   :  { %v16233_v48 = vpop.f32.mrb[2].mxu1  ;;  %v21427_v60 = vld [vmem:[#allocation3 + $0x158] sm:$0xff] }
 0xdf8   :  { %v10484_v55 = vpop.f32.mrb[3].mxu1  ;;  %v21431_v48 = vld [vmem:[#allocation3 + $0x160] sm:$0xff] }
 0xdfa   :  { %16347 = vmatmul.mubr.msk.bf16.gmra.mrb[148].mxu1 %vm8579_vm0, %v21133_v52 }
 0xdfb   :  { %16350 = vmatprep.mubr.msk.bf16.mxu1 %vm8579_vm0, %v21137_v32 }
 0xdfd   :  { %v16236_v10 = vpop.f32.mrb[4].mxu1 }
 0xdfe   :  { %v10494_v23 = vpop.f32.mrb[5].mxu1 }
 0xdff   :  { %v16237_v30 = vpop.f32.mrb[6].mxu1 }
 0xe00   :  { %v10496_v15 = vpop.f32.mrb[7].mxu1 }
 0xe01   :  { %v21435_v15 = vld [vmem:[#allocation3 + $0x168] sm:$0xff] }
 0xe02   :  { %16351 = vmatmul.mubr.msk.bf16.gmra.mrb[56].mxu1 %vm8579_vm0, %v21141_v51 }
 0xe03   :  { %16354 = vmatprep.mubr.msk.bf16.mxu1 %vm8579_vm0, %v21255_v1 }
 0xe0a   :  { %16355 = vmatmul.mubr.msk.bf16.gmra.mrb[60].mxu1 %vm8579_vm0, %v21351_v5 }
 0xe0b   :  { %16366 = vmatprep.mubr.msk.bf16.mxu1 %vm8579_vm0, %v21187_v56 }
 0xe12   :  { %16367 = vmatmul.mubr.msk.bf16.vlgmr.msra.gmra.mrb[96].mxu1 %vm8579_vm0, %v21191_v8 }
 0xe13   :  { %16370 = vmatprep.mubr.msk.bf16.mxu1 %vm8579_vm0, %v21195_v45  ;;  %16431 = vmatpush3.bf16.msra.mxu1 %v21282_v25 }
 0xe14   :  { %16432 = vmatprep.subr.bf16.mxu1 %v18192_v39 }
 0xe15   :  { %v16248_v53 = vpop.f32.mrb[8].mxu1 }
 0xe16   :  { %v10538_v31 = vpop.f32.mrb[9].mxu1  ;;  %v18196_v53 = vld [vmem:[%s21867_s5 + $0x108] sm:$0xff]  }
 0xe17   :  { %v16249_v56 = vpop.f32.mrb[10].mxu1  ;;  %16433 = vmatpush3.bf16.msra.mxu1 %v18192_v39  ;;  %v21439_v39 = vld [vmem:[#allocation3 + $0x170] sm:$0xff] }
 0xe18   :  { %v10540_v62 = vpop.f32.mrb[11].mxu1  ;;  %16434 = vmatprep.subr.bf16.mxu1 %v18193_v28  ;;  %v18197_v31 = vld [vmem:[%s21867_s5 + $0x110] sm:$0xff]  }
 0xe1a   :  { %16371 = vmatmul.mubr.msk.bf16.gmra.mrb[100].mxu1 %vm8579_vm0, %v21199_v9 }
 0xe1b   :  { %16374 = vmatprep.mubr.msk.bf16.mxu1 %vm8579_vm0, %v21203_v41  ;;  %16435 = vmatpush3.bf16.msra.mxu1 %v18193_v28  ;;  %v21443_v28 = vld [vmem:[#allocation3 + $0x178] sm:$0xff] }
 0xe1c   :  { %16436 = vmatprep.subr.bf16.mxu1 %v18194_v34 }
 0xe1d   :  { %v16252_v35 = vpop.f32.mrb[12].mxu1 }
 0xe1e   :  { %v10550_v44 = vpop.f32.mrb[13].mxu1  ;;  %v18198_v35 = vld [vmem:[%s21867_s5 + $0x118] sm:$0xff]  }
 0xe1f   :  { %v16253_v25 = vpop.f32.mrb[14].mxu1  ;;  %16437 = vmatpush3.bf16.msra.mxu1 %v18194_v34 }
 0xe20   :  { %v10552_v29 = vpop.f32.mrb[15].mxu1  ;;  %16502 = vmatprep.subr.bf16.mxu1 %v21378_v14 }
 0xe22   :  { %16375 = vmatmul.mubr.msk.bf16.gmra.mrb[64].mxu1 %vm8579_vm0, %v21207_v18 }
 0xe23   :  { %16378 = vmatprep.mubr.msk.bf16.mxu1 %vm8579_vm0, %v21211_v11 }
 0xe2a   :  { %16379 = vmatmul.mubr.msk.bf16.gmra.mrb[68].mxu1 %vm8579_vm0, %v21215_v63 }
 0xe2b   :  { %16382 = vmatprep.mubr.msk.bf16.mxu1 %vm8579_vm0, %v21219_v24 }
 0xe32   :  { %16383 = vmatmul.mubr.msk.bf16.gmra.mrb[112].mxu1 %vm8579_vm0, %v21223_v2 }
 0xe33   :  { %16386 = vmatprep.mubr.msk.bf16.mxu1 %vm8579_vm0, %v21307_v33 }
 0xe35   :  { %v16264_v4 = vpop.f32.mrb[16].mxu1 }
 0xe36   :  { %v10594_v17 = vpop.f32.mrb[17].mxu1 }
 0xe37   :  { %v16265_v36 = vpop.f32.mrb[18].mxu1 }
 0xe38   :  { %v10596_v38 = vpop.f32.mrb[19].mxu1 }
 0xe3a   :  { %16387 = vmatmul.mubr.msk.bf16.gmra.mrb[116].mxu1 %vm8579_vm0, %v21311_v20 }
 0xe3b   :  { %16390 = vmatprep.mubr.msk.bf16.mxu1 %vm8579_vm0, %v21315_v42 }
 0xe3d   :  { %v16268_v0 = vpop.f32.mrb[20].mxu1 }
 0xe3e   :  { %v10606_v54 = vpop.f32.mrb[21].mxu1 }
 0xe3f   :  { %v16269_v6 = vpop.f32.mrb[22].mxu1 }
 0xe40   :  { %v10608_v49 = vpop.f32.mrb[23].mxu1 }
 0xe42   :  { %16391 = vmatmul.mubr.msk.bf16.gmra.mrb[72].mxu1 %vm8579_vm0, %v21319_v21 }
 0xe43   :  { %16394 = vmatprep.mubr.msk.bf16.mxu1 %vm8579_vm0, %v21323_v19 }
 0xe4a   :  { %16395 = vmatmul.mubr.msk.bf16.gmra.mrb[76].mxu1 %vm8579_vm0, %v21327_v59 }
 0xe4b   :  { %16398 = vmatprep.mubr.msk.bf16.mxu1 %vm8579_vm0, %v21331_v27 }
 0xe52   :  { %16399 = vmatmul.mubr.msk.bf16.gmra.mrb[128].mxu1 %vm8579_vm0, %v21048_v7  ;;  %v21423_v7 = vld [vmem:[#allocation3 + $0x150] sm:$0xff] }
 0xe53   :  { %16402 = vmatprep.mubr.msk.bf16.mxu1 %vm8579_vm0, %v21121_v46 }
 0xe55   :  { %v16280_v50 = vpop.f32.mrb[24].mxu1 }
 0xe56   :  { %v10650_v16 = vpop.f32.mrb[25].mxu1  ;;  %v21489_v50 = vld [vmem:[#allocation3 + $0x108] sm:$0xff] }
 0xe57   :  { %v16281_v61 = vpop.f32.mrb[26].mxu1 }
 0xe58   :  { %v10652_v3 = vpop.f32.mrb[27].mxu1 }
 0xe5a   :  { %16403 = vmatmul.mubr.msk.bf16.gmra.mrb[132].mxu1 %vm8579_vm0, %v21125_v26 }
 0xe5b   :  { %16406 = vmatprep.mubr.msk.bf16.mxu1 %vm8579_vm0, %v21129_v13 }
 0xe5d   :  { %v16284_v58 = vpop.f32.mrb[28].mxu1 }
 0xe5e   :  { %v10662_v40 = vpop.f32.mrb[29].mxu1 }
 0xe5f   :  { %v16285_v12 = vpop.f32.mrb[30].mxu1 }
 0xe60   :  { %v10664_v22 = vpop.f32.mrb[31].mxu1 }
 0xe62   :  { %16407 = vmatmul.mubr.msk.bf16.gmra.mrb[80].mxu1 %vm8579_vm0, %v21133_v52 }
 0xe63   :  { %16410 = vmatprep.mubr.msk.bf16.mxu1 %vm8579_vm0, %v21137_v32 }
 0xe6a   :  { %16411 = vmatmul.mubr.msk.bf16.gmra.mrb[84].mxu1 %vm8579_vm0, %v21141_v51 }
 0xe6b   :  { %16414 = vmatprep.mubr.msk.bf16.mxu1 %vm8579_vm0, %v21255_v1 }
 0xe72   :  { %16415 = vmatmul.mubr.msk.bf16.gmra.mrb[144].mxu1 %vm8579_vm0, %v21351_v5 }
 0xe73   :  { %16418 = vmatprep.mubr.msk.bf16.mxu1 %vm8579_vm0, %v21423_v7 }
 0xe75   :  { %v16304_v37 = vpop.f32.mrb[32].mxu1 }
 0xe76   :  { %v10932_v57 = vpop.f32.mrb[33].mxu1 }
 0xe77   :  { %v16305_v47 = vpop.f32.mrb[34].mxu1 }
 0xe78   :  { %v10934_v43 = vpop.f32.mrb[35].mxu1 }
 0xe7a   :  { %16419 = vmatmul.mubr.msk.bf16.gmra.mrb[148].mxu1 %vm8579_vm0, %v21427_v60 }
 0xe7b   :  { %16422 = vmatprep.mubr.msk.bf16.mxu1 %vm8579_vm0, %v21431_v48 }
 0xe7d   :  { %v16308_v55 = vpop.f32.mrb[36].mxu1 }
 0xe7e   :  { %v10944_v10 = vpop.f32.mrb[37].mxu1  ;;  %v21522_v55 = vld [vmem:[#allocation3 + $0x180] sm:$0xff] }
 0xe7f   :  { %v16309_v23 = vpop.f32.mrb[38].mxu1  ;;  %v18199_v10 = vld [vmem:[%s21869_s7 + $0x10] sm:$0xff]  }
 0xe80   :  { %v10946_v30 = vpop.f32.mrb[39].mxu1 }
 0xe82   :  { %16423 = vmatmul.mubr.msk.bf16.gmra.mrb[88].mxu1 %vm8579_vm0, %v21435_v15 }
 0xe83   :  { %16426 = vmatprep.mubr.msk.bf16.mxu1 %vm8579_vm0, %v21439_v39 }
 0xe8a   :  { %16427 = vmatmul.mubr.msk.bf16.gmra.mrb[92].mxu1 %vm8579_vm0, %v21443_v28 }
 0xe8b   :  { %16438 = vmatprep.mubr.msk.bf16.mxu1 %vm8579_vm0, %v21191_v8 }
 0xe92   :  { %16439 = vmatmul.mubr.msk.bf16.vlgmr.msra.gmra.mrb[96].mxu1 %vm8579_vm0, %v21195_v45 }
 0xe93   :  { %16442 = vmatprep.mubr.msk.bf16.mxu1 %vm8579_vm0, %v21199_v9  ;;  %16503 = vmatpush3.bf16.msra.mxu1 %v21378_v14 }
 0xe94   :  { %16504 = vmatprep.subr.bf16.mxu1 %v18196_v53 }
 0xe95   :  { %v16320_v56 = vpop.f32.mrb[40].mxu1 }
 0xe96   :  { %v10988_v62 = vpop.f32.mrb[41].mxu1 }
 0xe97   :  { %v16321_v8 = vpop.f32.mrb[42].mxu1  ;;  %16505 = vmatpush3.bf16.msra.mxu1 %v18196_v53 }
 0xe98   :  { %v10990_v34 = vpop.f32.mrb[43].mxu1  ;;  %16506 = vmatprep.subr.bf16.mxu1 %v18197_v31 }
 0xe9a   :  { %16443 = vmatmul.mubr.msk.bf16.gmra.mrb[100].mxu1 %vm8579_vm0, %v21203_v41 }
 0xe9b   :  { %16446 = vmatprep.mubr.msk.bf16.mxu1 %vm8579_vm0, %v21207_v18  ;;  %16507 = vmatpush3.bf16.msra.mxu1 %v18197_v31 }
 0xe9c   :  { %16508 = vmatprep.subr.bf16.mxu1 %v18198_v35 }
 0xe9d   :  { %v16324_v14 = vpop.f32.mrb[44].mxu1 }
 0xe9e   :  { %v11000_v44 = vpop.f32.mrb[45].mxu1 }
 0xe9f   :  { %v16325_v25 = vpop.f32.mrb[46].mxu1  ;;  %16509 = vmatpush3.bf16.msra.mxu1 %v18198_v35 }
 0xea0   :  { %v11002_v29 = vpop.f32.mrb[47].mxu1 }
 0xea2   :  { %16447 = vmatmul.mubr.msk.bf16.gmra.mrb[104].mxu1 %vm8579_vm0, %v21211_v11 }
 0xea3   :  { %16450 = vmatprep.mubr.msk.bf16.mxu1 %vm8579_vm0, %v21215_v63 }
 0xeaa   :  { %16451 = vmatmul.mubr.msk.bf16.gmra.mrb[108].mxu1 %vm8579_vm0, %v21219_v24 }
 0xeab   :  { %16454 = vmatprep.mubr.msk.bf16.mxu1 %vm8579_vm0, %v21223_v2 }
 0xeb2   :  { %16455 = vmatmul.mubr.msk.bf16.gmra.mrb[112].mxu1 %vm8579_vm0, %v21307_v33 }
 0xeb3   :  { %16458 = vmatprep.mubr.msk.bf16.mxu1 %vm8579_vm0, %v21311_v20 }
 0xeb5   :  { %v16336_v4 = vpop.f32.mrb[48].mxu1 }
 0xeb6   :  { %v11044_v17 = vpop.f32.mrb[49].mxu1 }
 0xeb7   :  { %v16337_v36 = vpop.f32.mrb[50].mxu1 }
 0xeb8   :  { %v11046_v38 = vpop.f32.mrb[51].mxu1  ;;  %v12076_v36 = vld [vmem:[#allocation3 + $0x138] sm:$0xff] }
 0xeba   :  { %16459 = vmatmul.mubr.msk.bf16.gmra.mrb[116].mxu1 %vm8579_vm0, %v21315_v42 }
 0xebb   :  { %16462 = vmatprep.mubr.msk.bf16.mxu1 %vm8579_vm0, %v21319_v21 }
 0xebd   :  { %v16340_v0 = vpop.f32.mrb[52].mxu1 }
 0xebe   :  { %v11056_v54 = vpop.f32.mrb[53].mxu1 }
 0xebf   :  { %v16341_v6 = vpop.f32.mrb[54].mxu1 }
 0xec0   :  { %v11058_v49 = vpop.f32.mrb[55].mxu1 }
 0xec2   :  { %16463 = vmatmul.mubr.msk.bf16.gmra.mrb[120].mxu1 %vm8579_vm0, %v21323_v19 }
 0xec3   :  { %16466 = vmatprep.mubr.msk.bf16.mxu1 %vm8579_vm0, %v21327_v59 }
 0xeca   :  { %16467 = vmatmul.mubr.msk.bf16.gmra.mrb[124].mxu1 %vm8579_vm0, %v21331_v27 }
 0xecb   :  { %16470 = vmatprep.mubr.msk.bf16.mxu1 %vm8579_vm0, %v21489_v50 }
 0xed2   :  { %16471 = vmatmul.mubr.msk.bf16.gmra.mrb[128].mxu1 %vm8579_vm0, %v21121_v46  ;;  %v18233_v46 = vmov 0.0  }
 0xed3   :  { %16474 = vmatprep.mubr.msk.bf16.mxu1 %vm8579_vm0, %v21125_v26  ;;  %16574 = vmatprep.subr.bf16.mxu1 %v18233_v46 }
 0xed5   :  { %v16352_v16 = vpop.f32.mrb[56].mxu1 }
 0xed6   :  { %v11100_v61 = vpop.f32.mrb[57].mxu1 }
 0xed7   :  { %v16353_v3 = vpop.f32.mrb[58].mxu1 }
 0xed8   :  { %v11102_v58 = vpop.f32.mrb[59].mxu1 }
 0xeda   :  { %16475 = vmatmul.mubr.msk.bf16.gmra.mrb[132].mxu1 %vm8579_vm0, %v21129_v13 }
 0xedb   :  { %16478 = vmatprep.mubr.msk.bf16.mxu1 %vm8579_vm0, %v21133_v52 }
 0xedd   :  { %v16356_v40 = vpop.f32.mrb[60].mxu1 }
 0xede   :  { %v11112_v12 = vpop.f32.mrb[61].mxu1 }
 0xedf   :  { %v16357_v22 = vpop.f32.mrb[62].mxu1 }
 0xee0   :  { %v11114_v37 = vpop.f32.mrb[63].mxu1 }
 0xee2   :  { %16479 = vmatmul.mubr.msk.bf16.gmra.mrb[136].mxu1 %vm8579_vm0, %v21137_v32 }
 0xee3   :  { %16482 = vmatprep.mubr.msk.bf16.mxu1 %vm8579_vm0, %v21141_v51 }
 0xeea   :  { %16483 = vmatmul.mubr.msk.bf16.gmra.mrb[140].mxu1 %vm8579_vm0, %v21255_v1 }
 0xeeb   :  { %16486 = vmatprep.mubr.msk.bf16.mxu1 %vm8579_vm0, %v21351_v5 }
 0xef2   :  { %16487 = vmatmul.mubr.msk.bf16.gmra.mrb[144].mxu1 %vm8579_vm0, %v21423_v7 }
 0xef3   :  { %16490 = vmatprep.mubr.msk.bf16.mxu1 %vm8579_vm0, %v21427_v60 }
 0xef5   :  { %v16376_v26 = vpop.f32.mrb[64].mxu1 }
 0xef6   :  { %v11382_v13 = vpop.f32.mrb[65].mxu1 }
 0xef7   :  { %v16377_v52 = vpop.f32.mrb[66].mxu1 }
 0xef8   :  { %v11384_v32 = vpop.f32.mrb[67].mxu1 }
 0xefa   :  { %16491 = vmatmul.mubr.msk.bf16.gmra.mrb[148].mxu1 %vm8579_vm0, %v21431_v48 }
 0xefb   :  { %16494 = vmatprep.mubr.msk.bf16.mxu1 %vm8579_vm0, %v21435_v15 }
 0xefd   :  { %v16380_v51 = vpop.f32.mrb[68].mxu1 }
 0xefe   :  { %v11394_v57 = vpop.f32.mrb[69].mxu1 }
 0xeff   :  { %v16381_v47 = vpop.f32.mrb[70].mxu1 }
 0xf00   :  { %v11396_v43 = vpop.f32.mrb[71].mxu1 }
 0xf02   :  { %16495 = vmatmul.mubr.msk.bf16.gmra.mrb[152].mxu1 %vm8579_vm0, %v21439_v39 }
 0xf03   :  { %16498 = vmatprep.mubr.msk.bf16.mxu1 %vm8579_vm0, %v21443_v28 }
 0xf0a   :  { %16499 = vmatmul.mubr.msk.bf16.gmra.mrb[156].mxu1 %vm8579_vm0, %v21522_v55 }
 0xf0b   :  { %16510 = vmatprep.mubr.msk.bf16.mxu1 %vm8579_vm0, %v21195_v45 }
 0xf12   :  { %16511 = vmatmul.mubr.msk.bf16.vlgmr.msra.gmra.mrb[96].mxu1 %vm8579_vm0, %v21199_v9 }
 0xf13   :  { %16514 = vmatprep.mubr.msk.bf16.mxu1 %vm8579_vm0, %v21203_v41  ;;  %16575 = vmatpush3.bf16.msra.mxu1 %v18199_v10  ;;  %v18200_v41 = vld [vmem:[%s21869_s7 + $0x18] sm:$0xff]  }
 0xf14   :  { %16576 = vmatprep.subr.bf16.mxu1 %v18233_v46 }
 0xf15   :  { %v16392_v23 = vpop.f32.mrb[72].mxu1 }
 0xf16   :  { %v11438_v30 = vpop.f32.mrb[73].mxu1 }
 0xf17   :  { %v16393_v53 = vpop.f32.mrb[74].mxu1  ;;  %16577 = vmatpush3.bf16.msra.mxu1 %v18200_v41  ;;  %v21596_v30 = vld [vmem:[%s21870_s6] ss:$0 sm:$0xff] }
 0xf18   :  { %v11440_v31 = vpop.f32.mrb[75].mxu1  ;;  %16582 = vmatprep.subr.bf16.mxu1 %v18233_v46 }
 0xf1a   :  { %16515 = vmatmul.mubr.msk.bf16.gmra.mrb[100].mxu1 %vm8579_vm0, %v21207_v18 }
 0xf1b   :  { %16518 = vmatprep.mubr.msk.bf16.mxu1 %vm8579_vm0, %v21211_v11 }
 0xf1d   :  { %v16396_v45 = vpop.f32.mrb[76].mxu1 }
 0xf1e   :  { %v11450_v56 = vpop.f32.mrb[77].mxu1 }
 0xf1f   :  { %v16397_v62 = vpop.f32.mrb[78].mxu1 }
 0xf20   :  { %v11452_v9 = vpop.f32.mrb[79].mxu1 }
 0xf22   :  { %16519 = vmatmul.mubr.msk.bf16.gmra.mrb[160].mxu1 %vm8579_vm0, %v21215_v63 }
 0xf23   :  { %16522 = vmatprep.mubr.msk.bf16.mxu1 %vm8579_vm0, %v21219_v24 }
 0xf2a   :  { %16523 = vmatmul.mubr.msk.bf16.gmra.mrb[164].mxu1 %vm8579_vm0, %v21223_v2 }
 0xf2b   :  { %16526 = vmatprep.mubr.msk.bf16.mxu1 %vm8579_vm0, %v21307_v33 }
 0xf32   :  { %16527 = vmatmul.mubr.msk.bf16.gmra.mrb[112].mxu1 %vm8579_vm0, %v21311_v20  ;;  %v12071_v20 = vld [vmem:[#allocation3 + $0x110] sm:$0xff] }
 0xf33   :  { %16530 = vmatprep.mubr.msk.bf16.mxu1 %vm8579_vm0, %v21315_v42  ;;  %v12072_v42 = vld [vmem:[#allocation3 + $0x118] sm:$0xff] }
 0xf35   :  { %v16408_v18 = vpop.f32.mrb[80].mxu1 }
 0xf36   :  { %v11494_v11 = vpop.f32.mrb[81].mxu1 }
 0xf37   :  { %v16409_v63 = vpop.f32.mrb[82].mxu1 }
 0xf38   :  { %v11496_v8 = vpop.f32.mrb[83].mxu1 }
 0xf3a   :  { %16531 = vmatmul.mubr.msk.bf16.gmra.mrb[116].mxu1 %vm8579_vm0, %v21319_v21  ;;  %v12073_v21 = vld [vmem:[#allocation3 + $0x120] sm:$0xff] }
 0xf3b   :  { %16534 = vmatprep.mubr.msk.bf16.mxu1 %vm8579_vm0, %v21323_v19 }
 0xf3d   :  { %v16412_v24 = vpop.f32.mrb[84].mxu1 }
 0xf3e   :  { %v11506_v2 = vpop.f32.mrb[85].mxu1 }
 0xf3f   :  { %v16413_v34 = vpop.f32.mrb[86].mxu1  ;;  %v18201_v2 = vld [vmem:[%s21869_s7] sm:$0xff]  }
 0xf40   :  { %v11508_v33 = vpop.f32.mrb[87].mxu1 }
 0xf42   :  { %16535 = vmatmul.mubr.msk.bf16.gmra.mrb[168].mxu1 %vm8579_vm0, %v21327_v59  ;;  %v12074_v59 = vld [vmem:[#allocation3 + $0x128] sm:$0xff] }
 0xf43   :  { %16538 = vmatprep.mubr.msk.bf16.mxu1 %vm8579_vm0, %v21331_v27  ;;  %v12075_v27 = vld [vmem:[#allocation3 + $0x130] sm:$0xff] }
 0xf4a   :  { %16539 = vmatmul.mubr.msk.bf16.gmra.mrb[172].mxu1 %vm8579_vm0, %v21489_v50 }
 0xf4b   :  { %16542 = vmatprep.mubr.msk.bf16.mxu1 %vm8579_vm0, %v12071_v20 }
 0xf52   :  { %16543 = vmatmul.mubr.msk.bf16.gmra.mrb[128].mxu1 %vm8579_vm0, %v12072_v42 }
 0xf53   :  { %16546 = vmatprep.mubr.msk.bf16.mxu1 %vm8579_vm0, %v12073_v21 }
 0xf55   :  { %v16424_v19 = vpop.f32.mrb[88].mxu1 }
 0xf56   :  { %v11550_v35 = vpop.f32.mrb[89].mxu1 }
 0xf57   :  { %v16425_v14 = vpop.f32.mrb[90].mxu1 }
 0xf58   :  { %v11552_v44 = vpop.f32.mrb[91].mxu1  ;;  %v18202_v14 = vld [vmem:[%s21869_s7 + $0x8] sm:$0xff]  }
 0xf5a   :  { %16547 = vmatmul.mubr.msk.bf16.gmra.mrb[132].mxu1 %vm8579_vm0, %v12074_v59 }
 0xf5b   :  { %16550 = vmatprep.mubr.msk.bf16.mxu1 %vm8579_vm0, %v12075_v27 }
 0xf5d   :  { %v16428_v25 = vpop.f32.mrb[92].mxu1 }
 0xf5e   :  { %v11562_v29 = vpop.f32.mrb[93].mxu1 }
 0xf5f   :  { %v16429_v4 = vpop.f32.mrb[94].mxu1 }
 0xf60   :  { %v11564_v17 = vpop.f32.mrb[95].mxu1 }
 0xf62   :  { %16551 = vmatmul.mubr.msk.bf16.gmra.mrb[176].mxu1 %vm8579_vm0, %v12076_v36  ;;  %v18203_v36 = vld [vmem:[%s21869_s7 + $0x20] sm:$0xff]  }
 0xf63   :  { %16554 = vmatprep.mubr.msk.bf16.mxu1 %vm8579_vm0, %v21255_v1 }
 0xf6a   :  { %16555 = vmatmul.mubr.msk.bf16.gmra.mrb[180].mxu1 %vm8579_vm0, %v21351_v5 }
 0xf6b   :  { %16558 = vmatprep.mubr.msk.bf16.mxu1 %vm8579_vm0, %v21423_v7 }
 0xf72   :  { %16559 = vmatmul.mubr.msk.bf16.gmra.mrb[144].mxu1 %vm8579_vm0, %v21427_v60  ;;  %v12086_v60 = vld [vmem:[#allocation3 + $0x188] sm:$0xff] }
 0xf73   :  { %16562 = vmatprep.mubr.msk.bf16.mxu1 %vm8579_vm0, %v21431_v48 }
 0xf75   :  { %v16448_v38 = vpop.f32.mrb[104].mxu1 }
 0xf76   :  { %v11832_v0 = vpop.f32.mrb[105].mxu1 }
 0xf77   :  { %v16449_v54 = vpop.f32.mrb[106].mxu1 }
 0xf78   :  { %v11834_v6 = vpop.f32.mrb[107].mxu1 }
 0xf7a   :  { %16563 = vmatmul.mubr.msk.bf16.gmra.mrb[148].mxu1 %vm8579_vm0, %v21435_v15 }
 0xf7b   :  { %16566 = vmatprep.mubr.msk.bf16.mxu1 %vm8579_vm0, %v21439_v39 }
 0xf7d   :  { %v16452_v1 = vpop.f32.mrb[108].mxu1 }
 0xf7e   :  { %v11844_v5 = vpop.f32.mrb[109].mxu1 }
 0xf7f   :  { %v16453_v49 = vpop.f32.mrb[110].mxu1  ;;  %v18204_v5 = vld [vmem:[%s21869_s7 + $0x28] sm:$0xff]  }
 0xf80   :  { %v11846_v7 = vpop.f32.mrb[111].mxu1 }
 0xf81   :  { %v18205_v7 = vld [vmem:[%s21869_s7 + $0x30] sm:$0xff]  }
 0xf82   :  { %16567 = vmatmul.mubr.msk.bf16.gmra.mrb[184].mxu1 %vm8579_vm0, %v21443_v28 }
 0xf83   :  { %16570 = vmatprep.mubr.msk.bf16.mxu1 %vm8579_vm0, %v21522_v55 }
 0xf8a   :  { %16571 = vmatmul.mubr.msk.bf16.gmra.mrb[188].mxu1 %vm8579_vm0, %v12086_v60 }
 0xf8b   :  { %16578 = vmatprep.mubr.msk.bf16.mxu1 %vm18234_vm1, %v18233_v46 }
 0xf95   :  { %v16464_v48 = vpop.f32.mrb[120].mxu1 }
 0xf96   :  { %v11888_v15 = vpop.f32.mrb[121].mxu1 }
 0xf97   :  { %v16465_v39 = vpop.f32.mrb[122].mxu1 }
 0xf98   :  { %v11890_v50 = vpop.f32.mrb[123].mxu1  ;;  %v18206_v39 = vld [vmem:[%s21869_s7 + $0x38] sm:$0xff]  }
 0xf9d   :  { %v16468_v16 = vpop.f32.mrb[124].mxu1 }
 0xf9e   :  { %v11900_v61 = vpop.f32.mrb[125].mxu1  ;;  %v18207_v16 = vld [vmem:[%s21869_s7 + $0x40] sm:$0xff]  }
 0xf9f   :  { %v16469_v3 = vpop.f32.mrb[126].mxu1 }
 0xfa0   :  { %v11902_v58 = vpop.f32.mrb[127].mxu1 }
 0xfb5   :  { %v16480_v40 = vpop.f32.mrb[136].mxu1 }
 0xfb6   :  { %v11944_v28 = vpop.f32.mrb[137].mxu1 }
 0xfb7   :  { %v16481_v12 = vpop.f32.mrb[138].mxu1 }
 0xfb8   :  { %v11946_v22 = vpop.f32.mrb[139].mxu1  ;;  %v18208_v12 = vld [vmem:[%s21869_s7 + $0x48] sm:$0xff]  }
 0xfbd   :  { %v16484_v37 = vpop.f32.mrb[140].mxu1 }
 0xfbe   :  { %v11956_v26 = vpop.f32.mrb[141].mxu1 }
 0xfbf   :  { %v16485_v13 = vpop.f32.mrb[142].mxu1 }
 0xfc0   :  { %v11958_v52 = vpop.f32.mrb[143].mxu1 }
 0xfd5   :  { %v16496_v32 = vpop.f32.mrb[152].mxu1 }
 0xfd6   :  { %v12000_v51 = vpop.f32.mrb[153].mxu1 }
 0xfd7   :  { %v16497_v57 = vpop.f32.mrb[154].mxu1 }
 0xfd8   :  { %v12002_v47 = vpop.f32.mrb[155].mxu1 }
 0xfd9   :  { %v18209_v47 = vld [vmem:[%s21869_s7 + $0x50] sm:$0xff]  }
 0xfdd   :  { %v16500_v43 = vpop.f32.mrb[156].mxu1 }
 0xfde   :  { %v12012_v55 = vpop.f32.mrb[157].mxu1 }
 0xfdf   :  { %v16501_v10 = vpop.f32.mrb[158].mxu1 }
 0xfe0   :  { %v12014_v23 = vpop.f32.mrb[159].mxu1 }
 0xfe5   :  { %v16512_v53 = vpop.f32.mrb[96].mxu1 }
 0xfe6   :  { %v12514_v31 = vadd.f32 %v16512_v53, %v21596_v30  ;;  %v12250_v45 = vpop.f32.mrb[97].mxu1 }
 0xfe7   :  { %v12512_v56 = vadd.f32 %v21596_v30, %v12250_v45  ;;  %v16513_v62 = vpop.f32.mrb[98].mxu1 }
 0xfe8   :  { %v12515_v9 = vadd.f32 %v16513_v62, %v21596_v30  ;;  %v12253_v41 = vpop.f32.mrb[99].mxu1  ;;  %v12546_v11 = vmax.f32 %v12514_v31, 0.0  ;;  %v18210_v62 = vld [vmem:[%s21869_s7 + $0x58] sm:$0xff]  }
 0xfe9   :  { %v12513_v18 = vadd.f32 %v21596_v30, %v12253_v41  ;;  %v12544_v8 = vmax.f32 %v12512_v56, 0.0 }
 0xfea   :  { %v12547_v63 = vmax.f32 %v12515_v9, 0.0 }
 0xfeb   :  { %v12545_v24 = vmax.f32 %v12513_v18, 0.0 }
 0xfec   :  { %v12577_v34 = vpack.c.bf16 %v12547_v63, %v12546_v11 }
 0xfed   :  { %v12576_v33 = vpack.c.bf16 %v12545_v24, %v12544_v8  ;;  %v16516_v20 = vpop.f32.mrb[100].mxu1  ;;  %v18211_v24 = vld [vmem:[%s21869_s7 + $0x60] sm:$0xff]  }
 0xfee   :  { %v12518_v42 = vadd.f32 %v16516_v20, %v21596_v30  ;;  %v12266_v21 = vpop.f32.mrb[101].mxu1  ;;  %16579 = vmatmul.mubr.msk.bf16.vlgmr.msra.gmra.mrb[192].mxu1 %vm12613_vm2, %v12577_v34 }
 0xfef   :  { %v12516_v19 = vadd.f32 %v21596_v30, %v12266_v21  ;;  %v16517_v35 = vpop.f32.mrb[102].mxu1  ;;  %16583 = vmatpush3.bf16.msra.mxu1 %v18201_v2  ;;  %16586 = vmatprep.mubr.msk.bf16.mxu1 %vm18234_vm1, %v18233_v46  ;;  %v18212_v21 = vld [vmem:[%s21869_s7 + $0x68] sm:$0xff]  }
 0xff0   :  { %v12519_v44 = vadd.f32 %v16517_v35, %v21596_v30  ;;  %v12269_v59 = vpop.f32.mrb[103].mxu1  ;;  %16584 = vmatprep.subr.bf16.mxu1 %v18233_v46  ;;  %v12550_v25 = vmax.f32 %v12518_v42, 0.0 }
 0xff1   :  { %v12517_v27 = vadd.f32 %v21596_v30, %v12269_v59  ;;  %v12548_v4 = vmax.f32 %v12516_v19, 0.0  ;;  %v18213_v19 = vld [vmem:[%s21869_s7 + $0x70] sm:$0xff]  }
 0xff2   :  { %v12551_v29 = vmax.f32 %v12519_v44, 0.0 }
 0xff3   :  { %v12549_v17 = vmax.f32 %v12517_v27, 0.0  ;;  %16585 = vmatpush3.bf16.msra.mxu1 %v18202_v14  ;;  %v18214_v27 = vld [vmem:[%s21869_s7 + $0x78] sm:$0xff]  }
 0xff4   :  { %v12579_v38 = vpack.c.bf16 %v12551_v29, %v12550_v25  ;;  %16590 = vmatprep.subr.bf16.mxu1 %v18233_v46  ;;  %v18215_v25 = vld [vmem:[%s21869_s7 + $0x80] sm:$0xff]  }
 0xff5   :  { %v12578_v0 = vpack.c.bf16 %v12549_v17, %v12548_v4  ;;  %v16520_v54 = vpop.f32.mrb[160].mxu1 }
 0xff6   :  { %v12282_v6 = vpop.f32.mrb[161].mxu1  ;;  %16587 = vmatmul.mubr.msk.bf16.vlgmr.msra.gmra.mrb[196].mxu1 %vm12613_vm2, %v12576_v33 }
 0xff7   :  { %v16521_v1 = vpop.f32.mrb[162].mxu1  ;;  %16591 = vmatpush3.bf16.msra.mxu1 %v18203_v36  ;;  %16594 = vmatprep.mubr.msk.bf16.mxu1 %vm18234_vm1, %v18233_v46  ;;  %v18216_v6 = vld [vmem:[%s21869_s7 + $0x88] sm:$0xff]  }
 0xff8   :  { %v12284_v49 = vpop.f32.mrb[163].mxu1  ;;  %16592 = vmatprep.subr.bf16.mxu1 %v18233_v46 }
 0xffb   :  { %16593 = vmatpush3.bf16.msra.mxu1 %v18204_v5 }
 0xffc   :  { %16598 = vmatprep.subr.bf16.mxu1 %v18233_v46 }
 0xffd   :  { %v16524_v60 = vpop.f32.mrb[164].mxu1 }
 0xffe   :  { %v12294_v48 = vpop.f32.mrb[165].mxu1  ;;  %16595 = vmatmul.mubr.msk.bf16.vlgmr.msra.gmra.mrb[200].mxu1 %vm12613_vm2, %v12578_v0 }
 0xfff   :  { %v16525_v15 = vpop.f32.mrb[166].mxu1  ;;  %16599 = vmatpush3.bf16.msra.mxu1 %v18205_v7  ;;  %16602 = vmatprep.mubr.msk.bf16.mxu1 %vm18234_vm1, %v18233_v46 }
0x1000   :  { %v12296_v50 = vpop.f32.mrb[167].mxu1  ;;  %16600 = vmatprep.subr.bf16.mxu1 %v18233_v46  ;;  %v18217_v15 = vld [vmem:[%s21869_s7 + $0x90] sm:$0xff]  }
0x1003   :  { %16601 = vmatpush3.bf16.msra.mxu1 %v18206_v39 }
0x1004   :  { %16606 = vmatprep.subr.bf16.mxu1 %v18233_v46 }
0x1005   :  { %v16528_v61 = vpop.f32.mrb[112].mxu1 }
0x1006   :  { %v12522_v3 = vadd.f32 %v16528_v61, %v21596_v30  ;;  %v12306_v58 = vpop.f32.mrb[113].mxu1  ;;  %16603 = vmatmul.mubr.msk.bf16.vlgmr.msra.gmra.mrb[204].mxu1 %vm12613_vm2, %v12579_v38 }
0x1007   :  { %v12520_v40 = vadd.f32 %v21596_v30, %v12306_v58  ;;  %v16529_v28 = vpop.f32.mrb[114].mxu1  ;;  %16607 = vmatpush3.bf16.msra.mxu1 %v18207_v16  ;;  %16610 = vmatprep.mubr.msk.bf16.mxu1 %vm18234_vm1, %v18233_v46 }
0x1008   :  { %v12523_v22 = vadd.f32 %v16529_v28, %v21596_v30  ;;  %v12309_v37 = vpop.f32.mrb[115].mxu1  ;;  %16608 = vmatprep.subr.bf16.mxu1 %v18233_v46  ;;  %v12554_v13 = vmax.f32 %v12522_v3, 0.0 }
0x1009   :  { %v12521_v26 = vadd.f32 %v21596_v30, %v12309_v37  ;;  %v12552_v32 = vmax.f32 %v12520_v40, 0.0 }
0x100a   :  { %v12555_v52 = vmax.f32 %v12523_v22, 0.0 }
0x100b   :  { %v12553_v51 = vmax.f32 %v12521_v26, 0.0  ;;  %16609 = vmatpush3.bf16.msra.mxu1 %v18208_v12  ;;  %v18218_v12 = vld [vmem:[%s21869_s7 + $0x98] sm:$0xff]  }
0x100c   :  { %v12581_v57 = vpack.c.bf16 %v12555_v52, %v12554_v13  ;;  %16614 = vmatprep.subr.bf16.mxu1 %v18233_v46 }
0x100d   :  { %v12580_v43 = vpack.c.bf16 %v12553_v51, %v12552_v32  ;;  %v16532_v55 = vpop.f32.mrb[116].mxu1  ;;  %v18219_v51 = vld [vmem:[%s21869_s7 + $0xa0] sm:$0xff]  }
0x100e   :  { %v12526_v10 = vadd.f32 %v16532_v55, %v21596_v30  ;;  %v12322_v23 = vpop.f32.mrb[117].mxu1 }
0x100f   :  { %v12524_v53 = vadd.f32 %v21596_v30, %v12322_v23  ;;  %v16533_v31 = vpop.f32.mrb[118].mxu1  ;;  %16611 = vmatmul.mubr.msk.bf16.vlgmr.msra.gmra.mrb[208].mxu1 %vm12613_vm2, %v12580_v43  ;;  %v18220_v23 = vld [vmem:[%s21869_s7 + $0xa8] sm:$0xff]  }
0x1010   :  { %v12527_v45 = vadd.f32 %v16533_v31, %v21596_v30  ;;  %v12325_v56 = vpop.f32.mrb[119].mxu1  ;;  %16615 = vmatpush3.bf16.msra.mxu1 %v18209_v47  ;;  %16618 = vmatprep.mubr.msk.bf16.mxu1 %vm18234_vm1, %v18233_v46  ;;  %v12558_v41 = vmax.f32 %v12526_v10, 0.0 }
0x1011   :  { %v12525_v9 = vadd.f32 %v21596_v30, %v12325_v56  ;;  %16616 = vmatprep.subr.bf16.mxu1 %v18233_v46  ;;  %v12556_v11 = vmax.f32 %v12524_v53, 0.0  ;;  %v18221_v53 = vld [vmem:[%s21869_s7 + $0xb0] sm:$0xff]  }
0x1012   :  { %v12559_v18 = vmax.f32 %v12527_v45, 0.0 }
0x1013   :  { %v12557_v63 = vmax.f32 %v12525_v9, 0.0  ;;  %v18222_v9 = vld [vmem:[%s21869_s7 + $0xb8] sm:$0xff]  }
0x1014   :  { %v12583_v8 = vpack.c.bf16 %v12559_v18, %v12558_v41  ;;  %16617 = vmatpush3.bf16.msra.mxu1 %v18210_v62  ;;  %v18223_v41 = vld [vmem:[%s21869_s7 + $0xc0] sm:$0xff]  }
0x1015   :  { %v12582_v2 = vpack.c.bf16 %v12557_v63, %v12556_v11  ;;  %v16536_v34 = vpop.f32.mrb[168].mxu1  ;;  %16622 = vmatprep.subr.bf16.mxu1 %v18233_v46 }
0x1016   :  { %v12338_v33 = vpop.f32.mrb[169].mxu1 }
0x1017   :  { %v16537_v20 = vpop.f32.mrb[170].mxu1  ;;  %16619 = vmatmul.mubr.msk.bf16.vlgmr.msra.gmra.mrb[212].mxu1 %vm12613_vm2, %v12581_v57  ;;  %v18224_v33 = vld [vmem:[%s21869_s7 + $0xc8] sm:$0xff]  }
0x1018   :  { %v12340_v42 = vpop.f32.mrb[171].mxu1  ;;  %16623 = vmatpush3.bf16.msra.mxu1 %v18211_v24  ;;  %16626 = vmatprep.mubr.msk.bf16.mxu1 %vm18234_vm1, %v18233_v46 }
0x1019   :  { %16624 = vmatprep.subr.bf16.mxu1 %v18233_v46 }
0x101c   :  { %16625 = vmatpush3.bf16.msra.mxu1 %v18212_v21 }
0x101d   :  { %v16540_v35 = vpop.f32.mrb[172].mxu1  ;;  %16630 = vmatprep.subr.bf16.mxu1 %v18233_v46 }
0x101e   :  { %v12350_v14 = vpop.f32.mrb[173].mxu1 }
0x101f   :  { %v16541_v44 = vpop.f32.mrb[174].mxu1  ;;  %16627 = vmatmul.mubr.msk.bf16.vlgmr.msra.gmra.mrb[216].mxu1 %vm12613_vm2, %v12582_v2 }
0x1020   :  { %v12352_v59 = vpop.f32.mrb[175].mxu1  ;;  %16631 = vmatpush3.bf16.msra.mxu1 %v18213_v19  ;;  %16634 = vmatprep.mubr.msk.bf16.mxu1 %vm18234_vm1, %v18233_v46  ;;  %v18225_v44 = vld [vmem:[%s21869_s7 + $0xd0] sm:$0xff]  }
0x1021   :  { %16632 = vmatprep.subr.bf16.mxu1 %v18233_v46 }
0x1024   :  { %16633 = vmatpush3.bf16.msra.mxu1 %v18214_v27 }
0x1025   :  { %v16544_v29 = vpop.f32.mrb[128].mxu1  ;;  %16638 = vmatprep.subr.bf16.mxu1 %v18233_v46 }
0x1026   :  { %v12530_v4 = vadd.f32 %v16544_v29, %v21596_v30  ;;  %v12362_v17 = vpop.f32.mrb[129].mxu1 }
0x1027   :  { %v12528_v36 = vadd.f32 %v21596_v30, %v12362_v17  ;;  %v16545_v38 = vpop.f32.mrb[130].mxu1  ;;  %16635 = vmatmul.mubr.msk.bf16.vlgmr.msra.gmra.mrb[220].mxu1 %vm12613_vm2, %v12583_v8 }
0x1028   :  { %v12531_v0 = vadd.f32 %v16545_v38, %v21596_v30  ;;  %v12365_v54 = vpop.f32.mrb[131].mxu1  ;;  %16639 = vmatpush3.bf16.msra.mxu1 %v18215_v25  ;;  %16642 = vmatprep.mubr.msk.bf16.mxu1 %vm18234_vm1, %v18233_v46  ;;  %v12562_v5 = vmax.f32 %v12530_v4, 0.0 }
0x1029   :  { %v12529_v1 = vadd.f32 %v21596_v30, %v12365_v54  ;;  %16640 = vmatprep.subr.bf16.mxu1 %v18233_v46  ;;  %v12560_v7 = vmax.f32 %v12528_v36, 0.0 }
0x102a   :  { %v12563_v49 = vmax.f32 %v12531_v0, 0.0  ;;  %v18226_v0 = vld [vmem:[%s21869_s7 + $0xd8] sm:$0xff]  }
0x102b   :  { %v12561_v60 = vmax.f32 %v12529_v1, 0.0 }
0x102c   :  { %v12585_v48 = vpack.c.bf16 %v12563_v49, %v12562_v5  ;;  %16641 = vmatpush3.bf16.msra.mxu1 %v18216_v6 }
0x102d   :  { %v12584_v39 = vpack.c.bf16 %v12561_v60, %v12560_v7  ;;  %v16548_v50 = vpop.f32.mrb[132].mxu1  ;;  %16646 = vmatprep.subr.bf16.mxu1 %v18233_v46  ;;  %v18227_v60 = vld [vmem:[%s21869_s7 + $0xe0] sm:$0xff]  }
0x102e   :  { %v12534_v16 = vadd.f32 %v16548_v50, %v21596_v30  ;;  %v12378_v61 = vpop.f32.mrb[133].mxu1 }
0x102f   :  { %v12532_v3 = vadd.f32 %v21596_v30, %v12378_v61  ;;  %v16549_v58 = vpop.f32.mrb[134].mxu1  ;;  %16643 = vmatmul.mubr.msk.bf16.vlgmr.msra.gmra.mrb[224].mxu1 %vm12613_vm2, %v12584_v39  ;;  %v18229_v61 = vld [vmem:[%s21869_s7 + $0xf0] sm:$0xff]  }
0x1030   :  { %v12535_v40 = vadd.f32 %v16549_v58, %v21596_v30  ;;  %v12381_v28 = vpop.f32.mrb[135].mxu1  ;;  %16647 = vmatpush3.bf16.msra.mxu1 %v18217_v15  ;;  %16650 = vmatprep.mubr.msk.bf16.mxu1 %vm18234_vm1, %v18233_v46  ;;  %v12566_v37 = vmax.f32 %v12534_v16, 0.0  ;;  %v18228_v16 = vld [vmem:[%s21869_s7 + $0xe8] sm:$0xff]  }
0x1031   :  { %v12533_v22 = vadd.f32 %v21596_v30, %v12381_v28  ;;  %16648 = vmatprep.subr.bf16.mxu1 %v18233_v46  ;;  %v12564_v13 = vmax.f32 %v12532_v3, 0.0  ;;  %v18230_v28 = vld [vmem:[%s21869_s7 + $0xf8] sm:$0xff]  }
0x1032   :  { %v12567_v26 = vmax.f32 %v12535_v40, 0.0 }
0x1033   :  { %v12565_v52 = vmax.f32 %v12533_v22, 0.0  ;;  %v13607_v22 = vld [vmem:[%s21871_s9] sm:$0xff] }
0x1034   :  { %v12587_v32 = vpack.c.bf16 %v12567_v26, %v12566_v37  ;;  %16649 = vmatpush3.bf16.msra.mxu1 %v18218_v12  ;;  %v13608_v37 = vld [vmem:[%s21871_s9 + $0x8] sm:$0xff] }
0x1035   :  { %v12586_v57 = vpack.c.bf16 %v12565_v52, %v12564_v13  ;;  %v16552_v47 = vpop.f32.mrb[176].mxu1  ;;  %16654 = vmatprep.subr.bf16.mxu1 %v18233_v46  ;;  %v16713_v26 = vpack.c.bf16 %v13608_v37, %v13607_v22  ;;  %v13609_v13 = vld [vmem:[%s21871_s9 + $0x10] sm:$0xff] }
0x1036   :  { %v12394_v43 = vpop.f32.mrb[177].mxu1  ;;  %v500_v47 = vld [vmem:[%s21864_s0 + $0xe58] sm:$0xff] }
0x1037   :  { %v16553_v55 = vpop.f32.mrb[178].mxu1  ;;  %16651 = vmatmul.mubr.msk.bf16.vlgmr.msra.gmra.mrb[228].mxu1 %vm12613_vm2, %v12585_v48  ;;  %v504_v43 = vld [vmem:[%s21864_s0 + $0xe78] sm:$0xff] }
0x1038   :  { %v12396_v10 = vpop.f32.mrb[179].mxu1  ;;  %16655 = vmatpush3.bf16.msra.mxu1 %v18219_v51  ;;  %16658 = vmatprep.mubr.msk.bf16.mxu1 %vm18234_vm1, %v18233_v46  ;;  %v508_v55 = vld [vmem:[%s21864_s0 + $0xe98] sm:$0xff] }
0x1039   :  { %16656 = vmatprep.subr.bf16.mxu1 %v18233_v46 }
0x103c   :  { %16657 = vmatpush3.bf16.msra.mxu1 %v18220_v23  ;;  %v14180_v23 = vcombine.low %v500_v47, %v504_v43 }
0x103d   :  { %v16556_v31 = vpop.f32.mrb[180].mxu1  ;;  %16662 = vmatprep.subr.bf16.mxu1 %v18233_v46 }
0x103e   :  { %v12406_v45 = vpop.f32.mrb[181].mxu1  ;;  %v512_v31 = vld [vmem:[%s21864_s0 + $0xeb8] sm:$0xff] }
0x103f   :  { %v16557_v56 = vpop.f32.mrb[182].mxu1  ;;  %16659 = vmatmul.mubr.msk.bf16.vlgmr.msra.gmra.mrb[232].mxu1 %vm12613_vm2, %v12586_v57  ;;  %v16_v45 = vstv %s21872_s10 }
0x1040   :  { %v12408_v62 = vpop.f32.mrb[183].mxu1  ;;  %16663 = vmatpush3.bf16.msra.mxu1 %v18221_v53  ;;  %16666 = vmatprep.mubr.msk.bf16.mxu1 %vm18234_vm1, %v18233_v46  ;;  %v14181_v53 = vcombine.high %v500_v47, %v504_v43  ;;  %v14189_v56 = vcombine.high %v508_v55, %v512_v31  ;;  %17 = vst [vmem:[#allocation4] sm:$0x1] %v16_v45 }
0x1041   :  { %16664 = vmatprep.subr.bf16.mxu1 %v18233_v46 }
0x1042   :  { %5755 = vmatprep.mubr.bf16.mxu0 %v14181_v53 }
0x1043   :  { %5756 = vmatmul.mubr.bf16.gmra.mrb[228].mxu0 %v14180_v23 }
0x1044   :  { %16665 = vmatpush3.bf16.msra.mxu1 %v18222_v9  ;;  %5763 = vmatprep.mubr.bf16.mxu0 %v14189_v56  ;;  %v516_v9 = vld [vmem:[%s21864_s0 + $0xed8] sm:$0xff] }
0x1045   :  { %v16560_v18 = vpop.f32.mrb[144].mxu1  ;;  %16670 = vmatprep.subr.bf16.mxu1 %v18233_v46 }
0x1046   :  { %v12538_v11 = vadd.f32 %v16560_v18, %v21596_v30  ;;  %v12418_v63 = vpop.f32.mrb[145].mxu1 }
0x1047   :  { %v12536_v8 = vadd.f32 %v21596_v30, %v12418_v63  ;;  %v16561_v24 = vpop.f32.mrb[146].mxu1  ;;  %16667 = vmatmul.mubr.msk.bf16.vlgmr.msra.gmra.mrb[236].mxu1 %vm12613_vm2, %v12587_v32 }
0x1048   :  { %v12539_v2 = vadd.f32 %v16561_v24, %v21596_v30  ;;  %v12421_v34 = vpop.f32.mrb[147].mxu1  ;;  %16671 = vmatpush3.bf16.msra.mxu1 %v18223_v41  ;;  %16674 = vmatprep.mubr.msk.bf16.mxu1 %vm18234_vm1, %v18233_v46  ;;  %v12570_v42 = vmax.f32 %v12538_v11, 0.0  ;;  %v520_v41 = vld [vmem:[%s21864_s0 + $0xef8] sm:$0xff] }
0x1049   :  { %v12537_v20 = vadd.f32 %v21596_v30, %v12421_v34  ;;  %16672 = vmatprep.subr.bf16.mxu1 %v18233_v46  ;;  %v12568_v19 = vmax.f32 %v12536_v8, 0.0  ;;  %v14188_v8 = vcombine.low %v508_v55, %v512_v31  ;;  %v14197_v34 = vcombine.high %v516_v9, %v520_v41 }
0x104a   :  { %v12571_v21 = vmax.f32 %v12539_v2, 0.0 }
0x104b   :  { %v12569_v35 = vmax.f32 %v12537_v20, 0.0  ;;  %5764 = vmatmul.mubr.bf16.gmra.mrb[232].mxu0 %v14188_v8  ;;  %v524_v20 = vld [vmem:[%s21864_s0 + $0xf18] sm:$0xff] }
0x104c   :  { %v12589_v14 = vpack.c.bf16 %v12571_v21, %v12570_v42  ;;  %16673 = vmatpush3.bf16.msra.mxu1 %v18224_v33  ;;  %5771 = vmatprep.mubr.bf16.mxu0 %v14197_v34  ;;  %v528_v42 = vld [vmem:[%s21864_s0 + $0xf38] sm:$0xff] }
0x104d   :  { %v12588_v59 = vpack.c.bf16 %v12569_v35, %v12568_v19  ;;  %v16564_v27 = vpop.f32.mrb[148].mxu1  ;;  %16678 = vmatprep.subr.bf16.mxu1 %v18233_v46 }
0x104e   :  { %v12542_v25 = vadd.f32 %v16564_v27, %v21596_v30  ;;  %v12434_v29 = vpop.f32.mrb[149].mxu1  ;;  %v14205_v27 = vcombine.high %v524_v20, %v528_v42 }
0x104f   :  { %v12540_v4 = vadd.f32 %v21596_v30, %v12434_v29  ;;  %v16565_v17 = vpop.f32.mrb[150].mxu1  ;;  %16675 = vmatmul.mubr.msk.bf16.vlgmr.msra.gmra.mrb[240].mxu1 %vm12613_vm2, %v12588_v59  ;;  %v532_v29 = vld [vmem:[%s21864_s0 + $0xf58] sm:$0xff] }
0x1050   :  { %v12543_v36 = vadd.f32 %v16565_v17, %v21596_v30  ;;  %v12437_v38 = vpop.f32.mrb[151].mxu1  ;;  %16679 = vmatpush3.bf16.msra.mxu1 %v18225_v44  ;;  %16682 = vmatprep.mubr.msk.bf16.mxu1 %vm18234_vm1, %v18233_v46  ;;  %v12574_v6 = vmax.f32 %v12542_v25, 0.0 }
0x1051   :  { %v12541_v54 = vadd.f32 %v21596_v30, %v12437_v38  ;;  %16680 = vmatprep.subr.bf16.mxu1 %v18233_v46  ;;  %v12572_v5 = vmax.f32 %v12540_v4, 0.0  ;;  %v536_v4 = vld [vmem:[%s21864_s0 + $0xf78] sm:$0xff] }
0x1052   :  { %v12575_v1 = vmax.f32 %v12543_v36, 0.0 }
0x1053   :  { %v12573_v49 = vmax.f32 %v12541_v54, 0.0 }
0x1054   :  { %v12591_v7 = vpack.c.bf16 %v12575_v1, %v12574_v6  ;;  %16681 = vmatpush3.bf16.msra.mxu1 %v18226_v0  ;;  %v14204_v0 = vcombine.low %v524_v20, %v528_v42  ;;  %v14213_v1 = vcombine.high %v532_v29, %v536_v4 }
0x1055   :  { %v12590_v48 = vpack.c.bf16 %v12573_v49, %v12572_v5  ;;  %v16568_v15 = vpop.f32.mrb[184].mxu1  ;;  %16686 = vmatprep.subr.bf16.mxu1 %v18233_v46  ;;  %v540_v5 = vld [vmem:[%s21864_s0 + $0xf98] sm:$0xff] }
0x1056   :  { %v12450_v39 = vpop.f32.mrb[185].mxu1  ;;  %v544_v49 = vld [vmem:[%s21864_s0 + $0xfb8] sm:$0xff]  ;;  %v14212_v15 = vcombine.low %v532_v29, %v536_v4 }
0x1057   :  { %v16569_v50 = vpop.f32.mrb[186].mxu1  ;;  %16683 = vmatmul.mubr.msk.bf16.vlgmr.msra.gmra.mrb[244].mxu1 %vm12613_vm2, %v12589_v14  ;;  %v14196_v14 = vcombine.low %v516_v9, %v520_v41 }
0x1058   :  { %v12452_v30 = vpop.f32.mrb[187].mxu1  ;;  %16687 = vmatpush3.bf16.msra.mxu1 %v18227_v60  ;;  %16690 = vmatprep.mubr.msk.bf16.mxu1 %vm18234_vm1, %v18233_v46  ;;  %v14221_v50 = vcombine.high %v540_v5, %v544_v49 }
0x1059   :  { %16688 = vmatprep.subr.bf16.mxu1 %v18233_v46  ;;  %5772 = vmatmul.mubr.bf16.gmra.mrb[236].mxu0 %v14196_v14 }
0x105a   :  { %5779 = vmatprep.mubr.bf16.mxu0 %v14205_v27 }
0x105c   :  { %16689 = vmatpush3.bf16.msra.mxu1 %v18228_v16 }
0x105d   :  { %16694 = vmatprep.subr.bf16.mxu1 %v18233_v46  ;;  %v16572_v3 = vpop.f32.mrb[188].mxu1 }
0x105e   :  { %v12462_v58 = vpop.f32.mrb[189].mxu1  ;;  %v552_v3 = vld [vmem:[%s21864_s0 + $0xff8] sm:$0xff] }
0x105f   :  { %16691 = vmatmul.mubr.msk.bf16.vlgmr.msra.gmra.mrb[248].mxu1 %vm12613_vm2, %v12590_v48  ;;  %v16573_v40 = vpop.f32.mrb[190].mxu1 }
0x1060   :  { %16695 = vmatpush3.bf16.msra.mxu1 %v18229_v61  ;;  %16698 = vmatprep.mubr.msk.bf16.mxu1 %vm18234_vm1, %v18233_v46  ;;  %v12464_v12 = vpop.f32.mrb[191].mxu1  ;;  %v548_v61 = vld [vmem:[%s21864_s0 + $0xfd8] sm:$0xff] }
0x1061   :  { %16696 = vmatprep.subr.bf16.mxu1 %v18233_v46  ;;  %v13610_v46 = vld [vmem:[%s21871_s9 + $0x18] sm:$0xff]  ;;  %5780 = vmatmul.mubr.bf16.gmra.mrb[240].mxu0 %v14204_v0  ;;  %v14220_v12 = vcombine.low %v540_v5, %v544_v49  ;;  %v14229_v37 = vcombine.high %v548_v61, %v552_v3 }
0x1062   :  { %v16717_v52 = vpack.c.bf16 %v13610_v46, %v13609_v13  ;;  %5787 = vmatprep.mubr.bf16.mxu0 %v14213_v1 }
0x1064   :  { %16697 = vmatpush3.bf16.msra.mxu1 %v18230_v28 }
0x1065   :  { %16714 = vmatprep.subr.bf16.mxu1 %v16713_v26 }
0x1067   :  { %16699 = vmatmul.mubr.msk.bf16.vlgmr.msra.gmra.mrb[252].mxu1 %vm12613_vm2, %v12591_v7 }
0x1068   :  { %16716 = vmatpush3.bf16.msra.mxu1 %v16713_v26 }
0x1069   :  { %16718 = vmatprep.subr.bf16.mxu1 %v16717_v52  ;;  %5788 = vmatmul.mubr.bf16.gmra.mrb[244].mxu0 %v14212_v15 }
0x106a   :  { %5795 = vmatprep.mubr.bf16.mxu0 %v14221_v50 }
0x106c   :  { %16720 = vmatpush3.bf16.msra.mxu1 %v16717_v52 }
0x1071   :  { %5796 = vmatmul.mubr.bf16.gmra.mrb[248].mxu0 %v14220_v12 }
0x1072   :  { %5803 = vmatprep.mubr.bf16.mxu0 %v14229_v37 }
0x10c1   :  { %v12651_v32 = vpop.f32.mrb[192].mxu1 }
0x10c2   :  { %v16580_v51 = vpop.f32.mrb[193].mxu1 }
0x10c3   :  { %v12654_v57 = vpop.f32.mrb[194].mxu1  ;;  %v14228_v51 = vcombine.low %v548_v61, %v552_v3 }
0x10c4   :  { %v16581_v10 = vpop.f32.mrb[195].mxu1 }
0x10c5   :  { %5804 = vmatmul.mubr.bf16.gmra.mrb[252].mxu0 %v14228_v51 }
0x10c9   :  { %v12707_v62 = vpop.f32.mrb[196].mxu1 }
0x10ca   :  { %v12708_v18 = vadd.f32 %v12707_v62, %v12651_v32  ;;  %v16588_v11 = vpop.f32.mrb[197].mxu1 }
0x10cb   :  { %v12710_v63 = vpop.f32.mrb[198].mxu1 }
0x10cc   :  { %v12711_v24 = vadd.f32 %v12710_v63, %v12654_v57  ;;  %v16589_v2 = vpop.f32.mrb[199].mxu1 }
0x10d1   :  { %v12768_v33 = vpop.f32.mrb[200].mxu1 }
0x10d2   :  { %v12775_v21 = vadd.f32 %v12768_v33, %v12708_v18  ;;  %v16596_v19 = vpop.f32.mrb[201].mxu1 }
0x10d3   :  { %v12771_v35 = vpop.f32.mrb[202].mxu1 }
0x10d4   :  { %v12776_v44 = vadd.f32 %v12771_v35, %v12711_v24  ;;  %v16597_v59 = vpop.f32.mrb[203].mxu1 }
0x10d9   :  { %v12831_v25 = vpop.f32.mrb[204].mxu1 }
0x10da   :  { %v12838_v17 = vadd.f32 %v12831_v25, %v12775_v21  ;;  %v16604_v36 = vpop.f32.mrb[205].mxu1 }
0x10db   :  { %v12834_v38 = vpop.f32.mrb[206].mxu1 }
0x10dc   :  { %v12839_v54 = vadd.f32 %v12834_v38, %v12776_v44  ;;  %v16605_v6 = vpop.f32.mrb[207].mxu1 }
0x10e2   :  { %v12894_v7 = vpop.f32.mrb[208].mxu1 }
0x10e3   :  { %v12901_v60 = vadd.f32 %v12894_v7, %v12838_v17  ;;  %v16612_v48 = vpop.f32.mrb[209].mxu1 }
0x10e4   :  { %v12897_v39 = vpop.f32.mrb[210].mxu1 }
0x10e5   :  { %v12902_v30 = vadd.f32 %v12897_v39, %v12839_v54  ;;  %v16613_v16 = vpop.f32.mrb[211].mxu1 }
0x10ea   :  { %v12957_v58 = vpop.f32.mrb[212].mxu1 }
0x10eb   :  { %v12964_v40 = vadd.f32 %v12957_v58, %v12901_v60  ;;  %v16620_v28 = vpop.f32.mrb[213].mxu1  ;;  %v14872_v58 = vld [vmem:[%s21873_s8] ss:$0 sm:$0xff] }
0x10ec   :  { %v12960_v22 = vpop.f32.mrb[214].mxu1 }
0x10ed   :  { %v12965_v26 = vadd.f32 %v12960_v22, %v12902_v30  ;;  %v16621_v13 = vpop.f32.mrb[215].mxu1 }
0x10f2   :  { %v13020_v46 = vpop.f32.mrb[216].mxu1 }
0x10f3   :  { %v13027_v52 = vadd.f32 %v13020_v46, %v12964_v40  ;;  %v16628_v32 = vpop.f32.mrb[217].mxu1 }
0x10f4   :  { %v13023_v57 = vpop.f32.mrb[218].mxu1 }
0x10f5   :  { %v13028_v47 = vadd.f32 %v13023_v57, %v12965_v26  ;;  %v16629_v43 = vpop.f32.mrb[219].mxu1 }
0x10fa   :  { %v13083_v55 = vpop.f32.mrb[220].mxu1 }
0x10fb   :  { %v13090_v10 = vadd.f32 %v13083_v55, %v13027_v52  ;;  %v16636_v23 = vpop.f32.mrb[221].mxu1 }
0x10fc   :  { %v13086_v53 = vpop.f32.mrb[222].mxu1 }
0x10fd   :  { %v13091_v31 = vadd.f32 %v13086_v53, %v13028_v47  ;;  %v16637_v45 = vpop.f32.mrb[223].mxu1 }
0x1102   :  { %v13146_v56 = vpop.f32.mrb[224].mxu1 }
0x1103   :  { %v13153_v62 = vadd.f32 %v13146_v56, %v13090_v10  ;;  %v16644_v9 = vpop.f32.mrb[225].mxu1 }
0x1104   :  { %v13149_v41 = vpop.f32.mrb[226].mxu1 }
0x1105   :  { %v13154_v18 = vadd.f32 %v13149_v41, %v13091_v31  ;;  %v16645_v11 = vpop.f32.mrb[227].mxu1 }
0x110a   :  { %v13209_v63 = vpop.f32.mrb[228].mxu1 }
0x110b   :  { %v13216_v8 = vadd.f32 %v13209_v63, %v13153_v62  ;;  %v16652_v24 = vpop.f32.mrb[229].mxu1 }
0x110c   :  { %v13212_v2 = vpop.f32.mrb[230].mxu1 }
0x110d   :  { %v13217_v34 = vadd.f32 %v13212_v2, %v13154_v18  ;;  %v16653_v33 = vpop.f32.mrb[231].mxu1 }
0x1112   :  { %v13272_v20 = vpop.f32.mrb[232].mxu1 }
0x1113   :  { %v13279_v42 = vadd.f32 %v13272_v20, %v13216_v8  ;;  %v16660_v21 = vpop.f32.mrb[233].mxu1 }
0x1114   :  { %v13275_v19 = vpop.f32.mrb[234].mxu1 }
0x1115   :  { %v13280_v35 = vadd.f32 %v13275_v19, %v13217_v34  ;;  %v16661_v14 = vpop.f32.mrb[235].mxu1 }
0x1116   :  { %v5757_v32 = vpop.f32.mrb[228].mxu0  ;;  %v14873_v14 = vld [vmem:[#allocation4] ss:$0 sm:$0xff] }
0x1117   :  { %v5759_v51 = vpop.f32.mrb[229].mxu0 }
0x1118   :  { %v5760_v57 = vpop.f32.mrb[230].mxu0 }
0x1119   :  { %v5762_v47 = vpop.f32.mrb[231].mxu0 }
0x111a   :  { %v13335_v44 = vpop.f32.mrb[236].mxu1 }
0x111b   :  { %v13342_v59 = vadd.f32 %v13335_v44, %v13279_v42  ;;  %v16668_v27 = vpop.f32.mrb[237].mxu1 }
0x111c   :  { %v13338_v25 = vpop.f32.mrb[238].mxu1 }
0x111d   :  { %v13343_v29 = vadd.f32 %v13338_v25, %v13280_v35  ;;  %v16669_v4 = vpop.f32.mrb[239].mxu1 }
0x111e   :  { %v5765_v43 = vpop.f32.mrb[232].mxu0 }
0x111f   :  { %v5767_v55 = vpop.f32.mrb[233].mxu0 }
0x1120   :  { %v5768_v10 = vpop.f32.mrb[234].mxu0 }
0x1121   :  { %v5770_v23 = vpop.f32.mrb[235].mxu0 }
0x1122   :  { %v13398_v17 = vpop.f32.mrb[240].mxu1 }
0x1123   :  { %v13405_v36 = vadd.f32 %v13398_v17, %v13342_v59  ;;  %v16676_v38 = vpop.f32.mrb[241].mxu1 }
0x1124   :  { %v13401_v0 = vpop.f32.mrb[242].mxu1 }
0x1125   :  { %v13406_v54 = vadd.f32 %v13401_v0, %v13343_v29  ;;  %v16677_v6 = vpop.f32.mrb[243].mxu1 }
0x112a   :  { %v13461_v1 = vpop.f32.mrb[244].mxu1 }
0x112b   :  { %v13468_v5 = vadd.f32 %v13461_v1, %v13405_v36  ;;  %v16684_v49 = vpop.f32.mrb[245].mxu1 }
0x112c   :  { %v13464_v7 = vpop.f32.mrb[246].mxu1  ;;  %v5773_v53 = vpop.f32.mrb[236].mxu0 }
0x112d   :  { %v13469_v60 = vadd.f32 %v13464_v7, %v13406_v54  ;;  %v16685_v48 = vpop.f32.mrb[247].mxu1  ;;  %v5775_v31 = vpop.f32.mrb[237].mxu0 }
0x112e   :  { %v5776_v45 = vpop.f32.mrb[238].mxu0 }
0x112f   :  { %v5778_v56 = vpop.f32.mrb[239].mxu0 }
0x1132   :  { %v13524_v15 = vpop.f32.mrb[248].mxu1 }
0x1133   :  { %v13531_v39 = vadd.f32 %v13524_v15, %v13468_v5  ;;  %v16692_v50 = vpop.f32.mrb[249].mxu1 }
0x1134   :  { %v13527_v30 = vpop.f32.mrb[250].mxu1  ;;  %v5781_v62 = vpop.f32.mrb[240].mxu0 }
0x1135   :  { %v13532_v16 = vadd.f32 %v13527_v30, %v13469_v60  ;;  %v16693_v61 = vpop.f32.mrb[251].mxu1  ;;  %v5783_v9 = vpop.f32.mrb[241].mxu0 }
0x1136   :  { %v5784_v41 = vpop.f32.mrb[242].mxu0 }
0x1137   :  { %v5786_v18 = vpop.f32.mrb[243].mxu0 }
0x113a   :  { %v13587_v3 = vpop.f32.mrb[252].mxu1 }
0x113b   :  { %v13594_v40 = vadd.f32 %v13587_v3, %v13531_v39  ;;  %v16700_v28 = vpop.f32.mrb[253].mxu1 }
0x113c   :  { %v13590_v12 = vpop.f32.mrb[254].mxu1  ;;  %v5789_v11 = vpop.f32.mrb[244].mxu0 }
0x113d   :  { %v13603_v22 = vadd.f32 %v14872_v58, %v13594_v40  ;;  %v13595_v37 = vadd.f32 %v13590_v12, %v13532_v16  ;;  %v16701_v26 = vpop.f32.mrb[255].mxu1  ;;  %v5791_v63 = vpop.f32.mrb[245].mxu0 }
0x113e   :  { %v5792_v8 = vpop.f32.mrb[246].mxu0 }
0x113f   :  { %v13605_v13 = vmax.f32 %v13603_v22, 0.0  ;;  %v13604_v46 = vadd.f32 %v14872_v58, %v13595_v37  ;;  %v5794_v24 = vpop.f32.mrb[247].mxu0 }
0x1141   :  { %v13606_v52 = vmax.f32 %v13604_v46, 0.0  ;;  %16710 = vmatprep.mubr.msk.f32.mxu1 %vm12613_vm2, %v13605_v13 }
0x1143   :  { %16711 = vmatmul.mubr.msk.f32.vlgmr.msra.gmra.mrb[0].mxu1 %vm12613_vm2, %v13606_v52 }
0x1144   :  { %v5797_v2 = vpop.f32.mrb[248].mxu0 }
0x1145   :  { %v5799_v34 = vpop.f32.mrb[249].mxu0 }
0x1146   :  { %v5800_v33 = vpop.f32.mrb[250].mxu0 }
0x1147   :  { %v5802_v20 = vpop.f32.mrb[251].mxu0 }
0x1198   :  { %v5805_v42 = vpop.f32.mrb[252].mxu0 }
0x1199   :  { %v5807_v21 = vpop.f32.mrb[253].mxu0 }
0x119a   :  { %v5808_v19 = vpop.f32.mrb[254].mxu0 }
0x119b   :  { %v5810_v35 = vpop.f32.mrb[255].mxu0 }
0x1216   :  { %v16712_v44 = vpop.f32.mrb[0].mxu1 }
0x1217   :  { %v13690_v59 = vpop.f32.mrb[1].mxu1  ;;  %v13696_v25 = vadd.f32 %v16712_v44, %v14873_v14 }
0x1218   :  { %v13691_v27 = vadd.f32 %v14873_v14, %v13690_v59 }
0x1219   :  { %v13700_v4 = vmax.f32 %v13696_v25, 0.0 }
0x121a   :  { %v13699_v29 = vmax.f32 %v13691_v27, 0.0 }
0x121c   :  { %13703 = vperm.xlu0 %18066, %v13699_v29  }
0x1220   :  { %13708 = vperm.xlu0 %18066, %v13700_v4  }
0x129b   :  { %v13704_v17 = vpop.permute.xlu0 %13703 }
0x129c   :  { %13711 = vst [vmem:[%s21874_s11] sm:$0xff] %v13704_v17 }
0x129f   :  { %v13709_v36 = vpop.permute.xlu0 %13708 }
0x12a0   :  { %13712 = vst [vmem:[%s21874_s11 + $0x8] sm:$0xff] %v13709_v36 }

</bundles_post_ra>
